<compile_context>
chip_gen: v6e
topology: v6e:2x2x1
jax: 0.10.0
libtpu: 0.0.40
codegen_flags: <defaults>
</compile_context>

<pallas_src>
import math
from functools import partial

import jax
import jax.numpy as jnp
from jax.experimental import pallas as pl
from jax.experimental.pallas import tpu as pltpu


# ----------------------------------------------------------------------------
# Fused per-layer kernel (channels-first: activations are (C, N), N on lanes)
# ----------------------------------------------------------------------------
def layer_kernel(x_ref, col_ref, cw_ref, cb_ref, law_ref, lab_ref, wqkv_ref,
                 wout_ref, bout_ref, lfw_ref, lfb_ref, w1_ref, b1_ref,
                 w2_ref, b2_ref, o_ref, *, heads, dim_head, eps,
                 use_bf16_eup):
    inner = heads * dim_head

    def layer_norm(z, w_ref, b_ref):
        # Module semantics: (x - mean) / (sqrt(var) + eps) * w + b, var over C.
        mean = jnp.mean(z, axis=0, keepdims=True)                  # (1, N)
        var = jnp.mean((z - mean) ** 2, axis=0, keepdims=True)     # (1, N)
        inv = 1.0 / (jnp.sqrt(var) + eps)                          # (1, N) fp32
        return (z - mean) * inv * w_ref[...] + b_ref[...]

    # ---------------- Conv3d(3x3x3, padding=1) + residual -------------------
    x = x_ref[0]                                        # (C, N) f32 residual
    N = x.shape[-1]
    conv = jnp.dot(cw_ref[...], col_ref[0],             # (C,27C)@(27C,N) bf16
                   preferred_element_type=jnp.float32)  # (C, N) f32
    x = conv + cb_ref[...] + x

    # ---------------- GlobalAggr + residual ---------------------------------
    xn = layer_norm(x, law_ref, lab_ref).astype(jnp.bfloat16)      # (C, N)
    # qkv channels-first; q-scale already folded into the weights.
    qkv = jnp.dot(wqkv_ref[...], xn,
                  preferred_element_type=jnp.float32)              # (3*inner, N)

    # TODO(synk): for video-scale N (>~1k) tile this over KV blocks
    # (flash-style online softmax) so the heads*(N,N) scores fit v7x's
    # 64 MiB VMEM; at N = T*H*W = 256 the full score stack is ~1 MiB.
    scores = []
    for h in range(heads):
        qh = qkv[h * dim_head:(h + 1) * dim_head].astype(jnp.bfloat16)
        kh = qkv[inner + h * dim_head:
                 inner + (h + 1) * dim_head].astype(jnp.bfloat16)
        # s[n, m] = sum_d q[d, n] * k[d, m]  (contract dim 0, no transpose)
        scores.append(jax.lax.dot_general(
            qh, kh, (((0,), (0,)), ((), ())),
            preferred_element_type=jnp.float32))                   # (N, N)
    s_all = jnp.concatenate(scores, axis=0)                        # (heads*N, N)

    # Batched softmax across heads (single max/exp/sum/scale pass).
    m = jnp.max(s_all, axis=-1, keepdims=True)
    s_shift = s_all - m
    if use_bf16_eup:
        e = jnp.exp(s_shift.astype(jnp.bfloat16))
        denom = jnp.sum(e, axis=-1, keepdims=True, dtype=jnp.float32)
    else:
        e = jnp.exp(s_shift)
        denom = jnp.sum(e, axis=-1, keepdims=True)
    p = (e * pl.reciprocal(denom, approx=True)).astype(jnp.bfloat16)

    head_rows = []
    for h in range(heads):
        vh = qkv[2 * inner + h * dim_head:
                 2 * inner + (h + 1) * dim_head].astype(jnp.bfloat16)  # (d, N)
        ph = p[h * N:(h + 1) * N]                                      # (N, N)
        # out[d, n] = sum_m v[d, m] * p[n, m]  (channels-first, no transpose)
        head_rows.append(jax.lax.dot_general(
            vh, ph, (((1,), (1,)), ((), ())),
            preferred_element_type=jnp.float32))                       # (d, N)
    attn_cf = jnp.concatenate(head_rows, axis=0).astype(jnp.bfloat16)  # (inner, N)
    y = jnp.dot(wout_ref[...], attn_cf,
                preferred_element_type=jnp.float32)                    # (C, N)
    x = y + bout_ref[...] + x

    # ---------------- FeedForward + residual --------------------------------
    xn = layer_norm(x, lfw_ref, lfb_ref).astype(jnp.bfloat16)
    h1 = jnp.dot(w1_ref[...], xn,
                 preferred_element_type=jnp.float32) + b1_ref[...]     # (hid, N)
    if use_bf16_eup:
        g = jax.nn.gelu(h1.astype(jnp.bfloat16), approximate=True)
    else:
        g = jax.nn.gelu(h1, approximate=True).astype(jnp.bfloat16)
    y = jnp.dot(w2_ref[...], g,
                preferred_element_type=jnp.float32) + b2_ref[...]      # (C, N)
    o_ref[0] = (y + x).astype(o_ref.dtype)


# ----------------------------------------------------------------------------
# Pallas wrapper: one call per layer (grid over batch, channels-first I/O)
# ----------------------------------------------------------------------------
def transformer_layer(x, lp, heads, dim_head, use_bf16_eup):
    """x: (B, C, T, H, W) float32 (NCDHW) -> same shape/layout."""
    B, C, T, H, W = x.shape
    N = T * H * W
    inner = heads * dim_head
    hidden = lp["w1_k"].shape[0]

    # Channels-first lane-dense activation (free reshape of NCDHW).
    x_cn = x.reshape(B, C, N)

    # Channels-first im2col, built by XLA: rows ordered ((kt,kh,kw), Cin).
    # ~0.4 MB/batch bf16 of extra HBM traffic; kernel is not HBM-bound, and it
    # removes both the 27-way in-kernel lane concat and the padded-activation
    # round trip.
    xpad = jnp.pad(x, ((0, 0), (0, 0), (1, 1), (1, 1), (1, 1)))
    cols = [xpad[:, :, dt:dt + T, dh:dh + H, dw:dw + W].reshape(B, C, N)
            for dt in range(3) for dh in range(3) for dw in range(3)]
    im2col = jnp.concatenate(cols, axis=1).astype(jnp.bfloat16)   # (B, 27C, N)

    kernel = partial(layer_kernel, heads=heads, dim_head=dim_head, eps=1e-5,
                     use_bf16_eup=use_bf16_eup)

    # Weights: constant index_map -> same block every grid step (VMEM-resident).
    # (pl.Buffered(1) would drop their second pipeline buffer; at this size the
    #  saving is noise, so default buffering is kept.)
    def resident(shape):
        return pl.BlockSpec(shape, lambda *_: (0,) * len(shape))

    # Re-derived VMEM budget (review): double-buffered activation blocks +
    # resident weights + batched-softmax scratch (~4 MiB here) with headroom.
    blk_bytes = C * N * 4 + 27 * C * N * 2 + C * N * 4
    w_bytes = (27 * C * C + 3 * inner * C + C * inner
               + hidden * C + C * hidden) * 2 + (7 * C + hidden) * 4
    scratch_bytes = 3 * heads * N * N * 4 + 6 * C * N * 4
    vmem_limit = int(min(96 * 2 ** 20,
                         max(16 * 2 ** 20,
                             2 * (2 * blk_bytes + 2 * w_bytes + scratch_bytes))))

    # TODO(synk): for v7x with B == 1, add a second "parallel" grid axis over
    # q-row tiles of N so both TensorCores are occupied.
    out = pl.pallas_call(
        kernel,
        out_shape=jax.ShapeDtypeStruct((B, C, N), x.dtype),
        grid=(B,),
        in_specs=[
            pl.BlockSpec((1, C, N), lambda i: (i, 0, 0)),        # x (C,N) f32
            pl.BlockSpec((1, 27 * C, N), lambda i: (i, 0, 0)),   # im2col bf16
            resident((C, 27 * C)),                               # conv weight
            resident((C, 1)),                                    # conv bias
            resident((C, 1)),                                    # ln_attn w
            resident((C, 1)),                                    # ln_attn b
            resident((3 * inner, C)),                            # wqkv (q scaled)
            resident((C, inner)),                                # wout
            resident((C, 1)),                                    # bout
            resident((C, 1)),                                    # ln_ff w
            resident((C, 1)),                                    # ln_ff b
            resident((hidden, C)),                               # w1
            resident((hidden, 1)),                               # b1
            resident((C, hidden)),                               # w2
            resident((C, 1)),                                    # b2
        ],
        out_specs=pl.BlockSpec((1, C, N), lambda i: (i, 0, 0)),  # (C,N) lane-dense
        compiler_params=pltpu.CompilerParams(
            dimension_semantics=("parallel",),
            vmem_limit_bytes=vmem_limit),
    )(x_cn, im2col, lp["conv_w_k"], lp["conv_b_k"], lp["ln_attn_w_k"],
      lp["ln_attn_b_k"], lp["wqkv_k"], lp["wout_k"], lp["bout_k"],
      lp["ln_ff_w_k"], lp["ln_ff_b_k"], lp["w1_k"], lp["b1_k"],
      lp["w2_k"], lp["b2_k"])
    return out.reshape(B, C, T, H, W)


def transformer_forward(x_ncdhw, layers, heads, dim_head, use_bf16_eup=False):
    """Accepts / returns PyTorch NCDHW layout (no transposes needed)."""
    x = x_ncdhw
    for lp in layers:
        x = transformer_layer(x, lp, heads, dim_head, use_bf16_eup)
    return x


def _bf16_eup_ok():
    """bf16 exp/gelu only where the VPU/EUP has native bf16 (v6e / v7x)."""
    try:
        kind = jax.devices()[0].device_kind.lower()
    except Exception:
        return False
    return ("v6" in kind) or ("v7" in kind)


# ----------------------------------------------------------------------------
# Parameters (deterministic synthetic init, PyTorch weight conventions)
# ----------------------------------------------------------------------------
def init_layer_params(key, dim, heads, dim_head, ff_mult):
    inner = heads * dim_head
    hidden = dim * ff_mult
    ks = jax.random.split(key, 8)
    s = 0.05
    p = {
        # Conv3d(dim, dim, 3, padding=1): (Cout, Cin, 3, 3, 3), bias (Cout,)
        "conv_w": jax.random.normal(ks[0], (dim, dim, 3, 3, 3), jnp.float32) * s,
        "conv_b": jax.random.normal(ks[1], (dim,), jnp.float32) * s,
        # GlobalAggr
        "ln_attn_w": jnp.ones((dim,), jnp.float32),
        "ln_attn_b": jnp.zeros((dim,), jnp.float32),
        "wqkv": jax.random.normal(ks[2], (3 * inner, dim), jnp.float32) * s,
        "wout": jax.random.normal(ks[3], (dim, inner), jnp.float32) * s,
        "bout": jax.random.normal(ks[4], (dim,), jnp.float32) * s,
        # FeedForward
        "ln_ff_w": jnp.ones((dim,), jnp.float32),
        "ln_ff_b": jnp.zeros((dim,), jnp.float32),
        "w1": jax.random.normal(ks[5], (hidden, dim), jnp.float32) * s,
        "b1": jax.random.normal(ks[6], (hidden,), jnp.float32) * s,
        "w2": jax.random.normal(ks[7], (dim, hidden), jnp.float32) * s,
        "b2": jnp.zeros((dim,), jnp.float32),
    }
    # Kernel-layout (channels-first) views --------------------------------
    # Conv as one channels-first im2col matmul: (Cout, (kt,kh,kw,Cin)).
    p["conv_w_k"] = (jnp.transpose(p["conv_w"], (0, 2, 3, 4, 1))
                     .reshape(dim, 27 * dim).astype(jnp.bfloat16))
    p["conv_b_k"] = p["conv_b"].reshape(dim, 1)
    p["ln_attn_w_k"] = p["ln_attn_w"].reshape(dim, 1)
    p["ln_attn_b_k"] = p["ln_attn_b"].reshape(dim, 1)
    # qkv stays channels-first (3*inner, dim); fold q scale into the weights.
    qscale = jnp.concatenate(
        [jnp.full((inner, 1), dim_head ** (-0.5), jnp.float32),
         jnp.ones((2 * inner, 1), jnp.float32)], axis=0)
    p["wqkv_k"] = (p["wqkv"] * qscale).astype(jnp.bfloat16)
    p["wout_k"] = p["wout"].astype(jnp.bfloat16)           # (dim, inner)
    p["bout_k"] = p["bout"].reshape(dim, 1)
    p["ln_ff_w_k"] = p["ln_ff_w"].reshape(dim, 1)
    p["ln_ff_b_k"] = p["ln_ff_b"].reshape(dim, 1)
    p["w1_k"] = p["w1"].astype(jnp.bfloat16)                # (hidden, dim)
    p["b1_k"] = p["b1"].reshape(hidden, 1)
    p["w2_k"] = p["w2"].astype(jnp.bfloat16)                # (dim, hidden)
    p["b2_k"] = p["b2"].reshape(dim, 1)
    return p


def init_params(key, dim, depth, heads, dim_head, ff_mult):
    return [init_layer_params(jax.random.fold_in(key, d), dim, heads, dim_head,
                              ff_mult) for d in range(depth)]


# ----------------------------------------------------------------------------
# Pure-JAX reference mirroring the PyTorch forward (fp32, for the check)
# ----------------------------------------------------------------------------
def ref_forward(x, layers, heads, dim_head):
    eps = 1e-5
    scale = dim_head ** (-0.5)
    B, C, T, H, W = x.shape

    def ln(z, w, b):
        mean = z.mean(axis=1, keepdims=True)
        var = ((z - mean) ** 2).mean(axis=1, keepdims=True)
        return ((z - mean) / (jnp.sqrt(var) + eps)
                * w[None, :, None, None, None] + b[None, :, None, None, None])

    for lp in layers:
        xc = jax.lax.conv_general_dilated(
            x, lp["conv_w"], window_strides=(1, 1, 1),
            padding=((1, 1), (1, 1), (1, 1)),
            dimension_numbers=("NCDHW", "OIDHW", "NCDHW"))
        x = xc + lp["conv_b"][None, :, None, None, None] + x

        xn = ln(x, lp["ln_attn_w"], lp["ln_attn_b"])
        xf = xn.reshape(B, C, -1)                                   # (B, C, N)
        qkv = jnp.einsum("oc,bcn->bon", lp["wqkv"], xf)
        qkv = jnp.swapaxes(qkv.reshape(B, 3, heads, C // heads, -1), -2, -1)
        q, k, v = qkv[:, 0], qkv[:, 1], qkv[:, 2]
        q = q * scale
        attn = jax.nn.softmax(jnp.einsum("bhnd,bhmd->bhnm", q, k), axis=-1)
        out = jnp.einsum("bhnm,bhmd->bhnd", attn, v)
        out = jnp.swapaxes(out, -2, -1).reshape(B, C, -1)
        out = jnp.einsum("oc,bcn->bon", lp["wout"], out) + lp["bout"][None, :, None]
        x = out.reshape(B, C, T, H, W) + x

        xn = ln(x, lp["ln_ff_w"], lp["ln_ff_b"]).reshape(B, C, -1)
        h1 = jnp.einsum("oc,bcn->bon", lp["w1"], xn) + lp["b1"][None, :, None]
        g = 0.5 * h1 * (1.0 + jax.lax.erf(h1 / math.sqrt(2.0)))
        y = jnp.einsum("oc,bcn->bon", lp["w2"], g) + lp["b2"][None, :, None]
        x = y.reshape(B, C, T, H, W) + x
    return x


# ----------------------------------------------------------------------------
if __name__ == "__main__":
    key = jax.random.PRNGKey(0)
    B, C, T, H, W = 2, 32, 4, 8, 8
    depth, heads, ff_mult = 2, 4, 4
    # The module's qkv reshape implicitly requires inner_dim == dim:
    dim_head = C // heads

    kx, kp = jax.random.split(key)
    x = jax.random.normal(kx, (B, C, T, H, W), jnp.float32)
    layers = init_params(kp, C, depth, heads, dim_head, ff_mult)

    use_bf16_eup = _bf16_eup_ok()
    fwd = jax.jit(partial(transformer_forward, heads=heads, dim_head=dim_head,
                          use_bf16_eup=use_bf16_eup))
    out = jax.block_until_ready(fwd(x, layers))
    assert out.shape == x.shape and out.dtype == x.dtype

    ref = ref_forward(x, layers, heads, dim_head)
    err = float(jnp.max(jnp.abs(out - ref)) / (jnp.max(jnp.abs(ref)) + 1e-6))
    assert err < 2e-2, f"kernel/reference mismatch: rel err {err}"

    print("KERNEL_OK")
</pallas_src>

<mosaic_0001>
module attributes {stable_mosaic.version = 11 : i64} {
  func.func @layer_kernel(%arg0: i32, %arg1: memref<1x32x256xf32, #tpu.memory_space<vmem>>, %arg2: memref<1x864x256xbf16, #tpu.memory_space<vmem>>, %arg3: memref<32x864xbf16, #tpu.memory_space<vmem>>, %arg4: memref<32x1xf32, #tpu.memory_space<vmem>>, %arg5: memref<32x1xf32, #tpu.memory_space<vmem>>, %arg6: memref<32x1xf32, #tpu.memory_space<vmem>>, %arg7: memref<96x32xbf16, #tpu.memory_space<vmem>>, %arg8: memref<32x32xbf16, #tpu.memory_space<vmem>>, %arg9: memref<32x1xf32, #tpu.memory_space<vmem>>, %arg10: memref<32x1xf32, #tpu.memory_space<vmem>>, %arg11: memref<32x1xf32, #tpu.memory_space<vmem>>, %arg12: memref<128x32xbf16, #tpu.memory_space<vmem>>, %arg13: memref<128x1xf32, #tpu.memory_space<vmem>>, %arg14: memref<32x128xbf16, #tpu.memory_space<vmem>>, %arg15: memref<32x1xf32, #tpu.memory_space<vmem>>, %arg16: memref<1x32x256xf32, #tpu.memory_space<vmem>>) attributes {dimension_semantics = [#tpu.dimension_semantics<parallel>], iteration_bounds = array<i64: 2>, scalar_prefetch = 0 : i64, scratch_operands = 0 : i64, tpu.core_type = #tpu.core_type<tc>, window_params = [{transform_indices = @transform_0, window_bounds = array<i64: 1, 32, 256>}, {transform_indices = @transform_1, window_bounds = array<i64: 1, 864, 256>}, {pipeline_mode = #tpu.pipeline_mode<synchronous>, transform_indices = @transform_2, window_bounds = array<i64: 32, 864>}, {pipeline_mode = #tpu.pipeline_mode<synchronous>, transform_indices = @transform_3, window_bounds = array<i64: 32, 1>}, {pipeline_mode = #tpu.pipeline_mode<synchronous>, transform_indices = @transform_4, window_bounds = array<i64: 32, 1>}, {pipeline_mode = #tpu.pipeline_mode<synchronous>, transform_indices = @transform_5, window_bounds = array<i64: 32, 1>}, {pipeline_mode = #tpu.pipeline_mode<synchronous>, transform_indices = @transform_6, window_bounds = array<i64: 96, 32>}, {pipeline_mode = #tpu.pipeline_mode<synchronous>, transform_indices = @transform_7, window_bounds = array<i64: 32, 32>}, {pipeline_mode = #tpu.pipeline_mode<synchronous>, transform_indices = @transform_8, window_bounds = array<i64: 32, 1>}, {pipeline_mode = #tpu.pipeline_mode<synchronous>, transform_indices = @transform_9, window_bounds = array<i64: 32, 1>}, {pipeline_mode = #tpu.pipeline_mode<synchronous>, transform_indices = @transform_10, window_bounds = array<i64: 32, 1>}, {pipeline_mode = #tpu.pipeline_mode<synchronous>, transform_indices = @transform_11, window_bounds = array<i64: 128, 32>}, {pipeline_mode = #tpu.pipeline_mode<synchronous>, transform_indices = @transform_12, window_bounds = array<i64: 128, 1>}, {pipeline_mode = #tpu.pipeline_mode<synchronous>, transform_indices = @transform_13, window_bounds = array<i64: 32, 128>}, {pipeline_mode = #tpu.pipeline_mode<synchronous>, transform_indices = @transform_14, window_bounds = array<i64: 32, 1>}, {transform_indices = @transform_15, window_bounds = array<i64: 1, 32, 256>}]} {
    %c0 = arith.constant 0 : index
    %c0_0 = arith.constant 0 : index
    %c0_1 = arith.constant 0 : index
    %0 = vector.load %arg1[%c0, %c0_0, %c0_1] : memref<1x32x256xf32, #tpu.memory_space<vmem>>, vector<1x32x256xf32>
    %1 = vector.shape_cast %0 : vector<1x32x256xf32> to vector<32x256xf32>
    %c0_2 = arith.constant 0 : index
    %c0_3 = arith.constant 0 : index
    %2 = vector.load %arg3[%c0_2, %c0_3] : memref<32x864xbf16, #tpu.memory_space<vmem>>, vector<32x864xbf16>
    %c0_4 = arith.constant 0 : index
    %c0_5 = arith.constant 0 : index
    %c0_6 = arith.constant 0 : index
    %3 = vector.load %arg2[%c0_4, %c0_5, %c0_6] : memref<1x864x256xbf16, #tpu.memory_space<vmem>>, vector<1x864x256xbf16>
    %4 = vector.shape_cast %3 : vector<1x864x256xbf16> to vector<864x256xbf16>
    %cst = arith.constant dense<0.000000e+00> : vector<32x256xf32>
    %5 = tpu.matmul %2, %4, %cst {dimension_numbers = #tpu.dot_dimension_numbers<[1], [0], [0], [1], [0, 0, 1, 1], [], []>} : vector<32x864xbf16>, vector<864x256xbf16>, vector<32x256xf32> -> vector<32x256xf32>
    %c0_7 = arith.constant 0 : index
    %c0_8 = arith.constant 0 : index
    %6 = vector.load %arg4[%c0_7, %c0_8] : memref<32x1xf32, #tpu.memory_space<vmem>>, vector<32x1xf32>
    %7 = vector.broadcast %6 : vector<32x1xf32> to vector<32x256xf32>
    %8 = arith.addf %5, %7 : vector<32x256xf32>
    %9 = arith.addf %8, %1 : vector<32x256xf32>
    %cst_9 = arith.constant dense<0.000000e+00> : vector<256xf32>
    %10 = vector.multi_reduction <add>, %9, %cst_9 [0] : vector<32x256xf32> to vector<256xf32>
    %11 = vector.shape_cast %10 : vector<256xf32> to vector<1x256xf32>
    %cst_10 = arith.constant 3.200000e+01 : f32
    %12 = vector.broadcast %cst_10 : f32 to vector<1x256xf32>
    %13 = arith.divf %11, %12 : vector<1x256xf32>
    %14 = vector.broadcast %13 : vector<1x256xf32> to vector<32x256xf32>
    %15 = arith.subf %9, %14 : vector<32x256xf32>
    %16 = arith.mulf %15, %15 : vector<32x256xf32>
    %cst_11 = arith.constant dense<0.000000e+00> : vector<256xf32>
    %17 = vector.multi_reduction <add>, %16, %cst_11 [0] : vector<32x256xf32> to vector<256xf32>
    %18 = vector.shape_cast %17 : vector<256xf32> to vector<1x256xf32>
    %cst_12 = arith.constant 3.200000e+01 : f32
    %19 = vector.broadcast %cst_12 : f32 to vector<1x256xf32>
    %20 = arith.divf %18, %19 : vector<1x256xf32>
    %21 = math.sqrt %20 : vector<1x256xf32>
    %cst_13 = arith.constant 9.99999974E-6 : f32
    %22 = vector.broadcast %cst_13 : f32 to vector<1x256xf32>
    %23 = arith.addf %21, %22 : vector<1x256xf32>
    %cst_14 = arith.constant 1.000000e+00 : f32
    %24 = vector.broadcast %cst_14 : f32 to vector<1x256xf32>
    %25 = arith.divf %24, %23 : vector<1x256xf32>
    %26 = vector.broadcast %13 : vector<1x256xf32> to vector<32x256xf32>
    %27 = arith.subf %9, %26 : vector<32x256xf32>
    %28 = vector.broadcast %25 : vector<1x256xf32> to vector<32x256xf32>
    %29 = arith.mulf %27, %28 : vector<32x256xf32>
    %c0_15 = arith.constant 0 : index
    %c0_16 = arith.constant 0 : index
    %30 = vector.load %arg5[%c0_15, %c0_16] : memref<32x1xf32, #tpu.memory_space<vmem>>, vector<32x1xf32>
    %31 = vector.broadcast %30 : vector<32x1xf32> to vector<32x256xf32>
    %32 = arith.mulf %29, %31 : vector<32x256xf32>
    %c0_17 = arith.constant 0 : index
    %c0_18 = arith.constant 0 : index
    %33 = vector.load %arg6[%c0_17, %c0_18] : memref<32x1xf32, #tpu.memory_space<vmem>>, vector<32x1xf32>
    %34 = vector.broadcast %33 : vector<32x1xf32> to vector<32x256xf32>
    %35 = arith.addf %32, %34 : vector<32x256xf32>
    %36 = arith.truncf %35 : vector<32x256xf32> to vector<32x256xbf16>
    %c0_19 = arith.constant 0 : index
    %c0_20 = arith.constant 0 : index
    %37 = vector.load %arg7[%c0_19, %c0_20] : memref<96x32xbf16, #tpu.memory_space<vmem>>, vector<96x32xbf16>
    %cst_21 = arith.constant dense<0.000000e+00> : vector<96x256xf32>
    %38 = tpu.matmul %37, %36, %cst_21 {dimension_numbers = #tpu.dot_dimension_numbers<[1], [0], [0], [1], [0, 0, 1, 1], [], []>} : vector<96x32xbf16>, vector<32x256xbf16>, vector<96x256xf32> -> vector<96x256xf32>
    %39 = vector.extract_strided_slice %38 {offsets = [0, 0], sizes = [8, 256], strides = [1, 1]} : vector<96x256xf32> to vector<8x256xf32>
    %40 = arith.truncf %39 : vector<8x256xf32> to vector<8x256xbf16>
    %41 = vector.extract_strided_slice %38 {offsets = [32, 0], sizes = [8, 256], strides = [1, 1]} : vector<96x256xf32> to vector<8x256xf32>
    %42 = arith.truncf %41 : vector<8x256xf32> to vector<8x256xbf16>
    %cst_22 = arith.constant dense<0.000000e+00> : vector<256x256xf32>
    %43 = tpu.matmul %40, %42, %cst_22 {dimension_numbers = #tpu.dot_dimension_numbers<[0], [0], [1], [1], [0, 1, 1, 1], [], []>} : vector<8x256xbf16>, vector<8x256xbf16>, vector<256x256xf32> -> vector<256x256xf32>
    %44 = vector.extract_strided_slice %38 {offsets = [8, 0], sizes = [8, 256], strides = [1, 1]} : vector<96x256xf32> to vector<8x256xf32>
    %45 = arith.truncf %44 : vector<8x256xf32> to vector<8x256xbf16>
    %46 = vector.extract_strided_slice %38 {offsets = [40, 0], sizes = [8, 256], strides = [1, 1]} : vector<96x256xf32> to vector<8x256xf32>
    %47 = arith.truncf %46 : vector<8x256xf32> to vector<8x256xbf16>
    %cst_23 = arith.constant dense<0.000000e+00> : vector<256x256xf32>
    %48 = tpu.matmul %45, %47, %cst_23 {dimension_numbers = #tpu.dot_dimension_numbers<[0], [0], [1], [1], [0, 1, 1, 1], [], []>} : vector<8x256xbf16>, vector<8x256xbf16>, vector<256x256xf32> -> vector<256x256xf32>
    %49 = vector.extract_strided_slice %38 {offsets = [16, 0], sizes = [8, 256], strides = [1, 1]} : vector<96x256xf32> to vector<8x256xf32>
    %50 = arith.truncf %49 : vector<8x256xf32> to vector<8x256xbf16>
    %51 = vector.extract_strided_slice %38 {offsets = [48, 0], sizes = [8, 256], strides = [1, 1]} : vector<96x256xf32> to vector<8x256xf32>
    %52 = arith.truncf %51 : vector<8x256xf32> to vector<8x256xbf16>
    %cst_24 = arith.constant dense<0.000000e+00> : vector<256x256xf32>
    %53 = tpu.matmul %50, %52, %cst_24 {dimension_numbers = #tpu.dot_dimension_numbers<[0], [0], [1], [1], [0, 1, 1, 1], [], []>} : vector<8x256xbf16>, vector<8x256xbf16>, vector<256x256xf32> -> vector<256x256xf32>
    %54 = vector.extract_strided_slice %38 {offsets = [24, 0], sizes = [8, 256], strides = [1, 1]} : vector<96x256xf32> to vector<8x256xf32>
    %55 = arith.truncf %54 : vector<8x256xf32> to vector<8x256xbf16>
    %56 = vector.extract_strided_slice %38 {offsets = [56, 0], sizes = [8, 256], strides = [1, 1]} : vector<96x256xf32> to vector<8x256xf32>
    %57 = arith.truncf %56 : vector<8x256xf32> to vector<8x256xbf16>
    %cst_25 = arith.constant dense<0.000000e+00> : vector<256x256xf32>
    %58 = tpu.matmul %55, %57, %cst_25 {dimension_numbers = #tpu.dot_dimension_numbers<[0], [0], [1], [1], [0, 1, 1, 1], [], []>} : vector<8x256xbf16>, vector<8x256xbf16>, vector<256x256xf32> -> vector<256x256xf32>
    %59 = tpu.concatenate %43, %48, %53, %58 in 0 : vector<256x256xf32>, vector<256x256xf32>, vector<256x256xf32>, vector<256x256xf32> -> vector<1024x256xf32>
    %cst_26 = arith.constant dense<0xFF800000> : vector<1024xf32>
    %60 = vector.multi_reduction <maximumf>, %59, %cst_26 [1] : vector<1024x256xf32> to vector<1024xf32>
    %61 = vector.shape_cast %60 : vector<1024xf32> to vector<1024x1xf32>
    %62 = vector.broadcast %61 : vector<1024x1xf32> to vector<1024x256xf32>
    %63 = arith.subf %59, %62 : vector<1024x256xf32>
    %64 = math.exp %63 : vector<1024x256xf32>
    %cst_27 = arith.constant dense<0.000000e+00> : vector<1024xf32>
    %65 = vector.multi_reduction <add>, %64, %cst_27 [1] : vector<1024x256xf32> to vector<1024xf32>
    %66 = vector.shape_cast %65 : vector<1024xf32> to vector<1024x1xf32>
    %67 = tpu.reciprocal %66 {approx = true} : vector<1024x1xf32> -> vector<1024x1xf32>
    %68 = vector.broadcast %67 : vector<1024x1xf32> to vector<1024x256xf32>
    %69 = arith.mulf %64, %68 : vector<1024x256xf32>
    %70 = arith.truncf %69 : vector<1024x256xf32> to vector<1024x256xbf16>
    %71 = vector.extract_strided_slice %38 {offsets = [64, 0], sizes = [8, 256], strides = [1, 1]} : vector<96x256xf32> to vector<8x256xf32>
    %72 = arith.truncf %71 : vector<8x256xf32> to vector<8x256xbf16>
    %73 = vector.extract_strided_slice %70 {offsets = [0, 0], sizes = [256, 256], strides = [1, 1]} : vector<1024x256xbf16> to vector<256x256xbf16>
    %cst_28 = arith.constant dense<0.000000e+00> : vector<8x256xf32>
    %74 = tpu.matmul %72, %73, %cst_28 {dimension_numbers = #tpu.dot_dimension_numbers<[1], [1], [0], [0], [0, 0, 1, 0], [], []>} : vector<8x256xbf16>, vector<256x256xbf16>, vector<8x256xf32> -> vector<8x256xf32>
    %75 = vector.extract_strided_slice %38 {offsets = [72, 0], sizes = [8, 256], strides = [1, 1]} : vector<96x256xf32> to vector<8x256xf32>
    %76 = arith.truncf %75 : vector<8x256xf32> to vector<8x256xbf16>
    %77 = vector.extract_strided_slice %70 {offsets = [256, 0], sizes = [256, 256], strides = [1, 1]} : vector<1024x256xbf16> to vector<256x256xbf16>
    %cst_29 = arith.constant dense<0.000000e+00> : vector<8x256xf32>
    %78 = tpu.matmul %76, %77, %cst_29 {dimension_numbers = #tpu.dot_dimension_numbers<[1], [1], [0], [0], [0, 0, 1, 0], [], []>} : vector<8x256xbf16>, vector<256x256xbf16>, vector<8x256xf32> -> vector<8x256xf32>
    %79 = vector.extract_strided_slice %38 {offsets = [80, 0], sizes = [8, 256], strides = [1, 1]} : vector<96x256xf32> to vector<8x256xf32>
    %80 = arith.truncf %79 : vector<8x256xf32> to vector<8x256xbf16>
    %81 = vector.extract_strided_slice %70 {offsets = [512, 0], sizes = [256, 256], strides = [1, 1]} : vector<1024x256xbf16> to vector<256x256xbf16>
    %cst_30 = arith.constant dense<0.000000e+00> : vector<8x256xf32>
    %82 = tpu.matmul %80, %81, %cst_30 {dimension_numbers = #tpu.dot_dimension_numbers<[1], [1], [0], [0], [0, 0, 1, 0], [], []>} : vector<8x256xbf16>, vector<256x256xbf16>, vector<8x256xf32> -> vector<8x256xf32>
    %83 = vector.extract_strided_slice %38 {offsets = [88, 0], sizes = [8, 256], strides = [1, 1]} : vector<96x256xf32> to vector<8x256xf32>
    %84 = arith.truncf %83 : vector<8x256xf32> to vector<8x256xbf16>
    %85 = vector.extract_strided_slice %70 {offsets = [768, 0], sizes = [256, 256], strides = [1, 1]} : vector<1024x256xbf16> to vector<256x256xbf16>
    %cst_31 = arith.constant dense<0.000000e+00> : vector<8x256xf32>
    %86 = tpu.matmul %84, %85, %cst_31 {dimension_numbers = #tpu.dot_dimension_numbers<[1], [1], [0], [0], [0, 0, 1, 0], [], []>} : vector<8x256xbf16>, vector<256x256xbf16>, vector<8x256xf32> -> vector<8x256xf32>
    %87 = tpu.concatenate %74, %78, %82, %86 in 0 : vector<8x256xf32>, vector<8x256xf32>, vector<8x256xf32>, vector<8x256xf32> -> vector<32x256xf32>
    %88 = arith.truncf %87 : vector<32x256xf32> to vector<32x256xbf16>
    %c0_32 = arith.constant 0 : index
    %c0_33 = arith.constant 0 : index
    %89 = vector.load %arg8[%c0_32, %c0_33] : memref<32x32xbf16, #tpu.memory_space<vmem>>, vector<32x32xbf16>
    %cst_34 = arith.constant dense<0.000000e+00> : vector<32x256xf32>
    %90 = tpu.matmul %89, %88, %cst_34 {dimension_numbers = #tpu.dot_dimension_numbers<[1], [0], [0], [1], [0, 0, 1, 1], [], []>} : vector<32x32xbf16>, vector<32x256xbf16>, vector<32x256xf32> -> vector<32x256xf32>
    %c0_35 = arith.constant 0 : index
    %c0_36 = arith.constant 0 : index
    %91 = vector.load %arg9[%c0_35, %c0_36] : memref<32x1xf32, #tpu.memory_space<vmem>>, vector<32x1xf32>
    %92 = vector.broadcast %91 : vector<32x1xf32> to vector<32x256xf32>
    %93 = arith.addf %90, %92 : vector<32x256xf32>
    %94 = arith.addf %93, %9 : vector<32x256xf32>
    %cst_37 = arith.constant dense<0.000000e+00> : vector<256xf32>
    %95 = vector.multi_reduction <add>, %94, %cst_37 [0] : vector<32x256xf32> to vector<256xf32>
    %96 = vector.shape_cast %95 : vector<256xf32> to vector<1x256xf32>
    %cst_38 = arith.constant 3.200000e+01 : f32
    %97 = vector.broadcast %cst_38 : f32 to vector<1x256xf32>
    %98 = arith.divf %96, %97 : vector<1x256xf32>
    %99 = vector.broadcast %98 : vector<1x256xf32> to vector<32x256xf32>
    %100 = arith.subf %94, %99 : vector<32x256xf32>
    %101 = arith.mulf %100, %100 : vector<32x256xf32>
    %cst_39 = arith.constant dense<0.000000e+00> : vector<256xf32>
    %102 = vector.multi_reduction <add>, %101, %cst_39 [0] : vector<32x256xf32> to vector<256xf32>
    %103 = vector.shape_cast %102 : vector<256xf32> to vector<1x256xf32>
    %cst_40 = arith.constant 3.200000e+01 : f32
    %104 = vector.broadcast %cst_40 : f32 to vector<1x256xf32>
    %105 = arith.divf %103, %104 : vector<1x256xf32>
    %106 = math.sqrt %105 : vector<1x256xf32>
    %cst_41 = arith.constant 9.99999974E-6 : f32
    %107 = vector.broadcast %cst_41 : f32 to vector<1x256xf32>
    %108 = arith.addf %106, %107 : vector<1x256xf32>
    %cst_42 = arith.constant 1.000000e+00 : f32
    %109 = vector.broadcast %cst_42 : f32 to vector<1x256xf32>
    %110 = arith.divf %109, %108 : vector<1x256xf32>
    %111 = vector.broadcast %98 : vector<1x256xf32> to vector<32x256xf32>
    %112 = arith.subf %94, %111 : vector<32x256xf32>
    %113 = vector.broadcast %110 : vector<1x256xf32> to vector<32x256xf32>
    %114 = arith.mulf %112, %113 : vector<32x256xf32>
    %c0_43 = arith.constant 0 : index
    %c0_44 = arith.constant 0 : index
    %115 = vector.load %arg10[%c0_43, %c0_44] : memref<32x1xf32, #tpu.memory_space<vmem>>, vector<32x1xf32>
    %116 = vector.broadcast %115 : vector<32x1xf32> to vector<32x256xf32>
    %117 = arith.mulf %114, %116 : vector<32x256xf32>
    %c0_45 = arith.constant 0 : index
    %c0_46 = arith.constant 0 : index
    %118 = vector.load %arg11[%c0_45, %c0_46] : memref<32x1xf32, #tpu.memory_space<vmem>>, vector<32x1xf32>
    %119 = vector.broadcast %118 : vector<32x1xf32> to vector<32x256xf32>
    %120 = arith.addf %117, %119 : vector<32x256xf32>
    %121 = arith.truncf %120 : vector<32x256xf32> to vector<32x256xbf16>
    %c0_47 = arith.constant 0 : index
    %c0_48 = arith.constant 0 : index
    %122 = vector.load %arg12[%c0_47, %c0_48] : memref<128x32xbf16, #tpu.memory_space<vmem>>, vector<128x32xbf16>
    %cst_49 = arith.constant dense<0.000000e+00> : vector<128x256xf32>
    %123 = tpu.matmul %122, %121, %cst_49 {dimension_numbers = #tpu.dot_dimension_numbers<[1], [0], [0], [1], [0, 0, 1, 1], [], []>} : vector<128x32xbf16>, vector<32x256xbf16>, vector<128x256xf32> -> vector<128x256xf32>
    %c0_50 = arith.constant 0 : index
    %c0_51 = arith.constant 0 : index
    %124 = vector.load %arg13[%c0_50, %c0_51] : memref<128x1xf32, #tpu.memory_space<vmem>>, vector<128x1xf32>
    %125 = vector.broadcast %124 : vector<128x1xf32> to vector<128x256xf32>
    %126 = arith.addf %123, %125 : vector<128x256xf32>
    %127 = arith.mulf %126, %126 : vector<128x256xf32>
    %128 = arith.mulf %126, %127 : vector<128x256xf32>
    %cst_52 = arith.constant 4.471500e-02 : f32
    %129 = vector.broadcast %cst_52 : f32 to vector<128x256xf32>
    %130 = arith.mulf %129, %128 : vector<128x256xf32>
    %131 = arith.addf %126, %130 : vector<128x256xf32>
    %cst_53 = arith.constant 0.797884583 : f32
    %132 = vector.broadcast %cst_53 : f32 to vector<128x256xf32>
    %133 = arith.mulf %132, %131 : vector<128x256xf32>
    %134 = math.tanh %133 : vector<128x256xf32>
    %cst_54 = arith.constant 1.000000e+00 : f32
    %135 = vector.broadcast %cst_54 : f32 to vector<128x256xf32>
    %136 = arith.addf %135, %134 : vector<128x256xf32>
    %cst_55 = arith.constant 5.000000e-01 : f32
    %137 = vector.broadcast %cst_55 : f32 to vector<128x256xf32>
    %138 = arith.mulf %137, %136 : vector<128x256xf32>
    %139 = arith.mulf %126, %138 : vector<128x256xf32>
    %140 = arith.truncf %139 : vector<128x256xf32> to vector<128x256xbf16>
    %c0_56 = arith.constant 0 : index
    %c0_57 = arith.constant 0 : index
    %141 = vector.load %arg14[%c0_56, %c0_57] : memref<32x128xbf16, #tpu.memory_space<vmem>>, vector<32x128xbf16>
    %cst_58 = arith.constant dense<0.000000e+00> : vector<32x256xf32>
    %142 = tpu.matmul %141, %140, %cst_58 {dimension_numbers = #tpu.dot_dimension_numbers<[1], [0], [0], [1], [0, 0, 1, 1], [], []>} : vector<32x128xbf16>, vector<128x256xbf16>, vector<32x256xf32> -> vector<32x256xf32>
    %c0_59 = arith.constant 0 : index
    %c0_60 = arith.constant 0 : index
    %143 = vector.load %arg15[%c0_59, %c0_60] : memref<32x1xf32, #tpu.memory_space<vmem>>, vector<32x1xf32>
    %144 = vector.broadcast %143 : vector<32x1xf32> to vector<32x256xf32>
    %145 = arith.addf %142, %144 : vector<32x256xf32>
    %146 = arith.addf %145, %94 : vector<32x256xf32>
    %c0_61 = arith.constant 0 : index
    %c0_62 = arith.constant 0 : index
    %c0_63 = arith.constant 0 : index
    %147 = vector.load %arg16[%c0_61, %c0_62, %c0_63] : memref<1x32x256xf32, #tpu.memory_space<vmem>>, vector<1x32x256xf32>
    %148 = vector.shape_cast %147 : vector<1x32x256xf32> to vector<32x256xf32>
    %149 = vector.shape_cast %146 : vector<32x256xf32> to vector<1x32x256xf32>
    tpu.vector_store %arg16[%c0_61, %c0_62, %c0_63], %149 {strides = array<i32>} : memref<1x32x256xf32, #tpu.memory_space<vmem>>, vector<1x32x256xf32>,
    return
  }
  func.func @transform_0(%arg0: i32) -> (i32, i32, i32) {
    %c0_i32 = arith.constant 0 : i32
    %c0_i32_0 = arith.constant 0 : i32
    %c0_i32_1 = arith.constant 0 : i32
    return %arg0, %c0_i32, %c0_i32_0 : i32, i32, i32
  }
  func.func @transform_1(%arg0: i32) -> (i32, i32, i32) {
    %c0_i32 = arith.constant 0 : i32
    %c0_i32_0 = arith.constant 0 : i32
    %c0_i32_1 = arith.constant 0 : i32
    return %arg0, %c0_i32, %c0_i32_0 : i32, i32, i32
  }
  func.func @transform_2(%arg0: i32) -> (i32, i32) {
    %c0_i32 = arith.constant 0 : i32
    %c0_i32_0 = arith.constant 0 : i32
    %c0_i32_1 = arith.constant 0 : i32
    return %c0_i32, %c0_i32_0 : i32, i32
  }
  func.func @transform_3(%arg0: i32) -> (i32, i32) {
    %c0_i32 = arith.constant 0 : i32
    %c0_i32_0 = arith.constant 0 : i32
    %c0_i32_1 = arith.constant 0 : i32
    return %c0_i32, %c0_i32_0 : i32, i32
  }
  func.func @transform_4(%arg0: i32) -> (i32, i32) {
    %c0_i32 = arith.constant 0 : i32
    %c0_i32_0 = arith.constant 0 : i32
    %c0_i32_1 = arith.constant 0 : i32
    return %c0_i32, %c0_i32_0 : i32, i32
  }
  func.func @transform_5(%arg0: i32) -> (i32, i32) {
    %c0_i32 = arith.constant 0 : i32
    %c0_i32_0 = arith.constant 0 : i32
    %c0_i32_1 = arith.constant 0 : i32
    return %c0_i32, %c0_i32_0 : i32, i32
  }
  func.func @transform_6(%arg0: i32) -> (i32, i32) {
    %c0_i32 = arith.constant 0 : i32
    %c0_i32_0 = arith.constant 0 : i32
    %c0_i32_1 = arith.constant 0 : i32
    return %c0_i32, %c0_i32_0 : i32, i32
  }
  func.func @transform_7(%arg0: i32) -> (i32, i32) {
    %c0_i32 = arith.constant 0 : i32
    %c0_i32_0 = arith.constant 0 : i32
    %c0_i32_1 = arith.constant 0 : i32
    return %c0_i32, %c0_i32_0 : i32, i32
  }
  func.func @transform_8(%arg0: i32) -> (i32, i32) {
    %c0_i32 = arith.constant 0 : i32
    %c0_i32_0 = arith.constant 0 : i32
    %c0_i32_1 = arith.constant 0 : i32
    return %c0_i32, %c0_i32_0 : i32, i32
  }
  func.func @transform_9(%arg0: i32) -> (i32, i32) {
    %c0_i32 = arith.constant 0 : i32
    %c0_i32_0 = arith.constant 0 : i32
    %c0_i32_1 = arith.constant 0 : i32
    return %c0_i32, %c0_i32_0 : i32, i32
  }
  func.func @transform_10(%arg0: i32) -> (i32, i32) {
    %c0_i32 = arith.constant 0 : i32
    %c0_i32_0 = arith.constant 0 : i32
    %c0_i32_1 = arith.constant 0 : i32
    return %c0_i32, %c0_i32_0 : i32, i32
  }
  func.func @transform_11(%arg0: i32) -> (i32, i32) {
    %c0_i32 = arith.constant 0 : i32
    %c0_i32_0 = arith.constant 0 : i32
    %c0_i32_1 = arith.constant 0 : i32
    return %c0_i32, %c0_i32_0 : i32, i32
  }
  func.func @transform_12(%arg0: i32) -> (i32, i32) {
    %c0_i32 = arith.constant 0 : i32
    %c0_i32_0 = arith.constant 0 : i32
    %c0_i32_1 = arith.constant 0 : i32
    return %c0_i32, %c0_i32_0 : i32, i32
  }
  func.func @transform_13(%arg0: i32) -> (i32, i32) {
    %c0_i32 = arith.constant 0 : i32
    %c0_i32_0 = arith.constant 0 : i32
    %c0_i32_1 = arith.constant 0 : i32
    return %c0_i32, %c0_i32_0 : i32, i32
  }
  func.func @transform_14(%arg0: i32) -> (i32, i32) {
    %c0_i32 = arith.constant 0 : i32
    %c0_i32_0 = arith.constant 0 : i32
    %c0_i32_1 = arith.constant 0 : i32
    return %c0_i32, %c0_i32_0 : i32, i32
  }
  func.func @transform_15(%arg0: i32) -> (i32, i32, i32) {
    %c0_i32 = arith.constant 0 : i32
    %c0_i32_0 = arith.constant 0 : i32
    %c0_i32_1 = arith.constant 0 : i32
    return %arg0, %c0_i32, %c0_i32_0 : i32, i32, i32
  }
}

</mosaic_0001>

<bundles_post_ra>
// kernel: transformer_forward.2
= control target key start
LH: loop header
LB: loop body
LE: loop exit
PB: predicated region body
PF: predicated region fallthrough
CT: control target
= control target key end

     0   :  { %s7601_s18 = smov 0   ;;  %s11619_s0 = inlined_call_operand.vmem [shape: f32[2,32,256], index: 0, kind: input, shape index: {}]   ;;  %s11620_s1 = inlined_call_operand.vmem [shape: bf16[2,864,256], index: 1, kind: input, shape index: {}]   ;;  %s11621_s2 = inlined_call_operand.vmem [shape: bf16[32,864], index: 2, kind: input, shape index: {}]   ;;  %s11622_s3 = inlined_call_operand.vmem [shape: f32[32,1], index: 3, kind: input, shape index: {}]   ;;  %s11623_s4 = inlined_call_operand.vmem [shape: f32[32,1], index: 4, kind: input, shape index: {}]   ;;  %s11624_s5 = inlined_call_operand.vmem [shape: f32[32,1], index: 5, kind: input, shape index: {}]   ;;  %s11625_s6 = inlined_call_operand.vmem [shape: bf16[96,32], index: 6, kind: input, shape index: {}]   ;;  %s11626_s7 = inlined_call_operand.vmem [shape: bf16[32,32], index: 7, kind: input, shape index: {}]   ;;  %s11627_s8 = inlined_call_operand.vmem [shape: f32[32,1], index: 8, kind: input, shape index: {}]   ;;  %s11628_s9 = inlined_call_operand.vmem [shape: f32[32,1], index: 9, kind: input, shape index: {}]   ;;  %s11629_s10 = inlined_call_operand.vmem [shape: f32[32,1], index: 10, kind: input, shape index: {}]   ;;  %s11630_s11 = inlined_call_operand.vmem [shape: bf16[128,32], index: 11, kind: input, shape index: {}]   ;;  %s11631_s12 = inlined_call_operand.vmem [shape: f32[128,1], index: 12, kind: input, shape index: {}]   ;;  %s11632_s13 = inlined_call_operand.vmem [shape: bf16[32,128], index: 13, kind: input, shape index: {}]   ;;  %s11633_s14 = inlined_call_operand.vmem [shape: f32[32,1], index: 14, kind: input, shape index: {}]   ;;  %s11634_s15 = inlined_call_operand.vmem [shape: f32[2,32,256], index: 15, kind: output, shape index: {}]  }
   0x1 LB: > { %s6200_s19 = sadd.s32 4294967295, %s7518_s18   ;;  %p6204_p0 = scmp.ge.s32.totalorder %s7518_s18, 1  ;;  %s7518_s18 = sphi %s7601_s18, %s25_s18  }
   0x2   : > { %p447_p1 = scmp.lt.s32.totalorder %s7518_s18, 3 }
   0x4   : > { %p448_p2 = pnand %p6204_p0, %p447_p1 }
   0x6   : > { %451 = sbr.rel (%p448_p2) target bundleno = 2742 (0xab6), region = 80 }
   0xb   : > { %p500_p3 = scmp.lt.s32.totalorder %s6200_s19, 1  ;;  %v6561_v0 = vld [vmem:[%s11621_s2 + $0x4] ss:$28 sps:$4 sm:$0xff]   ;;  %v6568_v1 = vld [vmem:[%s11621_s2 + $0xc] ss:$28 sps:$4 sm:$0xff]   ;;  %v11646_v9 = vmov 0  }
   0xc   : > { %1321 = vmatprep.mubr.bf16.mxu0 %v6561_v0  ;;  %1374 = vmatprep.mubr.bf16.mxu1 %v6568_v1  ;;  %vm1282_vm0 = vcmask 785408   ;;  %vm1704_vm5 = vcmask 261120   ;;  %vm1901_vm6 = vcmask 1043456   ;;  %vm1852_vm7 = vcmask 64512  }
   0xd   : > { %s13169_s19 = smov (!%p500_p3, %s6200_s19), 1  ;;  %6462 = vset.pattern.permute.xlu0 %v11646_v9  ;;  %6463 = vset.pattern.permute.xlu1 %v11646_v9 }
   0xe   : > { %s6452_s24 = smul.u32 864, %s13169_s19  ;;  %s6438_s26 = sshll.u32 %s13169_s19, 6 }
   0xf   : > { %s7865_s30 = scalar_lea.vmem %s11619_s0, %s6438_s26 }
  0x10   : > { %s7621_s27 = scalar_lea.vmem %s11620_s1, %s6452_s24 }
  0x11   : > { %v6464_v2 = vld [vmem:[%s7621_s27 + $0x74] ss:$8 sps:$4 sm:$0xff]   ;;  %v6466_v3 = vld [vmem:[%s7621_s27 + $0x70] ss:$8 sps:$4 sm:$0xff]   ;;  %v6470_v6 = vld [vmem:[%s7621_s27 + $0x64] ss:$8 sps:$4 sm:$0xff]  }
  0x12   : > { %1289 = vmatprep.subr.bf16.mxu0 %v6464_v2  ;;  %v6467_v4 = vld [vmem:[%s7621_s27 + $0x174] ss:$8 sps:$4 sm:$0xff]   ;;  %v6469_v5 = vld [vmem:[%s7621_s27 + $0x170] ss:$8 sps:$4 sm:$0xff]   ;;  %v6472_v7 = vld [vmem:[%s7621_s27 + $0x60] ss:$8 sps:$4 sm:$0xff]  }
  0x13   : > { %1290 = vmatpush1.bf16.msra.mxu0 %v6466_v3  ;;  %1342 = vmatprep.subr.bf16.mxu1 %v6467_v4  ;;  %v6473_v8 = vld [vmem:[%s7621_s27 + $0x164] ss:$8 sps:$4 sm:$0xff]   ;;  %v6475_v10 = vld [vmem:[%s7621_s27 + $0x160] ss:$8 sps:$4 sm:$0xff]   ;;  %v6476_v11 = vld [vmem:[%s7621_s27 + $0x54] ss:$8 sps:$4 sm:$0xff]  }
  0x14   : > { %1343 = vmatpush1.bf16.msra.mxu1 %v6469_v5  ;;  %1291 = vmatprep.subr.bf16.mxu0 %v6470_v6  ;;  %v6478_v12 = vld [vmem:[%s7621_s27 + $0x50] ss:$8 sps:$4 sm:$0xff]   ;;  %v6479_v13 = vld [vmem:[%s7621_s27 + $0x154] ss:$8 sps:$4 sm:$0xff]   ;;  %v6482_v14 = vld [vmem:[%s7621_s27 + $0x44] ss:$8 sps:$4 sm:$0xff]  }
  0x15   : > { %1344 = vmatprep.subr.bf16.mxu1 %v6473_v8  ;;  %v6481_v15 = vld [vmem:[%s7621_s27 + $0x150] ss:$8 sps:$4 sm:$0xff]   ;;  %v6485_v16 = vld [vmem:[%s7621_s27 + $0x144] ss:$8 sps:$4 sm:$0xff]   ;;  %v6484_v17 = vld [vmem:[%s7621_s27 + $0x40] ss:$8 sps:$4 sm:$0xff]  }
  0x16   : > { %v6488_v18 = vld [vmem:[%s7621_s27 + $0x34] ss:$8 sps:$4 sm:$0xff]   ;;  %v6487_v19 = vld [vmem:[%s7621_s27 + $0x140] ss:$8 sps:$4 sm:$0xff]   ;;  %v6490_v21 = vld [vmem:[%s7621_s27 + $0x30] ss:$8 sps:$4 sm:$0xff]  }
  0x17   : > { %1292 = vmatpush1.bf16.msra.mxu0 %v6472_v7  ;;  %v6491_v20 = vld [vmem:[%s7621_s27 + $0x134] ss:$8 sps:$4 sm:$0xff]   ;;  %v6494_v22 = vld [vmem:[%s7621_s27 + $0x24] ss:$8 sps:$4 sm:$0xff]   ;;  %v6493_v23 = vld [vmem:[%s7621_s27 + $0x130] ss:$8 sps:$4 sm:$0xff]  }
  0x18   : > { %1293 = vmatprep.subr.bf16.mxu0 %v6476_v11  ;;  %1345 = vmatpush1.bf16.msra.mxu1 %v6475_v10  ;;  %v6497_v24 = vld [vmem:[%s7621_s27 + $0x124] ss:$8 sps:$4 sm:$0xff]   ;;  %v6496_v25 = vld [vmem:[%s7621_s27 + $0x20] ss:$8 sps:$4 sm:$0xff]   ;;  %v6500_v26 = vld [vmem:[%s7621_s27 + $0x14] ss:$8 sps:$4 sm:$0xff]  }
  0x19   : > { %1346 = vmatprep.subr.bf16.mxu1 %v6479_v13  ;;  %v6499_v27 = vld [vmem:[%s7621_s27 + $0x120] ss:$8 sps:$4 sm:$0xff]   ;;  %v6503_v28 = vld [vmem:[%s7621_s27 + $0x114] ss:$8 sps:$4 sm:$0xff]   ;;  %v6502_v29 = vld [vmem:[%s7621_s27 + $0x10] ss:$8 sps:$4 sm:$0xff]  }
  0x1a   : > { %v6506_v30 = vld [vmem:[%s7621_s27 + $0x4] ss:$8 sps:$4 sm:$0xff]   ;;  %v6505_v31 = vld [vmem:[%s7621_s27 + $0x110] ss:$8 sps:$4 sm:$0xff]   ;;  %v6508_v33 = vld [vmem:[%s7621_s27] ss:$8 sps:$4 sm:$0xff]  }
  0x1b   : > { %1294 = vmatpush1.bf16.msra.mxu0 %v6478_v12  ;;  %v6509_v32 = vld [vmem:[%s7621_s27 + $0x104] ss:$8 sps:$4 sm:$0xff]   ;;  %v6512_v34 = vld [vmem:[%s7621_s27 + $0xf4] ss:$8 sps:$4 sm:$0xff]   ;;  %v6511_v35 = vld [vmem:[%s7621_s27 + $0x100] ss:$8 sps:$4 sm:$0xff]  }
  0x1c   : > { %1295 = vmatprep.subr.bf16.mxu0 %v6482_v14  ;;  %1347 = vmatpush1.bf16.msra.mxu1 %v6481_v15  ;;  %v6515_v36 = vld [vmem:[%s7621_s27 + $0x1f4] ss:$8 sps:$4 sm:$0xff]   ;;  %v6514_v37 = vld [vmem:[%s7621_s27 + $0xf0] ss:$8 sps:$4 sm:$0xff]   ;;  %v6518_v38 = vld [vmem:[%s7621_s27 + $0xe4] ss:$8 sps:$4 sm:$0xff]  }
  0x1d   : > { %1348 = vmatprep.subr.bf16.mxu1 %v6485_v16  ;;  %v6517_v39 = vld [vmem:[%s7621_s27 + $0x1f0] ss:$8 sps:$4 sm:$0xff]   ;;  %v6521_v40 = vld [vmem:[%s7621_s27 + $0x1e4] ss:$8 sps:$4 sm:$0xff]   ;;  %v6520_v41 = vld [vmem:[%s7621_s27 + $0xe0] ss:$8 sps:$4 sm:$0xff]  }
  0x1e   : > { %v6524_v42 = vld [vmem:[%s7621_s27 + $0xd4] ss:$8 sps:$4 sm:$0xff]   ;;  %v6523_v43 = vld [vmem:[%s7621_s27 + $0x1e0] ss:$8 sps:$4 sm:$0xff]   ;;  %v6526_v45 = vld [vmem:[%s7621_s27 + $0xd0] ss:$8 sps:$4 sm:$0xff]  }
  0x1f   : > { %1296 = vmatpush1.bf16.msra.mxu0 %v6484_v17  ;;  %v6527_v44 = vld [vmem:[%s7621_s27 + $0x1d4] ss:$8 sps:$4 sm:$0xff]   ;;  %v6530_v46 = vld [vmem:[%s7621_s27 + $0xc4] ss:$8 sps:$4 sm:$0xff]   ;;  %v6529_v47 = vld [vmem:[%s7621_s27 + $0x1d0] ss:$8 sps:$4 sm:$0xff]  }
  0x20   : > { %1297 = vmatprep.subr.bf16.mxu0 %v6488_v18  ;;  %1349 = vmatpush1.bf16.msra.mxu1 %v6487_v19  ;;  %v6533_v48 = vld [vmem:[%s7621_s27 + $0x1c4] ss:$8 sps:$4 sm:$0xff]   ;;  %v6532_v49 = vld [vmem:[%s7621_s27 + $0xc0] ss:$8 sps:$4 sm:$0xff]   ;;  %v6536_v50 = vld [vmem:[%s7621_s27 + $0xb4] ss:$8 sps:$4 sm:$0xff]  }
  0x21   : > { %1350 = vmatprep.subr.bf16.mxu1 %v6491_v20  ;;  %v6535_v51 = vld [vmem:[%s7621_s27 + $0x1c0] ss:$8 sps:$4 sm:$0xff]   ;;  %v6539_v52 = vld [vmem:[%s7621_s27 + $0x1b4] ss:$8 sps:$4 sm:$0xff]   ;;  %v6538_v53 = vld [vmem:[%s7621_s27 + $0xb0] ss:$8 sps:$4 sm:$0xff]  }
  0x22   : > { %v6542_v54 = vld [vmem:[%s7621_s27 + $0xa4] ss:$8 sps:$4 sm:$0xff]   ;;  %v6541_v55 = vld [vmem:[%s7621_s27 + $0x1b0] ss:$8 sps:$4 sm:$0xff]   ;;  %v6544_v57 = vld [vmem:[%s7621_s27 + $0xa0] ss:$8 sps:$4 sm:$0xff]  }
  0x23   : > { %1298 = vmatpush1.bf16.msra.mxu0 %v6490_v21  ;;  %v6545_v56 = vld [vmem:[%s7621_s27 + $0x1a4] ss:$8 sps:$4 sm:$0xff]   ;;  %v6548_v58 = vld [vmem:[%s7621_s27 + $0x94] ss:$8 sps:$4 sm:$0xff]   ;;  %v6547_v59 = vld [vmem:[%s7621_s27 + $0x1a0] ss:$8 sps:$4 sm:$0xff]  }
  0x24   : > { %1299 = vmatprep.subr.bf16.mxu0 %v6494_v22  ;;  %1351 = vmatpush1.bf16.msra.mxu1 %v6493_v23  ;;  %v6551_v60 = vld [vmem:[%s7621_s27 + $0x194] ss:$8 sps:$4 sm:$0xff]   ;;  %v6550_v61 = vld [vmem:[%s7621_s27 + $0x90] ss:$8 sps:$4 sm:$0xff]   ;;  %v6554_v62 = vld [vmem:[%s7621_s27 + $0x84] ss:$8 sps:$4 sm:$0xff]  }
  0x25   : > { %1352 = vmatprep.subr.bf16.mxu1 %v6497_v24  ;;  %v6553_v63 = vld [vmem:[%s7621_s27 + $0x190] ss:$8 sps:$4 sm:$0xff]   ;;  %v6557_v0 = vld [vmem:[%s7621_s27 + $0x184] ss:$8 sps:$4 sm:$0xff]   ;;  %v6556_v1 = vld [vmem:[%s7621_s27 + $0x80] ss:$8 sps:$4 sm:$0xff]  }
  0x26   : > { %v6559_v2 = vld [vmem:[%s11621_s2] ss:$28 sps:$4 sm:$0xff]   ;;  %v6566_v5 = vld [vmem:[%s11621_s2 + $0x8] ss:$28 sps:$4 sm:$0xff]   ;;  %v6563_v8 = vld [vmem:[%s7621_s27 + $0x270] ss:$8 sps:$4 sm:$0xff]  }
  0x27   : > { %1300 = vmatpush1.bf16.msra.mxu0 %v6496_v25  ;;  %v6565_v3 = vld [vmem:[%s7621_s27 + $0x274] ss:$8 sps:$4 sm:$0xff]   ;;  %v6562_v4 = vld [vmem:[%s7621_s27 + $0x180] ss:$8 sps:$4 sm:$0xff]   ;;  %v6571_v11 = vld [vmem:[%s7621_s27 + $0x264] ss:$8 sps:$4 sm:$0xff]  }
  0x28   : > { %1301 = vmatprep.subr.bf16.mxu0 %v6500_v26  ;;  %1353 = vmatpush1.bf16.msra.mxu1 %v6499_v27  ;;  %v6605_v6 = vld [vmem:[%s11621_s2 + $0x3c] ss:$28 sps:$4 sm:$0xff]   ;;  %v6611_v10 = vld [vmem:[%s11621_s2 + $0x44] ss:$28 sps:$4 sm:$0xff]   ;;  %v6634_v19 = vld [vmem:[%s11621_s2 + $0x14] ss:$28 sps:$4 sm:$0xff]  }
  0x29   : > { %1354 = vmatprep.subr.bf16.mxu1 %v6503_v28  ;;  %v7700_v7 = vld [vmem:[%s7621_s27 + $0x354] ss:$8 sps:$4 sm:$0xff]   ;;  %v7708_v12 = vld [vmem:[%s7621_s27 + $0x350] ss:$8 sps:$4 sm:$0xff]   ;;  %v7712_v13 = vld [vmem:[%s7621_s27 + $0x344] ss:$8 sps:$4 sm:$0xff]  }
  0x2a   : > { %v6569_v14 = vld [vmem:[%s7621_s27 + $0x260] ss:$8 sps:$4 sm:$0xff]   ;;  %v6574_v15 = vld [vmem:[%s7621_s27 + $0x254] ss:$8 sps:$4 sm:$0xff]   ;;  %v6572_v21 = vld [vmem:[%s7621_s27 + $0x250] ss:$8 sps:$4 sm:$0xff]  }
  0x2b   : > { %1302 = vmatpush1.bf16.msra.mxu0 %v6502_v29  ;;  %v6610_v16 = vld [vmem:[%s11621_s2 + $0x38] ss:$28 sps:$4 sm:$0xff]   ;;  %v7721_v17 = vld [vmem:[%s7621_s27 + $0x340] ss:$8 sps:$4 sm:$0xff]   ;;  %v6577_v22 = vld [vmem:[%s7621_s27 + $0x244] ss:$8 sps:$4 sm:$0xff]  }
  0x2c   : > { %1303 = vmatprep.subr.bf16.mxu0 %v6506_v30  ;;  %1355 = vmatpush1.bf16.msra.mxu1 %v6505_v31  ;;  %v7725_v18 = vld [vmem:[%s7621_s27 + $0x334] ss:$8 sps:$4 sm:$0xff]   ;;  %v648_v20 = vld [vmem:[%s11622_s3] sm:$0xff]  ;;  %v7740_v24 = vld [vmem:[%s7621_s27 + $0x330] ss:$8 sps:$4 sm:$0xff]  }
  0x2d   : > { %1356 = vmatprep.subr.bf16.mxu1 %v6509_v32  ;;  %654 = vperm.xlu0 %6462, %v648_v20   ;;  %v6616_v23 = vld [vmem:[%s11621_s2 + $0x40] ss:$28 sps:$4 sm:$0xff]   ;;  %v7743_v25 = vld [vmem:[%s7621_s27 + $0x324] ss:$8 sps:$4 sm:$0xff]   ;;  %v650_v29 = vld [vmem:[%s11622_s3 + $0x10] sm:$0xff] }
  0x2e   : > { %v649_v26 = vld [vmem:[%s11622_s3 + $0x8] sm:$0xff]  ;;  %v6580_v28 = vld [vmem:[%s7621_s27 + $0x234] ss:$8 sps:$4 sm:$0xff]   ;;  %v6578_v30 = vld [vmem:[%s7621_s27 + $0x230] ss:$8 sps:$4 sm:$0xff]   ;;  %664 = vperm.xlu1 %6463, %v650_v29  }
  0x2f   : > { %1304 = vmatpush1.bf16.msra.mxu0 %v6508_v33  ;;  %v6575_v27 = vld [vmem:[%s7621_s27 + $0x240] ss:$8 sps:$4 sm:$0xff]   ;;  %v6583_v32 = vld [vmem:[%s7621_s27 + $0x224] ss:$8 sps:$4 sm:$0xff]   ;;  %v7762_v33 = vld [vmem:[%s7621_s27 + $0x314] ss:$8 sps:$4 sm:$0xff]  }
  0x30   : > { %1305 = vmatprep.subr.bf16.mxu0 %v6512_v34  ;;  %1357 = vmatpush1.bf16.msra.mxu1 %v6511_v35  ;;  %v7757_v31 = vld [vmem:[%s7621_s27 + $0x320] ss:$8 sps:$4 sm:$0xff]   ;;  %v651_v34 = vld [vmem:[%s11622_s3 + $0x18] sm:$0xff]  ;;  %v1596_v35 = vld [vmem:[%s11623_s4 + $0x10] sm:$0xff] }
  0x31   : > { %1358 = vmatprep.subr.bf16.mxu1 %v6515_v36  ;;  %659 = vperm.xlu0 %6462, %v649_v26   ;;  %v7772_v36 = vld [vmem:[%s7621_s27 + $0x310] ss:$8 sps:$4 sm:$0xff]  }
  0x32   : > { %669 = vperm.xlu1 %6463, %v651_v34  }
  0x33   : > { %1306 = vmatpush2.bf16.msra.mxu0 %v6514_v37  ;;  %v7775_v37 = vld [vmem:[%s7621_s27 + $0x304] ss:$8 sps:$4 sm:$0xff]  }
  0x34   : > { %1307 = vmatprep.subr.bf16.mxu0 %v6518_v38  ;;  %1359 = vmatpush2.bf16.msra.mxu1 %v6517_v39  ;;  %v1628_v38 = vld [vmem:[%s11624_s5 + $0x10] sm:$0xff]  ;;  %v6581_v39 = vld [vmem:[%s7621_s27 + $0x220] ss:$8 sps:$4 sm:$0xff]  }
  0x35   : > { %1360 = vmatprep.subr.bf16.mxu1 %v6521_v40  ;;  %1610 = vperm.xlu0 %6462, %v1596_v35   ;;  %v6586_v40 = vld [vmem:[%s7621_s27 + $0x214] ss:$8 sps:$4 sm:$0xff]  }
  0x37   : > { %1308 = vmatpush2.bf16.msra.mxu0 %v6520_v41  ;;  %v1597_v41 = vld [vmem:[%s11623_s4 + $0x18] sm:$0xff] }
  0x38   : > { %1309 = vmatprep.subr.bf16.mxu0 %v6524_v42  ;;  %1361 = vmatpush2.bf16.msra.mxu1 %v6523_v43  ;;  %v7788_v42 = vld [vmem:[%s7621_s27 + $0x300] ss:$8 sps:$4 sm:$0xff]  }
  0x39   : > { %1362 = vmatprep.subr.bf16.mxu1 %v6527_v44  ;;  %v1594_v43 = vld [vmem:[%s11623_s4] sm:$0xff]  ;;  %v6584_v44 = vld [vmem:[%s7621_s27 + $0x210] ss:$8 sps:$4 sm:$0xff]   ;;  %1642 = vperm.xlu0 %6462, %v1628_v38  }
  0x3a   : > { %1615 = vperm.xlu1 %6463, %v1597_v41  }
  0x3b   : > { %1310 = vmatpush2.bf16.msra.mxu0 %v6526_v45  ;;  %v6589_v45 = vld [vmem:[%s7621_s27 + $0x204] ss:$8 sps:$4 sm:$0xff]  }
  0x3c   : > { %1311 = vmatprep.subr.bf16.mxu0 %v6530_v46  ;;  %1363 = vmatpush2.bf16.msra.mxu1 %v6529_v47  ;;  %v6644_v46 = vld [vmem:[%s11621_s2 + $0x50] ss:$28 sps:$4 sm:$0xff]   ;;  %v1629_v47 = vld [vmem:[%s11624_s5 + $0x18] sm:$0xff] }
  0x3d   : > { %1364 = vmatprep.subr.bf16.mxu1 %v6533_v48  ;;  %v1626_v48 = vld [vmem:[%s11624_s5] sm:$0xff]  ;;  %1600 = vperm.xlu0 %6462, %v1594_v43  }
  0x3e   : > { %1647 = vperm.xlu1 %6463, %v1629_v47  }
  0x3f   : > { %1312 = vmatpush2.bf16.msra.mxu0 %v6532_v49  ;;  %v6587_v49 = vld [vmem:[%s7621_s27 + $0x200] ss:$8 sps:$4 sm:$0xff]  }
  0x40   : > { %1313 = vmatprep.subr.bf16.mxu0 %v6536_v50  ;;  %1365 = vmatpush2.bf16.msra.mxu1 %v6535_v51  ;;  %v6592_v50 = vld [vmem:[%s7621_s27 + $0x2f4] ss:$8 sps:$4 sm:$0xff]   ;;  %v1595_v51 = vld [vmem:[%s11623_s4 + $0x8] sm:$0xff] }
  0x41   : > { %1366 = vmatprep.subr.bf16.mxu1 %v6539_v52  ;;  %1632 = vperm.xlu0 %6462, %v1626_v48   ;;  %v6590_v52 = vld [vmem:[%s7621_s27 + $0x2f0] ss:$8 sps:$4 sm:$0xff]  }
  0x42   : > { %1605 = vperm.xlu1 %6463, %v1595_v51  }
  0x43   : > { %1314 = vmatpush2.bf16.msra.mxu0 %v6538_v53  ;;  %v6595_v53 = vld [vmem:[%s7621_s27 + $0x2e4] ss:$8 sps:$4 sm:$0xff]  }
  0x44   : > { %1315 = vmatprep.subr.bf16.mxu0 %v6542_v54  ;;  %1367 = vmatpush2.bf16.msra.mxu1 %v6541_v55  ;;  %v1627_v54 = vld [vmem:[%s11624_s5 + $0x8] sm:$0xff] }
  0x45   : > { %1368 = vmatprep.subr.bf16.mxu1 %v6545_v56  ;;  %v6593_v55 = vld [vmem:[%s7621_s27 + $0x2e0] ss:$8 sps:$4 sm:$0xff]   ;;  %v6598_v56 = vld [vmem:[%s7621_s27 + $0x2d4] ss:$8 sps:$4 sm:$0xff]  }
  0x46   : > { %1637 = vperm.xlu1 %6463, %v1627_v54  }
  0x47   : > { %1316 = vmatpush2.bf16.msra.mxu0 %v6544_v57  ;;  %v6596_v57 = vld [vmem:[%s7621_s27 + $0x2d0] ss:$8 sps:$4 sm:$0xff]  }
  0x48   : > { %1317 = vmatprep.subr.bf16.mxu0 %v6548_v58  ;;  %1369 = vmatpush2.bf16.msra.mxu1 %v6547_v59  ;;  %v6601_v58 = vld [vmem:[%s7621_s27 + $0x2c4] ss:$8 sps:$4 sm:$0xff]   ;;  %v6599_v59 = vld [vmem:[%s7621_s27 + $0x2c0] ss:$8 sps:$4 sm:$0xff]  }
  0x49   : > { %1370 = vmatprep.subr.bf16.mxu1 %v6551_v60  ;;  %v6604_v60 = vld [vmem:[%s7621_s27 + $0x2b4] ss:$8 sps:$4 sm:$0xff]  }
  0x4b   : > { %1318 = vmatpush2.bf16.msra.mxu0 %v6550_v61  ;;  %v6602_v61 = vld [vmem:[%s7621_s27 + $0x2b0] ss:$8 sps:$4 sm:$0xff]  }
  0x4c   : > { %1319 = vmatprep.subr.bf16.mxu0 %v6554_v62  ;;  %1371 = vmatpush2.bf16.msra.mxu1 %v6553_v63  ;;  %v6615_v62 = vld [vmem:[%s7621_s27 + $0x2a4] ss:$8 sps:$4 sm:$0xff]   ;;  %v6613_v63 = vld [vmem:[%s7621_s27 + $0x2a0] ss:$8 sps:$4 sm:$0xff]  }
  0x4d   : > { %1372 = vmatprep.subr.bf16.mxu1 %v6557_v0  ;;  %v6622_v0 = vld [vmem:[%s7621_s27 + $0x294] ss:$8 sps:$4 sm:$0xff]  }
  0x4f   : > { %1320 = vmatpush2.bf16.msra.mxu0 %v6556_v1  ;;  %v6620_v1 = vld [vmem:[%s7621_s27 + $0x290] ss:$8 sps:$4 sm:$0xff]  }
  0x50   : > { %1395 = vmatprep.subr.bf16.mxu0 %v6565_v3  ;;  %1373 = vmatpush2.bf16.msra.mxu1 %v6562_v4  ;;  %v6626_v3 = vld [vmem:[%s7621_s27 + $0x280] ss:$8 sps:$4 sm:$0xff]   ;;  %v6632_v4 = vld [vmem:[%s11621_s2 + $0x10] ss:$28 sps:$4 sm:$0xff]  }
  0x51   : > { %6440 = vmatprep.subr.bf16.mxu1 %v7700_v7 }
  0x52   : > { %1322 = vmatmul.mubr.bf16.vlgmr.msra.gmra.mxu0 %v6559_v2  ;;  %v6628_v2 = vld [vmem:[%s7621_s27 + $0x284] ss:$8 sps:$4 sm:$0xff]   ;;  %s11598_s27 = scalar_lea.vmem %s11634_s15, %s6438_s26 }
  0x53   : > { %1396 = vmatpush1.bf16.msra.mxu0 %v6563_v8  ;;  %1331 = vmatprep.mubr.bf16.mxu0 %v6605_v6  ;;  %v6643_v6 = vld [vmem:[%s11621_s2 + $0x48] ss:$28 sps:$4 sm:$0xff]  }
  0x54   : > { %1375 = vmatmul.mubr.bf16.vlgmr.msra.gmra.mxu1 %v6566_v5  ;;  %1397 = vmatprep.subr.bf16.mxu0 %v6571_v11  ;;  %v6641_v5 = vld [vmem:[%s11621_s2 + $0x4c] ss:$28 sps:$4 sm:$0xff]  }
  0x55   : > { %6446 = vmatpush1.bf16.msra.mxu1 %v7708_v12  ;;  %1384 = vmatprep.mubr.bf16.mxu1 %v6611_v10 }
  0x56   : > { %6441 = vmatprep.subr.bf16.mxu1 %v7712_v13 }
  0x57   : > { %1398 = vmatpush1.bf16.msra.mxu0 %v6569_v14 }
  0x58   : > { %1399 = vmatprep.subr.bf16.mxu0 %v6574_v15 }
  0x59   : > { %6447 = vmatpush1.bf16.msra.mxu1 %v7721_v17 }
  0x5a   : > { %1332 = vmatmul.mubr.bf16.gmra.mxu0 %v6610_v16  ;;  %6442 = vmatprep.subr.bf16.mxu1 %v7725_v18 }
  0x5b   : > { %1400 = vmatpush1.bf16.msra.mxu0 %v6572_v21  ;;  %1427 = vmatprep.mubr.bf16.mxu0 %v6634_v19 }
  0x5c   : > { %1401 = vmatprep.subr.bf16.mxu0 %v6577_v22  ;;  %1385 = vmatmul.mubr.bf16.gmra.mxu1 %v6616_v23 }
  0x5d   : > { %6448 = vmatpush1.bf16.msra.mxu1 %v7740_v24  ;;  %1490 = vmatprep.mubr.bf16.mxu1 %v11646_v9 }
  0x5e   : > { %6443 = vmatprep.subr.bf16.mxu1 %v7743_v25 }
  0x5f   : > { %1402 = vmatpush1.bf16.msra.mxu0 %v6575_v27 }
  0x60   : > { %1403 = vmatprep.subr.bf16.mxu0 %v6580_v28 }
  0x61   : > { %6449 = vmatpush1.bf16.msra.mxu1 %v7757_v31 }
  0x62   : > { %6444 = vmatprep.subr.bf16.mxu1 %v7762_v33 }
  0x63   : > { %1404 = vmatpush1.bf16.msra.mxu0 %v6578_v30 }
  0x64   : > { %1405 = vmatprep.subr.bf16.mxu0 %v6583_v32 }
  0x65   : > { %6450 = vmatpush1.bf16.msra.mxu1 %v7772_v36 }
  0x66   : > { %6445 = vmatprep.subr.bf16.mxu1 %v7775_v37 }
  0x67   : > { %1406 = vmatpush1.bf16.msra.mxu0 %v6581_v39 }
  0x68   : > { %1407 = vmatprep.subr.bf16.mxu0 %v6586_v40 }
  0x69   : > { %6451 = vmatpush1.bf16.msra.mxu1 %v7788_v42 }
  0x6b   : > { %1408 = vmatpush1.bf16.msra.mxu0 %v6584_v44 }
  0x6c   : > { %1409 = vmatprep.subr.bf16.mxu0 %v6589_v45  ;;  %6333 = vmatmul.mubr.msk.bf16.vlgmr.msra.gmra.mxu1 %vm1282_vm0, %v6644_v46 }
  0x6d   : > { %1755 = vmatprep.mubr.bf16.mxu1 %v11646_v9 }
  0x6f   : > { %1410 = vmatpush1.bf16.msra.mxu0 %v6587_v49 }
  0x70   : > { %1411 = vmatprep.subr.bf16.mxu0 %v6592_v50 }
  0x73   : > { %1412 = vmatpush2.bf16.msra.mxu0 %v6590_v52 }
  0x74   : > { %1413 = vmatprep.subr.bf16.mxu0 %v6595_v53 }
  0x77   : > { %1414 = vmatpush2.bf16.msra.mxu0 %v6593_v55 }
  0x78   : > { %1415 = vmatprep.subr.bf16.mxu0 %v6598_v56 }
  0x7b   : > { %1416 = vmatpush2.bf16.msra.mxu0 %v6596_v57 }
  0x7c   : > { %1417 = vmatprep.subr.bf16.mxu0 %v6601_v58 }
  0x7f   : > { %1418 = vmatpush2.bf16.msra.mxu0 %v6599_v59 }
  0x80   : > { %1419 = vmatprep.subr.bf16.mxu0 %v6604_v60 }
  0x83   : > { %1420 = vmatpush2.bf16.msra.mxu0 %v6602_v61 }
  0x84   : > { %1421 = vmatprep.subr.bf16.mxu0 %v6615_v62 }
  0x87   : > { %1422 = vmatpush2.bf16.msra.mxu0 %v6613_v63 }
  0x88   : > { %1423 = vmatprep.subr.bf16.mxu0 %v6622_v0 }
  0x8b   : > { %1424 = vmatpush2.bf16.msra.mxu0 %v6620_v1 }
  0x8c   : > { %1425 = vmatprep.subr.bf16.mxu0 %v6628_v2  ;;  %v516_v2 = vld [vmem:[%s7865_s30] sm:$0xff] }
  0x8f   : > { %1426 = vmatpush2.bf16.msra.mxu0 %v6626_v3  ;;  %v518_v3 = vld [vmem:[%s7865_s30 + $0x10] sm:$0xff] }
  0x90   : > { %1452 = vmatprep.subr.bf16.mxu0 %v7700_v7  ;;  %v6645_v7 = vld [vmem:[%s11621_s2 + $0x18] ss:$28 sps:$4 sm:$0xff]  }
  0x92   : > { %1428 = vmatmul.mubr.bf16.vlgmr.msra.gmra.mxu0 %v6632_v4 }
  0x93   : > { %1453 = vmatpush1.bf16.msra.mxu0 %v7708_v12  ;;  %1437 = vmatprep.mubr.bf16.mxu0 %v6641_v5 }
  0x94   : > { %1454 = vmatprep.subr.bf16.mxu0 %v7712_v13 }
  0x97   : > { %1455 = vmatpush1.bf16.msra.mxu0 %v7721_v17 }
  0x98   : > { %1456 = vmatprep.subr.bf16.mxu0 %v7725_v18 }
  0x9a   : > { %1438 = vmatmul.mubr.bf16.gmra.mxu0 %v6643_v6  ;;  %v520_v6 = vld [vmem:[%s7865_s30 + $0x20] sm:$0xff] }
  0x9b   : > { %1457 = vmatpush1.bf16.msra.mxu0 %v7740_v24  ;;  %1480 = vmatprep.mubr.bf16.mxu0 %v11646_v9 }
  0x9c   : > { %1458 = vmatprep.subr.bf16.mxu0 %v7743_v25 }
  0x9f   : > { %1459 = vmatpush1.bf16.msra.mxu0 %v7757_v31 }
  0xa0   : > { %1460 = vmatprep.subr.bf16.mxu0 %v7762_v33 }
  0xa3   : > { %1461 = vmatpush1.bf16.msra.mxu0 %v7772_v36 }
  0xa4   : > { %1462 = vmatprep.subr.bf16.mxu0 %v7775_v37 }
  0xa7   : > { %1463 = vmatpush1.bf16.msra.mxu0 %v7788_v42 }
  0xa8   : > { %v655_v28 = vpop.permute.xlu0 %654 }
  0xa9   : > { %v665_v29 = vpop.permute.xlu1 %664 }
  0xaa   : > { %6332 = vmatmul.mubr.msk.bf16.vlgmr.msra.gmra.mxu0 %vm1282_vm0, %v6645_v7 }
  0xab   : > { %1940 = vmatprep.mubr.bf16.mxu0 %v11646_v9 }
  0xac   : > { %v660_v33 = vpop.permute.xlu0 %659 }
  0xad   : > { %v670_v34 = vpop.permute.xlu1 %669 }
 0x112   : > { %v1323_v8 = vpop.f32.mrf.mxu0 }
 0x113   : > { %v1324_v38 = vadd.f32 %v1323_v8, %v655_v28 }
 0x114   : > { %v1325_v10 = vpop.f32.mrf.mxu0  ;;  %v1376_v14 = vpop.f32.mrf.mxu1 }
 0x115   : > { %v1326_v40 = vadd.f32 %v1325_v10, %v655_v28  ;;  %v1377_v48 = vadd.f32 %v1376_v14, %v1324_v38  ;;  %v519_v14 = vld [vmem:[%s7865_s30 + $0x18] sm:$0xff] }
 0x116   : > { %v1327_v11 = vpop.f32.mrf.mxu0  ;;  %v1378_v16 = vpop.f32.mrf.mxu1 }
 0x117   : > { %v1328_v41 = vadd.f32 %v1327_v11, %v660_v33  ;;  %v1379_v52 = vadd.f32 %v1378_v16, %v1326_v40 }
 0x118   : > { %v1329_v12 = vpop.f32.mrf.mxu0  ;;  %v1380_v18 = vpop.f32.mrf.mxu1 }
 0x119   : > { %v1330_v43 = vadd.f32 %v1329_v12, %v660_v33  ;;  %v1381_v53 = vadd.f32 %v1380_v18, %v1328_v41 }
 0x11a   : > { %v1333_v13 = vpop.f32.mrf.mxu0  ;;  %v1382_v21 = vpop.f32.mrf.mxu1 }
 0x11b   : > { %v1334_v35 = vadd.f32 %v1333_v13, %v665_v29  ;;  %v1383_v56 = vadd.f32 %v1382_v21, %v1330_v43  ;;  %v517_v13 = vld [vmem:[%s7865_s30 + $0x8] sm:$0xff] }
 0x11c   : > { %v1335_v15 = vpop.f32.mrf.mxu0  ;;  %v1386_v23 = vpop.f32.mrf.mxu1  ;;  %v521_v21 = vld [vmem:[%s7865_s30 + $0x28] sm:$0xff] }
 0x11d   : > { %v1336_v39 = vadd.f32 %v1335_v15, %v665_v29  ;;  %v1387_v44 = vadd.f32 %v1386_v23, %v1334_v35 }
 0x11e   : > { %v1337_v17 = vpop.f32.mrf.mxu0  ;;  %v1388_v26 = vpop.f32.mrf.mxu1 }
 0x11f   : > { %v1338_v42 = vadd.f32 %v1337_v17, %v670_v34  ;;  %v1389_v49 = vadd.f32 %v1388_v26, %v1336_v39 }
 0x120   : > { %v1339_v19 = vpop.f32.mrf.mxu0  ;;  %v1390_v30 = vpop.f32.mrf.mxu1 }
 0x121   : > { %v1340_v45 = vadd.f32 %v1339_v19, %v670_v34  ;;  %v1391_v54 = vadd.f32 %v1390_v30, %v1338_v42 }
 0x122   : > { %v1392_v32 = vpop.f32.mrf.mxu1 }
 0x123   : > { %v1393_v57 = vadd.f32 %v1392_v32, %v1340_v45 }
 0x12c   : > { %v1492_v36 = vpop.f32.mrf.mxu1 }
 0x12e   : > { %v1494_v46 = vpop.f32.mrf.mxu1 }
 0x130   : > { %v1496_v59 = vpop.f32.mrf.mxu1 }
 0x132   : > { %v1498_v12 = vpop.f32.mrf.mxu1 }
 0x152   : > { %v1429_v20 = vpop.f32.mrf.mxu0 }
 0x153   : > { %v1430_v55 = vadd.f32 %v1429_v20, %v1377_v48 }
 0x154   : > { %v1431_v22 = vpop.f32.mrf.mxu0 }
 0x155   : > { %v1432_v61 = vadd.f32 %v1431_v22, %v1379_v52  ;;  %v522_v22 = vld [vmem:[%s7865_s30 + $0x30] sm:$0xff] }
 0x156   : > { %v1433_v24 = vpop.f32.mrf.mxu0 }
 0x157   : > { %v1434_v62 = vadd.f32 %v1433_v24, %v1381_v53 }
 0x158   : > { %v1435_v25 = vpop.f32.mrf.mxu0 }
 0x159   : > { %v1436_v5 = vadd.f32 %v1435_v25, %v1383_v56 }
 0x15a   : > { %v1439_v27 = vpop.f32.mrf.mxu0 }
 0x15b   : > { %v1440_v50 = vadd.f32 %v1439_v27, %v1387_v44  ;;  %v523_v27 = vld [vmem:[%s7865_s30 + $0x38] sm:$0xff] }
 0x15c   : > { %v1441_v31 = vpop.f32.mrf.mxu0 }
 0x15d   : > { %v1442_v58 = vadd.f32 %v1441_v31, %v1389_v49  ;;  %v1493_v1 = vadd.f32 %v1492_v36, %v1440_v50 }
 0x15e   : > { %v1443_v37 = vpop.f32.mrf.mxu0 }
 0x15f   : > { %v1444_v63 = vadd.f32 %v1443_v37, %v1391_v54  ;;  %v1495_v11 = vadd.f32 %v1494_v46, %v1442_v58  ;;  %v7876_v20 = vadd.f32 %v1493_v1, %v520_v6 }
 0x160   : > { %v1445_v47 = vpop.f32.mrf.mxu0 }
 0x161   : > { %v1446_v7 = vadd.f32 %v1445_v47, %v1393_v57  ;;  %v1497_v16 = vadd.f32 %v1496_v59, %v1444_v63  ;;  %12125 = vst [vmem:[#allocation4_spill] sm:$0xff] %v7876_v20  ;;  %v7887_v28 = vadd.f32 %v1495_v11, %v521_v21 }
 0x163   : > { %v1499_v23 = vadd.f32 %v1498_v12, %v1446_v7  ;;  %12128 = vst [vmem:[#allocation7_spill] sm:$0xff] %v7887_v28  ;;  %v7889_v29 = vadd.f32 %v1497_v16, %v522_v22 }
 0x165   : > { %12129 = vst [vmem:[#allocation8_spill] sm:$0xff] %v7889_v29  ;;  %v7894_v32 = vadd.f32 %v1499_v23, %v523_v27 }
 0x167   : > { %12130 = vst [vmem:[#allocation9_spill] sm:$0xff] %v7894_v32 }
 0x16a   : > { %v1482_v51 = vpop.f32.mrf.mxu0 }
 0x16b   : > { %v1483_v0 = vadd.f32 %v1482_v51, %v1430_v55 }
 0x16c   : > { %v1484_v60 = vpop.f32.mrf.mxu0 }
 0x16d   : > { %v1485_v8 = vadd.f32 %v1484_v60, %v1432_v61  ;;  %v7872_v17 = vadd.f32 %v1483_v0, %v516_v2 }
 0x16e   : > { %v1486_v4 = vpop.f32.mrf.mxu0 }
 0x16f   : > { %v1487_v10 = vadd.f32 %v1486_v4, %v1434_v62  ;;  %12123 = vst [vmem:[#allocation2_spill] sm:$0xff] %v7872_v17  ;;  %v7880_v24 = vadd.f32 %v1485_v8, %v517_v13 }
 0x170   : > { %v1488_v15 = vpop.f32.mrf.mxu0 }
 0x171   : > { %v7874_v18 = vadd.f32 %v1487_v10, %v518_v3  ;;  %v1489_v19 = vadd.f32 %v1488_v15, %v1436_v5  ;;  %12126 = vst [vmem:[#allocation5_spill] sm:$0xff] %v7880_v24 }
 0x173   : > { %12124 = vst [vmem:[#allocation3_spill] sm:$0xff] %v7874_v18  ;;  %v1509_v25 = vadd.f32 %v7874_v18, %v7872_v17  ;;  %v7884_v26 = vadd.f32 %v1489_v19, %v519_v14 }
 0x175   : > { %12127 = vst [vmem:[#allocation6_spill] sm:$0xff] %v7884_v26  ;;  %v1510_v30 = vadd.f32 %v1509_v25, %v7876_v20  ;;  %v1518_v31 = vadd.f32 %v7884_v26, %v7880_v24 }
 0x177   : > { %v1511_v33 = vadd.f32 %v1510_v30, %v7889_v29  ;;  %v1519_v34 = vadd.f32 %v1518_v31, %v7887_v28 }
 0x179   : > { %v1512_v35 = vrot.slane %v1511_v33, 4  ;;  %v1520_v36 = vadd.f32 %v1519_v34, %v7894_v32 }
 0x17b   : > { %v1513_v37 = vadd.f32 %v1512_v35, %v1511_v33  ;;  %v1521_v38 = vrot.slane %v1520_v36, 4 }
 0x17d   : > { %v1514_v39 = vrot.slane %v1513_v37, 2  ;;  %v1522_v40 = vadd.f32 %v1521_v38, %v1520_v36 }
 0x17f   : > { %v1515_v41 = vadd.f32 %v1514_v39, %v1513_v37  ;;  %v1523_v42 = vrot.slane %v1522_v40, 2 }
 0x181   : > { %v1516_v43 = vrot.slane %v1515_v41, 1  ;;  %v1524_v44 = vadd.f32 %v1523_v42, %v1522_v40 }
 0x183   : > { %v1517_v45 = vadd.f32 %v1516_v43, %v1515_v41  ;;  %v1525_v46 = vrot.slane %v1524_v44, 1  ;;  %v1611_v43 = vpop.permute.xlu0 %1610 }
 0x185   : > { %v1528_v47 = vmul.f32 0.03125, %v1517_v45  ;;  %v1526_v48 = vadd.f32 %v1525_v46, %v1524_v44  ;;  %v1616_v44 = vpop.permute.xlu1 %1615 }
 0x187   : > { %v7900_v49 = vsub.f32 %v7872_v17, %v1528_v47  ;;  %v7903_v50 = vsub.f32 %v7874_v18, %v1528_v47  ;;  %v1534_v51 = vsub.f32 %v7876_v20, %v1528_v47  ;;  %v1529_v52 = vmul.f32 0.03125, %v1526_v48  ;;  %v1643_v45 = vpop.permute.xlu0 %1642 }
 0x188   : > { %v1536_v53 = vsub.f32 %v7889_v29, %v1528_v47 }
 0x189   : > { %v1538_v54 = vmul.f32 %v7900_v49, %v7900_v49  ;;  %v1540_v55 = vmul.f32 %v7903_v50, %v7903_v50  ;;  %v7912_v56 = vsub.f32 %v7880_v24, %v1529_v52  ;;  %v7915_v57 = vsub.f32 %v7884_v26, %v1529_v52  ;;  %v1648_v46 = vpop.permute.xlu1 %1647 }
 0x18a   : > { %v1535_v58 = vsub.f32 %v7887_v28, %v1529_v52  ;;  %v1542_v59 = vmul.f32 %v1534_v51, %v1534_v51  ;;  %v1537_v63 = vsub.f32 %v7894_v32, %v1529_v52  ;;  %v1544_v0 = vmul.f32 %v1536_v53, %v1536_v53 }
 0x18b   : > { %v1546_v60 = vadd.f32 %v1540_v55, %v1538_v54  ;;  %v1539_v61 = vmul.f32 %v7912_v56, %v7912_v56  ;;  %v1541_v62 = vmul.f32 %v7915_v57, %v7915_v57  ;;  %v1601_v48 = vpop.permute.xlu0 %1600 }
 0x18c   : > { %v1543_v3 = vmul.f32 %v1535_v58, %v1535_v58  ;;  %v1545_v5 = vmul.f32 %v1537_v63, %v1537_v63 }
 0x18d   : > { %v1547_v1 = vadd.f32 %v1546_v60, %v1542_v59  ;;  %v1555_v2 = vadd.f32 %v1541_v62, %v1539_v61  ;;  %v1606_v52 = vpop.permute.xlu1 %1605 }
 0x18f   : > { %v1548_v4 = vadd.f32 %v1547_v1, %v1544_v0  ;;  %v1556_v6 = vadd.f32 %v1555_v2, %v1543_v3 }
 0x191   : > { %v1549_v7 = vrot.slane %v1548_v4, 4  ;;  %v1557_v8 = vadd.f32 %v1556_v6, %v1545_v5 }
 0x193   : > { %v1550_v10 = vadd.f32 %v1549_v7, %v1548_v4  ;;  %v1558_v11 = vrot.slane %v1557_v8, 4 }
 0x195   : > { %v1551_v12 = vrot.slane %v1550_v10, 2  ;;  %v1559_v13 = vadd.f32 %v1558_v11, %v1557_v8 }
 0x197   : > { %v1552_v14 = vadd.f32 %v1551_v12, %v1550_v10  ;;  %v1560_v15 = vrot.slane %v1559_v13, 2  ;;  %v1633_v10 = vpop.permute.xlu0 %1632 }
 0x199   : > { %v1553_v16 = vrot.slane %v1552_v14, 1  ;;  %v1561_v19 = vadd.f32 %v1560_v15, %v1559_v13 }
 0x19b   : > { %v1554_v21 = vadd.f32 %v1553_v16, %v1552_v14  ;;  %v1562_v22 = vrot.slane %v1561_v19, 1 }
 0x19d   : > { %v1564_v23 = vmul.f32 0.03125, %v1554_v21  ;;  %v1563_v25 = vadd.f32 %v1562_v22, %v1561_v19  ;;  %v6646_v21 = vld [vmem:[%s11625_s6] sm:$0xff]   ;;  %v6647_v22 = vld [vmem:[%s11625_s6 + $0x8] sm:$0xff]  }
 0x19f   : > { %6664 = vrsqrt.f32 %v1564_v23  ;;  %v1565_v27 = vmul.f32 0.03125, %v1563_v25  ;;  %vm1568_vm1 = vcmp.eq.f32.partialorder %v1564_v23, inf  ;;  %v1571_v33 = vand.u32 2147483648, %v1564_v23  ;;  %v6649_v25 = vld [vmem:[%s11625_s6 + $0x18] sm:$0xff]  }
 0x1a0   : > { %vm1570_vm2 = vcmp.eq.f32.partialorder %v1564_v23, 0.0 }
 0x1a1   : > { %6666 = vrsqrt.f32 %v1565_v27  ;;  %vm1575_vm3 = vcmp.eq.f32.partialorder %v1565_v27, inf  ;;  %v1578_v39 = vand.u32 2147483648, %v1565_v27  ;;  %vm1577_vm4 = vcmp.eq.f32.partialorder %v1565_v27, 0.0 }
 0x1ac   : > { %v6665_v30 = vpop.eup %6664 }
 0x1ad   : > { %v1567_v31 = vmul.f32 %v6665_v30, %v1564_v23  ;;  %v6651_v30 = vld [vmem:[%s11625_s6 + $0x28] sm:$0xff]  }
 0x1ae   : > { %v6667_v34 = vpop.eup %6666 }
 0x1af   : > { %v1569_v35 = vsel %vm1568_vm1, %v1564_v23, %v1567_v31  ;;  %v1574_v37 = vmul.f32 %v6667_v34, %v1565_v27  ;;  %v6648_v23 = vld [vmem:[%s11625_s6 + $0x10] sm:$0xff]  }
 0x1b0   : > { %v1572_v36 = vsel %vm1570_vm2, %v1571_v33, %v1569_v35 }
 0x1b1   : > { %v1580_v38 = vadd.f32 1e-05, %v1572_v36  ;;  %v1576_v40 = vsel %vm1575_vm3, %v1565_v27, %v1574_v37  ;;  %v6650_v27 = vld [vmem:[%s11625_s6 + $0x20] sm:$0xff]  }
 0x1b2   : > { %v1579_v41 = vsel %vm1577_vm4, %v1578_v39, %v1576_v40 }
 0x1b3   : > { %6668 = vrcp.f32 %v1580_v38  ;;  %v1581_v42 = vadd.f32 1e-05, %v1579_v41 }
 0x1b5   : > { %6670 = vrcp.f32 %v1581_v42 }
 0x1c0   : > { %v6669_v47 = vpop.eup %6668 }
 0x1c1   : > { %v1590_v54 = vmul.f32 %v6669_v47, %v1534_v51  ;;  %v1592_v55 = vmul.f32 %v6669_v47, %v1536_v53  ;;  %v1588_v60 = vmul.f32 %v6669_v47, %v7903_v50  ;;  %v1586_v0 = vmul.f32 %v6669_v47, %v7900_v49  ;;  %v1638_v51 = vpop.permute.xlu1 %1637 }
 0x1c2   : > { %v6671_v59 = vpop.eup %6670 }
 0x1c3   : > { %v1622_v61 = vmul.f32 %v1611_v43, %v1590_v54  ;;  %v1624_v62 = vmul.f32 %v1616_v44, %v1592_v55  ;;  %v1591_v1 = vmul.f32 %v6671_v59, %v1535_v58  ;;  %v1593_v2 = vmul.f32 %v6671_v59, %v1537_v63 }
 0x1c4   : > { %v1587_v3 = vmul.f32 %v6671_v59, %v7912_v56  ;;  %v1589_v4 = vmul.f32 %v6671_v59, %v7915_v57  ;;  %v1620_v53 = vmul.f32 %v1606_v52, %v1588_v60  ;;  %v1618_v50 = vmul.f32 %v1601_v48, %v1586_v0 }
 0x1c5   : > { %v1623_v5 = vmul.f32 %v1611_v43, %v1591_v1  ;;  %v1625_v6 = vmul.f32 %v1616_v44, %v1593_v2  ;;  %v1654_v11 = vadd.f32 %v1643_v45, %v1622_v61  ;;  %v1656_v12 = vadd.f32 %v1648_v46, %v1624_v62 }
 0x1c6   : > { %v1619_v7 = vmul.f32 %v1601_v48, %v1587_v3  ;;  %v1621_v8 = vmul.f32 %v1606_v52, %v1589_v4  ;;  %v1650_v16 = vadd.f32 %v1633_v10, %v1618_v50  ;;  %v1652_v56 = vadd.f32 %v1638_v51, %v1620_v53 }
 0x1c7   : > { %v1655_v13 = vadd.f32 %v1643_v45, %v1623_v5  ;;  %v1657_v14 = vadd.f32 %v1648_v46, %v1625_v6  ;;  %v1660_v63 = vpack.c.bf16 %v1656_v12, %v1654_v11 }
 0x1c8   : > { %v1651_v15 = vadd.f32 %v1633_v10, %v1619_v7  ;;  %v1653_v49 = vadd.f32 %v1638_v51, %v1621_v8  ;;  %v1658_v19 = vpack.c.bf16 %v1652_v56, %v1650_v16 }
 0x1c9   : > { %v1661_v58 = vpack.c.bf16 %v1657_v14, %v1655_v13 }
 0x1ca   : > { %v1659_v57 = vpack.c.bf16 %v1653_v49, %v1651_v15 }
 0x1cb   : > { %1735 = vmatprep.subr.bf16.mxu1 %v1661_v58 }
 0x1cc   : > { %1736 = vmatpush1.bf16.msra.mxu1 %v1660_v63 }
 0x1cd   : > { %1737 = vmatprep.subr.bf16.mxu1 %v1659_v57 }
 0x1d0   : > { %1738 = vmatpush1.bf16.msra.mxu1 %v1658_v19 }
 0x1d3   : > { %6340 = vmatmul.mubr.msk.bf16.vlgmr.msra.gmra.mxu1 %vm1704_vm5, %v6646_v21 }
 0x1d4   : > { %1765 = vmatprep.mubr.bf16.mxu1 %v11646_v9 }
 0x1db   : > { %6341 = vmatmul.mubr.msk.bf16.gmra.mxu1 %vm1704_vm5, %v6647_v22 }
 0x1dc   : > { %1775 = vmatprep.mubr.bf16.mxu1 %v11646_v9 }
 0x1e3   : > { %6342 = vmatmul.mubr.msk.bf16.gmra.mxu1 %vm1704_vm5, %v6648_v23 }
 0x1e4   : > { %1785 = vmatprep.mubr.bf16.mxu1 %v11646_v9 }
 0x1eb   : > { %6343 = vmatmul.mubr.msk.bf16.gmra.mxu1 %vm1704_vm5, %v6649_v25 }
 0x1ec   : > { %1795 = vmatprep.mubr.bf16.mxu1 %v11646_v9 }
 0x1f3   : > { %6344 = vmatmul.mubr.msk.bf16.gmra.mxu1 %vm1704_vm5, %v6650_v27 }
 0x1f4   : > { %1805 = vmatprep.mubr.bf16.mxu1 %v11646_v9 }
 0x1fb   : > { %6345 = vmatmul.mubr.msk.bf16.gmra.mxu1 %vm1704_vm5, %v6651_v30 }
 0x1fc   : > { %2223 = vmatprep.mubr.bf16.mxu1 %v11646_v9 }
 0x293   : > { %v1757_v31 = vpop.f32.mrf.mxu1 }
 0x294   : > { %v1816_v33 = vpack.c.bf16 %v1757_v31, %v1757_v31 }
 0x295   : > { %v1759_v34 = vpop.f32.mrf.mxu1 }
 0x296   : > { %1820 = vxpose.xlu0.c.b16.start.end [1/1] (short) %v1816_v33, 128  ;;  %v1817_v3 = vpack.c.bf16 %v1759_v34, %v1759_v34 }
 0x297   : > { %v1761_v35 = vpop.f32.mrf.mxu1 }
 0x298   : > { %v2101_v36 = vpack.c.bf16 %v1761_v35, %v1761_v35 }
 0x299   : > { %v1763_v37 = vpop.f32.mrf.mxu1 }
 0x29a   : > { %2105 = vxpose.xlu1.c.b16.start.end [1/1] (short) %v2101_v36, 128  ;;  %v2102_v7 = vpack.c.bf16 %v1763_v37, %v1763_v37 }
 0x29b   : > { %v1767_v38 = vpop.f32.mrf.mxu1 }
 0x29c   : > { %v2384_v8 = vpack.c.bf16 %v1767_v38, %v1767_v38 }
 0x29d   : > { %v1769_v39 = vpop.f32.mrf.mxu1 }
 0x29e   : > { %v2385_v51 = vpack.c.bf16 %v1769_v39, %v1769_v39 }
 0x29f   : > { %v1771_v40 = vpop.f32.mrf.mxu1 }
 0x2a0   : > { %v2667_v10 = vpack.c.bf16 %v1771_v40, %v1771_v40 }
 0x2a1   : > { %v1773_v41 = vpop.f32.mrf.mxu1 }
 0x2a2   : > { %v2668_v53 = vpack.c.bf16 %v1773_v41, %v1773_v41 }
 0x2a3   : > { %v1777_v42 = vpop.f32.mrf.mxu1 }
 0x2a4   : > { %v1818_v43 = vpack.c.bf16 %v1777_v42, %v1777_v42 }
 0x2a5   : > { %v1779_v44 = vpop.f32.mrf.mxu1 }
 0x2a6   : > { %v1903_v45 = vsel %vm1901_vm6, %v1818_v43, 0  ;;  %v1819_v46 = vpack.c.bf16 %v1779_v44, %v1779_v44 }
 0x2a7   : > { %v1781_v47 = vpop.f32.mrf.mxu1 }
 0x2a8   : > { %v2103_v48 = vpack.c.bf16 %v1781_v47, %v1781_v47  ;;  %6346 = vmatprep.subr.msk.bf16.mxu0 %vm1901_vm6, %v1819_v46 }
 0x2a9   : > { %v1783_v52 = vpop.f32.mrf.mxu1  ;;  %1923 = vmatpush1.bf16.msra.mxu0 %v1903_v45 }
 0x2aa   : > { %v2186_v54 = vsel %vm1901_vm6, %v2103_v48, 0  ;;  %v2104_v55 = vpack.c.bf16 %v1783_v52, %v1783_v52 }
 0x2ab   : > { %v1787_v59 = vpop.f32.mrf.mxu1 }
 0x2ac   : > { %6363 = vmatprep.subr.msk.bf16.mxu1 %vm1901_vm6, %v2104_v55  ;;  %v2386_v60 = vpack.c.bf16 %v1787_v59, %v1787_v59 }
 0x2ad   : > { %2206 = vmatpush1.bf16.msra.mxu1 %v2186_v54  ;;  %v1789_v61 = vpop.f32.mrf.mxu1 }
 0x2ae   : > { %v2469_v62 = vsel %vm1901_vm6, %v2386_v60, 0  ;;  %v2387_v0 = vpack.c.bf16 %v1789_v61, %v1789_v61 }
 0x2af   : > { %v1791_v1 = vpop.f32.mrf.mxu1 }
 0x2b0   : > { %v2669_v2 = vpack.c.bf16 %v1791_v1, %v1791_v1  ;;  %6380 = vmatprep.subr.msk.bf16.mxu0 %vm1901_vm6, %v2387_v0 }
 0x2b1   : > { %v1793_v4 = vpop.f32.mrf.mxu1 }
 0x2b2   : > { %v2752_v5 = vsel %vm1901_vm6, %v2669_v2, 0  ;;  %v2670_v6 = vpack.c.bf16 %v1793_v4, %v1793_v4 }
 0x2b3   : > { %1836 = vxpose.xlu0.c.b16.start.end [1/1] (short) %v1817_v3, 128  ;;  %v8049_v0 = vpop.f32.mrf.mxu1 }
 0x2b4   : > { %6397 = vmatprep.subr.msk.bf16.mxu1 %vm1901_vm6, %v2670_v6  ;;  %12131 = vst [vmem:[#allocation10_spill] sm:$0xff] %v8049_v0 }
 0x2b5   : > { %v8053_v2 = vpop.f32.mrf.mxu1 }
 0x2b7   : > { %2121 = vxpose.xlu1.c.b16.start.end [1/1] (short) %v2102_v7, 128  ;;  %v8057_v4 = vpop.f32.mrf.mxu1 }
 0x2b8   : > { %12132 = vst [vmem:[#allocation11_spill] sm:$0xff] %v8057_v4 }
 0x2b9   : > { %v8061_v6 = vpop.f32.mrf.mxu1 }
 0x2d0   : > { %2388 = vxpose.xlu0.c.b16.start.end [1/1] (short) %v2384_v8, 128  ;;  %v8065_v8 = vpop.f32.mrf.mxu1 }
 0x2d1   : > { %12133 = vst [vmem:[#allocation12_spill] sm:$0xff] %v8065_v8 }
 0x2d4   : > { %2671 = vxpose.xlu1.c.b16.start.end [1/1] (short) %v2667_v10, 128 }
 0x2ed   : > { %2404 = vxpose.xlu0.c.b16.start.end [1/1] (short) %v2385_v51, 128  ;;  %v8069_v51 = vpop.f32.mrf.mxu1 }
 0x2ee   : > { %12134 = vst [vmem:[#allocation13_spill] sm:$0xff] %v8069_v51  ;;  %v4999_v51 = vpack.c.bf16 %v8053_v2, %v8053_v2  ;;  %v5042_v2 = vpack.c.bf16 %v8061_v6, %v8061_v6 }
 0x2f1   : > { %2687 = vxpose.xlu1.c.b16.start.end [1/1] (short) %v2668_v53, 128 }
 0x2f8   : > { %v1828_v11 = vpop.trf.xlu0 }
 0x2f9   : > { %6347 = vmatmul.mubr.msk.bf16.vlgmr.msra.gmra.mxu0 %vm1852_vm7, %v1828_v11  ;;  %v8073_v11 = vpop.f32.mrf.mxu1 }
 0x2fa   : > { %2489 = vmatpush1.bf16.msra.mxu0 %v2469_v62  ;;  %1950 = vmatprep.mubr.bf16.mxu0 %v11646_v9  ;;  %12135 = vst [vmem:[#allocation14_spill] sm:$0xff] %v8073_v11 }
 0x2fc   : > { %v2113_v12 = vpop.trf.xlu1  ;;  %v1829_v50 = vpop.trf.xlu0 }
 0x2fd   : > { %6364 = vmatmul.mubr.msk.bf16.vlgmr.msra.gmra.mxu1 %vm1852_vm7, %v2113_v12 }
 0x2fe   : > { %2772 = vmatpush1.bf16.msra.mxu1 %v2752_v5  ;;  %2233 = vmatprep.mubr.bf16.mxu1 %v11646_v9 }
 0x300   : > { %v2114_v13 = vpop.trf.xlu1  ;;  %v1830_v14 = vpop.trf.xlu0 }
 0x301   : > { %6348 = vmatmul.mubr.msk.bf16.gmra.mxu0 %vm1852_vm7, %v1829_v50 }
 0x302   : > { %1960 = vmatprep.mubr.bf16.mxu0 %v11646_v9 }
 0x304   : > { %v2115_v15 = vpop.trf.xlu1  ;;  %v1831_v49 = vpop.trf.xlu0 }
 0x305   : > { %6365 = vmatmul.mubr.msk.bf16.gmra.mxu1 %vm1852_vm7, %v2114_v13  ;;  %v8079_v13 = vpop.f32.mrf.mxu1 }
 0x306   : > { %2243 = vmatprep.mubr.bf16.mxu1 %v11646_v9  ;;  %12136 = vst [vmem:[#allocation15_spill] sm:$0xff] %v8079_v13 }
 0x308   : > { %v2116_v58 = vpop.trf.xlu1  ;;  %v1832_v63 = vpop.trf.xlu0 }
 0x309   : > { %6349 = vmatmul.mubr.msk.bf16.gmra.mxu0 %vm1852_vm7, %v1830_v14 }
 0x30a   : > { %1970 = vmatprep.mubr.bf16.mxu0 %v11646_v9 }
 0x30c   : > { %v2117_v16 = vpop.trf.xlu1  ;;  %v1833_v56 = vpop.trf.xlu0 }
 0x30d   : > { %6366 = vmatmul.mubr.msk.bf16.gmra.mxu1 %vm1852_vm7, %v2115_v15 }
 0x30e   : > { %2253 = vmatprep.mubr.bf16.mxu1 %v11646_v9 }
 0x310   : > { %v2118_v57 = vpop.trf.xlu1  ;;  %v1834_v19 = vpop.trf.xlu0 }
 0x311   : > { %6350 = vmatmul.mubr.msk.bf16.gmra.mxu0 %vm1852_vm7, %v1831_v49 }
 0x312   : > { %1980 = vmatprep.mubr.bf16.mxu0 %v11646_v9 }
 0x314   : > { %v2119_v21 = vpop.trf.xlu1  ;;  %v1835_v22 = vpop.trf.xlu0 }
 0x315   : > { %6367 = vmatmul.mubr.msk.bf16.gmra.mxu1 %vm1852_vm7, %v2116_v58 }
 0x316   : > { %2263 = vmatprep.mubr.bf16.mxu1 %v11646_v9 }
 0x318   : > { %v2120_v23 = vpop.trf.xlu1  ;;  %v1844_v25 = vpop.trf.xlu0 }
 0x319   : > { %6351 = vmatmul.mubr.msk.bf16.gmra.mxu0 %vm1852_vm7, %v1832_v63 }
 0x31a   : > { %1990 = vmatprep.mubr.bf16.mxu0 %v11646_v9 }
 0x31c   : > { %v2129_v27 = vpop.trf.xlu1  ;;  %v1845_v30 = vpop.trf.xlu0 }
 0x31d   : > { %6368 = vmatmul.mubr.msk.bf16.gmra.mxu1 %vm1852_vm7, %v2117_v16 }
 0x31e   : > { %2273 = vmatprep.mubr.bf16.mxu1 %v11646_v9 }
 0x320   : > { %v2130_v31 = vpop.trf.xlu1  ;;  %v1846_v33 = vpop.trf.xlu0 }
 0x321   : > { %6352 = vmatmul.mubr.msk.bf16.gmra.mxu0 %vm1852_vm7, %v1833_v56 }
 0x322   : > { %2000 = vmatprep.mubr.bf16.mxu0 %v11646_v9 }
 0x324   : > { %v2131_v34 = vpop.trf.xlu1  ;;  %v1847_v35 = vpop.trf.xlu0 }
 0x325   : > { %6369 = vmatmul.mubr.msk.bf16.gmra.mxu1 %vm1852_vm7, %v2118_v57 }
 0x326   : > { %2283 = vmatprep.mubr.bf16.mxu1 %v11646_v9 }
 0x328   : > { %v2132_v36 = vpop.trf.xlu1  ;;  %v1848_v37 = vpop.trf.xlu0 }
 0x329   : > { %6353 = vmatmul.mubr.msk.bf16.gmra.mxu0 %vm1852_vm7, %v1834_v19 }
 0x32a   : > { %2010 = vmatprep.mubr.bf16.mxu0 %v11646_v9 }
 0x32c   : > { %v2133_v38 = vpop.trf.xlu1  ;;  %v1849_v39 = vpop.trf.xlu0 }
 0x32d   : > { %6370 = vmatmul.mubr.msk.bf16.gmra.mxu1 %vm1852_vm7, %v2119_v21 }
 0x32e   : > { %2293 = vmatprep.mubr.bf16.mxu1 %v11646_v9 }
 0x330   : > { %v2134_v40 = vpop.trf.xlu1  ;;  %v1850_v41 = vpop.trf.xlu0 }
 0x331   : > { %6354 = vmatmul.mubr.msk.bf16.gmra.mxu0 %vm1852_vm7, %v1835_v22 }
 0x332   : > { %2020 = vmatprep.mubr.bf16.mxu0 %v11646_v9 }
 0x334   : > { %v2135_v42 = vpop.trf.xlu1  ;;  %v1851_v43 = vpop.trf.xlu0 }
 0x335   : > { %6371 = vmatmul.mubr.msk.bf16.gmra.mxu1 %vm1852_vm7, %v2120_v23 }
 0x336   : > { %2303 = vmatprep.mubr.bf16.mxu1 %v11646_v9 }
 0x338   : > { %v2136_v44 = vpop.trf.xlu1  ;;  %v2396_v45 = vpop.trf.xlu0 }
 0x339   : > { %6355 = vmatmul.mubr.msk.bf16.gmra.mxu0 %vm1852_vm7, %v1844_v25 }
 0x33a   : > { %2030 = vmatprep.mubr.bf16.mxu0 %v11646_v9 }
 0x33c   : > { %v2679_v46 = vpop.trf.xlu1  ;;  %v2397_v47 = vpop.trf.xlu0 }
 0x33d   : > { %6372 = vmatmul.mubr.msk.bf16.gmra.mxu1 %vm1852_vm7, %v2129_v27 }
 0x33e   : > { %2313 = vmatprep.mubr.bf16.mxu1 %v11646_v9 }
 0x340   : > { %v2680_v48 = vpop.trf.xlu1  ;;  %v2398_v52 = vpop.trf.xlu0 }
 0x341   : > { %6356 = vmatmul.mubr.msk.bf16.gmra.mxu0 %vm1852_vm7, %v1845_v30 }
 0x342   : > { %2040 = vmatprep.mubr.bf16.mxu0 %v11646_v9 }
 0x344   : > { %v2681_v54 = vpop.trf.xlu1  ;;  %v2399_v55 = vpop.trf.xlu0 }
 0x345   : > { %6373 = vmatmul.mubr.msk.bf16.gmra.mxu1 %vm1852_vm7, %v2130_v31 }
 0x346   : > { %2323 = vmatprep.mubr.bf16.mxu1 %v11646_v9 }
 0x348   : > { %v2682_v59 = vpop.trf.xlu1  ;;  %v2400_v60 = vpop.trf.xlu0 }
 0x349   : > { %6357 = vmatmul.mubr.msk.bf16.gmra.mxu0 %vm1852_vm7, %v1846_v33 }
 0x34a   : > { %2050 = vmatprep.mubr.bf16.mxu0 %v11646_v9 }
 0x34c   : > { %v2683_v61 = vpop.trf.xlu1  ;;  %v2401_v62 = vpop.trf.xlu0 }
 0x34d   : > { %6374 = vmatmul.mubr.msk.bf16.gmra.mxu1 %vm1852_vm7, %v2131_v34 }
 0x34e   : > { %2333 = vmatprep.mubr.bf16.mxu1 %v11646_v9 }
 0x350   : > { %v2684_v1 = vpop.trf.xlu1  ;;  %v2402_v3 = vpop.trf.xlu0 }
 0x351   : > { %6358 = vmatmul.mubr.msk.bf16.gmra.mxu0 %vm1852_vm7, %v1847_v35 }
 0x352   : > { %2060 = vmatprep.mubr.bf16.mxu0 %v11646_v9 }
 0x354   : > { %v2685_v5 = vpop.trf.xlu1  ;;  %v2403_v7 = vpop.trf.xlu0 }
 0x355   : > { %6375 = vmatmul.mubr.msk.bf16.gmra.mxu1 %vm1852_vm7, %v2132_v36 }
 0x356   : > { %2343 = vmatprep.mubr.bf16.mxu1 %v11646_v9 }
 0x358   : > { %v2686_v10 = vpop.trf.xlu1  ;;  %v2412_v53 = vpop.trf.xlu0 }
 0x359   : > { %6359 = vmatmul.mubr.msk.bf16.gmra.mxu0 %vm1852_vm7, %v1848_v37 }
 0x35a   : > { %2070 = vmatprep.mubr.bf16.mxu0 %v11646_v9 }
 0x35c   : > { %v2695_v50 = vpop.trf.xlu1  ;;  %v2413_v63 = vpop.trf.xlu0 }
 0x35d   : > { %6376 = vmatmul.mubr.msk.bf16.gmra.mxu1 %vm1852_vm7, %v2133_v38 }
 0x35e   : > { %2353 = vmatprep.mubr.bf16.mxu1 %v11646_v9 }
 0x360   : > { %v2696_v23 = vpop.trf.xlu1  ;;  %v2414_v35 = vpop.trf.xlu0 }
 0x361   : > { %6360 = vmatmul.mubr.msk.bf16.gmra.mxu0 %vm1852_vm7, %v1849_v39 }
 0x362   : > { %2080 = vmatprep.mubr.bf16.mxu0 %v11646_v9 }
 0x365   : > { %6377 = vmatmul.mubr.msk.bf16.gmra.mxu1 %vm1852_vm7, %v2134_v40 }
 0x366   : > { %2363 = vmatprep.mubr.bf16.mxu1 %v11646_v9 }
 0x369   : > { %6361 = vmatmul.mubr.msk.bf16.gmra.mxu0 %vm1852_vm7, %v1850_v41 }
 0x36a   : > { %2090 = vmatprep.mubr.bf16.mxu0 %v11646_v9 }
 0x36d   : > { %6378 = vmatmul.mubr.msk.bf16.gmra.mxu1 %vm1852_vm7, %v2135_v42  ;;  %v2697_v42 = vpop.trf.xlu1 }
 0x36e   : > { %2373 = vmatprep.mubr.bf16.mxu1 %v11646_v9 }
 0x371   : > { %6362 = vmatmul.mubr.msk.bf16.gmra.mxu0 %vm1852_vm7, %v1851_v43 }
 0x372   : > { %2506 = vmatprep.mubr.bf16.mxu0 %v11646_v9 }
 0x375   : > { %6379 = vmatmul.mubr.msk.bf16.gmra.mxu1 %vm1852_vm7, %v2136_v44 }
 0x376   : > { %2789 = vmatprep.mubr.bf16.mxu1 %v11646_v9 }
 0x379   : > { %6381 = vmatmul.mubr.msk.bf16.vlgmr.msra.gmra.mxu0 %vm1852_vm7, %v2396_v45 }
 0x37a   : > { %2516 = vmatprep.mubr.bf16.mxu0 %v11646_v9 }
 0x37d   : > { %6398 = vmatmul.mubr.msk.bf16.vlgmr.msra.gmra.mxu1 %vm1852_vm7, %v2679_v46 }
 0x37e   : > { %2799 = vmatprep.mubr.bf16.mxu1 %v11646_v9 }
 0x381   : > { %6382 = vmatmul.mubr.msk.bf16.gmra.mxu0 %vm1852_vm7, %v2397_v47 }
 0x382   : > { %2526 = vmatprep.mubr.bf16.mxu0 %v11646_v9 }
 0x385   : > { %6399 = vmatmul.mubr.msk.bf16.gmra.mxu1 %vm1852_vm7, %v2680_v48 }
 0x386   : > { %2809 = vmatprep.mubr.bf16.mxu1 %v11646_v9 }
 0x389   : > { %6383 = vmatmul.mubr.msk.bf16.gmra.mxu0 %vm1852_vm7, %v2398_v52  ;;  %v2415_v52 = vpop.trf.xlu0 }
 0x38a   : > { %2536 = vmatprep.mubr.bf16.mxu0 %v11646_v9 }
 0x38d   : > { %6400 = vmatmul.mubr.msk.bf16.gmra.mxu1 %vm1852_vm7, %v2681_v54 }
 0x38e   : > { %2819 = vmatprep.mubr.bf16.mxu1 %v11646_v9 }
 0x391   : > { %6384 = vmatmul.mubr.msk.bf16.gmra.mxu0 %vm1852_vm7, %v2399_v55 }
 0x392   : > { %2546 = vmatprep.mubr.bf16.mxu0 %v11646_v9 }
 0x395   : > { %6401 = vmatmul.mubr.msk.bf16.gmra.mxu1 %vm1852_vm7, %v2682_v59 }
 0x396   : > { %2829 = vmatprep.mubr.bf16.mxu1 %v11646_v9 }
 0x399   : > { %6385 = vmatmul.mubr.msk.bf16.gmra.mxu0 %vm1852_vm7, %v2400_v60 }
 0x39a   : > { %2556 = vmatprep.mubr.bf16.mxu0 %v11646_v9 }
 0x39d   : > { %6402 = vmatmul.mubr.msk.bf16.gmra.mxu1 %vm1852_vm7, %v2683_v61 }
 0x39e   : > { %2839 = vmatprep.mubr.bf16.mxu1 %v11646_v9 }
 0x3a1   : > { %6386 = vmatmul.mubr.msk.bf16.gmra.mxu0 %vm1852_vm7, %v2401_v62 }
 0x3a2   : > { %2566 = vmatprep.mubr.bf16.mxu0 %v11646_v9 }
 0x3a5   : > { %6403 = vmatmul.mubr.msk.bf16.gmra.mxu1 %vm1852_vm7, %v2684_v1  ;;  %v2698_v1 = vpop.trf.xlu1 }
 0x3a6   : > { %2849 = vmatprep.mubr.bf16.mxu1 %v11646_v9 }
 0x3a9   : > { %6387 = vmatmul.mubr.msk.bf16.gmra.mxu0 %vm1852_vm7, %v2402_v3 }
 0x3aa   : > { %2576 = vmatprep.mubr.bf16.mxu0 %v11646_v9 }
 0x3ad   : > { %6404 = vmatmul.mubr.msk.bf16.gmra.mxu1 %vm1852_vm7, %v2685_v5 }
 0x3ae   : > { %2859 = vmatprep.mubr.bf16.mxu1 %v11646_v9 }
 0x3b1   : > { %6388 = vmatmul.mubr.msk.bf16.gmra.mxu0 %vm1852_vm7, %v2403_v7 }
 0x3b2   : > { %2586 = vmatprep.mubr.bf16.mxu0 %v11646_v9 }
 0x3b5   : > { %6405 = vmatmul.mubr.msk.bf16.gmra.mxu1 %vm1852_vm7, %v2686_v10 }
 0x3b6   : > { %2869 = vmatprep.mubr.bf16.mxu1 %v11646_v9 }
 0x3b9   : > { %v8075_v12 = vpop.f32.mrf.mxu0  ;;  %6389 = vmatmul.mubr.msk.bf16.gmra.mxu0 %vm1852_vm7, %v2412_v53 }
 0x3ba   : > { %2596 = vmatprep.mubr.bf16.mxu0 %v11646_v9 }
 0x3bb   : > { %v8081_v14 = vpop.f32.mrf.mxu0 }
 0x3bc   : > { %v2950_v15 = vmax.f32 %v8075_v12, %v8081_v14 }
 0x3bd   : > { %v8085_v49 = vpop.f32.mrf.mxu0  ;;  %v8087_v58 = vpop.f32.mrf.mxu1  ;;  %6406 = vmatmul.mubr.msk.bf16.gmra.mxu1 %vm1852_vm7, %v2695_v50 }
 0x3be   : > { %2951 = vmax.xlane.f32.xlu1 %v2950_v15  ;;  %2879 = vmatprep.mubr.bf16.mxu1 %v11646_v9  ;;  %v2416_v15 = vpop.trf.xlu0 }
 0x3bf   : > { %v8091_v16 = vpop.f32.mrf.mxu0  ;;  %v8093_v56 = vpop.f32.mrf.mxu1 }
 0x3c0   : > { %v2953_v57 = vmax.f32 %v8085_v49, %v8091_v16  ;;  %v3046_v19 = vmax.f32 %v8087_v58, %v8093_v56 }
 0x3c1   : > { %v8099_v21 = vpop.f32.mrf.mxu0  ;;  %v8101_v22 = vpop.f32.mrf.mxu1  ;;  %6390 = vmatmul.mubr.msk.bf16.gmra.mxu0 %vm1852_vm7, %v2413_v63 }
 0x3c2   : > { %2954 = vmax.xlane.f32.xlu0 %v2953_v57  ;;  %3047 = vmax.xlane.f32.xlu1 %v3046_v19 }
 0x3c3   : > { %v8104_v25 = vpop.f32.mrf.mxu0  ;;  %v8106_v27 = vpop.f32.mrf.mxu1  ;;  %2606 = vmatprep.mubr.bf16.mxu0 %v11646_v9 }
 0x3c4   : > { %v2956_v30 = vmax.f32 %v8099_v21, %v8104_v25  ;;  %v3049_v31 = vmax.f32 %v8101_v22, %v8106_v27 }
 0x3c5   : > { %v8113_v33 = vpop.f32.mrf.mxu0  ;;  %v8115_v34 = vpop.f32.mrf.mxu1  ;;  %6407 = vmatmul.mubr.msk.bf16.gmra.mxu1 %vm1852_vm7, %v2696_v23 }
 0x3c6   : > { %2957 = vmax.xlane.f32.xlu1 %v2956_v30  ;;  %3050 = vmax.xlane.f32.xlu0 %v3049_v31 }
 0x3c7   : > { %v8118_v36 = vpop.f32.mrf.mxu0  ;;  %v8120_v37 = vpop.f32.mrf.mxu1  ;;  %2889 = vmatprep.mubr.bf16.mxu1 %v11646_v9 }
 0x3c8   : > { %v2959_v38 = vmax.f32 %v8113_v33, %v8118_v36  ;;  %v3052_v39 = vmax.f32 %v8115_v34, %v8120_v37 }
 0x3c9   : > { %v8127_v40 = vpop.f32.mrf.mxu0  ;;  %v8129_v41 = vpop.f32.mrf.mxu1  ;;  %6391 = vmatmul.mubr.msk.bf16.gmra.mxu0 %vm1852_vm7, %v2414_v35 }
 0x3ca   : > { %2960 = vmax.xlane.f32.xlu0 %v2959_v38  ;;  %3053 = vmax.xlane.f32.xlu1 %v3052_v39  ;;  %v2699_v35 = vpop.trf.xlu1 }
 0x3cb   : > { %v8132_v43 = vpop.f32.mrf.mxu0  ;;  %v8134_v44 = vpop.f32.mrf.mxu1  ;;  %2616 = vmatprep.mubr.bf16.mxu0 %v11646_v9 }
 0x3cc   : > { %v2962_v45 = vmax.f32 %v8127_v40, %v8132_v43  ;;  %v3055_v46 = vmax.f32 %v8129_v41, %v8134_v44 }
 0x3cd   : > { %v8141_v47 = vpop.f32.mrf.mxu0  ;;  %v8143_v48 = vpop.f32.mrf.mxu1  ;;  %6408 = vmatmul.mubr.msk.bf16.gmra.mxu1 %vm1852_vm7, %v2697_v42 }
 0x3ce   : > { %2963 = vmax.xlane.f32.xlu1 %v2962_v45  ;;  %3056 = vmax.xlane.f32.xlu0 %v3055_v46 }
 0x3cf   : > { %v8146_v54 = vpop.f32.mrf.mxu0  ;;  %v8148_v55 = vpop.f32.mrf.mxu1  ;;  %2899 = vmatprep.mubr.bf16.mxu1 %v11646_v9 }
 0x3d0   : > { %v2965_v59 = vmax.f32 %v8141_v47, %v8146_v54  ;;  %v3058_v60 = vmax.f32 %v8143_v48, %v8148_v55 }
 0x3d1   : > { %v8155_v61 = vpop.f32.mrf.mxu0  ;;  %v8157_v62 = vpop.f32.mrf.mxu1  ;;  %6392 = vmatmul.mubr.msk.bf16.gmra.mxu0 %vm1852_vm7, %v2415_v52 }
 0x3d2   : > { %2966 = vmax.xlane.f32.xlu0 %v2965_v59  ;;  %3059 = vmax.xlane.f32.xlu1 %v3058_v60  ;;  %v2417_v59 = vpop.trf.xlu0 }
 0x3d3   : > { %v8160_v3 = vpop.f32.mrf.mxu0  ;;  %v8162_v5 = vpop.f32.mrf.mxu1  ;;  %2626 = vmatprep.mubr.bf16.mxu0 %v11646_v9 }
 0x3d4   : > { %v2968_v7 = vmax.f32 %v8155_v61, %v8160_v3  ;;  %v3061_v10 = vmax.f32 %v8157_v62, %v8162_v5 }
 0x3d5   : > { %v8169_v53 = vpop.f32.mrf.mxu0  ;;  %v8171_v50 = vpop.f32.mrf.mxu1  ;;  %6409 = vmatmul.mubr.msk.bf16.gmra.mxu1 %vm1852_vm7, %v2698_v1 }
 0x3d6   : > { %2969 = vmax.xlane.f32.xlu1 %v2968_v7  ;;  %3062 = vmax.xlane.f32.xlu0 %v3061_v10 }
 0x3d7   : > { %v8174_v63 = vpop.f32.mrf.mxu0  ;;  %v8176_v57 = vpop.f32.mrf.mxu1  ;;  %2909 = vmatprep.mubr.bf16.mxu1 %v11646_v9 }
 0x3d8   : > { %v2971_v19 = vmax.f32 %v8169_v53, %v8174_v63  ;;  %v3064_v23 = vmax.f32 %v8171_v50, %v8176_v57 }
 0x3d9   : > { %v8183_v30 = vpop.f32.mrf.mxu0  ;;  %v8185_v31 = vpop.f32.mrf.mxu1  ;;  %6393 = vmatmul.mubr.msk.bf16.gmra.mxu0 %vm1852_vm7, %v2416_v15 }
 0x3da   : > { %2972 = vmax.xlane.f32.xlu0 %v2971_v19  ;;  %3065 = vmax.xlane.f32.xlu1 %v3064_v23  ;;  %v2700_v23 = vpop.trf.xlu1 }
 0x3db   : > { %v8188_v38 = vpop.f32.mrf.mxu0  ;;  %v8190_v39 = vpop.f32.mrf.mxu1  ;;  %2636 = vmatprep.mubr.bf16.mxu0 %v11646_v9 }
 0x3dc   : > { %v2974_v42 = vmax.f32 %v8183_v30, %v8188_v38  ;;  %v3067_v45 = vmax.f32 %v8185_v31, %v8190_v39 }
 0x3dd   : > { %v8197_v46 = vpop.f32.mrf.mxu0  ;;  %v8199_v52 = vpop.f32.mrf.mxu1  ;;  %6410 = vmatmul.mubr.msk.bf16.gmra.mxu1 %vm1852_vm7, %v2699_v35 }
 0x3de   : > { %2975 = vmax.xlane.f32.xlu1 %v2974_v42  ;;  %3068 = vmax.xlane.f32.xlu0 %v3067_v45 }
 0x3df   : > { %v8202_v60 = vpop.f32.mrf.mxu0  ;;  %v8204_v1 = vpop.f32.mrf.mxu1  ;;  %2919 = vmatprep.mubr.bf16.mxu1 %v11646_v9 }
 0x3e0   : > { %v2977_v7 = vmax.f32 %v8197_v46, %v8202_v60  ;;  %v3070_v10 = vmax.f32 %v8199_v52, %v8204_v1 }
 0x3e1   : > { %v8211_v15 = vpop.f32.mrf.mxu0  ;;  %v8213_v19 = vpop.f32.mrf.mxu1  ;;  %6394 = vmatmul.mubr.msk.bf16.gmra.mxu0 %vm1852_vm7, %v2417_v59 }
 0x3e2   : > { %2978 = vmax.xlane.f32.xlu0 %v2977_v7  ;;  %3071 = vmax.xlane.f32.xlu1 %v3070_v10  ;;  %v2418_v59 = vpop.trf.xlu0 }
 0x3e3   : > { %v8216_v35 = vpop.f32.mrf.mxu0  ;;  %v8218_v42 = vpop.f32.mrf.mxu1  ;;  %2646 = vmatprep.mubr.bf16.mxu0 %v11646_v9 }
 0x3e4   : > { %v2980_v45 = vmax.f32 %v8211_v15, %v8216_v35  ;;  %v3073_v32 = vmax.f32 %v8213_v19, %v8218_v42 }
 0x3e5   : > { %v8225_v29 = vpop.f32.mrf.mxu0  ;;  %v8227_v28 = vpop.f32.mrf.mxu1  ;;  %6411 = vmatmul.mubr.msk.bf16.gmra.mxu1 %vm1852_vm7, %v2700_v23 }
 0x3e6   : > { %2981 = vmax.xlane.f32.xlu1 %v2980_v45  ;;  %3074 = vmax.xlane.f32.xlu0 %v3073_v32  ;;  %v2701_v32 = vpop.trf.xlu1 }
 0x3e7   : > { %v8230_v7 = vpop.f32.mrf.mxu0  ;;  %v8232_v10 = vpop.f32.mrf.mxu1  ;;  %2929 = vmatprep.mubr.bf16.mxu1 %v11646_v9 }
 0x3e8   : > { %v3076_v24 = vmax.f32 %v8227_v28, %v8232_v10  ;;  %v2983_v20 = vmax.f32 %v8225_v29, %v8230_v7 }
 0x3e9   : > { %v8239_v26 = vpop.f32.mrf.mxu0  ;;  %v8241_v17 = vpop.f32.mrf.mxu1  ;;  %6395 = vmatmul.mubr.msk.bf16.gmra.mxu0 %vm1852_vm7, %v2418_v59 }
 0x3ea   : > { %12137 = vst [vmem:[#allocation16_spill] sm:$0xff] %v8239_v26  ;;  %12138 = vst [vmem:[#allocation17_spill] sm:$0xff] %v8241_v17  ;;  %2984 = vmax.xlane.f32.xlu0 %v2983_v20  ;;  %3077 = vmax.xlane.f32.xlu1 %v3076_v24  ;;  %v2419_v20 = vpop.trf.xlu0 }
 0x3eb   : > { %v8244_v23 = vpop.f32.mrf.mxu0  ;;  %v8246_v45 = vpop.f32.mrf.mxu1  ;;  %2656 = vmatprep.mubr.bf16.mxu0 %v11646_v9 }
 0x3ec   : > { %12139 = vst [vmem:[#allocation18_spill] sm:$0xff] %v8244_v23  ;;  %12140 = vst [vmem:[#allocation19_spill] sm:$0xff] %v8246_v45  ;;  %v2986_v18 = vmax.f32 %v8239_v26, %v8244_v23  ;;  %v3079_v11 = vmax.f32 %v8241_v17, %v8246_v45 }
 0x3ed   : > { %v8253_v8 = vpop.f32.mrf.mxu0  ;;  %v8255_v13 = vpop.f32.mrf.mxu1  ;;  %6412 = vmatmul.mubr.msk.bf16.gmra.mxu1 %vm1852_vm7, %v2701_v32 }
 0x3ee   : > { %12141 = vst [vmem:[#allocation20_spill] sm:$0xff] %v8253_v8  ;;  %12142 = vst [vmem:[#allocation21_spill] sm:$0xff] %v8255_v13  ;;  %2987 = vmax.xlane.f32.xlu1 %v2986_v18  ;;  %3080 = vmax.xlane.f32.xlu0 %v3079_v11  ;;  %v2702_v11 = vpop.trf.xlu1 }
 0x3ef   : > { %v8258_v24 = vpop.f32.mrf.mxu0  ;;  %v8260_v59 = vpop.f32.mrf.mxu1  ;;  %2939 = vmatprep.mubr.bf16.mxu1 %v11646_v9 }
 0x3f0   : > { %12143 = vst [vmem:[#allocation22_spill] sm:$0xff] %v8258_v24  ;;  %12144 = vst [vmem:[#allocation23_spill] sm:$0xff] %v8260_v59  ;;  %v2989_v4 = vmax.f32 %v8253_v8, %v8258_v24  ;;  %v3082_v0 = vmax.f32 %v8255_v13, %v8260_v59 }
 0x3f1   : > { %v8269_v45 = vpop.f32.mrf.mxu0  ;;  %v8271_v18 = vpop.f32.mrf.mxu1  ;;  %6396 = vmatmul.mubr.msk.bf16.gmra.mxu0 %vm1852_vm7, %v2419_v20 }
 0x3f2   : > { %12145 = vst [vmem:[#allocation24_spill] sm:$0xff] %v8269_v45  ;;  %12146 = vst [vmem:[#allocation25_spill] sm:$0xff] %v8271_v18  ;;  %5032 = vmatprep.mubr.bf16.mxu0 %v4999_v51  ;;  %2990 = vmax.xlane.f32.xlu0 %v2989_v4 }
 0x3f3   : > { %3083 = vmax.xlane.f32.xlu1 %v3082_v0  ;;  %v8274_v32 = vpop.f32.mrf.mxu0  ;;  %v8276_v9 = vpop.f32.mrf.mxu1 }
 0x3f4   : > { %12147 = vst [vmem:[#allocation26_spill] sm:$0xff] %v8274_v32  ;;  %12148 = vst [vmem:[#allocation27_spill] sm:$0xff] %v8276_v9  ;;  %v2992_v24 = vmax.f32 %v8269_v45, %v8274_v32  ;;  %v3085_v51 = vmax.f32 %v8271_v18, %v8276_v9 }
 0x3f5   : > { %v8282_v8 = vpop.f32.mrf.mxu0  ;;  %v8284_v59 = vpop.f32.mrf.mxu1  ;;  %6413 = vmatmul.mubr.msk.bf16.gmra.mxu1 %vm1852_vm7, %v2702_v11 }
 0x3f6   : > { %12149 = vst [vmem:[#allocation28_spill] sm:$0xff] %v8282_v8  ;;  %12150 = vst [vmem:[#allocation29_spill] sm:$0xff] %v8284_v59  ;;  %5075 = vmatprep.mubr.bf16.mxu1 %v5042_v2  ;;  %2993 = vmax.xlane.f32.xlu0 %v2992_v24 }
 0x3f7   : > { %v8287_v4 = vpop.f32.mrf.mxu0  ;;  %v8289_v0 = vpop.f32.mrf.mxu1 }
 0x3f8   : > { %12151 = vst [vmem:[#allocation30_spill] sm:$0xff] %v8287_v4  ;;  %12152 = vst [vmem:[#allocation31_spill] sm:$0xff] %v8289_v0  ;;  %v2995_v6 = vmax.f32 %v8282_v8, %v8287_v4  ;;  %v3088_v24 = vmax.f32 %v8284_v59, %v8289_v0 }
 0x3f9   : > { %v8295_v20 = vpop.f32.mrf.mxu0  ;;  %v8297_v32 = vpop.f32.mrf.mxu1 }
 0x3fa   : > { %12153 = vst [vmem:[#allocation32_spill] sm:$0xff] %v8295_v20  ;;  %12154 = vst [vmem:[#allocation33_spill] sm:$0xff] %v8297_v32  ;;  %2996 = vmax.xlane.f32.xlu1 %v2995_v6  ;;  %3086 = vmax.xlane.f32.xlu0 %v3085_v51 }
 0x3fb   : > { %v8299_v45 = vpop.f32.mrf.mxu0  ;;  %v8301_v11 = vpop.f32.mrf.mxu1 }
 0x3fc   : > { %12155 = vst [vmem:[#allocation34_spill] sm:$0xff] %v8299_v45  ;;  %12156 = vst [vmem:[#allocation35_spill] sm:$0xff] %v8301_v11  ;;  %v2998_v2 = vmax.f32 %v8295_v20, %v8299_v45  ;;  %v3091_v51 = vmax.f32 %v8297_v32, %v8301_v11 }
 0x3fd   : > { %v8307_v9 = vpop.f32.mrf.mxu0  ;;  %v8309_v18 = vpop.f32.mrf.mxu1 }
 0x3fe   : > { %12157 = vst [vmem:[#allocation36_spill] sm:$0xff] %v8307_v9  ;;  %12158 = vst [vmem:[#allocation37_spill] sm:$0xff] %v8309_v18  ;;  %2999 = vmax.xlane.f32.xlu1 %v2998_v2  ;;  %3089 = vmax.xlane.f32.xlu0 %v3088_v24 }
 0x3ff   : > { %v8311_v4 = vpop.f32.mrf.mxu0  ;;  %v8313_v6 = vpop.f32.mrf.mxu1 }
 0x400   : > { %12159 = vst [vmem:[#allocation38_spill] sm:$0xff] %v8311_v4  ;;  %12160 = vst [vmem:[#allocation39_spill] sm:$0xff] %v8313_v6  ;;  %v3094_v8 = vmax.f32 %v8309_v18, %v8313_v6  ;;  %v3001_v24 = vmax.f32 %v8307_v9, %v8311_v4 }
 0x401   : > { %v8319_v0 = vpop.f32.mrf.mxu0  ;;  %v8321_v59 = vpop.f32.mrf.mxu1 }
 0x402   : > { %12161 = vst [vmem:[#allocation40_spill] sm:$0xff] %v8319_v0  ;;  %12162 = vst [vmem:[#allocation41_spill] sm:$0xff] %v8321_v59  ;;  %3092 = vmax.xlane.f32.xlu0 %v3091_v51  ;;  %3095 = vmax.xlane.f32.xlu1 %v3094_v8 }
 0x403   : > { %v8323_v45 = vpop.f32.mrf.mxu0  ;;  %v8325_v2 = vpop.f32.mrf.mxu1 }
 0x404   : > { %12163 = vst [vmem:[#allocation42_spill] sm:$0xff] %v8323_v45  ;;  %12164 = vst [vmem:[#allocation43_spill] sm:$0xff] %v8325_v2  ;;  %v3004_v20 = vmax.f32 %v8319_v0, %v8323_v45  ;;  %v3097_v8 = vmax.f32 %v8321_v59, %v8325_v2 }
 0x405   : > { %v8331_v11 = vpop.f32.mrf.mxu0  ;;  %v8333_v32 = vpop.f32.mrf.mxu1 }
 0x406   : > { %12165 = vst [vmem:[#allocation44_spill] sm:$0xff] %v8331_v11  ;;  %12166 = vst [vmem:[#allocation45_spill] sm:$0xff] %v8333_v32  ;;  %3002 = vmax.xlane.f32.xlu0 %v3001_v24  ;;  %3005 = vmax.xlane.f32.xlu1 %v3004_v20 }
 0x407   : > { %v8335_v6 = vpop.f32.mrf.mxu0  ;;  %v8337_v51 = vpop.f32.mrf.mxu1 }
 0x408   : > { %12167 = vst [vmem:[#allocation46_spill] sm:$0xff] %v8335_v6  ;;  %12168 = vst [vmem:[#allocation47_spill] sm:$0xff] %v8337_v51  ;;  %v3100_v18 = vmax.f32 %v8333_v32, %v8337_v51  ;;  %v3007_v20 = vmax.f32 %v8331_v11, %v8335_v6 }
 0x409   : > { %v8343_v4 = vpop.f32.mrf.mxu0  ;;  %v8345_v9 = vpop.f32.mrf.mxu1 }
 0x40a   : > { %12169 = vst [vmem:[#allocation48_spill] sm:$0xff] %v8343_v4  ;;  %12170 = vst [vmem:[#allocation49_spill] sm:$0xff] %v8345_v9  ;;  %3098 = vmax.xlane.f32.xlu0 %v3097_v8  ;;  %3101 = vmax.xlane.f32.xlu1 %v3100_v18 }
 0x40b   : > { %v8347_v45 = vpop.f32.mrf.mxu0  ;;  %v8349_v24 = vpop.f32.mrf.mxu1 }
 0x40c   : > { %12171 = vst [vmem:[#allocation50_spill] sm:$0xff] %v8347_v45  ;;  %12172 = vst [vmem:[#allocation51_spill] sm:$0xff] %v8349_v24  ;;  %v3010_v0 = vmax.f32 %v8343_v4, %v8347_v45  ;;  %v3103_v18 = vmax.f32 %v8345_v9, %v8349_v24 }
 0x40d   : > { %v8355_v2 = vpop.f32.mrf.mxu0  ;;  %v8357_v59 = vpop.f32.mrf.mxu1 }
 0x40e   : > { %12173 = vst [vmem:[#allocation52_spill] sm:$0xff] %v8355_v2  ;;  %12174 = vst [vmem:[#allocation53_spill] sm:$0xff] %v8357_v59  ;;  %3008 = vmax.xlane.f32.xlu0 %v3007_v20  ;;  %3011 = vmax.xlane.f32.xlu1 %v3010_v0 }
 0x40f   : > { %v8359_v51 = vpop.f32.mrf.mxu0  ;;  %v8361_v8 = vpop.f32.mrf.mxu1 }
 0x410   : > { %12175 = vst [vmem:[#allocation54_spill] sm:$0xff] %v8359_v51  ;;  %12176 = vst [vmem:[#allocation55_spill] sm:$0xff] %v8361_v8  ;;  %v3106_v32 = vmax.f32 %v8357_v59, %v8361_v8  ;;  %v3013_v0 = vmax.f32 %v8355_v2, %v8359_v51 }
 0x411   : > { %v8367_v6 = vpop.f32.mrf.mxu0  ;;  %v8369_v11 = vpop.f32.mrf.mxu1 }
 0x412   : > { %12177 = vst [vmem:[#allocation56_spill] sm:$0xff] %v8367_v6  ;;  %12178 = vst [vmem:[#allocation57_spill] sm:$0xff] %v8369_v11  ;;  %3104 = vmax.xlane.f32.xlu0 %v3103_v18  ;;  %3107 = vmax.xlane.f32.xlu1 %v3106_v32 }
 0x413   : > { %v8371_v45 = vpop.f32.mrf.mxu0  ;;  %v8373_v20 = vpop.f32.mrf.mxu1 }
 0x414   : > { %12179 = vst [vmem:[#allocation58_spill] sm:$0xff] %v8371_v45  ;;  %12180 = vst [vmem:[#allocation59_spill] sm:$0xff] %v8373_v20  ;;  %v3016_v4 = vmax.f32 %v8367_v6, %v8371_v45  ;;  %v3109_v32 = vmax.f32 %v8369_v11, %v8373_v20 }
 0x415   : > { %v8379_v24 = vpop.f32.mrf.mxu0  ;;  %v8381_v9 = vpop.f32.mrf.mxu1 }
 0x416   : > { %12181 = vst [vmem:[#allocation60_spill] sm:$0xff] %v8379_v24  ;;  %12182 = vst [vmem:[#allocation61_spill] sm:$0xff] %v8381_v9  ;;  %3014 = vmax.xlane.f32.xlu0 %v3013_v0  ;;  %3017 = vmax.xlane.f32.xlu1 %v3016_v4 }
 0x417   : > { %v8383_v8 = vpop.f32.mrf.mxu0  ;;  %v8385_v18 = vpop.f32.mrf.mxu1 }
 0x418   : > { %12183 = vst [vmem:[#allocation62_spill] sm:$0xff] %v8383_v8  ;;  %12184 = vst [vmem:[#allocation63_spill] sm:$0xff] %v8385_v18  ;;  %v3112_v59 = vmax.f32 %v8381_v9, %v8385_v18  ;;  %v3019_v4 = vmax.f32 %v8379_v24, %v8383_v8 }
 0x419   : > { %v8391_v51 = vpop.f32.mrf.mxu0  ;;  %v8393_v2 = vpop.f32.mrf.mxu1 }
 0x41a   : > { %12185 = vst [vmem:[#allocation64_spill] sm:$0xff] %v8391_v51  ;;  %12186 = vst [vmem:[#allocation65_spill] sm:$0xff] %v8393_v2  ;;  %3110 = vmax.xlane.f32.xlu0 %v3109_v32  ;;  %3113 = vmax.xlane.f32.xlu1 %v3112_v59 }
 0x41b   : > { %v8395_v45 = vpop.f32.mrf.mxu0  ;;  %v8397_v0 = vpop.f32.mrf.mxu1 }
 0x41c   : > { %12187 = vst [vmem:[#allocation66_spill] sm:$0xff] %v8395_v45  ;;  %12188 = vst [vmem:[#allocation67_spill] sm:$0xff] %v8397_v0  ;;  %v3022_v6 = vmax.f32 %v8391_v51, %v8395_v45  ;;  %v3115_v59 = vmax.f32 %v8393_v2, %v8397_v0 }
 0x41d   : > { %v8403_v20 = vpop.f32.mrf.mxu0  ;;  %v8405_v11 = vpop.f32.mrf.mxu1 }
 0x41e   : > { %12189 = vst [vmem:[#allocation68_spill] sm:$0xff] %v8403_v20  ;;  %12190 = vst [vmem:[#allocation69_spill] sm:$0xff] %v8405_v11  ;;  %3020 = vmax.xlane.f32.xlu0 %v3019_v4  ;;  %3023 = vmax.xlane.f32.xlu1 %v3022_v6 }
 0x41f   : > { %v8407_v18 = vpop.f32.mrf.mxu0  ;;  %v8409_v32 = vpop.f32.mrf.mxu1 }
 0x420   : > { %12191 = vst [vmem:[#allocation70_spill] sm:$0xff] %v8407_v18  ;;  %12192 = vst [vmem:[#allocation71_spill] sm:$0xff] %v8409_v32  ;;  %v3118_v9 = vmax.f32 %v8405_v11, %v8409_v32  ;;  %v3025_v6 = vmax.f32 %v8403_v20, %v8407_v18 }
 0x421   : > { %v8415_v8 = vpop.f32.mrf.mxu0  ;;  %v8417_v24 = vpop.f32.mrf.mxu1 }
 0x422   : > { %12193 = vst [vmem:[#allocation72_spill] sm:$0xff] %v8415_v8  ;;  %12194 = vst [vmem:[#allocation73_spill] sm:$0xff] %v8417_v24  ;;  %3116 = vmax.xlane.f32.xlu0 %v3115_v59  ;;  %3119 = vmax.xlane.f32.xlu1 %v3118_v9 }
 0x423   : > { %v8419_v45 = vpop.f32.mrf.mxu0  ;;  %v8421_v4 = vpop.f32.mrf.mxu1 }
 0x424   : > { %12195 = vst [vmem:[#allocation74_spill] sm:$0xff] %v8419_v45  ;;  %12196 = vst [vmem:[#allocation75_spill] sm:$0xff] %v8421_v4  ;;  %v3028_v51 = vmax.f32 %v8415_v8, %v8419_v45  ;;  %v3121_v9 = vmax.f32 %v8417_v24, %v8421_v4 }
 0x425   : > { %v8427_v0 = vpop.f32.mrf.mxu0  ;;  %v8429_v2 = vpop.f32.mrf.mxu1 }
 0x426   : > { %12197 = vst [vmem:[#allocation76_spill] sm:$0xff] %v8427_v0  ;;  %12198 = vst [vmem:[#allocation77_spill] sm:$0xff] %v8429_v2  ;;  %3026 = vmax.xlane.f32.xlu0 %v3025_v6  ;;  %3029 = vmax.xlane.f32.xlu1 %v3028_v51 }
 0x427   : > { %v8431_v32 = vpop.f32.mrf.mxu0  ;;  %v8433_v59 = vpop.f32.mrf.mxu1 }
 0x428   : > { %12199 = vst [vmem:[#allocation78_spill] sm:$0xff] %v8431_v32  ;;  %12200 = vst [vmem:[#allocation79_spill] sm:$0xff] %v8433_v59  ;;  %v3124_v11 = vmax.f32 %v8429_v2, %v8433_v59  ;;  %v3031_v51 = vmax.f32 %v8427_v0, %v8431_v32 }
 0x429   : > { %v8439_v18 = vpop.f32.mrf.mxu0  ;;  %v8441_v20 = vpop.f32.mrf.mxu1 }
 0x42a   : > { %12201 = vst [vmem:[#allocation80_spill] sm:$0xff] %v8439_v18  ;;  %12202 = vst [vmem:[#allocation81_spill] sm:$0xff] %v8441_v20  ;;  %3122 = vmax.xlane.f32.xlu0 %v3121_v9  ;;  %3125 = vmax.xlane.f32.xlu1 %v3124_v11 }
 0x42b   : > { %v8443_v45 = vpop.f32.mrf.mxu0  ;;  %v8445_v6 = vpop.f32.mrf.mxu1 }
 0x42c   : > { %12203 = vst [vmem:[#allocation82_spill] sm:$0xff] %v8443_v45  ;;  %12204 = vst [vmem:[#allocation83_spill] sm:$0xff] %v8445_v6  ;;  %v3034_v8 = vmax.f32 %v8439_v18, %v8443_v45  ;;  %v3127_v11 = vmax.f32 %v8441_v20, %v8445_v6 }
 0x42d   : > { %v8451_v4 = vpop.f32.mrf.mxu0  ;;  %v8453_v24 = vpop.f32.mrf.mxu1 }
 0x42e   : > { %12205 = vst [vmem:[#allocation84_spill] sm:$0xff] %v8451_v4  ;;  %12206 = vst [vmem:[#allocation85_spill] sm:$0xff] %v8453_v24  ;;  %3032 = vmax.xlane.f32.xlu0 %v3031_v51  ;;  %3035 = vmax.xlane.f32.xlu1 %v3034_v8 }
 0x42f   : > { %v8455_v59 = vpop.f32.mrf.mxu0  ;;  %v8457_v9 = vpop.f32.mrf.mxu1 }
 0x430   : > { %12207 = vst [vmem:[#allocation86_spill] sm:$0xff] %v8455_v59  ;;  %12208 = vst [vmem:[#allocation87_spill] sm:$0xff] %v8457_v9  ;;  %v3130_v2 = vmax.f32 %v8453_v24, %v8457_v9  ;;  %v3037_v8 = vmax.f32 %v8451_v4, %v8455_v59 }
 0x431   : > { %v8463_v32 = vpop.f32.mrf.mxu0  ;;  %v8465_v0 = vpop.f32.mrf.mxu1 }
 0x432   : > { %12209 = vst [vmem:[#allocation88_spill] sm:$0xff] %v8463_v32  ;;  %12210 = vst [vmem:[#allocation89_spill] sm:$0xff] %v8465_v0  ;;  %3128 = vmax.xlane.f32.xlu0 %v3127_v11  ;;  %3131 = vmax.xlane.f32.xlu1 %v3130_v2 }
 0x433   : > { %v8467_v45 = vpop.f32.mrf.mxu0  ;;  %v8469_v51 = vpop.f32.mrf.mxu1 }
 0x434   : > { %12211 = vst [vmem:[#allocation90_spill] sm:$0xff] %v8467_v45  ;;  %12212 = vst [vmem:[#allocation91_spill] sm:$0xff] %v8469_v51  ;;  %v3040_v18 = vmax.f32 %v8463_v32, %v8467_v45  ;;  %v3133_v2 = vmax.f32 %v8465_v0, %v8469_v51 }
 0x435   : > { %v8475_v6 = vpop.f32.mrf.mxu0  ;;  %v8477_v20 = vpop.f32.mrf.mxu1 }
 0x436   : > { %12213 = vst [vmem:[#allocation92_spill] sm:$0xff] %v8475_v6  ;;  %12214 = vst [vmem:[#allocation93_spill] sm:$0xff] %v8477_v20  ;;  %3038 = vmax.xlane.f32.xlu0 %v3037_v8  ;;  %3041 = vmax.xlane.f32.xlu1 %v3040_v18 }
 0x437   : > { %v8479_v9 = vpop.f32.mrf.mxu0  ;;  %v8481_v11 = vpop.f32.mrf.mxu1 }
 0x438   : > { %12215 = vst [vmem:[#allocation94_spill] sm:$0xff] %v8479_v9  ;;  %12216 = vst [vmem:[#allocation95_spill] sm:$0xff] %v8481_v11  ;;  %v3136_v24 = vmax.f32 %v8477_v20, %v8481_v11  ;;  %v3043_v18 = vmax.f32 %v8475_v6, %v8479_v9 }
 0x439   : > { %v8487_v59 = vpop.f32.mrf.mxu1  ;;  %v8489_v4 = vpop.f32.mrf.mxu0 }
 0x43a   : > { %12217 = vst [vmem:[#allocation96_spill] sm:$0xff] %v8487_v59  ;;  %12218 = vst [vmem:[#allocation97_spill] sm:$0xff] %v8489_v4  ;;  %3134 = vmax.xlane.f32.xlu0 %v3133_v2  ;;  %3137 = vmax.xlane.f32.xlu1 %v3136_v24 }
 0x43b   : > { %v8491_v45 = vpop.f32.mrf.mxu1  ;;  %v8493_v8 = vpop.f32.mrf.mxu0 }
 0x43c   : > { %12219 = vst [vmem:[#allocation98_spill] sm:$0xff] %v8491_v45  ;;  %12220 = vst [vmem:[#allocation99_spill] sm:$0xff] %v8493_v8  ;;  %v3142_v32 = vmax.f32 %v8489_v4, %v8493_v8  ;;  %v3139_v24 = vmax.f32 %v8487_v59, %v8491_v45 }
 0x43d   : > { %v8499_v51 = vpop.f32.mrf.mxu0  ;;  %v8501_v0 = vpop.f32.mrf.mxu1 }
 0x43e   : > { %12221 = vst [vmem:[#allocation100_spill] sm:$0xff] %v8499_v51  ;;  %12222 = vst [vmem:[#allocation101_spill] sm:$0xff] %v8501_v0  ;;  %3044 = vmax.xlane.f32.xlu0 %v3043_v18  ;;  %3143 = vmax.xlane.f32.xlu1 %v3142_v32 }
 0x43f   : > { %v8503_v11 = vpop.f32.mrf.mxu0  ;;  %v8505_v2 = vpop.f32.mrf.mxu1 }
 0x440   : > { %12223 = vst [vmem:[#allocation102_spill] sm:$0xff] %v8503_v11  ;;  %12224 = vst [vmem:[#allocation103_spill] sm:$0xff] %v8505_v2  ;;  %v3238_v20 = vmax.f32 %v8501_v0, %v8505_v2  ;;  %v3145_v32 = vmax.f32 %v8499_v51, %v8503_v11 }
 0x441   : > { %v8511_v9 = vpop.f32.mrf.mxu0  ;;  %v8513_v6 = vpop.f32.mrf.mxu1 }
 0x442   : > { %12225 = vst [vmem:[#allocation104_spill] sm:$0xff] %v8511_v9  ;;  %12226 = vst [vmem:[#allocation105_spill] sm:$0xff] %v8513_v6  ;;  %3140 = vmax.xlane.f32.xlu0 %v3139_v24  ;;  %3239 = vmax.xlane.f32.xlu1 %v3238_v20 }
 0x443   : > { %v8515_v8 = vpop.f32.mrf.mxu0  ;;  %v8517_v18 = vpop.f32.mrf.mxu1 }
 0x444   : > { %12227 = vst [vmem:[#allocation106_spill] sm:$0xff] %v8515_v8  ;;  %12228 = vst [vmem:[#allocation107_spill] sm:$0xff] %v8517_v18  ;;  %v3148_v4 = vmax.f32 %v8511_v9, %v8515_v8  ;;  %v3241_v20 = vmax.f32 %v8513_v6, %v8517_v18 }
 0x445   : > { %v8523_v45 = vpop.f32.mrf.mxu0  ;;  %v8525_v59 = vpop.f32.mrf.mxu1 }
 0x446   : > { %12229 = vst [vmem:[#allocation108_spill] sm:$0xff] %v8523_v45  ;;  %12230 = vst [vmem:[#allocation109_spill] sm:$0xff] %v8525_v59  ;;  %3146 = vmax.xlane.f32.xlu0 %v3145_v32  ;;  %3149 = vmax.xlane.f32.xlu1 %v3148_v4 }
 0x447   : > { %v2952_v2 = vpop.xlane.xlu1 %2951  ;;  %v8527_v0 = vpop.f32.mrf.mxu0 }
 0x448   : > { %12231 = vst [vmem:[#allocation110_spill] sm:$0xff] %v8527_v0  ;;  %v3334_v24 = vsub.f32 %v8075_v12, %v2952_v2  ;;  %v3335_v13 = vsub.f32 %v8081_v14, %v2952_v2  ;;  %v8533_v11 = vpop.f32.mrf.mxu1  ;;  %v3151_v17 = vmax.f32 %v8523_v45, %v8527_v0 }
 0x449   : > { %12232 = vst [vmem:[#allocation111_spill] sm:$0xff] %v8533_v11  ;;  %v3244_v8 = vmax.f32 %v8525_v59, %v8533_v11  ;;  %v8537_v9 = vpop.f32.mrf.mxu0 }
 0x44a   : > { %12233 = vst [vmem:[#allocation112_spill] sm:$0xff] %v8537_v9  ;;  %v3590_v51 = vmul.f32 1.442695, %v3334_v24  ;;  %v3592_v32 = vmul.f32 1.442695, %v3335_v13  ;;  %v8539_v4 = vpop.f32.mrf.mxu1  ;;  %3242 = vmax.xlane.f32.xlu0 %v3241_v20 }
 0x44b   : > { %12234 = vst [vmem:[#allocation113_spill] sm:$0xff] %v8539_v4  ;;  %3245 = vmax.xlane.f32.xlu1 %v3244_v8  ;;  %v2955_v18 = vpop.xlane.xlu0 %2954  ;;  %v8543_v12 = vpop.f32.mrf.mxu0 }
 0x44c   : > { %12235 = vst [vmem:[#allocation114_spill] sm:$0xff] %v8543_v12  ;;  %6672 = vpow2.f32 %v3590_v51  ;;  %v3336_v14 = vsub.f32 %v8085_v49, %v2955_v18  ;;  %v3337_v2 = vsub.f32 %v8091_v16, %v2955_v18  ;;  %v3154_v11 = vmax.f32 %v8537_v9, %v8543_v12  ;;  %v3048_v24 = vpop.xlane.xlu1 %3047  ;;  %v8549_v13 = vpop.f32.mrf.mxu1 }
 0x44d   : > { %12236 = vst [vmem:[#allocation115_spill] sm:$0xff] %v8549_v13  ;;  %6674 = vpow2.f32 %v3592_v32  ;;  %v3398_v20 = vsub.f32 %v8087_v58, %v3048_v24  ;;  %v3399_v0 = vsub.f32 %v8093_v56, %v3048_v24  ;;  %v8553_v8 = vpop.f32.mrf.mxu0  ;;  %v3247_v12 = vmax.f32 %v8539_v4, %v8549_v13 }
 0x44e   : > { %12237 = vst [vmem:[#allocation116_spill] sm:$0xff] %v8553_v8  ;;  %v3594_v45 = vmul.f32 1.442695, %v3336_v14  ;;  %v8555_v59 = vpop.f32.mrf.mxu1  ;;  %3152 = vmax.xlane.f32.xlu0 %v3151_v17  ;;  %v3596_v49 = vmul.f32 1.442695, %v3337_v2 }
 0x44f   : > { %12238 = vst [vmem:[#allocation117_spill] sm:$0xff] %v8555_v59  ;;  %3155 = vmax.xlane.f32.xlu1 %v3154_v11  ;;  %v8557_v16 = vpop.f32.mrf.mxu0  ;;  %v3051_v51 = vpop.xlane.xlu0 %3050  ;;  %v3718_v18 = vmul.f32 1.442695, %v3398_v20  ;;  %v3720_v58 = vmul.f32 1.442695, %v3399_v0 }
 0x450   : > { %12239 = vst [vmem:[#allocation118_spill] sm:$0xff] %v8557_v16  ;;  %v2958_v32 = vpop.xlane.xlu1 %2957  ;;  %v8561_v9 = vpop.f32.mrf.mxu1  ;;  %6676 = vpow2.f32 %v3594_v45  ;;  %v3400_v17 = vsub.f32 %v8101_v22, %v3051_v51  ;;  %v3157_v0 = vmax.f32 %v8553_v8, %v8557_v16  ;;  %v3401_v13 = vsub.f32 %v8106_v27, %v3051_v51 }
 0x451   : > { %12240 = vst [vmem:[#allocation119_spill] sm:$0xff] %v8561_v9  ;;  %v3250_v56 = vmax.f32 %v8555_v59, %v8561_v9  ;;  %v8565_v14 = vpop.f32.mrf.mxu0  ;;  %6678 = vpow2.f32 %v3596_v49  ;;  %v3338_v2 = vsub.f32 %v8099_v21, %v2958_v32 }
 0x452   : > { %12241 = vst [vmem:[#allocation120_spill] sm:$0xff] %v8565_v14  ;;  %v8568_v11 = vpop.f32.mrf.mxu1  ;;  %3248 = vmax.xlane.f32.xlu0 %v3247_v12  ;;  %6680 = vpow2.f32 %v3718_v18  ;;  %v3339_v12 = vsub.f32 %v8104_v25, %v2958_v32  ;;  %v3722_v49 = vmul.f32 1.442695, %v3400_v17  ;;  %v3724_v51 = vmul.f32 1.442695, %v3401_v13 }
 0x453   : > { %12242 = vst [vmem:[#allocation121_spill] sm:$0xff] %v8568_v11  ;;  %3251 = vmax.xlane.f32.xlu1 %v3250_v56  ;;  %v8571_v24 = vpop.f32.mrf.mxu0  ;;  %v2961_v20 = vpop.xlane.xlu0 %2960  ;;  %6682 = vpow2.f32 %v3720_v58  ;;  %v3598_v18 = vmul.f32 1.442695, %v3338_v2 }
 0x454   : > { %12243 = vst [vmem:[#allocation122_spill] sm:$0xff] %v8571_v24  ;;  %v3160_v45 = vmax.f32 %v8565_v14, %v8571_v24  ;;  %v3054_v22 = vpop.xlane.xlu1 %3053  ;;  %v8578_v4 = vpop.f32.mrf.mxu1  ;;  %v3600_v32 = vmul.f32 1.442695, %v3339_v12  ;;  %6684 = vpow2.f32 %v3722_v49  ;;  %v3340_v13 = vsub.f32 %v8113_v33, %v2961_v20 }
 0x455   : > { %12244 = vst [vmem:[#allocation123_spill] sm:$0xff] %v8578_v4  ;;  %v8581_v21 = vpop.f32.mrf.mxu0  ;;  %v3253_v24 = vmax.f32 %v8568_v11, %v8578_v4  ;;  %6686 = vpow2.f32 %v3598_v18  ;;  %v3341_v4 = vsub.f32 %v8118_v36, %v2961_v20 }
 0x456   : > { %12245 = vst [vmem:[#allocation124_spill] sm:$0xff] %v8581_v21  ;;  %v8583_v56 = vpop.f32.mrf.mxu1  ;;  %3158 = vmax.xlane.f32.xlu0 %v3157_v0  ;;  %6688 = vpow2.f32 %v3724_v51  ;;  %v3602_v18 = vmul.f32 1.442695, %v3340_v13 }
 0x457   : > { %12246 = vst [vmem:[#allocation125_spill] sm:$0xff] %v8583_v56  ;;  %3161 = vmax.xlane.f32.xlu1 %v3160_v45  ;;  %v8585_v16 = vpop.f32.mrf.mxu0  ;;  %v8587_v27 = vpop.xlane.xlu0 %3056  ;;  %6690 = vpow2.f32 %v3600_v32 }
 0x458   : > { %12247 = vst [vmem:[#allocation126_spill] sm:$0xff] %v8585_v16  ;;  %v8591_v14 = vpop.xlane.xlu1 %2963  ;;  %v8593_v58 = vpop.f32.mrf.mxu1  ;;  %6692 = vpow2.f32 %v3602_v18 }
 0x459   : > { %12248 = vst [vmem:[#allocation127_spill] sm:$0xff] %v8593_v58  ;;  %v8595_v25 = vpop.eup %6672  ;;  %v3256_v17 = vmax.f32 %v8583_v56, %v8593_v58  ;;  %v8599_v2 = vpop.f32.mrf.mxu0  ;;  %v3402_v58 = vsub.f32 %v8115_v34, %v3054_v22  ;;  %v3163_v56 = vmax.f32 %v8581_v21, %v8585_v16 }
 0x45a   : > { %12249 = vst [vmem:[#allocation128_spill] sm:$0xff] %v8595_v25  ;;  %12250 = vst [vmem:[#allocation129_spill] sm:$0xff] %v8599_v2  ;;  %v8601_v0 = vpop.eup %6674  ;;  %v8604_v45 = vpop.f32.mrf.mxu1  ;;  %3254 = vmax.xlane.f32.xlu0 %v3253_v24  ;;  %v3403_v24 = vsub.f32 %v8120_v37, %v3054_v22 }
 0x45b   : > { %12251 = vst [vmem:[#allocation130_spill] sm:$0xff] %v8601_v0  ;;  %12252 = vst [vmem:[#allocation131_spill] sm:$0xff] %v8604_v45  ;;  %3257 = vmax.xlane.f32.xlu1 %v3256_v17  ;;  %v8607_v11 = vpop.xlane.xlu0 %2966  ;;  %v8609_v12 = vpop.f32.mrf.mxu0  ;;  %v4102_v36 = vadd.f32 %v8601_v0, %v8595_v25  ;;  %v3604_v17 = vmul.f32 1.442695, %v3341_v4  ;;  %v3726_v22 = vmul.f32 1.442695, %v3402_v58 }
 0x45c   : > { %12253 = vst [vmem:[#allocation132_spill] sm:$0xff] %v8609_v12  ;;  %v8614_v49 = vpop.xlane.xlu1 %3059  ;;  %v8616_v33 = vpop.f32.mrf.mxu1  ;;  %v3166_v16 = vmax.f32 %v8599_v2, %v8609_v12  ;;  %v3728_v4 = vmul.f32 1.442695, %v3403_v24  ;;  %v3404_v12 = vsub.f32 %v8129_v41, %v8587_v27  ;;  %v3405_v24 = vsub.f32 %v8134_v44, %v8587_v27 }
 0x45d   : > { %12254 = vst [vmem:[#allocation133_spill] sm:$0xff] %v8616_v33  ;;  %v8621_v20 = vpop.f32.mrf.mxu0  ;;  %v8625_v34 = vpop.eup %6676  ;;  %v3259_v13 = vmax.f32 %v8604_v45, %v8616_v33  ;;  %6694 = vpow2.f32 %v3604_v17  ;;  %v3342_v33 = vsub.f32 %v8127_v40, %v8591_v14  ;;  %v3343_v40 = vsub.f32 %v8132_v43, %v8591_v14 }
 0x45e   : > { %12255 = vst [vmem:[#allocation134_spill] sm:$0xff] %v8621_v20  ;;  %3164 = vmax.xlane.f32.xlu0 %v3163_v56  ;;  %v8623_v51 = vpop.f32.mrf.mxu1  ;;  %12257 = vst [vmem:[#allocation136_spill] sm:$0xff] %v8625_v34  ;;  %v8633_v37 = vpop.eup %6678  ;;  %6696 = vpow2.f32 %v3726_v22  ;;  %v3730_v22 = vmul.f32 1.442695, %v3404_v12  ;;  %v3732_v14 = vmul.f32 1.442695, %v3405_v24 }
 0x45f   : > { %12256 = vst [vmem:[#allocation135_spill] sm:$0xff] %v8623_v51  ;;  %4103 = vadd.xlane.f32.xlu1 %v4102_v36  ;;  %v8629_v21 = vpop.xlane.xlu0 %3062  ;;  %v8631_v32 = vpop.f32.mrf.mxu0  ;;  %12259 = vst [vmem:[#allocation138_spill] sm:$0xff] %v8633_v37  ;;  %v4105_v41 = vadd.f32 %v8633_v37, %v8625_v34  ;;  %6698 = vpow2.f32 %v3728_v4  ;;  %v3606_v27 = vmul.f32 1.442695, %v3342_v33  ;;  %v3608_v33 = vmul.f32 1.442695, %v3343_v40 }
 0x460   : > { %12258 = vst [vmem:[#allocation137_spill] sm:$0xff] %v8631_v32  ;;  %v8637_v56 = vpop.xlane.xlu1 %2969  ;;  %v8639_v8 = vpop.f32.mrf.mxu1  ;;  %v3169_v12 = vmax.f32 %v8621_v20, %v8631_v32  ;;  %6700 = vpow2.f32 %v3730_v22  ;;  %v3406_v40 = vsub.f32 %v8143_v48, %v8614_v49 }
 0x461   : > { %12260 = vst [vmem:[#allocation139_spill] sm:$0xff] %v8639_v8  ;;  %v8641_v9 = vpop.eup %6680  ;;  %v8643_v59 = vpop.f32.mrf.mxu0  ;;  %v3262_v34 = vmax.f32 %v8623_v51, %v8639_v8  ;;  %v3344_v8 = vsub.f32 %v8141_v47, %v8607_v11  ;;  %6702 = vpow2.f32 %v3606_v27  ;;  %v3345_v51 = vsub.f32 %v8146_v54, %v8607_v11 }
 0x462   : > { %12261 = vst [vmem:[#allocation140_spill] sm:$0xff] %v8641_v9  ;;  %12262 = vst [vmem:[#allocation141_spill] sm:$0xff] %v8643_v59  ;;  %v8645_v36 = vpop.eup %6682  ;;  %3260 = vmax.xlane.f32.xlu0 %v3259_v13  ;;  %v8649_v58 = vpop.f32.mrf.mxu1  ;;  %6704 = vpow2.f32 %v3732_v14  ;;  %v3407_v54 = vsub.f32 %v8148_v55, %v8614_v49  ;;  %v3734_v49 = vmul.f32 1.442695, %v3406_v40 }
 0x463   : > { %12263 = vst [vmem:[#allocation142_spill] sm:$0xff] %v8645_v36  ;;  %12264 = vst [vmem:[#allocation143_spill] sm:$0xff] %v8649_v58  ;;  %3167 = vmax.xlane.f32.xlu1 %v3166_v16  ;;  %v8653_v45 = vpop.xlane.xlu0 %2972  ;;  %v8655_v2 = vpop.f32.mrf.mxu0  ;;  %v4198_v16 = vadd.f32 %v8645_v36, %v8641_v9  ;;  %6706 = vpow2.f32 %v3608_v33  ;;  %v3610_v27 = vmul.f32 1.442695, %v3344_v8  ;;  %v3612_v6 = vmul.f32 1.442695, %v3345_v51 }
 0x464   : > { %12265 = vst [vmem:[#allocation144_spill] sm:$0xff] %v8655_v2  ;;  %v8659_v18 = vpop.xlane.xlu1 %3065  ;;  %v8663_v13 = vpop.f32.mrf.mxu1  ;;  %v3736_v51 = vmul.f32 1.442695, %v3407_v54  ;;  %v3409_v54 = vsub.f32 %v8162_v5, %v8629_v21 }
 0x465   : > { %12266 = vst [vmem:[#allocation145_spill] sm:$0xff] %v8663_v13  ;;  %v8669_v17 = vpop.f32.mrf.mxu0  ;;  %v8673_v44 = vpop.eup %6684  ;;  %v3265_v8 = vmax.f32 %v8649_v58, %v8663_v13  ;;  %6708 = vpow2.f32 %v3610_v27  ;;  %v3346_v13 = vsub.f32 %v8155_v61, %v8637_v56  ;;  %v3347_v61 = vsub.f32 %v8160_v3, %v8637_v56 }
 0x466   : > { %12267 = vst [vmem:[#allocation146_spill] sm:$0xff] %v8669_v17  ;;  %4106 = vadd.xlane.f32.xlu0 %v4105_v41  ;;  %v8671_v25 = vpop.f32.mrf.mxu1  ;;  %12269 = vst [vmem:[#allocation148_spill] sm:$0xff] %v8673_v44  ;;  %v8681_v43 = vpop.eup %6686  ;;  %6710 = vpow2.f32 %v3612_v6  ;;  %v3740_v56 = vmul.f32 1.442695, %v3409_v54 }
 0x467   : > { %12268 = vst [vmem:[#allocation147_spill] sm:$0xff] %v8671_v25  ;;  %4199 = vadd.xlane.f32.xlu1 %v4198_v16  ;;  %v8677_v4 = vpop.xlane.xlu0 %3068  ;;  %v8679_v37 = vpop.f32.mrf.mxu0  ;;  %12271 = vst [vmem:[#allocation150_spill] sm:$0xff] %v8681_v43  ;;  %6712 = vpow2.f32 %v3734_v49 }
 0x468   : > { %12270 = vst [vmem:[#allocation149_spill] sm:$0xff] %v8679_v37  ;;  %v8685_v41 = vpop.xlane.xlu1 %2975  ;;  %v8687_v9 = vpop.f32.mrf.mxu1  ;;  %6714 = vpow2.f32 %v3736_v51 }
 0x469   : > { %12272 = vst [vmem:[#allocation151_spill] sm:$0xff] %v8687_v9  ;;  %v8689_v36 = vpop.eup %6688  ;;  %v8691_v0 = vpop.f32.mrf.mxu0 }
 0x46a   : > { %12273 = vst [vmem:[#allocation152_spill] sm:$0xff] %v8689_v36  ;;  %v8693_v16 = vpop.eup %6690  ;;  %3170 = vmax.xlane.f32.xlu0 %v3169_v12  ;;  %v8697_v24 = vpop.f32.mrf.mxu1  ;;  %v4201_v47 = vadd.f32 %v8689_v36, %v8673_v44  ;;  %v3172_v44 = vmax.f32 %v8643_v59, %v8655_v2  ;;  %v3408_v2 = vsub.f32 %v8157_v62, %v8629_v21  ;;  %v3614_v21 = vmul.f32 1.442695, %v3346_v13 }
 0x46b   : > { %12274 = vst [vmem:[#allocation153_spill] sm:$0xff] %v8693_v16  ;;  %3263 = vmax.xlane.f32.xlu1 %v3262_v34  ;;  %v8701_v32 = vpop.xlane.xlu0 %2978  ;;  %v8703_v20 = vpop.f32.mrf.mxu0  ;;  %v4108_v11 = vadd.f32 %v8693_v16, %v8681_v43  ;;  %v3616_v13 = vmul.f32 1.442695, %v3347_v61  ;;  %v3410_v61 = vsub.f32 %v8171_v50, %v8659_v18 }
 0x46c   : > { %v8707_v22 = vpop.xlane.xlu1 %3071  ;;  %v8711_v12 = vpop.f32.mrf.mxu1  ;;  %v3738_v49 = vmul.f32 1.442695, %v3408_v2  ;;  %v3175_v2 = vmax.f32 %v8669_v17, %v8679_v37 }
 0x46d   : > { %12275 = vst [vmem:[#allocation154_spill] sm:$0xff] %v8711_v12  ;;  %v8717_v34 = vpop.f32.mrf.mxu0  ;;  %v8721_v48 = vpop.eup %6692 }
 0x46e   : > { %12276 = vst [vmem:[#allocation155_spill] sm:$0xff] %v8717_v34  ;;  %4202 = vadd.xlane.f32.xlu0 %v4201_v47  ;;  %v8719_v14 = vpop.f32.mrf.mxu1  ;;  %12278 = vst [vmem:[#allocation157_spill] sm:$0xff] %v8721_v48  ;;  %v8729_v55 = vpop.eup %6694  ;;  %6716 = vpow2.f32 %v3738_v49 }
 0x46f   : > { %12277 = vst [vmem:[#allocation156_spill] sm:$0xff] %v8719_v14  ;;  %4109 = vadd.xlane.f32.xlu1 %v4108_v11  ;;  %v8725_v33 = vpop.xlane.xlu0 %3074  ;;  %v8727_v36 = vpop.f32.mrf.mxu0  ;;  %12280 = vst [vmem:[#allocation159_spill] sm:$0xff] %v8729_v55  ;;  %v4111_v62 = vadd.f32 %v8729_v55, %v8721_v48  ;;  %v3268_v48 = vmax.f32 %v8671_v25, %v8687_v9  ;;  %v3348_v9 = vsub.f32 %v8169_v53, %v8653_v45 }
 0x470   : > { %12279 = vst [vmem:[#allocation158_spill] sm:$0xff] %v8727_v36  ;;  %v8733_v47 = vpop.xlane.xlu1 %2981  ;;  %v8735_v43 = vpop.f32.mrf.mxu1  ;;  %6718 = vpow2.f32 %v3614_v21  ;;  %v3349_v25 = vsub.f32 %v8174_v63, %v8653_v45  ;;  %v3411_v21 = vsub.f32 %v8176_v57, %v8659_v18 }
 0x471   : > { %12281 = vst [vmem:[#allocation160_spill] sm:$0xff] %v8735_v43  ;;  %v8737_v16 = vpop.eup %6696  ;;  %v8739_v23 = vpop.f32.mrf.mxu0  ;;  %6720 = vpow2.f32 %v3740_v56 }
 0x472   : > { %12282 = vst [vmem:[#allocation161_spill] sm:$0xff] %v8737_v16  ;;  %12283 = vst [vmem:[#allocation162_spill] sm:$0xff] %v8739_v23  ;;  %v8741_v11 = vpop.eup %6698  ;;  %3266 = vmax.xlane.f32.xlu0 %v3265_v8  ;;  %v8745_v40 = vpop.f32.mrf.mxu1  ;;  %6722 = vpow2.f32 %v3616_v13  ;;  %v3178_v13 = vmax.f32 %v8691_v0, %v8703_v20 }
 0x473   : > { %12284 = vst [vmem:[#allocation163_spill] sm:$0xff] %v8741_v11  ;;  %12285 = vst [vmem:[#allocation164_spill] sm:$0xff] %v8745_v40  ;;  %3173 = vmax.xlane.f32.xlu1 %v3172_v44  ;;  %v8749_v58 = vpop.xlane.xlu0 %2984  ;;  %v8751_v59 = vpop.f32.mrf.mxu0  ;;  %v4204_v6 = vadd.f32 %v8741_v11, %v8737_v16 }
 0x474   : > { %12286 = vst [vmem:[#allocation165_spill] sm:$0xff] %v8751_v59  ;;  %v8755_v27 = vpop.xlane.xlu1 %3077  ;;  %v8759_v8 = vpop.f32.mrf.mxu1 }
 0x475   : > { %12287 = vst [vmem:[#allocation166_spill] sm:$0xff] %v8759_v8  ;;  %v8765_v44 = vpop.f32.mrf.mxu0  ;;  %v8769_v5 = vpop.eup %6700 }
 0x476   : > { %12288 = vst [vmem:[#allocation167_spill] sm:$0xff] %v8765_v44  ;;  %4112 = vadd.xlane.f32.xlu0 %v4111_v62  ;;  %v8767_v26 = vpop.f32.mrf.mxu1  ;;  %12290 = vst [vmem:[#allocation169_spill] sm:$0xff] %v8769_v5  ;;  %v8777_v3 = vpop.eup %6702 }
 0x477   : > { %12289 = vst [vmem:[#allocation168_spill] sm:$0xff] %v8767_v26  ;;  %4205 = vadd.xlane.f32.xlu1 %v4204_v6  ;;  %v8773_v51 = vpop.xlane.xlu0 %3080  ;;  %v8775_v55 = vpop.f32.mrf.mxu0  ;;  %12292 = vst [vmem:[#allocation171_spill] sm:$0xff] %v8777_v3 }
 0x478   : > { %12291 = vst [vmem:[#allocation170_spill] sm:$0xff] %v8775_v55  ;;  %v8781_v62 = vpop.xlane.xlu1 %2987  ;;  %v8783_v16 = vpop.f32.mrf.mxu1 }
 0x479   : > { %12293 = vst [vmem:[#allocation172_spill] sm:$0xff] %v8783_v16  ;;  %v8785_v11 = vpop.eup %6704  ;;  %v8787_v44 = vpop.f32.mrf.mxu0 }
 0x47a   : > { %12294 = vst [vmem:[#allocation173_spill] sm:$0xff] %v8785_v11  ;;  %12295 = vst [vmem:[#allocation174_spill] sm:$0xff] %v8787_v44  ;;  %v8789_v6 = vpop.eup %6706  ;;  %3176 = vmax.xlane.f32.xlu0 %v3175_v2  ;;  %v8793_v54 = vpop.f32.mrf.mxu1  ;;  %v4207_v49 = vadd.f32 %v8785_v11, %v8769_v5  ;;  %v3620_v44 = vmul.f32 1.442695, %v3349_v25 }
 0x47b   : > { %12296 = vst [vmem:[#allocation175_spill] sm:$0xff] %v8789_v6  ;;  %12297 = vst [vmem:[#allocation176_spill] sm:$0xff] %v8793_v54  ;;  %3269 = vmax.xlane.f32.xlu1 %v3268_v48  ;;  %v8797_v37 = vpop.xlane.xlu0 %2990  ;;  %v8799_v17 = vpop.f32.mrf.mxu0  ;;  %v4114_v63 = vadd.f32 %v8789_v6, %v8777_v3  ;;  %v3618_v48 = vmul.f32 1.442695, %v3348_v9  ;;  %v3271_v9 = vmax.f32 %v8697_v24, %v8711_v12  ;;  %v3744_v3 = vmul.f32 1.442695, %v3411_v21 }
 0x47c   : > { %12298 = vst [vmem:[#allocation177_spill] sm:$0xff] %v8799_v17  ;;  %v8805_v53 = vpop.f32.mrf.mxu1  ;;  %v8813_v2 = vpop.xlane.xlu1 %3083  ;;  %v3413_v21 = vsub.f32 %v8190_v39, %v8677_v4 }
 0x47d   : > { %12299 = vst [vmem:[#allocation178_spill] sm:$0xff] %v8805_v53  ;;  %v8811_v45 = vpop.f32.mrf.mxu0  ;;  %v8817_v50 = vpop.eup %6708  ;;  %6724 = vpow2.f32 %v3618_v48 }
 0x47e   : > { %12300 = vst [vmem:[#allocation179_spill] sm:$0xff] %v8811_v45  ;;  %4208 = vadd.xlane.f32.xlu0 %v4207_v49  ;;  %v8815_v56 = vpop.f32.mrf.mxu1  ;;  %12302 = vst [vmem:[#allocation181_spill] sm:$0xff] %v8817_v50  ;;  %v8825_v18 = vpop.eup %6710  ;;  %v3742_v45 = vmul.f32 1.442695, %v3410_v61  ;;  %6726 = vpow2.f32 %v3620_v44  ;;  %v3350_v61 = vsub.f32 %v8183_v30, %v8685_v41  ;;  %v3351_v30 = vsub.f32 %v8188_v38, %v8685_v41 }
 0x47f   : > { %12301 = vst [vmem:[#allocation180_spill] sm:$0xff] %v8815_v56  ;;  %4115 = vadd.xlane.f32.xlu1 %v4114_v63  ;;  %v8821_v17 = vpop.xlane.xlu0 %2993  ;;  %v8823_v57 = vpop.f32.mrf.mxu0  ;;  %12304 = vst [vmem:[#allocation183_spill] sm:$0xff] %v8825_v18  ;;  %v3412_v63 = vsub.f32 %v8185_v31, %v8677_v4  ;;  %v4117_v48 = vadd.f32 %v8825_v18, %v8817_v50  ;;  %v3748_v41 = vmul.f32 1.442695, %v3413_v21 }
 0x480   : > { %12303 = vst [vmem:[#allocation182_spill] sm:$0xff] %v8823_v57  ;;  %v8829_v49 = vpop.f32.mrf.mxu1  ;;  %v8831_v56 = vpop.eup %6712  ;;  %6728 = vpow2.f32 %v3742_v45  ;;  %v3622_v4 = vmul.f32 1.442695, %v3350_v61  ;;  %v3352_v21 = vsub.f32 %v8197_v46, %v8701_v32 }
 0x481   : > { %12305 = vst [vmem:[#allocation184_spill] sm:$0xff] %v8829_v49  ;;  %12306 = vst [vmem:[#allocation185_spill] sm:$0xff] %v8831_v56  ;;  %v8833_v25 = vpop.f32.mrf.mxu0  ;;  %v8835_v6 = vpop.eup %6714  ;;  %6730 = vpow2.f32 %v3744_v3 }
 0x482   : > { %12307 = vst [vmem:[#allocation186_spill] sm:$0xff] %v8833_v25  ;;  %12308 = vst [vmem:[#allocation187_spill] sm:$0xff] %v8835_v6  ;;  %3272 = vmax.xlane.f32.xlu0 %v3271_v9  ;;  %v8839_v57 = vpop.f32.mrf.mxu1  ;;  %v4210_v44 = vadd.f32 %v8835_v6, %v8831_v56  ;;  %v8863_v39 = vpop.eup %6716  ;;  %v3274_v25 = vmax.f32 %v8719_v14, %v8735_v43 }
 0x483   : > { %12309 = vst [vmem:[#allocation188_spill] sm:$0xff] %v8839_v57  ;;  %3179 = vmax.xlane.f32.xlu1 %v3178_v13  ;;  %v8843_v49 = vpop.xlane.xlu1 %2996  ;;  %v8845_v12 = vpop.xlane.xlu0 %3086  ;;  %v3746_v13 = vmul.f32 1.442695, %v3412_v63  ;;  %12314 = vst [vmem:[#allocation193_spill] sm:$0xff] %v8863_v39  ;;  %v3414_v63 = vsub.f32 %v8199_v52, %v8707_v22 }
 0x484   : > { %v8851_v31 = vpop.f32.mrf.mxu0  ;;  %v8853_v9 = vpop.f32.mrf.mxu1 }
 0x485   : > { %12310 = vst [vmem:[#allocation189_spill] sm:$0xff] %v8851_v31  ;;  %12311 = vst [vmem:[#allocation190_spill] sm:$0xff] %v8853_v9  ;;  %v8871_v38 = vpop.eup %6718  ;;  %v3415_v31 = vsub.f32 %v8204_v1, %v8707_v22  ;;  %6732 = vpow2.f32 %v3746_v13  ;;  %v3750_v1 = vmul.f32 1.442695, %v3414_v63  ;;  %v3354_v22 = vsub.f32 %v8211_v15, %v8733_v47 }
 0x486   : > { %4118 = vadd.xlane.f32.xlu0 %v4117_v48  ;;  %v8859_v45 = vpop.f32.mrf.mxu0  ;;  %v8861_v57 = vpop.f32.mrf.mxu1  ;;  %12315 = vst [vmem:[#allocation194_spill] sm:$0xff] %v8871_v38  ;;  %v3181_v48 = vmax.f32 %v8717_v34, %v8727_v36  ;;  %6734 = vpow2.f32 %v3622_v4 }
 0x487   : > { %12312 = vst [vmem:[#allocation191_spill] sm:$0xff] %v8859_v45  ;;  %12313 = vst [vmem:[#allocation192_spill] sm:$0xff] %v8861_v57  ;;  %4211 = vadd.xlane.f32.xlu1 %v4210_v44  ;;  %v8867_v3 = vpop.xlane.xlu1 %2999  ;;  %v8869_v9 = vpop.xlane.xlu0 %3089  ;;  %v3624_v44 = vmul.f32 1.442695, %v3351_v30  ;;  %6736 = vpow2.f32 %v3748_v41  ;;  %v3752_v4 = vmul.f32 1.442695, %v3415_v31  ;;  %v3416_v41 = vsub.f32 %v8213_v19, %v8725_v33 }
 0x488   : > { %v8877_v45 = vpop.f32.mrf.mxu0  ;;  %v8879_v61 = vpop.f32.mrf.mxu1  ;;  %v3417_v31 = vsub.f32 %v8218_v42, %v8725_v33 }
 0x489   : > { %12316 = vst [vmem:[#allocation195_spill] sm:$0xff] %v8877_v45  ;;  %12317 = vst [vmem:[#allocation196_spill] sm:$0xff] %v8879_v61  ;;  %v8881_v57 = vpop.eup %6720  ;;  %v3353_v45 = vsub.f32 %v8202_v60, %v8701_v32  ;;  %6738 = vpow2.f32 %v3624_v44  ;;  %v3355_v60 = vsub.f32 %v8216_v35, %v8733_v47  ;;  %v3184_v35 = vmax.f32 %v8739_v23, %v8751_v59 }
 0x48a   : > { %12318 = vst [vmem:[#allocation197_spill] sm:$0xff] %v8881_v57  ;;  %v8885_v56 = vpop.eup %6722  ;;  %3182 = vmax.xlane.f32.xlu0 %v3181_v48  ;;  %v8889_v52 = vpop.f32.mrf.mxu0  ;;  %v4213_v46 = vadd.f32 %v8881_v57, %v8863_v39  ;;  %6740 = vpow2.f32 %v3750_v1  ;;  %v3754_v1 = vmul.f32 1.442695, %v3416_v41 }
 0x48b   : > { %12319 = vst [vmem:[#allocation198_spill] sm:$0xff] %v8885_v56  ;;  %12320 = vst [vmem:[#allocation199_spill] sm:$0xff] %v8889_v52  ;;  %v8891_v6 = vpop.f32.mrf.mxu1  ;;  %3275 = vmax.xlane.f32.xlu1 %v3274_v25  ;;  %v8895_v30 = vpop.xlane.xlu0 %3092  ;;  %v4120_v32 = vadd.f32 %v8885_v56, %v8871_v38  ;;  %v3626_v25 = vmul.f32 1.442695, %v3352_v21  ;;  %v3630_v21 = vmul.f32 1.442695, %v3354_v22  ;;  %6742 = vpow2.f32 %v3752_v4 }
 0x48c   : > { %12321 = vst [vmem:[#allocation200_spill] sm:$0xff] %v8891_v6  ;;  %v8897_v61 = vpop.xlane.xlu1 %3095  ;;  %v8903_v13 = vpop.f32.mrf.mxu0  ;;  %v3419_v56 = vsub.f32 %v8232_v10, %v8755_v27  ;;  %v3357_v4 = vsub.f32 %v8230_v7, %v8749_v58 }
 0x48d   : > { %12322 = vst [vmem:[#allocation201_spill] sm:$0xff] %v8903_v13  ;;  %v8905_v48 = vpop.f32.mrf.mxu1  ;;  %v8917_v6 = vpop.eup %6724  ;;  %6744 = vpow2.f32 %v3626_v25  ;;  %v12334_v25 = vld [vmem:[#allocation16_spill] sm:$0xff] }
 0x48e   : > { %12323 = vst [vmem:[#allocation202_spill] sm:$0xff] %v8905_v48  ;;  %4214 = vadd.xlane.f32.xlu0 %v4213_v46  ;;  %v8913_v15 = vpop.f32.mrf.mxu0  ;;  %12326 = vst [vmem:[#allocation205_spill] sm:$0xff] %v8917_v6  ;;  %v3628_v48 = vmul.f32 1.442695, %v3353_v45  ;;  %v8927_v19 = vpop.eup %6726  ;;  %v3418_v46 = vsub.f32 %v8227_v28, %v8755_v27  ;;  %v3277_v45 = vmax.f32 %v8745_v40, %v8759_v8  ;;  %v3756_v8 = vmul.f32 1.442695, %v3417_v31 }
 0x48f   : > { %12324 = vst [vmem:[#allocation203_spill] sm:$0xff] %v8913_v15  ;;  %v8915_v63 = vpop.f32.mrf.mxu1  ;;  %4121 = vadd.xlane.f32.xlu1 %v4120_v32  ;;  %v8923_v47 = vpop.xlane.xlu0 %3002  ;;  %12327 = vst [vmem:[#allocation206_spill] sm:$0xff] %v8927_v19  ;;  %v3632_v32 = vmul.f32 1.442695, %v3355_v60  ;;  %v3356_v28 = vsub.f32 %v8225_v29, %v8749_v58  ;;  %v3358_v29 = vsub.f32 %v12334_v25, %v8781_v62 }
 0x490   : > { %12325 = vst [vmem:[#allocation204_spill] sm:$0xff] %v8915_v63  ;;  %v8925_v44 = vpop.xlane.xlu1 %3005  ;;  %v8933_v38 = vpop.f32.mrf.mxu0  ;;  %6746 = vpow2.f32 %v3628_v48  ;;  %v3758_v27 = vmul.f32 1.442695, %v3418_v46  ;;  %v4123_v41 = vadd.f32 %v8927_v19, %v8917_v6  ;;  %v12335_v48 = vld [vmem:[#allocation18_spill] sm:$0xff]  ;;  %v12338_v46 = vld [vmem:[#allocation17_spill] sm:$0xff] }
 0x491   : > { %12328 = vst [vmem:[#allocation207_spill] sm:$0xff] %v8933_v38  ;;  %v8935_v42 = vpop.f32.mrf.mxu1  ;;  %v8937_v33 = vpop.eup %6728  ;;  %6748 = vpow2.f32 %v3630_v21  ;;  %v3359_v31 = vsub.f32 %v12335_v48, %v8781_v62  ;;  %v3634_v21 = vmul.f32 1.442695, %v3356_v28  ;;  %v3420_v25 = vsub.f32 %v12338_v46, %v8773_v51 }
 0x492   : > { %12329 = vst [vmem:[#allocation208_spill] sm:$0xff] %v8935_v42  ;;  %12330 = vst [vmem:[#allocation209_spill] sm:$0xff] %v8937_v33  ;;  %v8941_v39 = vpop.eup %6730  ;;  %3278 = vmax.xlane.f32.xlu0 %v3277_v45  ;;  %v8945_v22 = vpop.f32.mrf.mxu0  ;;  %6750 = vpow2.f32 %v3632_v32  ;;  %v3760_v45 = vmul.f32 1.442695, %v3419_v56  ;;  %v3636_v56 = vmul.f32 1.442695, %v3357_v4  ;;  %v3280_v48 = vmax.f32 %v8767_v26, %v8783_v16 }
 0x493   : > { %12331 = vst [vmem:[#allocation210_spill] sm:$0xff] %v8941_v39  ;;  %12332 = vst [vmem:[#allocation211_spill] sm:$0xff] %v8945_v22  ;;  %v8947_v57 = vpop.f32.mrf.mxu1  ;;  %3185 = vmax.xlane.f32.xlu1 %v3184_v35  ;;  %v8951_v60 = vpop.xlane.xlu0 %3098  ;;  %v4216_v7 = vadd.f32 %v8941_v39, %v8937_v33  ;;  %6752 = vpow2.f32 %v3754_v1  ;;  %v12340_v32 = vld [vmem:[#allocation19_spill] sm:$0xff]  ;;  %v3638_v28 = vmul.f32 1.442695, %v3358_v29  ;;  %v12349_v29 = vld [vmem:[#allocation20_spill] sm:$0xff] }
 0x494   : > { %12333 = vst [vmem:[#allocation212_spill] sm:$0xff] %v8947_v57  ;;  %v8953_v10 = vpop.xlane.xlu1 %3101  ;;  %v8963_v58 = vpop.f32.mrf.mxu0  ;;  %6754 = vpow2.f32 %v3756_v8  ;;  %v3421_v62 = vsub.f32 %v12340_v32, %v8773_v51  ;;  %v12343_v8 = vld [vmem:[#allocation167_spill] sm:$0xff]  ;;  %v3640_v51 = vmul.f32 1.442695, %v3359_v31  ;;  %v12351_v26 = vld [vmem:[#allocation24_spill] sm:$0xff] }
 0x495   : > { %12336 = vst [vmem:[#allocation16_spill] sm:$0xff] %v8963_v58  ;;  %v8965_v35 = vpop.f32.mrf.mxu1  ;;  %v8969_v57 = vpop.eup %6732  ;;  %6756 = vpow2.f32 %v3758_v27  ;;  %v3187_v4 = vmax.f32 %v12343_v8, %v8775_v55  ;;  %v3762_v27 = vmul.f32 1.442695, %v3420_v25  ;;  %v12459_v22 = vld [vmem:[#allocation67_spill] sm:$0xff] }
 0x496   : > { %12337 = vst [vmem:[#allocation18_spill] sm:$0xff] %v8965_v35  ;;  %4124 = vadd.xlane.f32.xlu0 %v4123_v41  ;;  %12339 = vst [vmem:[#allocation17_spill] sm:$0xff] %v8969_v57  ;;  %v8979_v1 = vpop.eup %6734  ;;  %v12342_v41 = vld [vmem:[#allocation21_spill] sm:$0xff]  ;;  %6758 = vpow2.f32 %v3760_v45  ;;  %v8989_v19 = vpop.f32.mrf.mxu0  ;;  %v3764_v55 = vmul.f32 1.442695, %v3421_v62  ;;  %v12350_v45 = vld [vmem:[#allocation22_spill] sm:$0xff] }
 0x497   : > { %4217 = vadd.xlane.f32.xlu1 %v4216_v7  ;;  %v8975_v33 = vpop.xlane.xlu0 %3008  ;;  %12341 = vst [vmem:[#allocation19_spill] sm:$0xff] %v8979_v1  ;;  %v3422_v46 = vsub.f32 %v12342_v41, %v8813_v2  ;;  %v8985_v6 = vpop.eup %6736  ;;  %v12345_v7 = vld [vmem:[#allocation23_spill] sm:$0xff]  ;;  %6760 = vpow2.f32 %v3634_v21  ;;  %v3360_v41 = vsub.f32 %v12349_v29, %v8797_v37  ;;  %v3361_v31 = vsub.f32 %v12350_v45, %v8797_v37  ;;  %v12353_v62 = vld [vmem:[#allocation26_spill] sm:$0xff]  ;;  %v12357_v45 = vld [vmem:[#allocation25_spill] sm:$0xff] }
 0x498   : > { %v8977_v39 = vpop.xlane.xlu1 %3011  ;;  %12344 = vst [vmem:[#allocation21_spill] sm:$0xff] %v8985_v6  ;;  %v3423_v32 = vsub.f32 %v12345_v7, %v8813_v2  ;;  %12346 = vst [vmem:[#allocation23_spill] sm:$0xff] %v8989_v19  ;;  %v8991_v35 = vpop.f32.mrf.mxu1  ;;  %6762 = vpow2.f32 %v3636_v56  ;;  %v3362_v21 = vsub.f32 %v12351_v26, %v8821_v17  ;;  %v4219_v25 = vadd.f32 %v8985_v6, %v8969_v57 }
 0x499   : > { %12347 = vst [vmem:[#allocation213_spill] sm:$0xff] %v8991_v35  ;;  %v8993_v16 = vpop.eup %6738  ;;  %6764 = vpow2.f32 %v3638_v28  ;;  %v3766_v7 = vmul.f32 1.442695, %v3422_v46  ;;  %v3363_v37 = vsub.f32 %v12353_v62, %v8821_v17  ;;  %v3642_v26 = vmul.f32 1.442695, %v3360_v41  ;;  %v12359_v17 = vld [vmem:[#allocation27_spill] sm:$0xff] }
 0x49a   : > { %12348 = vst [vmem:[#allocation214_spill] sm:$0xff] %v8993_v16  ;;  %3188 = vmax.xlane.f32.xlu0 %v3187_v4  ;;  %v9007_v29 = vpop.eup %6740  ;;  %6766 = vpow2.f32 %v3640_v51  ;;  %v3768_v56 = vmul.f32 1.442695, %v3423_v32  ;;  %v9013_v4 = vpop.f32.mrf.mxu0  ;;  %v3424_v57 = vsub.f32 %v12357_v45, %v8845_v12  ;;  %v3644_v32 = vmul.f32 1.442695, %v3361_v31  ;;  %v12361_v41 = vld [vmem:[#allocation29_spill] sm:$0xff] }
 0x49b   : > { %3281 = vmax.xlane.f32.xlu1 %v3280_v48  ;;  %v8999_v8 = vpop.xlane.xlu0 %3104  ;;  %12352 = vst [vmem:[#allocation20_spill] sm:$0xff] %v9007_v29  ;;  %v4126_v48 = vadd.f32 %v8993_v16, %v8979_v1  ;;  %12354 = vst [vmem:[#allocation22_spill] sm:$0xff] %v9013_v4  ;;  %v9015_v28 = vpop.f32.mrf.mxu1  ;;  %6768 = vpow2.f32 %v3762_v27  ;;  %v3425_v62 = vsub.f32 %v12359_v17, %v8845_v12  ;;  %v3646_v27 = vmul.f32 1.442695, %v3362_v21  ;;  %v12363_v12 = vld [vmem:[#allocation31_spill] sm:$0xff] }
 0x49c   : > { %v9001_v2 = vpop.xlane.xlu1 %3107  ;;  %12355 = vst [vmem:[#allocation24_spill] sm:$0xff] %v9015_v28  ;;  %v9017_v46 = vpop.eup %6742  ;;  %6770 = vpow2.f32 %v3764_v55  ;;  %v3426_v45 = vsub.f32 %v12361_v41, %v8869_v9  ;;  %v3648_v31 = vmul.f32 1.442695, %v3363_v37  ;;  %v12367_v41 = vld [vmem:[#allocation28_spill] sm:$0xff] }
 0x49d   : > { %12356 = vst [vmem:[#allocation26_spill] sm:$0xff] %v9017_v46  ;;  %v9021_v51 = vpop.eup %6744  ;;  %6772 = vpow2.f32 %v3766_v7  ;;  %v4222_v17 = vadd.f32 %v9017_v46, %v9007_v29  ;;  %v9041_v63 = vpop.f32.mrf.mxu0 }
 0x49e   : > { %4220 = vadd.xlane.f32.xlu0 %v4219_v25  ;;  %12358 = vst [vmem:[#allocation25_spill] sm:$0xff] %v9021_v51  ;;  %v9029_v16 = vpop.eup %6746  ;;  %v3283_v25 = vmax.f32 %v8793_v54, %v8805_v53  ;;  %6774 = vpow2.f32 %v3768_v56  ;;  %12364 = vst [vmem:[#allocation31_spill] sm:$0xff] %v9041_v63  ;;  %v9043_v7 = vpop.f32.mrf.mxu1  ;;  %v3364_v53 = vsub.f32 %v12367_v41, %v8843_v49  ;;  %v3770_v54 = vmul.f32 1.442695, %v3424_v57  ;;  %v12371_v41 = vld [vmem:[#allocation40_spill] sm:$0xff] }
 0x49f   : > { %4127 = vadd.xlane.f32.xlu1 %v4126_v48  ;;  %v9025_v6 = vpop.xlane.xlu0 %3014  ;;  %12360 = vst [vmem:[#allocation27_spill] sm:$0xff] %v9029_v16  ;;  %v9035_v55 = vpop.eup %6748  ;;  %v3427_v48 = vsub.f32 %v12363_v12, %v8869_v9  ;;  %12365 = vst [vmem:[#allocation215_spill] sm:$0xff] %v9043_v7  ;;  %6776 = vpow2.f32 %v3642_v26  ;;  %v12369_v9 = vld [vmem:[#allocation30_spill] sm:$0xff]  ;;  %v3772_v12 = vmul.f32 1.442695, %v3425_v62  ;;  %v3370_v57 = vsub.f32 %v12371_v41, %v8925_v44 }
 0x4a0   : > { %v9027_v1 = vpop.xlane.xlu1 %3017  ;;  %12362 = vst [vmem:[#allocation29_spill] sm:$0xff] %v9035_v55  ;;  %v9045_v21 = vpop.eup %6750  ;;  %6778 = vpow2.f32 %v3644_v32  ;;  %v3365_v37 = vsub.f32 %v12369_v9, %v8843_v49  ;;  %v3774_v26 = vmul.f32 1.442695, %v3426_v45  ;;  %v12373_v62 = vld [vmem:[#allocation42_spill] sm:$0xff]  ;;  %v3650_v41 = vmul.f32 1.442695, %v3364_v53 }
 0x4a1   : > { %12366 = vst [vmem:[#allocation216_spill] sm:$0xff] %v9045_v21  ;;  %v9049_v56 = vpop.eup %6752  ;;  %6780 = vpow2.f32 %v3646_v27  ;;  %v3776_v49 = vmul.f32 1.442695, %v3427_v48  ;;  %v4132_v9 = vadd.f32 %v9045_v21, %v9035_v55  ;;  %v9069_v42 = vpop.f32.mrf.mxu0  ;;  %v12381_v53 = vld [vmem:[#allocation45_spill] sm:$0xff] }
 0x4a2   : > { %3284 = vmax.xlane.f32.xlu0 %v3283_v25  ;;  %12368 = vst [vmem:[#allocation28_spill] sm:$0xff] %v9049_v56  ;;  %v9057_v7 = vpop.eup %6754  ;;  %v4129_v25 = vadd.f32 %v9029_v16, %v9021_v51  ;;  %6782 = vpow2.f32 %v3648_v31  ;;  %12374 = vst [vmem:[#allocation42_spill] sm:$0xff] %v9069_v42  ;;  %v9071_v27 = vpop.f32.mrf.mxu1  ;;  %v12377_v51 = vld [vmem:[#allocation33_spill] sm:$0xff]  ;;  %v3652_v48 = vmul.f32 1.442695, %v3365_v37 }
 0x4a3   : > { %4223 = vadd.xlane.f32.xlu1 %v4222_v17  ;;  %v9053_v29 = vpop.xlane.xlu0 %3110  ;;  %12370 = vst [vmem:[#allocation30_spill] sm:$0xff] %v9057_v7  ;;  %v9063_v32 = vpop.eup %6756  ;;  %v3371_v17 = vsub.f32 %v12373_v62, %v8925_v44  ;;  %12375 = vst [vmem:[#allocation217_spill] sm:$0xff] %v9071_v27  ;;  %6784 = vpow2.f32 %v3770_v54  ;;  %v3428_v16 = vsub.f32 %v12377_v51, %v8895_v30  ;;  %v12379_v44 = vld [vmem:[#allocation35_spill] sm:$0xff]  ;;  %v3662_v54 = vmul.f32 1.442695, %v3370_v57 }
 0x4a4   : > { %v9055_v46 = vpop.xlane.xlu1 %3113  ;;  %12372 = vst [vmem:[#allocation40_spill] sm:$0xff] %v9063_v32  ;;  %v9073_v45 = vpop.eup %6758  ;;  %6786 = vpow2.f32 %v3772_v12  ;;  %v3429_v62 = vsub.f32 %v12379_v44, %v8895_v30  ;;  %v3434_v51 = vsub.f32 %v12381_v53, %v8953_v10  ;;  %v12383_v30 = vld [vmem:[#allocation47_spill] sm:$0xff] }
 0x4a5   : > { %12376 = vst [vmem:[#allocation218_spill] sm:$0xff] %v9073_v45  ;;  %v9077_v31 = vpop.eup %6760  ;;  %6788 = vpow2.f32 %v3774_v26  ;;  %v3664_v12 = vmul.f32 1.442695, %v3371_v17  ;;  %v4228_v44 = vadd.f32 %v9073_v45, %v9063_v32  ;;  %v9097_v15 = vpop.f32.mrf.mxu0  ;;  %v3778_v53 = vmul.f32 1.442695, %v3428_v16 }
 0x4a6   : > { %4130 = vadd.xlane.f32.xlu0 %v4129_v25  ;;  %12378 = vst [vmem:[#allocation33_spill] sm:$0xff] %v9077_v31  ;;  %v9085_v27 = vpop.eup %6762  ;;  %v4225_v25 = vadd.f32 %v9057_v7, %v9049_v56  ;;  %6790 = vpow2.f32 %v3776_v49  ;;  %12384 = vst [vmem:[#allocation47_spill] sm:$0xff] %v9097_v15  ;;  %v9099_v26 = vpop.f32.mrf.mxu1  ;;  %v12387_v56 = vld [vmem:[#allocation44_spill] sm:$0xff]  ;;  %v3780_v17 = vmul.f32 1.442695, %v3429_v62 }
 0x4a7   : > { %4133 = vadd.xlane.f32.xlu1 %v4132_v9  ;;  %v9081_v55 = vpop.xlane.xlu0 %3020  ;;  %12380 = vst [vmem:[#allocation35_spill] sm:$0xff] %v9085_v27  ;;  %v9091_v37 = vpop.eup %6764  ;;  %v3435_v9 = vsub.f32 %v12383_v30, %v8953_v10  ;;  %12385 = vst [vmem:[#allocation219_spill] sm:$0xff] %v9099_v26  ;;  %6792 = vpow2.f32 %v3650_v41  ;;  %v3372_v7 = vsub.f32 %v12387_v56, %v8975_v33  ;;  %v12389_v10 = vld [vmem:[#allocation46_spill] sm:$0xff]  ;;  %v3790_v16 = vmul.f32 1.442695, %v3434_v51  ;;  %v12391_v41 = vld [vmem:[#allocation48_spill] sm:$0xff] }
 0x4a8   : > { %v9083_v21 = vpop.xlane.xlu1 %3023  ;;  %12382 = vst [vmem:[#allocation45_spill] sm:$0xff] %v9091_v37  ;;  %v9101_v57 = vpop.eup %6766  ;;  %6794 = vpow2.f32 %v3652_v48  ;;  %v3373_v30 = vsub.f32 %v12389_v10, %v8975_v33  ;;  %v3374_v56 = vsub.f32 %v12391_v41, %v8977_v39  ;;  %v12393_v33 = vld [vmem:[#allocation50_spill] sm:$0xff] }
 0x4a9   : > { %12386 = vst [vmem:[#allocation220_spill] sm:$0xff] %v9101_v57  ;;  %v9105_v49 = vpop.eup %6768  ;;  %6796 = vpow2.f32 %v3662_v54  ;;  %v3792_v62 = vmul.f32 1.442695, %v3435_v9  ;;  %v4138_v10 = vadd.f32 %v9101_v57, %v9091_v37  ;;  %v9125_v40 = vpop.f32.mrf.mxu0  ;;  %v3666_v41 = vmul.f32 1.442695, %v3372_v7  ;;  %v12398_v9 = vld [vmem:[#allocation49_spill] sm:$0xff] }
 0x4aa   : > { %4226 = vadd.xlane.f32.xlu0 %v4225_v25  ;;  %12388 = vst [vmem:[#allocation44_spill] sm:$0xff] %v9105_v49  ;;  %v9113_v38 = vpop.eup %6770  ;;  %v4135_v25 = vadd.f32 %v9085_v27, %v9077_v31  ;;  %6798 = vpow2.f32 %v3664_v12  ;;  %12394 = vst [vmem:[#allocation50_spill] sm:$0xff] %v9125_v40  ;;  %v9127_v54 = vpop.f32.mrf.mxu1  ;;  %v3668_v12 = vmul.f32 1.442695, %v3373_v30  ;;  %v3436_v27 = vsub.f32 %v12398_v9, %v8999_v8 }
 0x4ab   : > { %4229 = vadd.xlane.f32.xlu1 %v4228_v44  ;;  %v9109_v32 = vpop.xlane.xlu0 %3116  ;;  %12390 = vst [vmem:[#allocation46_spill] sm:$0xff] %v9113_v38  ;;  %v9119_v48 = vpop.eup %6772  ;;  %v3375_v44 = vsub.f32 %v12393_v33, %v8977_v39  ;;  %12395 = vst [vmem:[#allocation221_spill] sm:$0xff] %v9127_v54  ;;  %6800 = vpow2.f32 %v3778_v53  ;;  %v3670_v57 = vmul.f32 1.442695, %v3374_v56  ;;  %v12400_v53 = vld [vmem:[#allocation51_spill] sm:$0xff] }
 0x4ac   : > { %v9111_v45 = vpop.xlane.xlu1 %3119  ;;  %12392 = vst [vmem:[#allocation48_spill] sm:$0xff] %v9119_v48  ;;  %v9129_v51 = vpop.eup %6774  ;;  %6802 = vpow2.f32 %v3780_v17  ;;  %v3437_v7 = vsub.f32 %v12400_v53, %v8999_v8  ;;  %v3794_v53 = vmul.f32 1.442695, %v3436_v27  ;;  %v12411_v27 = vld [vmem:[#allocation55_spill] sm:$0xff] }
 0x4ad   : > { %12396 = vst [vmem:[#allocation222_spill] sm:$0xff] %v9129_v51  ;;  %v9131_v31 = vpop.eup %6776  ;;  %6804 = vpow2.f32 %v3790_v16  ;;  %v3672_v30 = vmul.f32 1.442695, %v3375_v44  ;;  %v9149_v9 = vpop.f32.mrf.mxu0  ;;  %v12405_v16 = vld [vmem:[#allocation53_spill] sm:$0xff] }
 0x4ae   : > { %4136 = vadd.xlane.f32.xlu0 %v4135_v25  ;;  %12397 = vst [vmem:[#allocation223_spill] sm:$0xff] %v9131_v31  ;;  %v9139_v37 = vpop.eup %6778  ;;  %v4231_v25 = vadd.f32 %v9113_v38, %v9105_v49  ;;  %6806 = vpow2.f32 %v3792_v62  ;;  %12402 = vst [vmem:[#allocation224_spill] sm:$0xff] %v9149_v9  ;;  %v9151_v59 = vpop.f32.mrf.mxu1  ;;  %v3438_v8 = vsub.f32 %v12405_v16, %v9001_v2  ;;  %v12407_v62 = vld [vmem:[#allocation52_spill] sm:$0xff] }
 0x4af   : > { %4139 = vadd.xlane.f32.xlu1 %v4138_v10  ;;  %v9135_v39 = vpop.xlane.xlu0 %3026  ;;  %12399 = vst [vmem:[#allocation49_spill] sm:$0xff] %v9139_v37  ;;  %v9145_v17 = vpop.eup %6780  ;;  %v4234_v10 = vadd.f32 %v9129_v51, %v9119_v48  ;;  %12403 = vst [vmem:[#allocation225_spill] sm:$0xff] %v9151_v59  ;;  %6808 = vpow2.f32 %v3666_v41  ;;  %v3376_v44 = vsub.f32 %v12407_v62, %v9025_v6  ;;  %v3796_v41 = vmul.f32 1.442695, %v3437_v7  ;;  %v12409_v51 = vld [vmem:[#allocation54_spill] sm:$0xff] }
 0x4b0   : > { %v9137_v33 = vpop.xlane.xlu1 %3029  ;;  %12401 = vst [vmem:[#allocation51_spill] sm:$0xff] %v9145_v17  ;;  %v9153_v23 = vpop.eup %6782  ;;  %6810 = vpow2.f32 %v3668_v12  ;;  %v3377_v16 = vsub.f32 %v12409_v51, %v9025_v6  ;;  %v3798_v7 = vmul.f32 1.442695, %v3438_v8 }
 0x4b1   : > { %12404 = vst [vmem:[#allocation226_spill] sm:$0xff] %v9153_v23  ;;  %v9157_v56 = vpop.eup %6784  ;;  %6812 = vpow2.f32 %v3670_v57  ;;  %v4144_v62 = vadd.f32 %v9153_v23, %v9145_v17  ;;  %v9177_v50 = vpop.f32.mrf.mxu0  ;;  %v3674_v51 = vmul.f32 1.442695, %v3376_v44  ;;  %v12421_v23 = vld [vmem:[#allocation56_spill] sm:$0xff] }
 0x4b2   : > { %4232 = vadd.xlane.f32.xlu0 %v4231_v25  ;;  %12406 = vst [vmem:[#allocation53_spill] sm:$0xff] %v9157_v56  ;;  %v9165_v38 = vpop.eup %6786  ;;  %v4141_v25 = vadd.f32 %v9139_v37, %v9131_v31  ;;  %6814 = vpow2.f32 %v3672_v30  ;;  %12412 = vst [vmem:[#allocation55_spill] sm:$0xff] %v9177_v50  ;;  %v9179_v18 = vpop.f32.mrf.mxu1 }
 0x4b3   : > { %4235 = vadd.xlane.f32.xlu1 %v4234_v10  ;;  %v9161_v49 = vpop.xlane.xlu0 %3122  ;;  %12408 = vst [vmem:[#allocation52_spill] sm:$0xff] %v9165_v38  ;;  %v9171_v12 = vpop.eup %6788  ;;  %v3439_v10 = vsub.f32 %v12411_v27, %v9001_v2  ;;  %12413 = vst [vmem:[#allocation227_spill] sm:$0xff] %v9179_v18  ;;  %6816 = vpow2.f32 %v3794_v53  ;;  %v3676_v27 = vmul.f32 1.442695, %v3377_v16  ;;  %v4237_v17 = vadd.f32 %v9165_v38, %v9157_v56  ;;  %v12423_v56 = vld [vmem:[#allocation57_spill] sm:$0xff] }
 0x4b4   : > { %v9163_v48 = vpop.xlane.xlu1 %3125  ;;  %12410 = vst [vmem:[#allocation54_spill] sm:$0xff] %v9171_v12  ;;  %v9181_v57 = vpop.eup %6790  ;;  %6818 = vpow2.f32 %v3796_v41  ;;  %v3378_v41 = vsub.f32 %v12421_v23, %v9027_v1 }
 0x4b5   : > { %12414 = vst [vmem:[#allocation228_spill] sm:$0xff] %v9181_v57  ;;  %v9183_v6 = vpop.eup %6792  ;;  %v3800_v8 = vmul.f32 1.442695, %v3439_v10  ;;  %v9197_v53 = vpop.f32.mrf.mxu0  ;;  %6820 = vpow2.f32 %v3798_v7  ;;  %v3440_v10 = vsub.f32 %v12423_v56, %v9053_v29  ;;  %v12425_v7 = vld [vmem:[#allocation59_spill] sm:$0xff] }
 0x4b6   : > { %4142 = vadd.xlane.f32.xlu0 %v4141_v25  ;;  %12415 = vst [vmem:[#allocation229_spill] sm:$0xff] %v9183_v6  ;;  %v9189_v2 = vpop.eup %6794  ;;  %v4240_v25 = vadd.f32 %v9181_v57, %v9171_v12  ;;  %12418 = vst [vmem:[#allocation232_spill] sm:$0xff] %v9197_v53  ;;  %v9199_v44 = vpop.f32.mrf.mxu1  ;;  %6822 = vpow2.f32 %v3674_v51  ;;  %v3441_v36 = vsub.f32 %v12425_v7, %v9053_v29  ;;  %v12427_v51 = vld [vmem:[#allocation58_spill] sm:$0xff]  ;;  %v3678_v35 = vmul.f32 1.442695, %v3378_v41 }
 0x4b7   : > { %4145 = vadd.xlane.f32.xlu1 %v4144_v62  ;;  %v9185_v30 = vpop.xlane.xlu0 %3032  ;;  %12416 = vst [vmem:[#allocation230_spill] sm:$0xff] %v9189_v2  ;;  %v9193_v37 = vpop.eup %6796  ;;  %12419 = vst [vmem:[#allocation233_spill] sm:$0xff] %v9199_v44  ;;  %6824 = vpow2.f32 %v3676_v27  ;;  %v4147_v23 = vadd.f32 %v9189_v2, %v9183_v6  ;;  %v3379_v56 = vsub.f32 %v12427_v51, %v9027_v1  ;;  %v3802_v7 = vmul.f32 1.442695, %v3440_v10  ;;  %v12433_v51 = vld [vmem:[#allocation32_spill] sm:$0xff]  ;;  %v12435_v41 = vld [vmem:[#allocation34_spill] sm:$0xff] }
 0x4b8   : > { %v9187_v31 = vpop.xlane.xlu1 %3035  ;;  %12417 = vst [vmem:[#allocation231_spill] sm:$0xff] %v9193_v37  ;;  %v9201_v62 = vpop.eup %6798  ;;  %6826 = vpow2.f32 %v3800_v8 }
 0x4b9   : > { %12420 = vst [vmem:[#allocation234_spill] sm:$0xff] %v9201_v62  ;;  %v9205_v16 = vpop.eup %6800  ;;  %v9225_v19 = vpop.f32.mrf.mxu0  ;;  %v3680_v10 = vmul.f32 1.442695, %v3379_v56  ;;  %6828 = vpow2.f32 %v3678_v35 }
 0x4ba   : > { %4238 = vadd.xlane.f32.xlu0 %v4237_v17  ;;  %12422 = vst [vmem:[#allocation56_spill] sm:$0xff] %v9205_v16  ;;  %v9213_v57 = vpop.eup %6802  ;;  %12428 = vst [vmem:[#allocation58_spill] sm:$0xff] %v9225_v19  ;;  %v9227_v4 = vpop.f32.mrf.mxu1  ;;  %6830 = vpow2.f32 %v3802_v7 }
 0x4bb   : > { %4241 = vadd.xlane.f32.xlu1 %v4240_v25  ;;  %v9209_v38 = vpop.xlane.xlu0 %3128  ;;  %12424 = vst [vmem:[#allocation57_spill] sm:$0xff] %v9213_v57  ;;  %v9219_v17 = vpop.eup %6804  ;;  %v4156_v25 = vadd.f32 %v9201_v62, %v9193_v37  ;;  %12429 = vst [vmem:[#allocation235_spill] sm:$0xff] %v9227_v4  ;;  %v3366_v37 = vsub.f32 %v12433_v51, %v8867_v3  ;;  %v3804_v62 = vmul.f32 1.442695, %v3441_v36  ;;  %v12439_v36 = vld [vmem:[#allocation61_spill] sm:$0xff] }
 0x4bc   : > { %v9211_v12 = vpop.xlane.xlu1 %3131  ;;  %12426 = vst [vmem:[#allocation59_spill] sm:$0xff] %v9219_v17  ;;  %v9229_v27 = vpop.eup %6806  ;;  %v4243_v2 = vadd.f32 %v9213_v57, %v9205_v16  ;;  %v3442_v51 = vsub.f32 %v12439_v36, %v9055_v46  ;;  %v12440_v16 = vld [vmem:[#allocation60_spill] sm:$0xff] }
 0x4bd   : > { %12430 = vst [vmem:[#allocation236_spill] sm:$0xff] %v9229_v27  ;;  %v9231_v29 = vpop.eup %6808  ;;  %v9249_v52 = vpop.f32.mrf.mxu0  ;;  %v3380_v57 = vsub.f32 %v12440_v16, %v9081_v55  ;;  %6832 = vpow2.f32 %v3804_v62  ;;  %v12444_v16 = vld [vmem:[#allocation63_spill] sm:$0xff]  ;;  %v12447_v62 = vld [vmem:[#allocation37_spill] sm:$0xff] }
 0x4be   : > { %4148 = vadd.xlane.f32.xlu0 %v4147_v23  ;;  %12431 = vst [vmem:[#allocation237_spill] sm:$0xff] %v9231_v29  ;;  %v9237_v1 = vpop.eup %6810  ;;  %v3367_v23 = vsub.f32 %v12435_v41, %v8867_v3  ;;  %12436 = vst [vmem:[#allocation34_spill] sm:$0xff] %v9249_v52  ;;  %v9251_v13 = vpop.f32.mrf.mxu1  ;;  %6834 = vpow2.f32 %v3680_v10 }
 0x4bf   : > { %4157 = vadd.xlane.f32.xlu1 %v4156_v25  ;;  %v9233_v6 = vpop.xlane.xlu0 %3038  ;;  %12432 = vst [vmem:[#allocation238_spill] sm:$0xff] %v9237_v1  ;;  %v9243_v28 = vpop.eup %6812  ;;  %v4252_v25 = vadd.f32 %v9229_v27, %v9219_v17  ;;  %12437 = vst [vmem:[#allocation239_spill] sm:$0xff] %v9251_v13  ;;  %v3654_v17 = vmul.f32 1.442695, %v3366_v37  ;;  %v12442_v27 = vld [vmem:[#allocation62_spill] sm:$0xff]  ;;  %v4159_v36 = vadd.f32 %v9237_v1, %v9231_v29 }
 0x4c0   : > { %v9235_v8 = vpop.xlane.xlu1 %3041  ;;  %12434 = vst [vmem:[#allocation32_spill] sm:$0xff] %v9243_v28  ;;  %v9253_v43 = vpop.eup %6814  ;;  %v3381_v35 = vsub.f32 %v12442_v27, %v9081_v55  ;;  %v3656_v7 = vmul.f32 1.442695, %v3367_v23  ;;  %v3430_v55 = vsub.f32 %v12447_v62, %v8897_v61  ;;  %v3806_v27 = vmul.f32 1.442695, %v3442_v51  ;;  %v12449_v23 = vld [vmem:[#allocation39_spill] sm:$0xff] }
 0x4c1   : > { %12438 = vst [vmem:[#allocation240_spill] sm:$0xff] %v9253_v43  ;;  %v9263_v41 = vpop.eup %6816  ;;  %v9273_v14 = vpop.f32.mrf.mxu0  ;;  %v4162_v59 = vadd.f32 %v9253_v43, %v9243_v28  ;;  %v3431_v10 = vsub.f32 %v12449_v23, %v8897_v61  ;;  %v3682_v1 = vmul.f32 1.442695, %v3380_v57  ;;  %6836 = vpow2.f32 %v3654_v17  ;;  %v12451_v51 = vld [vmem:[#allocation36_spill] sm:$0xff]  ;;  %v12453_v57 = vld [vmem:[#allocation38_spill] sm:$0xff] }
 0x4c2   : > { %4244 = vadd.xlane.f32.xlu0 %v4243_v2  ;;  %12441 = vst [vmem:[#allocation61_spill] sm:$0xff] %v9263_v41  ;;  %v9269_v2 = vpop.eup %6818  ;;  %12445 = vst [vmem:[#allocation62_spill] sm:$0xff] %v9273_v14  ;;  %v9277_v37 = vpop.f32.mrf.mxu1  ;;  %v3684_v62 = vmul.f32 1.442695, %v3381_v35  ;;  %6838 = vpow2.f32 %v3656_v7  ;;  %v3782_v17 = vmul.f32 1.442695, %v3430_v55  ;;  %v3445_v55 = vsub.f32 %v12459_v22, %v9109_v32 }
 0x4c3   : > { %4253 = vadd.xlane.f32.xlu1 %v4252_v25  ;;  %v9259_v3 = vpop.xlane.xlu0 %3134  ;;  %12443 = vst [vmem:[#allocation60_spill] sm:$0xff] %v9269_v2  ;;  %v3443_v25 = vsub.f32 %v12444_v16, %v9055_v46  ;;  %12446 = vst [vmem:[#allocation63_spill] sm:$0xff] %v9277_v37  ;;  %v9281_v29 = vpop.eup %6820  ;;  %v3226_v46 = vmax.f32 %v9249_v52, %v9273_v14  ;;  %v4255_v18 = vadd.f32 %v9269_v2, %v9263_v41  ;;  %v12457_v35 = vld [vmem:[#allocation64_spill] sm:$0xff]  ;;  %v12458_v7 = vld [vmem:[#allocation65_spill] sm:$0xff] }
 0x4c4   : > { %v9261_v56 = vpop.xlane.xlu1 %3137  ;;  %12448 = vst [vmem:[#allocation37_spill] sm:$0xff] %v9281_v29  ;;  %v9291_v43 = vpop.eup %6822  ;;  %6840 = vpow2.f32 %v3806_v27  ;;  %v3784_v41 = vmul.f32 1.442695, %v3431_v10  ;;  %v3444_v2 = vsub.f32 %v12458_v7, %v9109_v32 }
 0x4c5   : > { %12450 = vst [vmem:[#allocation39_spill] sm:$0xff] %v9291_v43  ;;  %v9297_v61 = vpop.eup %6824  ;;  %v3808_v23 = vmul.f32 1.442695, %v3443_v25  ;;  %v9301_v14 = vpop.f32.mrf.mxu0  ;;  %6842 = vpow2.f32 %v3682_v1 }
 0x4c6   : > { %4160 = vadd.xlane.f32.xlu0 %v4159_v36  ;;  %v3368_v36 = vsub.f32 %v12451_v51, %v8923_v47  ;;  %12452 = vst [vmem:[#allocation36_spill] sm:$0xff] %v9297_v61  ;;  %12454 = vst [vmem:[#allocation38_spill] sm:$0xff] %v9301_v14  ;;  %v9303_v52 = vpop.f32.mrf.mxu1  ;;  %v9305_v34 = vpop.eup %6826  ;;  %v3382_v51 = vsub.f32 %v12457_v35, %v9083_v21  ;;  %6844 = vpow2.f32 %v3684_v62 }
 0x4c7   : > { %4163 = vadd.xlane.f32.xlu1 %v4162_v59  ;;  %v9287_v16 = vpop.xlane.xlu0 %3044  ;;  %v3369_v59 = vsub.f32 %v12453_v57, %v8923_v47  ;;  %12455 = vst [vmem:[#allocation241_spill] sm:$0xff] %v9303_v52  ;;  %12456 = vst [vmem:[#allocation242_spill] sm:$0xff] %v9305_v34  ;;  %v4165_v27 = vadd.f32 %v9297_v61, %v9291_v43  ;;  %6846 = vpow2.f32 %v3808_v23  ;;  %v9321_v10 = vpop.f32.mrf.mxu0 }
 0x4c8   : > { %v9289_v28 = vpop.xlane.xlu1 %3143  ;;  %v3658_v57 = vmul.f32 1.442695, %v3368_v36  ;;  %12461 = vst [vmem:[#allocation64_spill] sm:$0xff] %v9321_v10  ;;  %v4258_v7 = vadd.f32 %v9305_v34, %v9281_v29  ;;  %6848 = vpow2.f32 %v3782_v17  ;;  %v12463_v36 = vld [vmem:[#allocation41_spill] sm:$0xff]  ;;  %v3686_v22 = vmul.f32 1.442695, %v3382_v51  ;;  %v9329_v32 = vpop.eup %6828 }
 0x4c9   : > { %v3660_v35 = vmul.f32 1.442695, %v3369_v59  ;;  %v3432_v62 = vsub.f32 %v12463_v36, %v8951_v60  ;;  %12464 = vst [vmem:[#allocation67_spill] sm:$0xff] %v9329_v32  ;;  %6850 = vpow2.f32 %v3784_v41  ;;  %v12465_v59 = vld [vmem:[#allocation43_spill] sm:$0xff]  ;;  %v9339_v17 = vpop.eup %6830  ;;  %v3812_v51 = vmul.f32 1.442695, %v3445_v55 }
 0x4ca   : > { %4256 = vadd.xlane.f32.xlu0 %v4255_v18  ;;  %v12460_v18 = vld [vmem:[#allocation66_spill] sm:$0xff]  ;;  %v3433_v23 = vsub.f32 %v12465_v59, %v8951_v60  ;;  %6852 = vpow2.f32 %v3658_v57  ;;  %v3229_v41 = vmax.f32 %v9301_v14, %v9321_v10  ;;  %v9345_v60 = vpop.eup %6832  ;;  %v12473_v55 = vld [vmem:[#allocation68_spill] sm:$0xff] }
 0x4cb   : > { %3227 = vmax.xlane.f32.xlu1 %v3226_v46  ;;  %v9311_v47 = vpop.xlane.xlu0 %3140  ;;  %v3383_v1 = vsub.f32 %v12460_v18, %v9083_v21  ;;  %v9323_v46 = vpop.f32.mrf.mxu1  ;;  %v3810_v21 = vmul.f32 1.442695, %v3444_v2  ;;  %12466 = vst [vmem:[#allocation66_spill] sm:$0xff] %v9339_v17  ;;  %12468 = vst [vmem:[#allocation41_spill] sm:$0xff] %v9345_v60  ;;  %6854 = vpow2.f32 %v3660_v35  ;;  %v3786_v57 = vmul.f32 1.442695, %v3432_v62 }
 0x4cc   : > { %v9313_v25 = vpop.xlane.xlu1 %3239  ;;  %12462 = vst [vmem:[#allocation65_spill] sm:$0xff] %v9323_v46  ;;  %v3322_v18 = vmax.f32 %v9303_v52, %v9323_v46  ;;  %v9351_v46 = vpop.f32.mrf.mxu0  ;;  %6856 = vpow2.f32 %v3686_v22  ;;  %v3788_v10 = vmul.f32 1.442695, %v3433_v23  ;;  %v12474_v35 = vld [vmem:[#allocation70_spill] sm:$0xff]  ;;  %v4261_v62 = vadd.f32 %v9345_v60, %v9339_v17 }
 0x4cd   : > { %v3688_v2 = vmul.f32 1.442695, %v3383_v1  ;;  %v9349_v34 = vpop.f32.mrf.mxu1  ;;  %v9353_v52 = vpop.eup %6834  ;;  %6858 = vpow2.f32 %v3810_v21  ;;  %v3385_v1 = vsub.f32 %v12474_v35, %v9135_v39  ;;  %v12477_v21 = vld [vmem:[#allocation74_spill] sm:$0xff]  ;;  %v12481_v35 = vld [vmem:[#allocation73_spill] sm:$0xff] }
 0x4ce   : > { %4166 = vadd.xlane.f32.xlu0 %v4165_v27  ;;  %v12467_v27 = vld [vmem:[#allocation69_spill] sm:$0xff]  ;;  %12470 = vst [vmem:[#allocation43_spill] sm:$0xff] %v9349_v34  ;;  %6860 = vpow2.f32 %v3812_v51  ;;  %v9367_v22 = vpop.eup %6836  ;;  %v4168_v51 = vadd.f32 %v9353_v52, %v9329_v32 }
 0x4cf   : > { %4259 = vadd.xlane.f32.xlu1 %v4258_v7  ;;  %v9335_v43 = vpop.xlane.xlu0 %3146  ;;  %v3446_v36 = vsub.f32 %v12467_v27, %v9111_v45  ;;  %v12469_v7 = vld [vmem:[#allocation71_spill] sm:$0xff]  ;;  %12471 = vst [vmem:[#allocation69_spill] sm:$0xff] %v9351_v46  ;;  %v3384_v27 = vsub.f32 %v12473_v55, %v9135_v39  ;;  %12476 = vst [vmem:[#allocation68_spill] sm:$0xff] %v9367_v22  ;;  %6862 = vpow2.f32 %v3688_v2 }
 0x4d0   : > { %v9337_v29 = vpop.xlane.xlu1 %3149  ;;  %v3447_v59 = vsub.f32 %v12469_v7, %v9111_v45  ;;  %12472 = vst [vmem:[#allocation71_spill] sm:$0xff] %v9353_v52  ;;  %v12475_v7 = vld [vmem:[#allocation72_spill] sm:$0xff]  ;;  %v3387_v39 = vsub.f32 %v12477_v21, %v9137_v33  ;;  %6864 = vpow2.f32 %v3786_v57 }
 0x4d1   : > { %v3814_v45 = vmul.f32 1.442695, %v3446_v36  ;;  %v3386_v61 = vsub.f32 %v12475_v7, %v9137_v33  ;;  %v9377_v36 = vpop.eup %6838  ;;  %v3690_v55 = vmul.f32 1.442695, %v3384_v27  ;;  %v3448_v7 = vsub.f32 %v12481_v35, %v9161_v49  ;;  %v12483_v33 = vld [vmem:[#allocation75_spill] sm:$0xff]  ;;  %v12485_v27 = vld [vmem:[#allocation77_spill] sm:$0xff] }
 0x4d2   : > { %3230 = vmax.xlane.f32.xlu0 %v3229_v41  ;;  %v3816_v23 = vmul.f32 1.442695, %v3447_v59  ;;  %v9373_v41 = vpop.f32.mrf.mxu0  ;;  %12480 = vst [vmem:[#allocation74_spill] sm:$0xff] %v9377_v36  ;;  %v9381_v2 = vpop.eup %6840  ;;  %6866 = vpow2.f32 %v3788_v10  ;;  %v3692_v59 = vmul.f32 1.442695, %v3385_v1  ;;  %v3449_v21 = vsub.f32 %v12483_v33, %v9161_v49 }
 0x4d3   : > { %3323 = vmax.xlane.f32.xlu1 %v3322_v18  ;;  %v9359_v14 = vpop.xlane.xlu0 %3242  ;;  %v9371_v18 = vpop.f32.mrf.mxu1  ;;  %12479 = vst [vmem:[#allocation72_spill] sm:$0xff] %v9373_v41  ;;  %12482 = vst [vmem:[#allocation73_spill] sm:$0xff] %v9381_v2  ;;  %v3232_v17 = vmax.f32 %v9351_v46, %v9373_v41  ;;  %6868 = vpow2.f32 %v3814_v45  ;;  %v3694_v57 = vmul.f32 1.442695, %v3386_v61  ;;  %v3696_v49 = vmul.f32 1.442695, %v3387_v39 }
 0x4d4   : > { %v9363_v58 = vpop.xlane.xlu1 %3245  ;;  %12478 = vst [vmem:[#allocation70_spill] sm:$0xff] %v9371_v18  ;;  %v9389_v32 = vpop.eup %6842  ;;  %v3325_v10 = vmax.f32 %v9349_v34, %v9371_v18  ;;  %6870 = vpow2.f32 %v3816_v23  ;;  %v3818_v45 = vmul.f32 1.442695, %v3448_v7  ;;  %v3820_v23 = vmul.f32 1.442695, %v3449_v21  ;;  %v12493_v39 = vld [vmem:[#allocation78_spill] sm:$0xff] }
 0x4d5   : > { %12484 = vst [vmem:[#allocation75_spill] sm:$0xff] %v9389_v32  ;;  %v9397_v35 = vpop.eup %6844  ;;  %v9401_v52 = vpop.f32.mrf.mxu0  ;;  %6872 = vpow2.f32 %v3690_v55  ;;  %v3389_v46 = vsub.f32 %v12493_v39, %v9185_v30  ;;  %v12496_v55 = vld [vmem:[#allocation80_spill] sm:$0xff] }
 0x4d6   : > { %4262 = vadd.xlane.f32.xlu0 %v4261_v62  ;;  %v3450_v62 = vsub.f32 %v12485_v27, %v9163_v48  ;;  %12486 = vst [vmem:[#allocation77_spill] sm:$0xff] %v9397_v35  ;;  %v9403_v41 = vpop.f32.mrf.mxu1  ;;  %v9405_v61 = vpop.eup %6846  ;;  %v12491_v27 = vld [vmem:[#allocation76_spill] sm:$0xff]  ;;  %6874 = vpow2.f32 %v3692_v59  ;;  %v3390_v7 = vsub.f32 %v12496_v55, %v9187_v31 }
 0x4d7   : > { %4169 = vadd.xlane.f32.xlu1 %v4168_v51  ;;  %v9387_v60 = vpop.xlane.xlu0 %3152  ;;  %v12487_v51 = vld [vmem:[#allocation79_spill] sm:$0xff]  ;;  %12489 = vst [vmem:[#allocation243_spill] sm:$0xff] %v9403_v41  ;;  %12490 = vst [vmem:[#allocation244_spill] sm:$0xff] %v9405_v61  ;;  %v3388_v18 = vsub.f32 %v12491_v27, %v9185_v30  ;;  %v9409_v34 = vpop.eup %6848  ;;  %6876 = vpow2.f32 %v3694_v57  ;;  %v12498_v30 = vld [vmem:[#allocation82_spill] sm:$0xff]  ;;  %v4264_v57 = vadd.f32 %v9405_v61, %v9381_v2 }
 0x4d8   : > { %v9395_v1 = vpop.xlane.xlu1 %3155  ;;  %v3451_v33 = vsub.f32 %v12487_v51, %v9163_v48  ;;  %12488 = vst [vmem:[#allocation79_spill] sm:$0xff] %v9401_v52  ;;  %12492 = vst [vmem:[#allocation76_spill] sm:$0xff] %v9409_v34  ;;  %v9415_v51 = vpop.eup %6850  ;;  %v3822_v15 = vmul.f32 1.442695, %v3450_v62  ;;  %6878 = vpow2.f32 %v3696_v49 }
 0x4d9   : > { %12495 = vst [vmem:[#allocation245_spill] sm:$0xff] %v9415_v51  ;;  %v9423_v59 = vpop.eup %6852  ;;  %v9427_v27 = vpop.f32.mrf.mxu0  ;;  %6880 = vpow2.f32 %v3818_v45  ;;  %v3698_v55 = vmul.f32 1.442695, %v3388_v18  ;;  %v3702_v18 = vmul.f32 1.442695, %v3390_v7  ;;  %v12511_v7 = vld [vmem:[#allocation84_spill] sm:$0xff] }
 0x4da   : > { %3326 = vmax.xlane.f32.xlu0 %v3325_v10  ;;  %v4171_v10 = vadd.f32 %v9397_v35, %v9389_v32  ;;  %12497 = vst [vmem:[#allocation80_spill] sm:$0xff] %v9423_v59  ;;  %v3824_v21 = vmul.f32 1.442695, %v3451_v33  ;;  %12499 = vst [vmem:[#allocation82_spill] sm:$0xff] %v9427_v27  ;;  %v9429_v39 = vpop.f32.mrf.mxu1  ;;  %v9433_v62 = vpop.eup %6854  ;;  %v12502_v32 = vld [vmem:[#allocation81_spill] sm:$0xff]  ;;  %6882 = vpow2.f32 %v3820_v23  ;;  %v3235_v23 = vmax.f32 %v9401_v52, %v9427_v27 }
 0x4db   : > { %3233 = vmax.xlane.f32.xlu1 %v3232_v17  ;;  %v9413_v48 = vpop.xlane.xlu0 %3248  ;;  %v3391_v17 = vsub.f32 %v12498_v30, %v9187_v31  ;;  %12500 = vst [vmem:[#allocation246_spill] sm:$0xff] %v9429_v39  ;;  %12501 = vst [vmem:[#allocation247_spill] sm:$0xff] %v9433_v62  ;;  %v3452_v35 = vsub.f32 %v12502_v32, %v9209_v38  ;;  %v9437_v49 = vpop.eup %6856  ;;  %v3700_v33 = vmul.f32 1.442695, %v3389_v46  ;;  %v12504_v31 = vld [vmem:[#allocation83_spill] sm:$0xff]  ;;  %6884 = vpow2.f32 %v3822_v15  ;;  %v12506_v32 = vld [vmem:[#allocation85_spill] sm:$0xff] }
 0x4dc   : > { %12494 = vst [vmem:[#allocation78_spill] sm:$0xff] %v9413_v48  ;;  %v9419_v40 = vpop.xlane.xlu1 %3251  ;;  %12503 = vst [vmem:[#allocation81_spill] sm:$0xff] %v9437_v49  ;;  %v3453_v30 = vsub.f32 %v12504_v31, %v9209_v38  ;;  %v3328_v48 = vmax.f32 %v9403_v41, %v9429_v39  ;;  %v9445_v61 = vpop.eup %6858  ;;  %v3454_v45 = vsub.f32 %v12506_v32, %v9211_v12  ;;  %6886 = vpow2.f32 %v3824_v21  ;;  %v12513_v21 = vld [vmem:[#allocation86_spill] sm:$0xff] }
 0x4dd   : > { %12505 = vst [vmem:[#allocation83_spill] sm:$0xff] %v9445_v61  ;;  %v3704_v38 = vmul.f32 1.442695, %v3391_v17  ;;  %v9457_v39 = vpop.f32.mrf.mxu1  ;;  %6888 = vpow2.f32 %v3698_v55  ;;  %v3826_v15 = vmul.f32 1.442695, %v3452_v35  ;;  %v3392_v32 = vsub.f32 %v12511_v7, %v9233_v6  ;;  %v12516_v35 = vld [vmem:[#allocation88_spill] sm:$0xff] }
 0x4de   : > { %4172 = vadd.xlane.f32.xlu0 %v4171_v10  ;;  %v9453_v10 = vpop.eup %6860  ;;  %6890 = vpow2.f32 %v3700_v33  ;;  %v3828_v52 = vmul.f32 1.442695, %v3453_v30  ;;  %v3393_v17 = vsub.f32 %v12513_v21, %v9233_v6  ;;  %v3394_v55 = vsub.f32 %v12516_v35, %v9235_v8  ;;  %v12518_v6 = vld [vmem:[#allocation90_spill] sm:$0xff]  ;;  %v12521_v35 = vld [vmem:[#allocation89_spill] sm:$0xff] }
 0x4df   : > { %4265 = vadd.xlane.f32.xlu1 %v4264_v57  ;;  %v9443_v2 = vpop.xlane.xlu0 %3158  ;;  %12507 = vst [vmem:[#allocation85_spill] sm:$0xff] %v9453_v10  ;;  %v12508_v57 = vld [vmem:[#allocation87_spill] sm:$0xff]  ;;  %v9459_v41 = vpop.eup %6862  ;;  %6892 = vpow2.f32 %v3702_v18  ;;  %v3706_v21 = vmul.f32 1.442695, %v3392_v32 }
 0x4e0   : > { %v9451_v46 = vpop.xlane.xlu1 %3161  ;;  %v3455_v31 = vsub.f32 %v12508_v57, %v9211_v12  ;;  %12509 = vst [vmem:[#allocation87_spill] sm:$0xff] %v9457_v39  ;;  %12510 = vst [vmem:[#allocation248_spill] sm:$0xff] %v9459_v41  ;;  %v9463_v27 = vpop.eup %6864  ;;  %v3830_v57 = vmul.f32 1.442695, %v3454_v45  ;;  %6894 = vpow2.f32 %v3704_v38  ;;  %v4174_v18 = vadd.f32 %v9459_v41, %v9437_v49 }
 0x4e1   : > { %12512 = vst [vmem:[#allocation84_spill] sm:$0xff] %v9463_v27  ;;  %v9469_v12 = vpop.eup %6866  ;;  %v9481_v7 = vpop.f32.mrf.mxu1  ;;  %6896 = vpow2.f32 %v3826_v15  ;;  %v3708_v38 = vmul.f32 1.442695, %v3393_v17  ;;  %v3710_v49 = vmul.f32 1.442695, %v3394_v55  ;;  %v12525_v15 = vld [vmem:[#allocation93_spill] sm:$0xff] }
 0x4e2   : > { %3236 = vmax.xlane.f32.xlu0 %v3235_v23  ;;  %12515 = vst [vmem:[#allocation249_spill] sm:$0xff] %v9469_v12  ;;  %v4267_v23 = vadd.f32 %v9453_v10, %v9445_v61  ;;  %v9477_v33 = vpop.eup %6868  ;;  %v3832_v30 = vmul.f32 1.442695, %v3455_v31  ;;  %12519 = vst [vmem:[#allocation90_spill] sm:$0xff] %v9481_v7  ;;  %6898 = vpow2.f32 %v3828_v52  ;;  %v12523_v31 = vld [vmem:[#allocation91_spill] sm:$0xff]  ;;  %v3458_v32 = vsub.f32 %v12525_v15, %v9261_v56  ;;  %v12529_v55 = vld [vmem:[#allocation92_spill] sm:$0xff] }
 0x4e3   : > { %3329 = vmax.xlane.f32.xlu1 %v3328_v48  ;;  %v9467_v5 = vpop.xlane.xlu0 %3254  ;;  %12517 = vst [vmem:[#allocation88_spill] sm:$0xff] %v9477_v33  ;;  %v3395_v48 = vsub.f32 %v12518_v6, %v9235_v8  ;;  %v9485_v45 = vpop.eup %6870  ;;  %v3457_v8 = vsub.f32 %v12523_v31, %v9259_v3  ;;  %6900 = vpow2.f32 %v3830_v57  ;;  %v3396_v15 = vsub.f32 %v12529_v55, %v9287_v16 }
 0x4e4   : > { %12514 = vst [vmem:[#allocation86_spill] sm:$0xff] %v9467_v5  ;;  %v9473_v11 = vpop.xlane.xlu1 %3257  ;;  %12520 = vst [vmem:[#allocation250_spill] sm:$0xff] %v9485_v45  ;;  %v3456_v5 = vsub.f32 %v12521_v35, %v9259_v3  ;;  %v9489_v61 = vpop.eup %6872  ;;  %6902 = vpow2.f32 %v3832_v30  ;;  %v12527_v3 = vld [vmem:[#allocation95_spill] sm:$0xff] }
 0x4e5   : > { %12522 = vst [vmem:[#allocation89_spill] sm:$0xff] %v9489_v61  ;;  %v9495_v10 = vpop.eup %6874  ;;  %v3712_v52 = vmul.f32 1.442695, %v3395_v48  ;;  %v3459_v17 = vsub.f32 %v12527_v3, %v9261_v56  ;;  %6904 = vpow2.f32 %v3706_v21  ;;  %v3838_v56 = vmul.f32 1.442695, %v3458_v32  ;;  %v12532_v3 = vld [vmem:[#allocation94_spill] sm:$0xff] }
 0x4e6   : > { %4268 = vadd.xlane.f32.xlu0 %v4267_v23  ;;  %12524 = vst [vmem:[#allocation91_spill] sm:$0xff] %v9495_v10  ;;  %v3331_v23 = vmax.f32 %v9457_v39, %v9481_v7  ;;  %v9501_v41 = vpop.eup %6876  ;;  %v3834_v57 = vmul.f32 1.442695, %v3456_v5  ;;  %6906 = vpow2.f32 %v3708_v38  ;;  %v3836_v39 = vmul.f32 1.442695, %v3457_v8  ;;  %v12535_v32 = vld [vmem:[#allocation97_spill] sm:$0xff] }
 0x4e7   : > { %4175 = vadd.xlane.f32.xlu1 %v4174_v18  ;;  %v9493_v6 = vpop.xlane.xlu0 %3164  ;;  %12526 = vst [vmem:[#allocation93_spill] sm:$0xff] %v9501_v41  ;;  %v4270_v18 = vadd.f32 %v9485_v45, %v9477_v33  ;;  %v9507_v31 = vpop.eup %6878  ;;  %6908 = vpow2.f32 %v3710_v49  ;;  %v3397_v33 = vsub.f32 %v12532_v3, %v9287_v16  ;;  %v4177_v5 = vadd.f32 %v9495_v10, %v9489_v61  ;;  %v12537_v3 = vld [vmem:[#allocation96_spill] sm:$0xff] }
 0x4e8   : > { %v4104_v35 = vpop.xlane.xlu1 %4103  ;;  %12528 = vst [vmem:[#allocation95_spill] sm:$0xff] %v9507_v31  ;;  %v9511_v7 = vpop.eup %6880  ;;  %6910 = vpow2.f32 %v3712_v52  ;;  %v3840_v38 = vmul.f32 1.442695, %v3459_v17  ;;  %v4180_v8 = vadd.f32 %v9507_v31, %v9501_v41  ;;  %v3714_v49 = vmul.f32 1.442695, %v3396_v15  ;;  %v12539_v41 = vld [vmem:[#allocation98_spill] sm:$0xff] }
 0x4e9   : > { %12530 = vst [vmem:[#allocation92_spill] sm:$0xff] %v9511_v7  ;;  %v9515_v48 = vpop.eup %6882  ;;  %6912 = vpow2.f32 %v3834_v57  ;;  %v3462_v55 = vsub.f32 %v12535_v32, %v9289_v28  ;;  %v3460_v61 = vsub.f32 %v12537_v3, %v9311_v47  ;;  %v3716_v10 = vmul.f32 1.442695, %v3397_v33 }
 0x4ea   : > { %3332 = vmax.xlane.f32.xlu0 %v3331_v23  ;;  %12531 = vst [vmem:[#allocation251_spill] sm:$0xff] %v9515_v48  ;;  %v9523_v23 = vpop.eup %6884  ;;  %6914 = vpow2.f32 %v3836_v39  ;;  %v3461_v57 = vsub.f32 %v12539_v41, %v9311_v47  ;;  %v4273_v32 = vadd.f32 %v9515_v48, %v9511_v7  ;;  %v12541_v39 = vld [vmem:[#allocation99_spill] sm:$0xff]  ;;  %v12544_v41 = vld [vmem:[#allocation101_spill] sm:$0xff] }
 0x4eb   : > { %4271 = vadd.xlane.f32.xlu1 %v4270_v18  ;;  %v9513_v30 = vpop.xlane.xlu0 %3260  ;;  %12533 = vst [vmem:[#allocation94_spill] sm:$0xff] %v9523_v23  ;;  %v9527_v18 = vpop.eup %6886  ;;  %6916 = vpow2.f32 %v3838_v56  ;;  %v3463_v45 = vsub.f32 %v12541_v39, %v9289_v28  ;;  %v3846_v33 = vmul.f32 1.442695, %v3462_v55  ;;  %v3842_v47 = vmul.f32 1.442695, %v3460_v61  ;;  %v12547_v61 = vld [vmem:[#allocation103_spill] sm:$0xff] }
 0x4ec   : > { %v9519_v21 = vpop.xlane.xlu1 %3167  ;;  %12534 = vst [vmem:[#allocation252_spill] sm:$0xff] %v9527_v18  ;;  %v9531_v16 = vpop.eup %6888  ;;  %6918 = vpow2.f32 %v3840_v38  ;;  %v3526_v7 = vsub.f32 %v12544_v41, %v9313_v25  ;;  %v3844_v28 = vmul.f32 1.442695, %v3461_v57 }
 0x4ed   : > { %12536 = vst [vmem:[#allocation97_spill] sm:$0xff] %v9531_v16  ;;  %v9535_v17 = vpop.eup %6890  ;;  %6920 = vpow2.f32 %v3714_v49 }
 0x4ee   : > { %4178 = vadd.xlane.f32.xlu0 %v4177_v5  ;;  %12538 = vst [vmem:[#allocation96_spill] sm:$0xff] %v9535_v17  ;;  %v9541_v5 = vpop.eup %6892  ;;  %6922 = vrcp.f32 %v4104_v35  ;;  %v4183_v49 = vadd.f32 %v9535_v17, %v9531_v16  ;;  %v3974_v16 = vmul.f32 1.442695, %v3526_v7  ;;  %v12555_v7 = vld [vmem:[#allocation106_spill] sm:$0xff] }
 0x4ef   : > { %4181 = vadd.xlane.f32.xlu1 %v4180_v8  ;;  %v4107_v52 = vpop.xlane.xlu0 %4106  ;;  %12540 = vst [vmem:[#allocation98_spill] sm:$0xff] %v9541_v5  ;;  %v4276_v8 = vadd.f32 %v9527_v18, %v9523_v23  ;;  %v9547_v3 = vpop.eup %6894  ;;  %6924 = vpow2.f32 %v3716_v10  ;;  %v3527_v23 = vsub.f32 %v12547_v61, %v9313_v25  ;;  %v12549_v10 = vld [vmem:[#allocation100_spill] sm:$0xff]  ;;  %v3467_v17 = vsub.f32 %v12555_v7, %v9337_v29 }
 0x4f0   : > { %v4200_v15 = vpop.xlane.xlu1 %4199  ;;  %12542 = vst [vmem:[#allocation99_spill] sm:$0xff] %v9547_v3  ;;  %v9549_v56 = vpop.eup %6896  ;;  %6926 = vrcp.f32 %v4107_v52  ;;  %v4186_v35 = vadd.f32 %v9547_v3, %v9541_v5  ;;  %v3464_v57 = vsub.f32 %v12549_v10, %v9335_v43  ;;  %v12553_v61 = vld [vmem:[#allocation104_spill] sm:$0xff] }
 0x4f1   : > { %12543 = vst [vmem:[#allocation253_spill] sm:$0xff] %v9549_v56  ;;  %v9555_v48 = vpop.eup %6898  ;;  %6928 = vpow2.f32 %v3846_v33  ;;  %v3466_v5 = vsub.f32 %v12553_v61, %v9337_v29 }
 0x4f2   : > { %4274 = vadd.xlane.f32.xlu0 %v4273_v32  ;;  %12545 = vst [vmem:[#allocation101_spill] sm:$0xff] %v9555_v48  ;;  %v9561_v55 = vpop.eup %6900  ;;  %v3848_v32 = vmul.f32 1.442695, %v3463_v45  ;;  %6930 = vpow2.f32 %v3842_v47  ;;  %v12551_v45 = vld [vmem:[#allocation102_spill] sm:$0xff]  ;;  %v4279_v10 = vadd.f32 %v9555_v48, %v9549_v56  ;;  %v3976_v47 = vmul.f32 1.442695, %v3527_v23 }
 0x4f3   : > { %4277 = vadd.xlane.f32.xlu1 %v4276_v8  ;;  %v9553_v38 = vpop.xlane.xlu0 %3170  ;;  %12546 = vst [vmem:[#allocation254_spill] sm:$0xff] %v9561_v55  ;;  %v9567_v8 = vpop.eup %6902  ;;  %v3465_v18 = vsub.f32 %v12551_v45, %v9335_v43  ;;  %6932 = vpow2.f32 %v3844_v28  ;;  %v3850_v28 = vmul.f32 1.442695, %v3464_v57  ;;  %v12557_v45 = vld [vmem:[#allocation105_spill] sm:$0xff]  ;;  %v3854_v29 = vmul.f32 1.442695, %v3466_v5 }
 0x4f4   : > { %v9557_v39 = vpop.xlane.xlu1 %3263  ;;  %12548 = vst [vmem:[#allocation103_spill] sm:$0xff] %v9567_v8  ;;  %v9571_v41 = vpop.eup %6904  ;;  %6934 = vpow2.f32 %v3848_v32  ;;  %v4282_v43 = vadd.f32 %v9567_v8, %v9561_v55  ;;  %v3528_v61 = vsub.f32 %v12557_v45, %v9359_v14 }
 0x4f5   : > { %12550 = vst [vmem:[#allocation100_spill] sm:$0xff] %v9571_v41  ;;  %v9575_v52 = vpop.eup %6906  ;;  %6936 = vrcp.f32 %v4200_v15  ;;  %v3852_v56 = vmul.f32 1.442695, %v3465_v18  ;;  %v3856_v15 = vmul.f32 1.442695, %v3467_v17 }
 0x4f6   : > { %4184 = vadd.xlane.f32.xlu0 %v4183_v49  ;;  %12552 = vst [vmem:[#allocation102_spill] sm:$0xff] %v9575_v52  ;;  %v9581_v49 = vpop.eup %6908  ;;  %6938 = vpow2.f32 %v3974_v16  ;;  %v4189_v57 = vadd.f32 %v9575_v52, %v9571_v41  ;;  %v12565_v41 = vld [vmem:[#allocation108_spill] sm:$0xff] }
 0x4f7   : > { %4187 = vadd.xlane.f32.xlu1 %v4186_v35  ;;  %v4203_v25 = vpop.xlane.xlu0 %4202  ;;  %12554 = vst [vmem:[#allocation104_spill] sm:$0xff] %v9581_v49  ;;  %v9587_v35 = vpop.eup %6910  ;;  %v3468_v8 = vsub.f32 %v12565_v41, %v9387_v60 }
 0x4f8   : > { %v4110_v33 = vpop.xlane.xlu1 %4109  ;;  %12556 = vst [vmem:[#allocation106_spill] sm:$0xff] %v9587_v35  ;;  %v9591_v31 = vpop.eup %6912  ;;  %6940 = vrcp.f32 %v4203_v25  ;;  %v4192_v16 = vadd.f32 %v9587_v35, %v9581_v49  ;;  %v12563_v25 = vld [vmem:[#allocation111_spill] sm:$0xff] }
 0x4f9   : > { %12558 = vst [vmem:[#allocation105_spill] sm:$0xff] %v9591_v31  ;;  %v9595_v32 = vpop.eup %6914  ;;  %6942 = vpow2.f32 %v3976_v47  ;;  %v3531_v45 = vsub.f32 %v12563_v25, %v9363_v58  ;;  %v12568_v25 = vld [vmem:[#allocation112_spill] sm:$0xff] }
 0x4fa   : > { %4280 = vadd.xlane.f32.xlu0 %v4279_v10  ;;  %12559 = vst [vmem:[#allocation255_spill] sm:$0xff] %v9595_v32  ;;  %v9601_v48 = vpop.eup %6916  ;;  %6944 = vpow2.f32 %v3850_v28  ;;  %v3978_v10 = vmul.f32 1.442695, %v3528_v61  ;;  %v4285_v28 = vadd.f32 %v9595_v32, %v9591_v31  ;;  %v3470_v35 = vsub.f32 %v12568_v25, %v9395_v1 }
 0x4fb   : > { %4283 = vadd.xlane.f32.xlu1 %v4282_v43  ;;  %v9593_v23 = vpop.xlane.xlu0 %3266  ;;  %12560 = vst [vmem:[#allocation256_spill] sm:$0xff] %v9601_v48  ;;  %v9605_v18 = vpop.eup %6918  ;;  %v12562_v43 = vld [vmem:[#allocation109_spill] sm:$0xff]  ;;  %6946 = vpow2.f32 %v3852_v56  ;;  %v3984_v41 = vmul.f32 1.442695, %v3531_v45  ;;  %v3858_v45 = vmul.f32 1.442695, %v3468_v8 }
 0x4fc   : > { %v9597_v7 = vpop.xlane.xlu1 %3173  ;;  %12561 = vst [vmem:[#allocation257_spill] sm:$0xff] %v9605_v18  ;;  %v3530_v5 = vsub.f32 %v12562_v43, %v9363_v58  ;;  %v9611_v55 = vpop.eup %6920  ;;  %6948 = vpow2.f32 %v3854_v29  ;;  %v3220_v58 = vmax.f32 %v9149_v9, %v9177_v50  ;;  %v12649_v9 = vld [vmem:[#allocation199_spill] sm:$0xff] }
 0x4fd   : > { %12564 = vst [vmem:[#allocation109_spill] sm:$0xff] %v9611_v55  ;;  %v6923_v17 = vpop.eup %6922  ;;  %6950 = vpow2.f32 %v3856_v15  ;;  %v12570_v15 = vld [vmem:[#allocation130_spill] sm:$0xff] }
 0x4fe   : > { %4190 = vadd.xlane.f32.xlu0 %v4189_v57  ;;  %v9617_v61 = vpop.eup %6924  ;;  %v12567_v57 = vld [vmem:[#allocation110_spill] sm:$0xff]  ;;  %6952 = vpow2.f32 %v3978_v10  ;;  %v3982_v43 = vmul.f32 1.442695, %v3530_v5  ;;  %v9632_v3 = vmul.f32 %v6923_v17, %v12570_v15 }
 0x4ff   : > { %4193 = vadd.xlane.f32.xlu1 %v4192_v16  ;;  %v4113_v47 = vpop.xlane.xlu0 %4112  ;;  %12566 = vst [vmem:[#allocation111_spill] sm:$0xff] %v9617_v61  ;;  %v3469_v56 = vsub.f32 %v12567_v57, %v9387_v60  ;;  %v4288_v16 = vadd.f32 %v9605_v18, %v9601_v48  ;;  %v6927_v29 = vpop.eup %6926  ;;  %6954 = vrcp.f32 %v4110_v33  ;;  %v12572_v60 = vld [vmem:[#allocation138_spill] sm:$0xff]  ;;  %v12574_v48 = vld [vmem:[#allocation136_spill] sm:$0xff]  ;;  %v4195_v33 = vadd.f32 %v9617_v61, %v9611_v55 }
 0x500   : > { %v4206_v49 = vpop.xlane.xlu1 %4205  ;;  %v9627_v31 = vpop.eup %6928  ;;  %12571 = vst [vmem:[#allocation110_spill] sm:$0xff] %v9632_v3  ;;  %v9635_v57 = vmul.f32 %v6927_v29, %v12572_v60  ;;  %v9638_v10 = vmul.f32 %v6927_v29, %v12574_v48  ;;  %v12581_v48 = vld [vmem:[#allocation117_spill] sm:$0xff]  ;;  %6956 = vrcp.f32 %v4113_v47 }
 0x501   : > { %12569 = vst [vmem:[#allocation108_spill] sm:$0xff] %v9627_v31  ;;  %v9640_v5 = vpop.eup %6930  ;;  %v3860_v60 = vmul.f32 1.442695, %v3469_v56  ;;  %v3534_v29 = vsub.f32 %v12581_v48, %v9419_v40  ;;  %6958 = vpow2.f32 %v3982_v43  ;;  %v3862_v56 = vmul.f32 1.442695, %v3470_v35  ;;  %v12585_v43 = vld [vmem:[#allocation116_spill] sm:$0xff] }
 0x502   : > { %4286 = vadd.xlane.f32.xlu0 %v4285_v28  ;;  %12573 = vst [vmem:[#allocation112_spill] sm:$0xff] %v9635_v57  ;;  %12575 = vst [vmem:[#allocation130_spill] sm:$0xff] %v9638_v10  ;;  %v12577_v28 = vld [vmem:[#allocation114_spill] sm:$0xff]  ;;  %v9651_v52 = vpop.eup %6932  ;;  %6960 = vpow2.f32 %v3984_v41  ;;  %v12586_v35 = vld [vmem:[#allocation120_spill] sm:$0xff] }
 0x503   : > { %4289 = vadd.xlane.f32.xlu1 %v4288_v16  ;;  %v9629_v32 = vpop.xlane.xlu0 %3176  ;;  %12576 = vst [vmem:[#allocation138_spill] sm:$0xff] %v9640_v5  ;;  %v3471_v25 = vsub.f32 %v12577_v28, %v9395_v1  ;;  %v12578_v16 = vld [vmem:[#allocation128_spill] sm:$0xff]  ;;  %12580 = vst [vmem:[#allocation114_spill] sm:$0xff] %v9651_v52  ;;  %v9657_v50 = vpop.eup %6934  ;;  %6962 = vpow2.f32 %v3858_v45  ;;  %v4291_v1 = vadd.f32 %v9651_v52, %v9640_v5  ;;  %v3990_v41 = vmul.f32 1.442695, %v3534_v29  ;;  %v12589_v45 = vld [vmem:[#allocation142_spill] sm:$0xff] }
 0x504   : > { %v9644_v18 = vpop.xlane.xlu1 %3269  ;;  %v9649_v15 = vmul.f32 %v6923_v17, %v12578_v16  ;;  %12582 = vst [vmem:[#allocation128_spill] sm:$0xff] %v9657_v50  ;;  %v6937_v28 = vpop.eup %6936  ;;  %v3316_v17 = vmax.f32 %v9199_v44, %v9227_v4  ;;  %v12583_v16 = vld [vmem:[#allocation119_spill] sm:$0xff]  ;;  %6964 = vpow2.f32 %v3860_v60  ;;  %v3474_v4 = vsub.f32 %v12586_v35, %v9451_v46  ;;  %v12593_v5 = vld [vmem:[#allocation148_spill] sm:$0xff] }
 0x505   : > { %v3535_v48 = vsub.f32 %v12583_v16, %v9419_v40  ;;  %v9665_v55 = vpop.eup %6938  ;;  %v3864_v8 = vmul.f32 1.442695, %v3471_v25  ;;  %v12587_v40 = vld [vmem:[#allocation122_spill] sm:$0xff]  ;;  %6966 = vrcp.f32 %v4206_v49  ;;  %v9678_v25 = vmul.f32 %v6937_v28, %v12589_v45  ;;  %v12596_v49 = vld [vmem:[#allocation140_spill] sm:$0xff] }
 0x506   : > { %12579 = vst [vmem:[#allocation136_spill] sm:$0xff] %v9649_v15  ;;  %4196 = vadd.xlane.f32.xlu0 %v4195_v33  ;;  %12584 = vst [vmem:[#allocation117_spill] sm:$0xff] %v9665_v55  ;;  %v3472_v33 = vsub.f32 %v12585_v43, %v9443_v2  ;;  %v6941_v15 = vpop.eup %6940  ;;  %v12591_v43 = vld [vmem:[#allocation152_spill] sm:$0xff]  ;;  %v3223_v29 = vmax.f32 %v9197_v53, %v9225_v19  ;;  %6968 = vpow2.f32 %v3862_v56  ;;  %v12603_v53 = vld [vmem:[#allocation141_spill] sm:$0xff] }
 0x507   : > { %3221 = vmax.xlane.f32.xlu1 %v3220_v58  ;;  %v4209_v47 = vpop.xlane.xlu0 %4208  ;;  %v3475_v58 = vsub.f32 %v12587_v40, %v9451_v46  ;;  %v9675_v16 = vpop.eup %6942  ;;  %12590 = vst [vmem:[#allocation116_spill] sm:$0xff] %v9678_v25  ;;  %v9681_v44 = vmul.f32 %v6941_v15, %v12591_v43  ;;  %v9684_v52 = vmul.f32 %v6941_v15, %v12593_v5  ;;  %v3992_v46 = vmul.f32 1.442695, %v3535_v48  ;;  %v12599_v43 = vld [vmem:[#allocation125_spill] sm:$0xff] }
 0x508   : > { %v4116_v61 = vpop.xlane.xlu1 %4115  ;;  %12588 = vst [vmem:[#allocation119_spill] sm:$0xff] %v9675_v16  ;;  %v9686_v60 = vpop.eup %6944  ;;  %v3866_v45 = vmul.f32 1.442695, %v3472_v33  ;;  %v3538_v5 = vsub.f32 %v12599_v43, %v9473_v11  ;;  %6970 = vrcp.f32 %v4209_v47  ;;  %v12602_v47 = vld [vmem:[#allocation127_spill] sm:$0xff]  ;;  %v3482_v19 = vsub.f32 %v12603_v53, %v9597_v7  ;;  %v12606_v53 = vld [vmem:[#allocation146_spill] sm:$0xff]  ;;  %v12651_v25 = vld [vmem:[#allocation213_spill] sm:$0xff] }
 0x509   : > { %12592 = vst [vmem:[#allocation120_spill] sm:$0xff] %v9681_v44  ;;  %12594 = vst [vmem:[#allocation122_spill] sm:$0xff] %v9684_v52  ;;  %v9695_v40 = vpop.eup %6946  ;;  %6972 = vpow2.f32 %v3864_v8  ;;  %v3539_v43 = vsub.f32 %v12602_v47, %v9473_v11  ;;  %v12605_v11 = vld [vmem:[#allocation144_spill] sm:$0xff]  ;;  %v12771_v55 = vld [vmem:[#allocation229_spill] sm:$0xff] }
 0x50a   : > { %4292 = vadd.xlane.f32.xlu0 %v4291_v1  ;;  %12595 = vst [vmem:[#allocation142_spill] sm:$0xff] %v9686_v60  ;;  %v9693_v1 = vmul.f32 %v6937_v28, %v12596_v49  ;;  %12598 = vst [vmem:[#allocation148_spill] sm:$0xff] %v9695_v40  ;;  %v9703_v56 = vpop.eup %6948  ;;  %v4150_v28 = vadd.f32 %v9377_v36, %v9367_v22  ;;  %6974 = vpow2.f32 %v3990_v41  ;;  %v3872_v49 = vmul.f32 1.442695, %v3475_v58  ;;  %v12646_v52 = vld [vmem:[#allocation160_spill] sm:$0xff] }
 0x50b   : > { %3317 = vmax.xlane.f32.xlu1 %v3316_v17  ;;  %v9690_v35 = vpop.xlane.xlu0 %3272  ;;  %12600 = vst [vmem:[#allocation140_spill] sm:$0xff] %v9703_v56  ;;  %v3870_v17 = vmul.f32 1.442695, %v3474_v4  ;;  %v9709_v33 = vpop.eup %6950  ;;  %v3214_v4 = vmax.f32 %v9041_v63, %v9069_v42  ;;  %6976 = vpow2.f32 %v3992_v46  ;;  %v3319_v41 = vmax.f32 %v9251_v13, %v9277_v37 }
 0x50c   : > { %12597 = vst [vmem:[#allocation152_spill] sm:$0xff] %v9693_v1  ;;  %v9699_v15 = vpop.xlane.xlu1 %3179  ;;  %12601 = vst [vmem:[#allocation125_spill] sm:$0xff] %v9709_v33  ;;  %v9715_v10 = vpop.eup %6952  ;;  %6978 = vpow2.f32 %v3866_v45  ;;  %v3998_v58 = vmul.f32 1.442695, %v3538_v5  ;;  %v3483_v47 = vsub.f32 %v12605_v11, %v9597_v7  ;;  %v4246_v36 = vadd.f32 %v9415_v51, %v9409_v34  ;;  %v12607_v45 = vld [vmem:[#allocation149_spill] sm:$0xff]  ;;  %v12611_v34 = vld [vmem:[#allocation159_spill] sm:$0xff] }
 0x50d   : > { %12604 = vst [vmem:[#allocation127_spill] sm:$0xff] %v9715_v10  ;;  %v6955_v48 = vpop.eup %6954  ;;  %6980 = vpow2.f32 %v3870_v17  ;;  %v4153_v46 = vadd.f32 %v9433_v62, %v9423_v59  ;;  %v4000_v42 = vmul.f32 1.442695, %v3539_v43  ;;  %v3886_v63 = vmul.f32 1.442695, %v3482_v19  ;;  %v12609_v11 = vld [vmem:[#allocation153_spill] sm:$0xff] }
 0x50e   : > { %3224 = vmax.xlane.f32.xlu0 %v3223_v29  ;;  %v3484_v29 = vsub.f32 %v12606_v53, %v9629_v32  ;;  %6982 = vpow2.f32 %v3872_v49  ;;  %v3485_v5 = vsub.f32 %v12607_v45, %v9629_v32  ;;  %v9736_v53 = vmul.f32 %v6955_v48, %v12609_v11  ;;  %v12613_v59 = vld [vmem:[#allocation157_spill] sm:$0xff]  ;;  %v12616_v43 = vld [vmem:[#allocation147_spill] sm:$0xff] }
 0x50f   : > { %4151 = vadd.xlane.f32.xlu1 %v4150_v28  ;;  %v4119_v8 = vpop.xlane.xlu0 %4118  ;;  %v6957_v28 = vpop.eup %6956  ;;  %6984 = vrcp.f32 %v4116_v61  ;;  %v3888_v32 = vmul.f32 1.442695, %v3483_v47  ;;  %v12624_v47 = vld [vmem:[#allocation163_spill] sm:$0xff] }
 0x510   : > { %v4212_v22 = vpop.xlane.xlu1 %4211  ;;  %v9731_v7 = vpop.eup %6958  ;;  %12610 = vst [vmem:[#allocation144_spill] sm:$0xff] %v9736_v53  ;;  %v9739_v51 = vmul.f32 %v6957_v28, %v12611_v34  ;;  %v9742_v49 = vmul.f32 %v6957_v28, %v12613_v59  ;;  %6986 = vpow2.f32 %v3998_v58  ;;  %v3890_v62 = vmul.f32 1.442695, %v3484_v29  ;;  %v12620_v34 = vld [vmem:[#allocation151_spill] sm:$0xff]  ;;  %v12626_v59 = vld [vmem:[#allocation173_spill] sm:$0xff] }
 0x511   : > { %12608 = vst [vmem:[#allocation141_spill] sm:$0xff] %v9731_v7  ;;  %v9744_v19 = vpop.eup %6960  ;;  %v3547_v37 = vsub.f32 %v12620_v34, %v9644_v18  ;;  %6988 = vrcp.f32 %v4119_v8  ;;  %v3548_v29 = vsub.f32 %v8697_v24, %v9690_v35  ;;  %v3310_v8 = vmax.f32 %v9099_v26, %v9127_v54  ;;  %v12628_v54 = vld [vmem:[#allocation169_spill] sm:$0xff] }
 0x512   : > { %3320 = vmax.xlane.f32.xlu0 %v3319_v41  ;;  %12612 = vst [vmem:[#allocation146_spill] sm:$0xff] %v9739_v51  ;;  %12614 = vst [vmem:[#allocation149_spill] sm:$0xff] %v9742_v49  ;;  %v3546_v41 = vsub.f32 %v12616_v43, %v9644_v18  ;;  %v9753_v11 = vpop.eup %6962  ;;  %6990 = vpow2.f32 %v4000_v42  ;;  %v3486_v42 = vsub.f32 %v8691_v0, %v9699_v15  ;;  %v12668_v49 = vld [vmem:[#allocation164_spill] sm:$0xff]  ;;  %v12674_v53 = vld [vmem:[#allocation217_spill] sm:$0xff] }
 0x513   : > { %4247 = vadd.xlane.f32.xlu1 %v4246_v36  ;;  %v9733_v17 = vpop.xlane.xlu0 %3182  ;;  %12615 = vst [vmem:[#allocation153_spill] sm:$0xff] %v9744_v19  ;;  %v12617_v36 = vld [vmem:[#allocation150_spill] sm:$0xff]  ;;  %12619 = vst [vmem:[#allocation157_spill] sm:$0xff] %v9753_v11  ;;  %v9759_v58 = vpop.eup %6964  ;;  %6992 = vpow2.f32 %v3886_v63  ;;  %v4016_v34 = vmul.f32 1.442695, %v3547_v37  ;;  %v3487_v24 = vsub.f32 %v8703_v20, %v9699_v15  ;;  %v12631_v20 = vld [vmem:[#allocation161_spill] sm:$0xff] }
 0x514   : > { %v9748_v61 = vpop.xlane.xlu1 %3275  ;;  %v9751_v45 = vmul.f32 %v6955_v48, %v12617_v36  ;;  %12621 = vst [vmem:[#allocation147_spill] sm:$0xff] %v9759_v58  ;;  %v6967_v28 = vpop.eup %6966  ;;  %v3892_v48 = vmul.f32 1.442695, %v3485_v5  ;;  %6994 = vpow2.f32 %v3888_v32  ;;  %v4249_v36 = vadd.f32 %v9469_v12, %v9463_v27 }
 0x515   : > { %v9765_v18 = vpop.eup %6968  ;;  %6996 = vpow2.f32 %v3890_v62  ;;  %v4014_v5 = vmul.f32 1.442695, %v3546_v41  ;;  %v9778_v32 = vmul.f32 %v6967_v28, %v12624_v47  ;;  %v4018_v37 = vmul.f32 1.442695, %v3548_v29  ;;  %v12634_v41 = vld [vmem:[#allocation50_spill] sm:$0xff]  ;;  %v12635_v47 = vld [vmem:[#allocation47_spill] sm:$0xff] }
 0x516   : > { %12618 = vst [vmem:[#allocation159_spill] sm:$0xff] %v9751_v45  ;;  %4154 = vadd.xlane.f32.xlu0 %v4153_v46  ;;  %12622 = vst [vmem:[#allocation150_spill] sm:$0xff] %v9765_v18  ;;  %v6971_v63 = vpop.eup %6970  ;;  %6998 = vrcp.f32 %v4212_v22  ;;  %v9791_v15 = vmul.f32 %v6967_v28, %v12631_v20  ;;  %v12637_v29 = vld [vmem:[#allocation16_spill] sm:$0xff]  ;;  %v3896_v28 = vmul.f32 1.442695, %v3487_v24  ;;  %v12643_v24 = vld [vmem:[#allocation227_spill] sm:$0xff] }
 0x517   : > { %3215 = vmax.xlane.f32.xlu1 %v3214_v4  ;;  %v4215_v43 = vpop.xlane.xlu0 %4214  ;;  %v9775_v4 = vpop.eup %6972  ;;  %12625 = vst [vmem:[#allocation163_spill] sm:$0xff] %v9778_v32  ;;  %v9781_v0 = vmul.f32 %v6971_v63, %v12626_v59  ;;  %v9784_v26 = vmul.f32 %v6971_v63, %v12628_v54  ;;  %7000 = vpow2.f32 %v3892_v48  ;;  %v3894_v59 = vmul.f32 1.442695, %v3486_v42  ;;  %v12642_v54 = vld [vmem:[#allocation155_spill] sm:$0xff]  ;;  %v12645_v20 = vld [vmem:[#allocation156_spill] sm:$0xff] }
 0x518   : > { %v4122_v46 = vpop.xlane.xlu1 %4121  ;;  %12623 = vst [vmem:[#allocation151_spill] sm:$0xff] %v9775_v4  ;;  %v9786_v27 = vpop.eup %6974  ;;  %12632 = vst [vmem:[#allocation161_spill] sm:$0xff] %v9791_v15  ;;  %7002 = vrcp.f32 %v4215_v43  ;;  %v12640_v43 = vld [vmem:[#allocation154_spill] sm:$0xff] }
 0x519   : > { %12627 = vst [vmem:[#allocation173_spill] sm:$0xff] %v9781_v0  ;;  %12629 = vst [vmem:[#allocation169_spill] sm:$0xff] %v9784_v26  ;;  %v9793_v22 = vpop.eup %6976  ;;  %7004 = vpow2.f32 %v4014_v5  ;;  %v3549_v42 = vsub.f32 %v12640_v43, %v9690_v35  ;;  %v3551_v35 = vsub.f32 %v12646_v52, %v9748_v61  ;;  %v12672_v0 = vld [vmem:[#allocation208_spill] sm:$0xff] }
 0x51a   : > { %4250 = vadd.xlane.f32.xlu0 %v4249_v36  ;;  %12630 = vst [vmem:[#allocation258_spill] sm:$0xff] %v9786_v27  ;;  %12633 = vst [vmem:[#allocation259_spill] sm:$0xff] %v9793_v22  ;;  %v3217_v36 = vmax.f32 %v12635_v47, %v12634_v41  ;;  %v9801_v48 = vpop.eup %6978  ;;  %7006 = vpow2.f32 %v4016_v34  ;;  %v3488_v47 = vsub.f32 %v12642_v54, %v9733_v17 }
 0x51b   : > { %3311 = vmax.xlane.f32.xlu1 %v3310_v8  ;;  %v9788_v62 = vpop.xlane.xlu0 %3278  ;;  %12636 = vst [vmem:[#allocation260_spill] sm:$0xff] %v9801_v48  ;;  %v12638_v8 = vld [vmem:[#allocation211_spill] sm:$0xff]  ;;  %v9807_v13 = vpop.eup %6980  ;;  %7008 = vpow2.f32 %v4018_v37  ;;  %v3550_v34 = vsub.f32 %v12645_v20, %v9748_v61  ;;  %v12648_v37 = vld [vmem:[#allocation201_spill] sm:$0xff]  ;;  %v4020_v26 = vmul.f32 1.442695, %v3549_v42  ;;  %v12654_v20 = vld [vmem:[#allocation158_spill] sm:$0xff] }
 0x51c   : > { %v9797_v12 = vpop.xlane.xlu1 %3185  ;;  %v3208_v63 = vmax.f32 %v12638_v8, %v12637_v29  ;;  %12639 = vst [vmem:[#allocation261_spill] sm:$0xff] %v9807_v13  ;;  %v9811_v41 = vpop.eup %6982  ;;  %v12644_v8 = vld [vmem:[#allocation225_spill] sm:$0xff]  ;;  %7010 = vpow2.f32 %v3894_v59  ;;  %v3202_v54 = vmax.f32 %v12649_v9, %v12648_v37  ;;  %v12653_v59 = vld [vmem:[#allocation23_spill] sm:$0xff]  ;;  %v3489_v3 = vsub.f32 %v12654_v20, %v9733_v17 }
 0x51d   : > { %12641 = vst [vmem:[#allocation154_spill] sm:$0xff] %v9811_v41  ;;  %v6985_v5 = vpop.eup %6984  ;;  %v3313_v1 = vmax.f32 %v12644_v8, %v12643_v24  ;;  %7012 = vpow2.f32 %v3896_v28  ;;  %v12652_v24 = vld [vmem:[#allocation22_spill] sm:$0xff]  ;;  %v3898_v61 = vmul.f32 1.442695, %v3488_v47  ;;  %v12656_v37 = vld [vmem:[#allocation175_spill] sm:$0xff] }
 0x51e   : > { %3218 = vmax.xlane.f32.xlu0 %v3217_v36  ;;  %v9823_v43 = vpop.eup %6986  ;;  %v3211_v8 = vmax.f32 %v12653_v59, %v12652_v24  ;;  %7014 = vrcp.f32 %v4122_v46  ;;  %v9838_v9 = vmul.f32 %v6985_v5, %v12656_v37  ;;  %v12658_v28 = vld [vmem:[#allocation183_spill] sm:$0xff]  ;;  %v4022_v17 = vmul.f32 1.442695, %v3550_v34  ;;  %v12667_v37 = vld [vmem:[#allocation165_spill] sm:$0xff] }
 0x51f   : > { %3209 = vmax.xlane.f32.xlu1 %v3208_v63  ;;  %v4125_v29 = vpop.xlane.xlu0 %4124  ;;  %12647 = vst [vmem:[#allocation155_spill] sm:$0xff] %v9823_v43  ;;  %v12650_v63 = vld [vmem:[#allocation24_spill] sm:$0xff]  ;;  %v6989_v15 = vpop.eup %6988  ;;  %v4024_v46 = vmul.f32 1.442695, %v3551_v35  ;;  %v12670_v35 = vld [vmem:[#allocation207_spill] sm:$0xff] }
 0x520   : > { %v9821_v36 = vpop.xlane.xlu1 %4217  ;;  %v3304_v44 = vmax.f32 %v12651_v25, %v12650_v63  ;;  %v9833_v52 = vpop.eup %6990  ;;  %12657 = vst [vmem:[#allocation160_spill] sm:$0xff] %v9838_v9  ;;  %v9841_v63 = vmul.f32 %v6989_v15, %v12658_v28  ;;  %v12660_v25 = vld [vmem:[#allocation181_spill] sm:$0xff]  ;;  %v3491_v28 = vsub.f32 %v12667_v37, %v9797_v12  ;;  %7016 = vrcp.f32 %v4125_v29 }
 0x521   : > { %12655 = vst [vmem:[#allocation156_spill] sm:$0xff] %v9833_v52  ;;  %v9844_v24 = vmul.f32 %v6989_v15, %v12660_v25  ;;  %v9846_v42 = vpop.eup %6992  ;;  %v3552_v25 = vsub.f32 %v12668_v49, %v9788_v62  ;;  %7018 = vpow2.f32 %v4020_v26  ;;  %v12675_v49 = vld [vmem:[#allocation215_spill] sm:$0xff]  ;;  %v3900_v51 = vmul.f32 1.442695, %v3489_v3  ;;  %v12676_v15 = vld [vmem:[#allocation166_spill] sm:$0xff]  ;;  %v12678_v26 = vld [vmem:[#allocation124_spill] sm:$0xff] }
 0x522   : > { %3314 = vmax.xlane.f32.xlu0 %v3313_v1  ;;  %12659 = vst [vmem:[#allocation158_spill] sm:$0xff] %v9841_v63  ;;  %12662 = vst [vmem:[#allocation183_spill] sm:$0xff] %v9846_v42  ;;  %v12663_v1 = vld [vmem:[#allocation162_spill] sm:$0xff]  ;;  %v9853_v45 = vpop.eup %6994  ;;  %v3307_v29 = vmax.f32 %v12675_v49, %v12674_v53  ;;  %7020 = vpow2.f32 %v3898_v61  ;;  %v3553_v10 = vsub.f32 %v12676_v15, %v9788_v62  ;;  %v3904_v3 = vmul.f32 1.442695, %v3491_v28  ;;  %v12680_v49 = vld [vmem:[#allocation172_spill] sm:$0xff] }
 0x523   : > { %3305 = vmax.xlane.f32.xlu1 %v3304_v44  ;;  %v9835_v57 = vpop.xlane.xlu0 %3188  ;;  %12661 = vst [vmem:[#allocation175_spill] sm:$0xff] %v9844_v24  ;;  %v3490_v20 = vsub.f32 %v12663_v1, %v9797_v12  ;;  %v12664_v44 = vld [vmem:[#allocation171_spill] sm:$0xff]  ;;  %12666 = vst [vmem:[#allocation162_spill] sm:$0xff] %v9853_v45  ;;  %v9861_v34 = vpop.eup %6996  ;;  %7022 = vpow2.f32 %v4022_v17  ;;  %v12679_v12 = vld [vmem:[#allocation168_spill] sm:$0xff]  ;;  %v4026_v61 = vmul.f32 1.442695, %v3552_v25 }
 0x524   : > { %v3282_v47 = vpop.xlane.xlu1 %3281  ;;  %v9851_v59 = vmul.f32 %v6985_v5, %v12664_v44  ;;  %12669 = vst [vmem:[#allocation171_spill] sm:$0xff] %v9861_v34  ;;  %v12671_v1 = vld [vmem:[#allocation203_spill] sm:$0xff]  ;;  %v12673_v5 = vld [vmem:[#allocation204_spill] sm:$0xff]  ;;  %v6999_v37 = vpop.eup %6998  ;;  %7024 = vpow2.f32 %v4024_v46  ;;  %v12685_v17 = vld [vmem:[#allocation197_spill] sm:$0xff]  ;;  %v4028_v25 = vmul.f32 1.442695, %v3553_v10  ;;  %v4324_v10 = vadd.f32 %v9853_v45, %v9846_v42 }
 0x525   : > { %v3205_v32 = vmax.f32 %v12671_v1, %v12670_v35  ;;  %v3298_v44 = vmax.f32 %v12673_v5, %v12672_v0  ;;  %v9875_v35 = vpop.eup %7000  ;;  %v3902_v1 = vmul.f32 1.442695, %v3490_v20  ;;  %v3554_v0 = vsub.f32 %v12679_v12, %v3282_v47  ;;  %v12682_v15 = vld [vmem:[#allocation167_spill] sm:$0xff]  ;;  %v12687_v12 = vld [vmem:[#allocation193_spill] sm:$0xff]  ;;  %v12690_v28 = vld [vmem:[#allocation126_spill] sm:$0xff] }
 0x526   : > { %12665 = vst [vmem:[#allocation181_spill] sm:$0xff] %v9851_v59  ;;  %3212 = vmax.xlane.f32.xlu0 %v3211_v8  ;;  %12677 = vst [vmem:[#allocation165_spill] sm:$0xff] %v9875_v35  ;;  %v3476_v8 = vsub.f32 %v12678_v26, %v9493_v6  ;;  %v7003_v53 = vpop.eup %7002  ;;  %v3555_v62 = vsub.f32 %v12680_v49, %v3282_v47  ;;  %v3492_v59 = vsub.f32 %v12682_v15, %v9835_v57  ;;  %v12683_v24 = vld [vmem:[#allocation187_spill] sm:$0xff]  ;;  %v12691_v15 = vld [vmem:[#allocation185_spill] sm:$0xff] }
 0x527   : > { %3203 = vmax.xlane.f32.xlu1 %v3202_v54  ;;  %v9873_v40 = vpop.xlane.xlu0 %4220  ;;  %v9883_v54 = vpop.eup %7004  ;;  %v9888_v26 = vmul.f32 %v6999_v37, %v12683_v24  ;;  %v9891_v20 = vmul.f32 %v7003_v53, %v12685_v17  ;;  %v9894_v60 = vmul.f32 %v7003_v53, %v12687_v12  ;;  %v3477_v47 = vsub.f32 %v12690_v28, %v9493_v6  ;;  %v12694_v17 = vld [vmem:[#allocation170_spill] sm:$0xff] }
 0x528   : > { %v9880_v5 = vpop.xlane.xlu1 %4127  ;;  %12681 = vst [vmem:[#allocation164_spill] sm:$0xff] %v9883_v54  ;;  %v9896_v46 = vpop.eup %7006  ;;  %7026 = vpow2.f32 %v3900_v51  ;;  %v3493_v9 = vsub.f32 %v12694_v17, %v9835_v57  ;;  %v4030_v53 = vmul.f32 1.442695, %v3554_v0  ;;  %v4032_v51 = vmul.f32 1.442695, %v3555_v62  ;;  %v12699_v62 = vld [vmem:[#allocation212_spill] sm:$0xff] }
 0x529   : > { %12684 = vst [vmem:[#allocation166_spill] sm:$0xff] %v9888_v26  ;;  %12686 = vst [vmem:[#allocation124_spill] sm:$0xff] %v9891_v20  ;;  %v9903_v24 = vpop.eup %7008  ;;  %7028 = vpow2.f32 %v3902_v1  ;;  %v3906_v57 = vmul.f32 1.442695, %v3492_v59  ;;  %v12700_v42 = vld [vmem:[#allocation178_spill] sm:$0xff]  ;;  %v12764_v26 = vld [vmem:[#allocation123_spill] sm:$0xff] }
 0x52a   : > { %3308 = vmax.xlane.f32.xlu0 %v3307_v29  ;;  %12688 = vst [vmem:[#allocation168_spill] sm:$0xff] %v9894_v60  ;;  %12689 = vst [vmem:[#allocation172_spill] sm:$0xff] %v9896_v46  ;;  %v9901_v29 = vmul.f32 %v6999_v37, %v12691_v15  ;;  %v9911_v6 = vpop.eup %7010  ;;  %7030 = vpow2.f32 %v3904_v3  ;;  %v12697_v37 = vld [vmem:[#allocation176_spill] sm:$0xff]  ;;  %v12698_v3 = vld [vmem:[#allocation18_spill] sm:$0xff]  ;;  %v3908_v63 = vmul.f32 1.442695, %v3493_v9 }
 0x52b   : > { %3299 = vmax.xlane.f32.xlu1 %v3298_v44  ;;  %v3285_v49 = vpop.xlane.xlu0 %3284  ;;  %12693 = vst [vmem:[#allocation187_spill] sm:$0xff] %v9903_v24  ;;  %12695 = vst [vmem:[#allocation197_spill] sm:$0xff] %v9911_v6  ;;  %v9917_v1 = vpop.eup %7012  ;;  %7032 = vpow2.f32 %v4026_v61  ;;  %v3301_v17 = vmax.f32 %v12699_v62, %v12698_v3  ;;  %v3876_v61 = vmul.f32 1.442695, %v3477_v47  ;;  %v12703_v9 = vld [vmem:[#allocation198_spill] sm:$0xff] }
 0x52c   : > { %12692 = vst [vmem:[#allocation167_spill] sm:$0xff] %v9901_v29  ;;  %v9907_v12 = vpop.xlane.xlu1 %4223  ;;  %12696 = vst [vmem:[#allocation193_spill] sm:$0xff] %v9917_v1  ;;  %v7015_v0 = vpop.eup %7014  ;;  %7034 = vpow2.f32 %v4028_v25  ;;  %v3556_v28 = vsub.f32 %v12697_v37, %v3285_v49  ;;  %v3557_v45 = vsub.f32 %v12700_v42, %v3285_v49  ;;  %v3874_v29 = vmul.f32 1.442695, %v3476_v8  ;;  %v12701_v25 = vld [vmem:[#allocation129_spill] sm:$0xff]  ;;  %v12702_v37 = vld [vmem:[#allocation131_spill] sm:$0xff] }
 0x52d   : > { %7036 = vpow2.f32 %v4030_v53  ;;  %v7017_v59 = vpop.eup %7016  ;;  %v3540_v60 = vsub.f32 %v12702_v37, %v9513_v30  ;;  %v9934_v53 = vmul.f32 %v7015_v0, %v12703_v9  ;;  %v12705_v49 = vld [vmem:[#allocation206_spill] sm:$0xff] }
 0x52e   : > { %3206 = vmax.xlane.f32.xlu0 %v3205_v32  ;;  %7038 = vpow2.f32 %v4032_v51  ;;  %v4420_v32 = vadd.f32 %v9896_v46, %v9883_v54  ;;  %v9936_v42 = vpop.eup %7018  ;;  %v4034_v8 = vmul.f32 1.442695, %v3556_v28  ;;  %v9941_v51 = vmul.f32 %v7017_v59, %v12705_v49  ;;  %v12706_v54 = vld [vmem:[#allocation194_spill] sm:$0xff] }
 0x52f   : > { %4325 = vadd.xlane.f32.xlu1 %v4324_v10  ;;  %v9920_v15 = vpop.xlane.xlu0 %4130  ;;  %v3478_v10 = vsub.f32 %v12701_v25, %v9519_v21  ;;  %7040 = vpow2.f32 %v3906_v57  ;;  %12704 = vst [vmem:[#allocation126_spill] sm:$0xff] %v9936_v42  ;;  %v9944_v46 = vmul.f32 %v7015_v0, %v12706_v54  ;;  %v12708_v25 = vld [vmem:[#allocation205_spill] sm:$0xff]  ;;  %v9949_v57 = vpop.eup %7020  ;;  %v4036_v9 = vmul.f32 1.442695, %v3557_v45 }
 0x530   : > { %v9925_v44 = vpop.xlane.xlu1 %4133  ;;  %v9947_v3 = vmul.f32 %v7017_v59, %v12708_v25  ;;  %12710 = vst [vmem:[#allocation176_spill] sm:$0xff] %v9949_v57  ;;  %7042 = vpow2.f32 %v3908_v63  ;;  %v9957_v49 = vpop.eup %7022  ;;  %v12713_v54 = vld [vmem:[#allocation133_spill] sm:$0xff]  ;;  %v4330_v59 = vadd.f32 %v9917_v1, %v9911_v6  ;;  %v4002_v63 = vmul.f32 1.442695, %v3540_v60 }
 0x531   : > { %12707 = vst [vmem:[#allocation185_spill] sm:$0xff] %v9944_v46  ;;  %12712 = vst [vmem:[#allocation178_spill] sm:$0xff] %v9957_v49  ;;  %v3541_v0 = vsub.f32 %v12713_v54, %v9513_v30  ;;  %v9967_v45 = vpop.eup %7024  ;;  %7044 = vpow2.f32 %v3874_v29  ;;  %v12716_v30 = vld [vmem:[#allocation137_spill] sm:$0xff]  ;;  %v4423_v29 = vadd.f32 %v9936_v42, %v9903_v24 }
 0x532   : > { %3302 = vmax.xlane.f32.xlu0 %v3301_v17  ;;  %12709 = vst [vmem:[#allocation170_spill] sm:$0xff] %v9947_v3  ;;  %v12711_v17 = vld [vmem:[#allocation132_spill] sm:$0xff]  ;;  %12714 = vst [vmem:[#allocation129_spill] sm:$0xff] %v9967_v45  ;;  %v3481_v54 = vsub.f32 %v12716_v30, %v9553_v38  ;;  %7046 = vpow2.f32 %v4034_v8 }
 0x533   : > { %4421 = vadd.xlane.f32.xlu1 %v4420_v32  ;;  %v9938_v47 = vpop.xlane.xlu0 %4226  ;;  %v3479_v37 = vsub.f32 %v12711_v17, %v9519_v21  ;;  %v4327_v32 = vadd.f32 %v9875_v35, %v9861_v34  ;;  %v12715_v17 = vld [vmem:[#allocation134_spill] sm:$0xff]  ;;  %v3878_v35 = vmul.f32 1.442695, %v3478_v10  ;;  %v12718_v21 = vld [vmem:[#allocation135_spill] sm:$0xff]  ;;  %7048 = vpow2.f32 %v4036_v9 }
 0x534   : > { %v9953_v28 = vpop.xlane.xlu1 %4229  ;;  %v3480_v34 = vsub.f32 %v12715_v17, %v9553_v38  ;;  %v3542_v62 = vsub.f32 %v12718_v21, %v9557_v39  ;;  %7050 = vpow2.f32 %v3876_v61  ;;  %v4004_v10 = vmul.f32 1.442695, %v3541_v0  ;;  %v12720_v38 = vld [vmem:[#allocation139_spill] sm:$0xff]  ;;  %v12724_v61 = vld [vmem:[#allocation145_spill] sm:$0xff] }
 0x535   : > { %v9975_v25 = vpop.eup %7026  ;;  %v3880_v1 = vmul.f32 1.442695, %v3479_v37  ;;  %v3543_v8 = vsub.f32 %v12720_v38, %v9557_v39  ;;  %7052 = vpow2.f32 %v4002_v63  ;;  %v12722_v9 = vld [vmem:[#allocation143_spill] sm:$0xff]  ;;  %v3884_v24 = vmul.f32 1.442695, %v3481_v54 }
 0x536   : > { %4328 = vadd.xlane.f32.xlu0 %v4327_v32  ;;  %12717 = vst [vmem:[#allocation131_spill] sm:$0xff] %v9975_v25  ;;  %v9981_v32 = vpop.eup %7028  ;;  %v3882_v37 = vmul.f32 1.442695, %v3480_v34  ;;  %v3544_v21 = vsub.f32 %v12722_v9, %v9593_v23  ;;  %7054 = vpow2.f32 %v3878_v35  ;;  %v3545_v0 = vsub.f32 %v12724_v61, %v9593_v23 }
 0x537   : > { %4331 = vadd.xlane.f32.xlu1 %v4330_v59  ;;  %v9973_v6 = vpop.xlane.xlu0 %4136  ;;  %12719 = vst [vmem:[#allocation198_spill] sm:$0xff] %v9981_v32  ;;  %v4426_v59 = vadd.f32 %v9967_v45, %v9957_v49  ;;  %v9987_v17 = vpop.eup %7030  ;;  %7056 = vpow2.f32 %v3880_v1  ;;  %v4006_v49 = vmul.f32 1.442695, %v3542_v62  ;;  %v4333_v34 = vadd.f32 %v9975_v25, %v9949_v57  ;;  %v12755_v25 = vld [vmem:[#allocation121_spill] sm:$0xff] }
 0x538   : > { %v4140_v60 = vpop.xlane.xlu1 %4139  ;;  %12721 = vst [vmem:[#allocation206_spill] sm:$0xff] %v9987_v17  ;;  %v9991_v30 = vpop.eup %7032  ;;  %7058 = vpow2.f32 %v4004_v10  ;;  %v4336_v35 = vadd.f32 %v9987_v17, %v9981_v32  ;;  %v4010_v23 = vmul.f32 1.442695, %v3544_v21  ;;  %v4012_v1 = vmul.f32 1.442695, %v3545_v0  ;;  %v12752_v17 = vld [vmem:[#allocation200_spill] sm:$0xff] }
 0x539   : > { %12723 = vst [vmem:[#allocation194_spill] sm:$0xff] %v9991_v30  ;;  %v9997_v38 = vpop.eup %7034  ;;  %7060 = vpow2.f32 %v3882_v37 }
 0x53a   : > { %4424 = vadd.xlane.f32.xlu0 %v4423_v29  ;;  %12725 = vst [vmem:[#allocation205_spill] sm:$0xff] %v9997_v38  ;;  %v10001_v9 = vpop.eup %7036  ;;  %v4008_v29 = vmul.f32 1.442695, %v3543_v8  ;;  %7062 = vpow2.f32 %v3884_v24  ;;  %v4429_v10 = vadd.f32 %v9997_v38, %v9991_v30 }
 0x53b   : > { %4427 = vadd.xlane.f32.xlu1 %v4426_v59  ;;  %v9995_v39 = vpop.xlane.xlu0 %4232  ;;  %12726 = vst [vmem:[#allocation132_spill] sm:$0xff] %v10001_v9  ;;  %v10005_v54 = vpop.eup %7038  ;;  %7064 = vpow2.f32 %v4006_v49 }
 0x53c   : > { %v4236_v63 = vpop.xlane.xlu1 %4235  ;;  %12727 = vst [vmem:[#allocation133_spill] sm:$0xff] %v10005_v54  ;;  %v10007_v59 = vpop.eup %7040  ;;  %7066 = vpow2.f32 %v4008_v29  ;;  %v4432_v42 = vadd.f32 %v10005_v54, %v10001_v9  ;;  %v12733_v29 = vld [vmem:[#allocation189_spill] sm:$0xff]  ;;  %v12739_v9 = vld [vmem:[#allocation196_spill] sm:$0xff] }
 0x53d   : > { %12728 = vst [vmem:[#allocation134_spill] sm:$0xff] %v10007_v59  ;;  %v10011_v8 = vpop.eup %7042  ;;  %7068 = vpow2.f32 %v4010_v23 }
 0x53e   : > { %4334 = vadd.xlane.f32.xlu0 %v4333_v34  ;;  %12729 = vst [vmem:[#allocation137_spill] sm:$0xff] %v10011_v8  ;;  %v10015_v37 = vpop.eup %7044  ;;  %7070 = vpow2.f32 %v4012_v1  ;;  %v4339_v0 = vadd.f32 %v10011_v8, %v10007_v59  ;;  %v12751_v8 = vld [vmem:[#allocation202_spill] sm:$0xff] }
 0x53f   : > { %4337 = vadd.xlane.f32.xlu1 %v4336_v35  ;;  %v4143_v62 = vpop.xlane.xlu0 %4142  ;;  %12730 = vst [vmem:[#allocation135_spill] sm:$0xff] %v10015_v37  ;;  %v10017_v21 = vpop.eup %7046  ;;  %v12734_v35 = vld [vmem:[#allocation186_spill] sm:$0xff] }
 0x540   : > { %v4146_v61 = vpop.xlane.xlu1 %4145  ;;  %12731 = vst [vmem:[#allocation139_spill] sm:$0xff] %v10017_v21  ;;  %7072 = vrcp.f32 %v4143_v62  ;;  %v10021_v34 = vpop.eup %7048  ;;  %v3196_v30 = vmax.f32 %v12734_v35, %v12733_v29  ;;  %v12763_v35 = vld [vmem:[#allocation188_spill] sm:$0xff] }
 0x541   : > { %12732 = vst [vmem:[#allocation143_spill] sm:$0xff] %v10021_v34  ;;  %7074 = vrcp.f32 %v4146_v61  ;;  %v10025_v23 = vpop.eup %7050  ;;  %v4435_v57 = vadd.f32 %v10021_v34, %v10017_v21  ;;  %v12740_v61 = vld [vmem:[#allocation192_spill] sm:$0xff]  ;;  %v12745_v21 = vld [vmem:[#allocation191_spill] sm:$0xff] }
 0x542   : > { %4430 = vadd.xlane.f32.xlu0 %v4429_v10  ;;  %12735 = vst [vmem:[#allocation145_spill] sm:$0xff] %v10025_v23  ;;  %7076 = vrcp.f32 %v4140_v60  ;;  %v10027_v1 = vpop.eup %7052  ;;  %v3292_v54 = vmax.f32 %v12740_v61, %v12739_v9  ;;  %v12757_v9 = vld [vmem:[#allocation174_spill] sm:$0xff]  ;;  %v12759_v61 = vld [vmem:[#allocation179_spill] sm:$0xff] }
 0x543   : > { %4433 = vadd.xlane.f32.xlu1 %v4432_v42  ;;  %v4239_v24 = vpop.xlane.xlu0 %4238  ;;  %12736 = vst [vmem:[#allocation262_spill] sm:$0xff] %v10027_v1  ;;  %v10029_v62 = vpop.eup %7054 }
 0x544   : > { %v4242_v49 = vpop.xlane.xlu1 %4241  ;;  %7078 = vrcp.f32 %v4239_v24  ;;  %12737 = vst [vmem:[#allocation263_spill] sm:$0xff] %v10029_v62  ;;  %v10033_v38 = vpop.eup %7056 }
 0x545   : > { %12738 = vst [vmem:[#allocation264_spill] sm:$0xff] %v10033_v38  ;;  %v10037_v60 = vpop.eup %7058 }
 0x546   : > { %4340 = vadd.xlane.f32.xlu0 %v4339_v0  ;;  %12741 = vst [vmem:[#allocation265_spill] sm:$0xff] %v10037_v60 }
 0x547   : > { %3197 = vmax.xlane.f32.xlu1 %v3196_v30  ;;  %v4149_v42 = vpop.xlane.xlu0 %4148  ;;  %v10040_v30 = vpop.eup %7060 }
 0x548   : > { %v4158_v10 = vpop.xlane.xlu1 %4157  ;;  %7080 = vrcp.f32 %v4149_v42  ;;  %12742 = vst [vmem:[#allocation266_spill] sm:$0xff] %v10040_v30  ;;  %v10042_v0 = vpop.eup %7062  ;;  %v12744_v42 = vld [vmem:[#allocation195_spill] sm:$0xff] }
 0x549   : > { %7082 = vrcp.f32 %v4242_v49  ;;  %12743 = vst [vmem:[#allocation267_spill] sm:$0xff] %v10042_v0  ;;  %v3199_v34 = vmax.f32 %v12745_v21, %v12744_v42  ;;  %v10046_v59 = vpop.eup %7064  ;;  %v12747_v49 = vld [vmem:[#allocation118_spill] sm:$0xff]  ;;  %v12756_v21 = vld [vmem:[#allocation177_spill] sm:$0xff] }
 0x54a   : > { %7084 = vrcp.f32 %v9973_v6  ;;  %4436 = vadd.xlane.f32.xlu0 %v4435_v57  ;;  %12746 = vst [vmem:[#allocation268_spill] sm:$0xff] %v10046_v59  ;;  %v3473_v32 = vsub.f32 %v12747_v49, %v9443_v2  ;;  %v4318_v6 = vadd.f32 %v10033_v38, %v10029_v62  ;;  %v10052_v57 = vpop.eup %7066  ;;  %v3295_v2 = vmax.f32 %v12752_v17, %v12751_v8  ;;  %v12758_v17 = vld [vmem:[#allocation182_spill] sm:$0xff] }
 0x54b   : > { %7086 = vrcp.f32 %v4236_v63  ;;  %3293 = vmax.xlane.f32.xlu1 %v3292_v54  ;;  %v4245_v24 = vpop.xlane.xlu0 %4244  ;;  %12748 = vst [vmem:[#allocation118_spill] sm:$0xff] %v10052_v57  ;;  %v10055_v63 = vpop.eup %7068  ;;  %v3190_v8 = vmax.f32 %v12757_v9, %v12756_v21 }
 0x54c   : > { %v4254_v45 = vpop.xlane.xlu1 %4253  ;;  %7088 = vrcp.f32 %v4245_v24  ;;  %12749 = vst [vmem:[#allocation269_spill] sm:$0xff] %v10055_v63  ;;  %v10058_v24 = vpop.eup %7070 }
 0x54d   : > { %7090 = vrcp.f32 %v4158_v10  ;;  %12750 = vst [vmem:[#allocation270_spill] sm:$0xff] %v10058_v24  ;;  %v12753_v10 = vld [vmem:[#allocation107_spill] sm:$0xff]  ;;  %v10064_v38 = vpop.eup %7072 }
 0x54e   : > { %7092 = vrcp.f32 %v9925_v44  ;;  %3200 = vmax.xlane.f32.xlu0 %v3199_v34  ;;  %v3529_v49 = vsub.f32 %v12753_v10, %v9359_v14  ;;  %v3868_v44 = vmul.f32 1.442695, %v3473_v32  ;;  %v12754_v34 = vld [vmem:[#allocation86_spill] sm:$0xff]  ;;  %v12760_v32 = vld [vmem:[#allocation184_spill] sm:$0xff] }
 0x54f   : > { %7094 = vrcp.f32 %v9995_v39  ;;  %4319 = vadd.xlane.f32.xlu1 %v4318_v6  ;;  %v4161_v54 = vpop.xlane.xlu0 %4160  ;;  %v3536_v42 = vsub.f32 %v12755_v25, %v12754_v34  ;;  %v4414_v39 = vadd.f32 %v10052_v57, %v10046_v59  ;;  %v7075_v6 = vpop.eup %7074  ;;  %v12761_v10 = vld [vmem:[#allocation180_spill] sm:$0xff]  ;;  %v12762_v25 = vld [vmem:[#allocation190_spill] sm:$0xff]  ;;  %v3537_v59 = vsub.f32 %v12764_v26, %v12754_v34 }
 0x550   : > { %v4164_v62 = vpop.xlane.xlu1 %4163  ;;  %7096 = vrcp.f32 %v4161_v54  ;;  %v10075_v54 = vpop.eup %7076  ;;  %v3286_v29 = vmax.f32 %v12761_v10, %v12760_v32  ;;  %v10086_v14 = vmul.f32 1.442695, %v3529_v49  ;;  %v12767_v34 = vld [vmem:[#allocation226_spill] sm:$0xff] }
 0x551   : > { %7098 = vrcp.f32 %v9953_v28  ;;  %v10084_v21 = vpop.eup %7078  ;;  %v4321_v28 = vadd.f32 %v10042_v0, %v10040_v30  ;;  %v3994_v26 = vmul.f32 1.442695, %v3536_v42  ;;  %v12769_v49 = vld [vmem:[#allocation230_spill] sm:$0xff]  ;;  %v12772_v30 = vld [vmem:[#allocation115_spill] sm:$0xff]  ;;  %v3996_v42 = vmul.f32 1.442695, %v3537_v59 }
 0x552   : > { %7100 = vrcp.f32 %v4254_v45  ;;  %3296 = vmax.xlane.f32.xlu0 %v3295_v2  ;;  %v12765_v45 = vld [vmem:[#allocation78_spill] sm:$0xff]  ;;  %v12766_v2 = vld [vmem:[#allocation113_spill] sm:$0xff] }
 0x553   : > { %7102 = vrcp.f32 %v9920_v15  ;;  %4415 = vadd.xlane.f32.xlu1 %v4414_v39  ;;  %v4257_v57 = vpop.xlane.xlu0 %4256  ;;  %v3532_v9 = vsub.f32 %v12766_v2, %v12765_v45  ;;  %v4643_v15 = vmul.f32 %v7075_v6, %v12767_v34  ;;  %v12768_v39 = vld [vmem:[#allocation49_spill] sm:$0xff]  ;;  %v12770_v2 = vld [vmem:[#allocation51_spill] sm:$0xff] }
 0x554   : > { %v10090_v20 = vpop.xlane.xlu1 %3227  ;;  %7104 = vrcp.f32 %v4257_v57  ;;  %v4641_v10 = vmul.f32 %v10064_v38, %v12768_v39  ;;  %v4642_v16 = vmul.f32 %v7075_v6, %v12770_v2  ;;  %v12773_v39 = vld [vmem:[#allocation220_spill] sm:$0xff] }
 0x555   : > { %v7081_v32 = vpop.eup %7080  ;;  %7106 = vpow2.f32 %v3868_v44  ;;  %v3533_v44 = vsub.f32 %v12772_v30, %v12765_v45  ;;  %v12775_v30 = vld [vmem:[#allocation228_spill] sm:$0xff] }
 0x556   : > { %v7083_v46 = vpop.eup %7082  ;;  %7108 = vrcp.f32 %v4164_v62  ;;  %4322 = vadd.xlane.f32.xlu0 %v4321_v28  ;;  %v4645_v3 = vmul.f32 %v7081_v32, %v12769_v49  ;;  %v4644_v57 = vmul.f32 %v7081_v32, %v12771_v55  ;;  %v4639_v62 = vmul.f32 %v10075_v54, %v12773_v39  ;;  %v12777_v39 = vld [vmem:[#allocation57_spill] sm:$0xff] }
 0x557   : > { %v10100_v50 = vpop.eup %7084  ;;  %7110 = vrcp.f32 %v9880_v5  ;;  %3191 = vmax.xlane.f32.xlu1 %v3190_v8  ;;  %v4167_v34 = vpop.xlane.xlu0 %4166  ;;  %v4417_v55 = vadd.f32 %v10058_v24, %v10055_v63  ;;  %v4707_v5 = vmul.f32 %v7083_v46, %v12775_v30  ;;  %v12776_v8 = vld [vmem:[#allocation52_spill] sm:$0xff]  ;;  %v12782_v30 = vld [vmem:[#allocation35_spill] sm:$0xff] }
 0x558   : > { %v10107_v28 = vpop.eup %7086  ;;  %v10109_v49 = vpop.xlane.xlu1 %4259  ;;  %7112 = vrcp.f32 %v4167_v34  ;;  %v4885_v6 = vpack.c.bf16 %v4645_v3, %v4643_v15  ;;  %v4884_v32 = vpack.c.bf16 %v4644_v57, %v4642_v16  ;;  %v4883_v59 = vpack.c.bf16 %v4641_v10, %v4639_v62  ;;  %v12778_v3 = vld [vmem:[#allocation54_spill] sm:$0xff] }
 0x559   : > { %12774 = vst [vmem:[#allocation107_spill] sm:$0xff] %v10109_v49  ;;  %v7089_v2 = vpop.eup %7088  ;;  %7114 = vpow2.f32 %v3994_v26  ;;  %v4705_v45 = vmul.f32 %v10084_v21, %v12776_v8  ;;  %v4706_v15 = vmul.f32 %v7083_v46, %v12778_v3  ;;  %v12779_v49 = vld [vmem:[#allocation56_spill] sm:$0xff]  ;;  %v3986_v26 = vmul.f32 1.442695, %v3532_v9 }
 0x55a   : > { %v7091_v0 = vpop.eup %7090  ;;  %7116 = vrcp.f32 %v9938_v47  ;;  %5000 = vmatprep.subr.bf16.mxu0 %v4885_v6  ;;  %4418 = vadd.xlane.f32.xlu0 %v4417_v55  ;;  %v4709_v34 = vmul.f32 %v7089_v2, %v12777_v39  ;;  %v4708_v63 = vmul.f32 %v7089_v2, %v12779_v49  ;;  %v10122_v10 = vmul.f32 1.442695, %v3533_v44  ;;  %v12780_v47 = vld [vmem:[#allocation222_spill] sm:$0xff] }
 0x55b   : > { %v10120_v16 = vpop.eup %7092  ;;  %7118 = vrcp.f32 %v9907_v12  ;;  %3287 = vmax.xlane.f32.xlu1 %v3286_v29  ;;  %5001 = vmatpush1.bf16.xpose.msra.mxu0 %v4884_v32  ;;  %v10125_v57 = vpop.xlane.xlu0 %3230  ;;  %v4703_v62 = vmul.f32 %v10107_v28, %v12780_v47  ;;  %v4312_v9 = vadd.f32 %v9811_v41, %v9807_v13  ;;  %v10137_v12 = vadd.f32 %v9775_v4, %v9765_v18  ;;  %v12781_v32 = vld [vmem:[#allocation223_spill] sm:$0xff]  ;;  %v12783_v39 = vld [vmem:[#allocation234_spill] sm:$0xff]  ;;  %v12802_v13 = vld [vmem:[#allocation69_spill] sm:$0xff] }
 0x55c   : > { %v10129_v6 = vpop.eup %7094  ;;  %v10131_v55 = vpop.xlane.xlu1 %3323  ;;  %5002 = vmatprep.subr.bf16.mxu0 %v4883_v59  ;;  %v4917_v46 = vpack.c.bf16 %v4709_v34, %v4707_v5  ;;  %v4916_v44 = vpack.c.bf16 %v4708_v63, %v4706_v15  ;;  %v4640_v2 = vmul.f32 %v10064_v38, %v12781_v32  ;;  %v4637_v8 = vmul.f32 %v10100_v50, %v12782_v30  ;;  %v12785_v5 = vld [vmem:[#allocation238_spill] sm:$0xff]  ;;  %v12787_v38 = vld [vmem:[#allocation237_spill] sm:$0xff]  ;;  %v12808_v41 = vld [vmem:[#allocation39_spill] sm:$0xff] }
 0x55d   : > { %v7097_v29 = vpop.eup %7096  ;;  %v4915_v49 = vpack.c.bf16 %v4705_v45, %v4703_v62  ;;  %v10144_v3 = vmul.f32 %v7091_v0, %v12783_v39  ;;  %7120 = vpow2.f32 %v3996_v42  ;;  %v12784_v63 = vmax.f32 %v12759_v61, %v12758_v17  ;;  %v12786_v45 = vld [vmem:[#allocation231_spill] sm:$0xff]  ;;  %v12788_v32 = vld [vmem:[#allocation45_spill] sm:$0xff] }
 0x55e   : > { %v10146_v59 = vpop.eup %7098  ;;  %5043 = vmatprep.subr.bf16.mxu1 %v4917_v46  ;;  %v10152_v34 = vmul.f32 %v7097_v29, %v12785_v5  ;;  %v10155_v15 = vmul.f32 %v7091_v0, %v12786_v45  ;;  %v10158_v47 = vmul.f32 %v7097_v29, %v12787_v38  ;;  %7122 = vrcp.f32 %v9821_v36 }
 0x55f   : > { %3194 = vmax.xlane.f32.xlu0 %v12784_v63  ;;  %v7101_v62 = vpop.eup %7100  ;;  %4313 = vadd.xlane.f32.xlu1 %v4312_v9  ;;  %v10161_v42 = vpop.xlane.xlu0 %4262  ;;  %v4408_v46 = vadd.f32 %v9833_v52, %v9823_v43  ;;  %v4638_v30 = vmul.f32 %v10075_v54, %v12788_v32  ;;  %v4315_v0 = vadd.f32 %v10025_v23, %v10015_v37  ;;  %v12789_v63 = vld [vmem:[#allocation216_spill] sm:$0xff]  ;;  %v12790_v9 = vld [vmem:[#allocation46_spill] sm:$0xff]  ;;  %7124 = vrcp.f32 %v9873_v40  ;;  %v12791_v32 = vld [vmem:[#allocation53_spill] sm:$0xff] }
 0x560   : > { %5044 = vmatpush1.bf16.xpose.msra.mxu1 %v4916_v44  ;;  %v10169_v39 = vpop.eup %7102  ;;  %v10171_v29 = vpop.xlane.xlu1 %4169  ;;  %v4635_v36 = vmul.f32 %v10120_v16, %v12789_v63  ;;  %v4701_v44 = vmul.f32 %v10129_v6, %v12790_v9  ;;  %v4704_v18 = vmul.f32 %v10084_v21, %v12791_v32  ;;  %v12794_v9 = vmax.f32 %v12763_v35, %v12762_v25  ;;  %v12795_v43 = vld [vmem:[#allocation236_spill] sm:$0xff]  ;;  %v12797_v40 = vld [vmem:[#allocation61_spill] sm:$0xff] }
 0x561   : > { %5045 = vmatprep.subr.bf16.mxu1 %v4915_v49  ;;  %v7105_v45 = vpop.eup %7104  ;;  %v4882_v38 = vpack.c.bf16 %v4640_v2, %v4638_v30  ;;  %v12792_v49 = vld [vmem:[#allocation218_spill] sm:$0xff]  ;;  %v10192_v52 = vmul.f32 %v7101_v62, %v12795_v43  ;;  %v12796_v54 = vld [vmem:[#allocation60_spill] sm:$0xff]  ;;  %7126 = vpow2.f32 %v3986_v26  ;;  %v12799_v43 = vld [vmem:[#allocation59_spill] sm:$0xff] }
 0x562   : > { %v4699_v4 = vmul.f32 %v10146_v59, %v12792_v49  ;;  %v10186_v63 = vpop.eup %7106  ;;  %v4881_v5 = vpack.c.bf16 %v4637_v8, %v4635_v36  ;;  %v10195_v37 = vmul.f32 %v7105_v45, %v12796_v54  ;;  %v10198_v2 = vmul.f32 %v7105_v45, %v12797_v40  ;;  %v12798_v32 = vld [vmem:[#allocation48_spill] sm:$0xff]  ;;  %v12800_v40 = vld [vmem:[#allocation33_spill] sm:$0xff] }
 0x563   : > { %12793 = vst [vmem:[#allocation86_spill] sm:$0xff] %v10186_v63  ;;  %3290 = vmax.xlane.f32.xlu0 %v12794_v9  ;;  %v7109_v21 = vpop.eup %7108  ;;  %4409 = vadd.xlane.f32.xlu1 %v4408_v46  ;;  %v10200_v30 = vpop.xlane.xlu0 %3326  ;;  %v4702_v49 = vmul.f32 %v10107_v28, %v12798_v32  ;;  %v4411_v8 = vadd.f32 %v10037_v60, %v10027_v1  ;;  %v12801_v46 = vld [vmem:[#allocation27_spill] sm:$0xff]  ;;  %v12803_v60 = vld [vmem:[#allocation72_spill] sm:$0xff]  ;;  %7128 = vpow2.f32 %v10122_v10 }
 0x564   : > { %5003 = vmatpush1.bf16.xpose.msra.mxu0 %v4882_v38  ;;  %v10207_v36 = vmul.f32 %v7101_v62, %v12799_v43  ;;  %v10209_v54 = vpop.eup %7110  ;;  %v3234_v9 = vpop.xlane.xlu1 %3233  ;;  %v4913_v45 = vpack.c.bf16 %v4701_v44, %v4699_v4  ;;  %v4636_v26 = vmul.f32 %v10100_v50, %v12800_v40  ;;  %v4633_v38 = vmul.f32 %v10169_v39, %v12801_v46  ;;  %v12805_v4 = vld [vmem:[#allocation240_spill] sm:$0xff] }
 0x565   : > { %5004 = vmatprep.subr.bf16.mxu0 %v4881_v5  ;;  %v7113_v32 = vpop.eup %7112  ;;  %v3522_v1 = vsub.f32 %v12802_v13, %v3234_v9  ;;  %v3523_v62 = vsub.f32 %v12803_v60, %v3234_v9  ;;  %v4914_v43 = vpack.c.bf16 %v4704_v18, %v4702_v49  ;;  %v10224_v50 = vmul.f32 %v7109_v21, %v12805_v4  ;;  %v12806_v44 = vld [vmem:[#allocation36_spill] sm:$0xff]  ;;  %v12810_v9 = vld [vmem:[#allocation214_spill] sm:$0xff] }
 0x566   : > { %v10221_v5 = vpop.eup %7114  ;;  %v10227_v40 = vmul.f32 %v7113_v32, %v12806_v44  ;;  %v12807_v46 = vld [vmem:[#allocation32_spill] sm:$0xff]  ;;  %v10233_v13 = vmul.f32 %v7113_v32, %v12808_v41  ;;  %v4631_v4 = vmul.f32 %v10209_v54, %v12810_v9  ;;  %v12812_v32 = vld [vmem:[#allocation34_spill] sm:$0xff]  ;;  %7130 = vpow2.f32 %v10086_v14 }
 0x567   : > { %12804 = vst [vmem:[#allocation121_spill] sm:$0xff] %v10221_v5  ;;  %4316 = vadd.xlane.f32.xlu0 %v4315_v0  ;;  %v10230_v28 = vmul.f32 %v7109_v21, %v12807_v46  ;;  %v10235_v60 = vpop.eup %7116  ;;  %4307 = vadd.xlane.f32.xlu1 %v10137_v12  ;;  %v10239_v18 = vpop.xlane.xlu0 %4172  ;;  %v12809_v0 = vld [vmem:[#allocation29_spill] sm:$0xff]  ;;  %v12811_v21 = vld [vmem:[#allocation44_spill] sm:$0xff]  ;;  %v3518_v46 = vsub.f32 %v12812_v32, %v10090_v20  ;;  %v3966_v10 = vmul.f32 1.442695, %v3522_v1  ;;  %v12814_v12 = vld [vmem:[#allocation30_spill] sm:$0xff] }
 0x568   : > { %5046 = vmatpush1.bf16.xpose.msra.mxu1 %v4914_v43  ;;  %v4634_v49 = vmul.f32 %v10120_v16, %v12809_v0  ;;  %v4700_v44 = vmul.f32 %v10129_v6, %v12811_v21  ;;  %v10247_v41 = vpop.eup %7118  ;;  %v10251_v23 = vpop.xlane.xlu1 %4265  ;;  %v3968_v43 = vmul.f32 1.442695, %v3523_v62  ;;  %v4402_v0 = vadd.f32 %v9793_v22, %v9786_v27  ;;  %v12813_v9 = vld [vmem:[#allocation40_spill] sm:$0xff]  ;;  %v12820_v14 = vld [vmem:[#allocation62_spill] sm:$0xff] }
 0x569   : > { %5047 = vmatprep.subr.bf16.mxu1 %v4913_v45  ;;  %v4698_v21 = vmul.f32 %v10146_v59, %v12813_v9  ;;  %v4879_v32 = vpack.c.bf16 %v4633_v38, %v4631_v4  ;;  %v4300_v1 = vadd.f32 %v9709_v33, %v9703_v56  ;;  %v4309_v45 = vadd.f32 %v10186_v63, %v9801_v48  ;;  %v12816_v59 = vld [vmem:[#allocation26_spill] sm:$0xff]  ;;  %v12817_v38 = vld [vmem:[#allocation25_spill] sm:$0xff]  ;;  %v12818_v56 = vld [vmem:[#allocation79_spill] sm:$0xff] }
 0x56a   : > { %v4880_v6 = vpack.c.bf16 %v4636_v26, %v4634_v49  ;;  %v4697_v24 = vmul.f32 %v10235_v60, %v12814_v12  ;;  %v10267_v16 = vpop.eup %7120  ;;  %v4632_v49 = vmul.f32 %v10169_v39, %v12817_v38  ;;  %v3958_v9 = vmul.f32 1.442695, %v3518_v46  ;;  %v12819_v33 = vld [vmem:[#allocation82_spill] sm:$0xff]  ;;  %v12823_v39 = vld [vmem:[#allocation241_spill] sm:$0xff]  ;;  %v12931_v25 = vld [vmem:[#allocation256_spill] sm:$0xff] }
 0x56b   : > { %4412 = vadd.xlane.f32.xlu0 %v4411_v8  ;;  %12815 = vst [vmem:[#allocation123_spill] sm:$0xff] %v10267_v16  ;;  %4403 = vadd.xlane.f32.xlu1 %v4402_v0  ;;  %v3237_v26 = vpop.xlane.xlu0 %3236  ;;  %v4912_v62 = vpack.c.bf16 %v4700_v44, %v4698_v21  ;;  %v4695_v8 = vmul.f32 %v10247_v41, %v12816_v59  ;;  %v10274_v4 = vpop.eup %7122  ;;  %7132 = vpow2.f32 %v3966_v10  ;;  %v12821_v44 = vld [vmem:[#allocation243_spill] sm:$0xff]  ;;  %v12822_v21 = vld [vmem:[#allocation246_spill] sm:$0xff] }
 0x56c   : > { %5005 = vmatpush1.bf16.xpose.msra.mxu0 %v4880_v6  ;;  %v3524_v12 = vsub.f32 %v12818_v56, %v3237_v26  ;;  %v3525_v27 = vsub.f32 %v12819_v33, %v3237_v26  ;;  %v3330_v22 = vpop.xlane.xlu1 %3329  ;;  %v3519_v0 = vsub.f32 %v12820_v14, %v10090_v20  ;;  %7134 = vpow2.f32 %v3968_v43  ;;  %v10282_v48 = vpop.eup %7124  ;;  %v12930_v63 = vld [vmem:[#allocation114_spill] sm:$0xff] }
 0x56d   : > { %5006 = vmatprep.subr.bf16.mxu0 %v4879_v32  ;;  %v3586_v6 = vsub.f32 %v12821_v44, %v3330_v22  ;;  %v3587_v59 = vsub.f32 %v12822_v21, %v3330_v22  ;;  %v3582_v46 = vsub.f32 %v12823_v39, %v10131_v55  ;;  %v4911_v56 = vpack.c.bf16 %v4697_v24, %v4695_v8  ;;  %v12824_v32 = vld [vmem:[#allocation65_spill] sm:$0xff]  ;;  %v12825_v22 = vld [vmem:[#allocation19_spill] sm:$0xff]  ;;  %v12830_v39 = vld [vmem:[#allocation38_spill] sm:$0xff] }
 0x56e   : > { %v3970_v10 = vmul.f32 1.442695, %v3524_v12  ;;  %v4396_v33 = vadd.f32 %v9744_v19, %v9731_v7  ;;  %v3583_v26 = vsub.f32 %v12824_v32, %v10131_v55  ;;  %v4630_v14 = vmul.f32 %v10209_v54, %v12825_v22  ;;  %v10294_v44 = vpop.eup %7126  ;;  %v12827_v12 = vld [vmem:[#allocation28_spill] sm:$0xff]  ;;  %v12829_v21 = vld [vmem:[#allocation21_spill] sm:$0xff] }
 0x56f   : > { %4310 = vadd.xlane.f32.xlu0 %v4309_v45  ;;  %v4094_v20 = vmul.f32 1.442695, %v3586_v6  ;;  %v4096_v43 = vmul.f32 1.442695, %v3587_v59  ;;  %4301 = vadd.xlane.f32.xlu1 %v4300_v1  ;;  %v10290_v38 = vpop.xlane.xlu0 %4268  ;;  %12826 = vst [vmem:[#allocation78_spill] sm:$0xff] %v10294_v44  ;;  %7136 = vpow2.f32 %v3958_v9  ;;  %v4405_v8 = vadd.f32 %v10267_v16, %v10221_v5  ;;  %v12828_v9 = vld [vmem:[#allocation210_spill] sm:$0xff] }
 0x570   : > { %5048 = vmatpush1.bf16.xpose.msra.mxu1 %v4912_v62  ;;  %v3972_v45 = vmul.f32 1.442695, %v3525_v27  ;;  %v10296_v24 = vpop.xlane.xlu1 %4175  ;;  %v4303_v55 = vadd.f32 %v9759_v58, %v9753_v11  ;;  %v3960_v1 = vmul.f32 1.442695, %v3519_v0  ;;  %7138 = vpow2.f32 %v3970_v10  ;;  %v12831_v0 = vld [vmem:[#allocation20_spill] sm:$0xff]  ;;  %v12923_v7 = vld [vmem:[#allocation93_spill] sm:$0xff] }
 0x571   : > { %5049 = vmatprep.subr.bf16.mxu1 %v4911_v56  ;;  %v4878_v62 = vpack.c.bf16 %v4632_v49, %v4630_v14  ;;  %v4696_v6 = vmul.f32 %v10235_v60, %v12827_v12  ;;  %v4086_v54 = vmul.f32 1.442695, %v3582_v46  ;;  %7140 = vpow2.f32 %v4094_v20  ;;  %v10312_v46 = vpop.eup %7128  ;;  %v12833_v10 = vld [vmem:[#allocation64_spill] sm:$0xff]  ;;  %v12834_v14 = vld [vmem:[#allocation87_spill] sm:$0xff]  ;;  %v12835_v12 = vld [vmem:[#allocation90_spill] sm:$0xff] }
 0x572   : > { %v4691_v27 = vmul.f32 %v10274_v4, %v12828_v9  ;;  %v4693_v59 = vmul.f32 %v10282_v48, %v12829_v21  ;;  %v3520_v56 = vsub.f32 %v12830_v39, %v10125_v57  ;;  %v4088_v32 = vmul.f32 1.442695, %v3583_v26  ;;  %12832 = vst [vmem:[#allocation113_spill] sm:$0xff] %v10312_v46  ;;  %v12837_v26 = vld [vmem:[#allocation128_spill] sm:$0xff]  ;;  %v12838_v39 = vld [vmem:[#allocation43_spill] sm:$0xff] }
 0x573   : > { %4406 = vadd.xlane.f32.xlu0 %v4405_v8  ;;  %7142 = vpow2.f32 %v4096_v43  ;;  %4397 = vadd.xlane.f32.xlu1 %v4396_v33  ;;  %v3333_v49 = vpop.xlane.xlu0 %3332  ;;  %v4694_v60 = vmul.f32 %v10247_v41, %v12831_v0  ;;  %v3521_v20 = vsub.f32 %v12833_v10, %v10125_v57  ;;  %v12836_v33 = vpack.c.bf16 %v9941_v51, %v9934_v53  ;;  %v10329_v53 = vpop.eup %7130  ;;  %v12925_v11 = vld [vmem:[#allocation255_spill] sm:$0xff] }
 0x574   : > { %5007 = vmatpush1.bf16.xpose.msra.mxu0 %v4878_v62  ;;  %7144 = vpow2.f32 %v3972_v45  ;;  %v10316_v22 = vpop.xlane.xlu1 %4271  ;;  %v3588_v8 = vsub.f32 %v12834_v14, %v3333_v49  ;;  %v3589_v9 = vsub.f32 %v12835_v12, %v3333_v49  ;;  %v4294_v41 = vadd.f32 %v12837_v26, %v9627_v31  ;;  %12839 = vst [vmem:[#allocation226_spill] sm:$0xff] %v10329_v53  ;;  %v12846_v14 = vld [vmem:[#allocation170_spill] sm:$0xff]  ;;  %v12921_v26 = vld [vmem:[#allocation104_spill] sm:$0xff] }
 0x575   : > { %5008 = vmatprep.subr.bf16.mxu0 %v12836_v33  ;;  %7146 = vpow2.f32 %v3960_v1  ;;  %v4910_v43 = vpack.c.bf16 %v4696_v6, %v4694_v60  ;;  %v4909_v57 = vpack.c.bf16 %v4693_v59, %v4691_v27  ;;  %v3962_v45 = vmul.f32 1.442695, %v3520_v56  ;;  %v12840_v1 = vld [vmem:[#allocation70_spill] sm:$0xff]  ;;  %v12842_v59 = vld [vmem:[#allocation117_spill] sm:$0xff]  ;;  %v12843_v56 = vld [vmem:[#allocation119_spill] sm:$0xff] }
 0x576   : > { %7148 = vpow2.f32 %v4086_v54  ;;  %v4098_v62 = vmul.f32 1.442695, %v3588_v8  ;;  %v4100_v21 = vmul.f32 1.442695, %v3589_v9  ;;  %v3584_v0 = vsub.f32 %v12838_v39, %v10200_v30  ;;  %v12844_v60 = vld [vmem:[#allocation17_spill] sm:$0xff]  ;;  %v12853_v39 = vld [vmem:[#allocation142_spill] sm:$0xff] }
 0x577   : > { %4304 = vadd.xlane.f32.xlu0 %v4303_v55  ;;  %7150 = vpow2.f32 %v4088_v32  ;;  %4295 = vadd.xlane.f32.xlu1 %v4294_v41  ;;  %v10327_v49 = vpop.xlane.xlu0 %4178  ;;  %v3964_v51 = vmul.f32 1.442695, %v3521_v20  ;;  %v3585_v6 = vsub.f32 %v12840_v1, %v10200_v30  ;;  %v4399_v55 = vadd.f32 %v10312_v46, %v10294_v44  ;;  %v12847_v8 = vld [vmem:[#allocation185_spill] sm:$0xff] }
 0x578   : > { %5050 = vmatpush1.bf16.xpose.msra.mxu1 %v4910_v43  ;;  %7152 = vpow2.f32 %v4098_v62  ;;  %v10333_v54 = vpop.xlane.xlu1 %4181  ;;  %v10337_v27 = vpop.eup %7132  ;;  %v4390_v32 = vadd.f32 %v12843_v56, %v12842_v59  ;;  %v4692_v10 = vmul.f32 %v10282_v48, %v12844_v60  ;;  %v4090_v30 = vmul.f32 1.442695, %v3584_v0  ;;  %v12849_v33 = vld [vmem:[#allocation209_spill] sm:$0xff]  ;;  %v12851_v48 = vld [vmem:[#allocation160_spill] sm:$0xff]  ;;  %v12917_v59 = vld [vmem:[#allocation95_spill] sm:$0xff] }
 0x579   : > { %5051 = vmatprep.subr.bf16.mxu1 %v4909_v57  ;;  %12841 = vst [vmem:[#allocation49_spill] sm:$0xff] %v10337_v27  ;;  %7154 = vpow2.f32 %v4100_v21  ;;  %v10343_v20 = vpop.eup %7134  ;;  %v12848_v12 = vpack.c.bf16 %v12846_v14, %v12847_v8  ;;  %v4690_v41 = vmul.f32 %v10274_v4, %v12849_v33  ;;  %v4092_v43 = vmul.f32 1.442695, %v3585_v6  ;;  %v12850_v21 = vld [vmem:[#allocation158_spill] sm:$0xff]  ;;  %v12859_v8 = vld [vmem:[#allocation124_spill] sm:$0xff]  ;;  %v12922_v44 = vld [vmem:[#allocation109_spill] sm:$0xff] }
 0x57a   : > { %12845 = vst [vmem:[#allocation230_spill] sm:$0xff] %v10343_v20  ;;  %7156 = vpow2.f32 %v3962_v45  ;;  %v12852_v57 = vpack.c.bf16 %v12850_v21, %v12851_v48  ;;  %v12854_v45 = vld [vmem:[#allocation148_spill] sm:$0xff]  ;;  %v12862_v21 = vld [vmem:[#allocation127_spill] sm:$0xff] }
 0x57b   : > { %4400 = vadd.xlane.f32.xlu0 %v4399_v55  ;;  %4391 = vadd.xlane.f32.xlu1 %v4390_v32  ;;  %v4275_v9 = vpop.xlane.xlu0 %4274  ;;  %7158 = vpow2.f32 %v3964_v51  ;;  %v4297_v0 = vadd.f32 %v12854_v45, %v12853_v39  ;;  %v4384_v55 = vadd.f32 %v10343_v20, %v10337_v27  ;;  %v4908_v32 = vpack.c.bf16 %v4692_v10, %v4690_v41  ;;  %v12911_v27 = vld [vmem:[#allocation71_spill] sm:$0xff] }
 0x57c   : > { %5009 = vmatpush1.bf16.xpose.msra.mxu0 %v12848_v12  ;;  %v10350_v62 = vpop.xlane.xlu1 %4277  ;;  %v10357_v1 = vpop.eup %7136  ;;  %7160 = vpow2.f32 %v4090_v30  ;;  %v12860_v12 = vld [vmem:[#allocation166_spill] sm:$0xff]  ;;  %v4393_v10 = vadd.f32 %v10329_v53, %v12862_v21  ;;  %v12920_v39 = vld [vmem:[#allocation111_spill] sm:$0xff] }
 0x57d   : > { %5010 = vmatprep.subr.bf16.mxu0 %v12852_v57  ;;  %12855 = vst [vmem:[#allocation51_spill] sm:$0xff] %v10357_v1  ;;  %v10361_v60 = vpop.eup %7138  ;;  %7162 = vpow2.f32 %v4092_v43  ;;  %v12861_v33 = vpack.c.bf16 %v12859_v8, %v12860_v12  ;;  %v12865_v57 = vld [vmem:[#allocation107_spill] sm:$0xff]  ;;  %v12918_v53 = vld [vmem:[#allocation250_spill] sm:$0xff] }
 0x57e   : > { %12856 = vst [vmem:[#allocation229_spill] sm:$0xff] %v10361_v60  ;;  %v10363_v4 = vpop.eup %7140  ;;  %7164 = vrcp.f32 %v12865_v57  ;;  %v12867_v43 = vld [vmem:[#allocation175_spill] sm:$0xff] }
 0x57f   : > { %4298 = vadd.xlane.f32.xlu0 %v4297_v0  ;;  %12857 = vst [vmem:[#allocation115_spill] sm:$0xff] %v10363_v4  ;;  %4385 = vadd.xlane.f32.xlu1 %v4384_v55  ;;  %v10365_v51 = vpop.xlane.xlu0 %4184  ;;  %7166 = vrcp.f32 %v10161_v42  ;;  %v12868_v55 = vld [vmem:[#allocation181_spill] sm:$0xff] }
 0x580   : > { %5052 = vmatpush1.bf16.xpose.msra.mxu1 %v4908_v32  ;;  %v10367_v6 = vpop.eup %7142  ;;  %v4188_v14 = vpop.xlane.xlu1 %4187  ;;  %v12869_v32 = vpack.c.bf16 %v12867_v43, %v12868_v55  ;;  %7168 = vrcp.f32 %v10171_v29  ;;  %v12876_v29 = vld [vmem:[#allocation168_spill] sm:$0xff] }
 0x581   : > { %12858 = vst [vmem:[#allocation220_spill] sm:$0xff] %v10367_v6  ;;  %5053 = vmatprep.subr.bf16.mxu1 %v12861_v33  ;;  %v10374_v41 = vpop.eup %7144  ;;  %v4480_v30 = vadd.f32 %v10367_v6, %v10363_v4  ;;  %v12871_v4 = vld [vmem:[#allocation146_spill] sm:$0xff]  ;;  %v12872_v6 = vld [vmem:[#allocation144_spill] sm:$0xff]  ;;  %7170 = vrcp.f32 %v10251_v23 }
 0x582   : > { %12863 = vst [vmem:[#allocation228_spill] sm:$0xff] %v10374_v41  ;;  %v10378_v48 = vpop.eup %7146  ;;  %v12873_v57 = vpack.c.bf16 %v12871_v4, %v12872_v6  ;;  %7172 = vrcp.f32 %v10239_v18  ;;  %v12877_v4 = vld [vmem:[#allocation167_spill] sm:$0xff] }
 0x583   : > { %12864 = vst [vmem:[#allocation52_spill] sm:$0xff] %v10378_v48  ;;  %4394 = vadd.xlane.f32.xlu0 %v4393_v10  ;;  %v10381_v0 = vpop.eup %7148  ;;  %4481 = vadd.xlane.f32.xlu1 %v4480_v30  ;;  %v10387_v8 = vpop.xlane.xlu0 %4280  ;;  %v4387_v10 = vadd.f32 %v10374_v41, %v10361_v60  ;;  %v4378_v30 = vadd.f32 %v10378_v48, %v10357_v1  ;;  %7174 = vrcp.f32 %v10296_v24  ;;  %v12881_v1 = vld [vmem:[#allocation163_spill] sm:$0xff]  ;;  %v12915_v41 = vld [vmem:[#allocation102_spill] sm:$0xff] }
 0x584   : > { %12866 = vst [vmem:[#allocation57_spill] sm:$0xff] %v10381_v0  ;;  %5011 = vmatpush1.bf16.xpose.msra.mxu0 %v12869_v32  ;;  %v10389_v12 = vpop.eup %7150  ;;  %v4284_v33 = vpop.xlane.xlu1 %4283  ;;  %v12878_v6 = vpack.c.bf16 %v12876_v29, %v12877_v4  ;;  %7176 = vrcp.f32 %v10316_v22  ;;  %v12884_v22 = vld [vmem:[#allocation149_spill] sm:$0xff] }
 0x585   : > { %12870 = vst [vmem:[#allocation54_spill] sm:$0xff] %v10389_v12  ;;  %5012 = vmatprep.subr.bf16.mxu0 %v12873_v57  ;;  %v10397_v42 = vpop.eup %7152  ;;  %v12880_v57 = vld [vmem:[#allocation173_spill] sm:$0xff]  ;;  %7178 = vrcp.f32 %v10333_v54  ;;  %v4474_v24 = vadd.f32 %v10389_v12, %v10381_v0  ;;  %v12901_v12 = vld [vmem:[#allocation136_spill] sm:$0xff] }
 0x586   : > { %12874 = vst [vmem:[#allocation56_spill] sm:$0xff] %v10397_v42  ;;  %v10402_v43 = vpop.eup %7154  ;;  %v12882_v48 = vpack.c.bf16 %v12880_v57, %v12881_v1  ;;  %7180 = vrcp.f32 %v10327_v49  ;;  %v12889_v57 = vld [vmem:[#allocation110_spill] sm:$0xff] }
 0x587   : > { %12875 = vst [vmem:[#allocation222_spill] sm:$0xff] %v10402_v43  ;;  %4388 = vadd.xlane.f32.xlu0 %v4387_v10  ;;  %4379 = vadd.xlane.f32.xlu1 %v4378_v30  ;;  %v4191_v55 = vpop.xlane.xlu0 %4190  ;;  %v10409_v32 = vpop.eup %7156  ;;  %v4483_v18 = vadd.f32 %v10402_v43, %v10397_v42  ;;  %7182 = vrcp.f32 %v4275_v9  ;;  %v12885_v30 = vld [vmem:[#allocation159_spill] sm:$0xff] }
 0x588   : > { %5054 = vmatpush1.bf16.xpose.msra.mxu1 %v12878_v6  ;;  %12879 = vst [vmem:[#allocation223_spill] sm:$0xff] %v10409_v32  ;;  %v4194_v23 = vpop.xlane.xlu1 %4193  ;;  %v10417_v10 = vpop.eup %7158  ;;  %v12886_v29 = vpack.c.bf16 %v12884_v22, %v12885_v30  ;;  %7184 = vrcp.f32 %v4191_v55  ;;  %v12888_v6 = vld [vmem:[#allocation112_spill] sm:$0xff] }
 0x589   : > { %5055 = vmatprep.subr.bf16.mxu1 %v12882_v48  ;;  %12883 = vst [vmem:[#allocation35_spill] sm:$0xff] %v10417_v10  ;;  %v10426_v48 = vpop.eup %7160  ;;  %v12890_v54 = vpack.c.bf16 %v12888_v6, %v12889_v57  ;;  %v4381_v0 = vadd.f32 %v10417_v10, %v10409_v32  ;;  %7186 = vrcp.f32 %v4188_v14  ;;  %v12895_v6 = vld [vmem:[#allocation120_spill] sm:$0xff] }
 0x58a   : > { %12887 = vst [vmem:[#allocation234_spill] sm:$0xff] %v10426_v48  ;;  %v10433_v49 = vpop.eup %7162  ;;  %7188 = vrcp.f32 %v4194_v23  ;;  %v12896_v57 = vld [vmem:[#allocation116_spill] sm:$0xff] }
 0x58b   : > { %4484 = vadd.xlane.f32.xlu0 %v4483_v18  ;;  %4475 = vadd.xlane.f32.xlu1 %v4474_v24  ;;  %v4287_v1 = vpop.xlane.xlu0 %4286  ;;  %12891 = vst [vmem:[#allocation238_spill] sm:$0xff] %v10433_v49  ;;  %v10435_v9 = vpop.eup %7164  ;;  %v12892_v18 = vld [vmem:[#allocation169_spill] sm:$0xff]  ;;  %v4477_v14 = vadd.f32 %v10433_v49, %v10426_v48  ;;  %v12898_v23 = vld [vmem:[#allocation224_spill] sm:$0xff] }
 0x58c   : > { %5013 = vmatpush1.bf16.xpose.msra.mxu0 %v12886_v29  ;;  %v4290_v4 = vpop.xlane.xlu1 %4289  ;;  %7190 = vrcp.f32 %v4287_v1  ;;  %v12893_v24 = vld [vmem:[#allocation161_spill] sm:$0xff]  ;;  %v10440_v30 = vpop.eup %7166 }
 0x58d   : > { %5014 = vmatprep.subr.bf16.mxu0 %v12890_v54  ;;  %v12894_v22 = vpack.c.bf16 %v12892_v18, %v12893_v24  ;;  %v12897_v54 = vpack.c.bf16 %v12895_v6, %v12896_v57  ;;  %v12899_v18 = vld [vmem:[#allocation55_spill] sm:$0xff] }
 0x58f   : > { %4382 = vadd.xlane.f32.xlu0 %v4381_v0  ;;  %v4197_v55 = vpop.xlane.xlu0 %4196  ;;  %v10447_v0 = vpop.eup %7168 }
 0x590   : > { %5056 = vmatpush1.bf16.xpose.msra.mxu1 %v12894_v22  ;;  %v3222_v29 = vpop.xlane.xlu1 %3221  ;;  %7192 = vrcp.f32 %v4197_v55  ;;  %v10452_v22 = vpop.eup %7170 }
 0x591   : > { %5057 = vmatprep.subr.bf16.mxu1 %v12897_v54  ;;  %7194 = vrcp.f32 %v10365_v51  ;;  %v3514_v1 = vsub.f32 %v12898_v23, %v3222_v29  ;;  %v3515_v24 = vsub.f32 %v12899_v18, %v3222_v29  ;;  %v10454_v55 = vpop.eup %7172  ;;  %v12900_v54 = vld [vmem:[#allocation130_spill] sm:$0xff]  ;;  %v12903_v29 = vld [vmem:[#allocation233_spill] sm:$0xff] }
 0x592   : > { %7196 = vrcp.f32 %v4290_v4  ;;  %v12902_v48 = vpack.c.bf16 %v12900_v54, %v12901_v12  ;;  %v10459_v32 = vpop.eup %7174 }
 0x593   : > { %4478 = vadd.xlane.f32.xlu0 %v4477_v14  ;;  %7198 = vrcp.f32 %v4284_v33  ;;  %v3950_v6 = vmul.f32 1.442695, %v3514_v1  ;;  %v3952_v57 = vmul.f32 1.442695, %v3515_v24  ;;  %v4293_v49 = vpop.xlane.xlu0 %4292  ;;  %v10461_v23 = vpop.eup %7176  ;;  %v12904_v14 = vld [vmem:[#allocation235_spill] sm:$0xff]  ;;  %v12905_v1 = vld [vmem:[#allocation122_spill] sm:$0xff] }
 0x594   : > { %5015 = vmatpush1.bf16.xpose.msra.mxu0 %v12902_v48  ;;  %v3318_v51 = vpop.xlane.xlu1 %3317  ;;  %7200 = vrcp.f32 %v4293_v49  ;;  %v7179_v10 = vpop.eup %7178  ;;  %v12906_v24 = vld [vmem:[#allocation152_spill] sm:$0xff] }
 0x595   : > { %7202 = vpow2.f32 %v3950_v6  ;;  %v3578_v4 = vsub.f32 %v12903_v29, %v3318_v51  ;;  %v3579_v18 = vsub.f32 %v12904_v14, %v3318_v51  ;;  %v10465_v33 = vpop.eup %7180  ;;  %v12907_v54 = vpack.c.bf16 %v12905_v1, %v12906_v24  ;;  %v12908_v51 = vld [vmem:[#allocation232_spill] sm:$0xff] }
 0x596   : > { %7204 = vpow2.f32 %v3952_v57  ;;  %v10471_v42 = vpop.eup %7182  ;;  %v12909_v57 = vld [vmem:[#allocation58_spill] sm:$0xff]  ;;  %v10521_v46 = vmul.f32 %v7179_v10, %v12923_v7 }
 0x597   : > { %7206 = vrcp.f32 %v10350_v62  ;;  %v4078_v12 = vmul.f32 1.442695, %v3578_v4  ;;  %v4080_v48 = vmul.f32 1.442695, %v3579_v18  ;;  %v3225_v49 = vpop.xlane.xlu0 %3224  ;;  %v10478_v43 = vpop.eup %7184 }
 0x598   : > { %5058 = vmatpush1.bf16.xpose.msra.mxu1 %v12907_v54  ;;  %7208 = vrcp.f32 %v10387_v8  ;;  %v10474_v6 = vpop.xlane.xlu1 %4151  ;;  %v3516_v29 = vsub.f32 %v12908_v51, %v3225_v49  ;;  %v3517_v14 = vsub.f32 %v12909_v57, %v3225_v49  ;;  %v10480_v62 = vpop.eup %7186  ;;  %v12910_v54 = vld [vmem:[#allocation248_spill] sm:$0xff]  ;;  %v10489_v51 = vmul.f32 %v10447_v0, %v12911_v27  ;;  %v12912_v49 = vld [vmem:[#allocation77_spill] sm:$0xff]  ;;  %v12916_v27 = vld [vmem:[#allocation99_spill] sm:$0xff] }
 0x599   : > { %7210 = vpow2.f32 %v4078_v12  ;;  %v7189_v1 = vpop.eup %7188  ;;  %v10485_v8 = vmul.f32 %v10459_v32, %v12910_v54  ;;  %v10493_v12 = vmul.f32 %v10454_v55, %v12912_v49  ;;  %v4673_v54 = vmul.f32 %v10478_v43, %v12915_v41 }
 0x59a   : > { %7212 = vpow2.f32 %v4080_v48  ;;  %v3954_v4 = vmul.f32 1.442695, %v3516_v29  ;;  %v3956_v18 = vmul.f32 1.442695, %v3517_v14  ;;  %v10495_v57 = vpop.eup %7190  ;;  %v12913_v29 = vld [vmem:[#allocation239_spill] sm:$0xff]  ;;  %v4671_v21 = vmul.f32 %v10480_v62, %v12916_v27 }
 0x59b   : > { %7214 = vrcp.f32 %v10290_v38  ;;  %v3321_v24 = vpop.xlane.xlu0 %3320  ;;  %v12914_v14 = vld [vmem:[#allocation63_spill] sm:$0xff]  ;;  %v10506_v49 = vmul.f32 %v7179_v10, %v12917_v59  ;;  %v4674_v27 = vmul.f32 %v7189_v1, %v12921_v26  ;;  %v4737_v58 = vmul.f32 %v10495_v57, %v12925_v11 }
 0x59c   : > { %7216 = vpow2.f32 %v3954_v4  ;;  %v10497_v48 = vpop.xlane.xlu1 %4247  ;;  %v3580_v38 = vsub.f32 %v12913_v29, %v3321_v24  ;;  %v3581_v60 = vsub.f32 %v12914_v14, %v3321_v24  ;;  %v10510_v4 = vmul.f32 %v10461_v23, %v12918_v53  ;;  %v12919_v24 = vld [vmem:[#allocation106_spill] sm:$0xff]  ;;  %v12924_v53 = vld [vmem:[#allocation91_spill] sm:$0xff] }
 0x59d   : > { %v7193_v20 = vpop.eup %7192  ;;  %7218 = vpow2.f32 %v3956_v18  ;;  %v4675_v14 = vmul.f32 %v7189_v1, %v12919_v24  ;;  %v10525_v19 = vmul.f32 %v10465_v33, %v12924_v53  ;;  %v12926_v26 = vld [vmem:[#allocation31_spill] sm:$0xff]  ;;  %v12929_v53 = vld [vmem:[#allocation257_spill] sm:$0xff] }
 0x59e   : > { %v10512_v56 = vpop.eup %7194  ;;  %v4082_v29 = vmul.f32 1.442695, %v3580_v38  ;;  %v4084_v31 = vmul.f32 1.442695, %v3581_v60  ;;  %v4677_v41 = vmul.f32 %v7193_v20, %v12920_v39  ;;  %v4676_v59 = vmul.f32 %v7193_v20, %v12922_v44  ;;  %v12927_v20 = vld [vmem:[#allocation42_spill] sm:$0xff] }
 0x59f   : > { %v7197_v45 = vpop.eup %7196  ;;  %v10516_v18 = vpop.xlane.xlu0 %4154  ;;  %v4899_v39 = vpack.c.bf16 %v4673_v54, %v4671_v21  ;;  %v12932_v21 = vld [vmem:[#allocation138_spill] sm:$0xff] }
 0x5a0   : > { %v10527_v38 = vpop.eup %7198  ;;  %7220 = vpow2.f32 %v4082_v29  ;;  %v3216_v60 = vpop.xlane.xlu1 %3215  ;;  %v4901_v24 = vpack.c.bf16 %v4677_v41, %v4675_v14  ;;  %v4900_v10 = vpack.c.bf16 %v4676_v59, %v4674_v27  ;;  %v4739_v16 = vmul.f32 %v7197_v45, %v12929_v53  ;;  %v12934_v59 = vld [vmem:[#allocation96_spill] sm:$0xff]  ;;  %v12936_v53 = vld [vmem:[#allocation219_spill] sm:$0xff] }
 0x5a1   : > { %v7201_v5 = vpop.eup %7200  ;;  %7222 = vpow2.f32 %v4084_v31  ;;  %v3510_v44 = vsub.f32 %v12926_v26, %v3216_v60  ;;  %v3511_v7 = vsub.f32 %v12927_v20, %v3216_v60  ;;  %v4738_v14 = vmul.f32 %v7197_v45, %v12931_v25  ;;  %v12933_v60 = vld [vmem:[#allocation103_spill] sm:$0xff] }
 0x5a2   : > { %v10533_v1 = vpop.eup %7202  ;;  %5016 = vmatprep.subr.bf16.mxu0 %v4901_v24  ;;  %v4741_v29 = vmul.f32 %v7201_v5, %v12930_v63  ;;  %v4740_v54 = vmul.f32 %v7201_v5, %v12932_v21  ;;  %v4735_v27 = vmul.f32 %v10527_v38, %v12933_v60  ;;  %v4669_v24 = vmul.f32 %v10512_v56, %v12934_v59  ;;  %v12937_v60 = vld [vmem:[#allocation221_spill] sm:$0xff] }
 0x5a3   : > { %12928 = vst [vmem:[#allocation231_spill] sm:$0xff] %v10533_v1  ;;  %v10539_v41 = vpop.eup %7204  ;;  %v3942_v11 = vmul.f32 1.442695, %v3510_v44  ;;  %v3944_v31 = vmul.f32 1.442695, %v3511_v7  ;;  %5017 = vmatpush2.bf16.xpose.msra.mxu0 %v4900_v10  ;;  %v10541_v26 = vpop.xlane.xlu0 %4250  ;;  %v12935_v44 = vld [vmem:[#allocation100_spill] sm:$0xff] }
 0x5a4   : > { %v10547_v20 = vpop.eup %7206  ;;  %v3312_v63 = vpop.xlane.xlu1 %3311  ;;  %v4372_v25 = vadd.f32 %v10539_v41, %v10533_v1  ;;  %5018 = vmatprep.subr.bf16.mxu0 %v4899_v39  ;;  %v4933_v5 = vpack.c.bf16 %v4741_v29, %v4739_v16  ;;  %v4932_v45 = vpack.c.bf16 %v4740_v54, %v4738_v14  ;;  %v4672_v7 = vmul.f32 %v10478_v43, %v12935_v44  ;;  %v12938_v59 = vld [vmem:[#allocation89_spill] sm:$0xff]  ;;  %v12940_v39 = vld [vmem:[#allocation98_spill] sm:$0xff]  ;;  %v12941_v29 = vld [vmem:[#allocation251_spill] sm:$0xff] }
 0x5a5   : > { %v10553_v10 = vpop.eup %7208  ;;  %7224 = vpow2.f32 %v3942_v11  ;;  %v3574_v21 = vsub.f32 %v12936_v53, %v3312_v63  ;;  %v3575_v35 = vsub.f32 %v12937_v60, %v3312_v63  ;;  %v10559_v17 = vmul.f32 %v10465_v33, %v12938_v59  ;;  %v12943_v53 = vld [vmem:[#allocation252_spill] sm:$0xff] }
 0x5a6   : > { %v10561_v61 = vpop.eup %7210  ;;  %7226 = vpow2.f32 %v3944_v31  ;;  %4373 = vadd.xlane.f32.xlu1 %v4372_v25  ;;  %5059 = vmatprep.subr.bf16.mxu1 %v4933_v5  ;;  %v4931_v16 = vpack.c.bf16 %v4737_v58, %v4735_v27  ;;  %v4670_v43 = vmul.f32 %v10480_v62, %v12940_v39  ;;  %v10567_v14 = vmul.f32 %v10471_v42, %v12941_v29  ;;  %v12944_v27 = vld [vmem:[#allocation47_spill] sm:$0xff]  ;;  %v12945_v5 = vld [vmem:[#allocation50_spill] sm:$0xff]  ;;  %v12949_v29 = vld [vmem:[#allocation105_spill] sm:$0xff] }
 0x5a7   : > { %12939 = vst [vmem:[#allocation237_spill] sm:$0xff] %v10561_v61  ;;  %v10569_v54 = vpop.eup %7212  ;;  %v4070_v11 = vmul.f32 1.442695, %v3574_v21  ;;  %v4072_v63 = vmul.f32 1.442695, %v3575_v35  ;;  %5060 = vmatpush2.bf16.xpose.msra.mxu1 %v4932_v45  ;;  %v3219_v33 = vpop.xlane.xlu0 %3218  ;;  %v4897_v44 = vpack.c.bf16 %v4669_v24, %v10506_v49  ;;  %v4731_v31 = vmul.f32 %v10547_v20, %v12943_v53  ;;  %v12947_v45 = vld [vmem:[#allocation211_spill] sm:$0xff] }
 0x5a8   : > { %12942 = vst [vmem:[#allocation45_spill] sm:$0xff] %v10569_v54  ;;  %v10574_v25 = vpop.eup %7214  ;;  %v3210_v58 = vpop.xlane.xlu1 %3209  ;;  %v3512_v62 = vsub.f32 %v12944_v27, %v3219_v33  ;;  %v3513_v60 = vsub.f32 %v12945_v5, %v3219_v33  ;;  %v4468_v59 = vadd.f32 %v10569_v54, %v10561_v61  ;;  %5061 = vmatprep.subr.bf16.mxu1 %v4931_v16  ;;  %v12948_v24 = vld [vmem:[#allocation16_spill] sm:$0xff]  ;;  %v12950_v33 = vld [vmem:[#allocation254_spill] sm:$0xff]  ;;  %v12951_v16 = vld [vmem:[#allocation101_spill] sm:$0xff] }
 0x5a9   : > { %v4898_v21 = vpack.c.bf16 %v4672_v7, %v4670_v43  ;;  %v10580_v35 = vpop.eup %7216  ;;  %7228 = vpow2.f32 %v4070_v11  ;;  %v3506_v49 = vsub.f32 %v12947_v45, %v3210_v58  ;;  %v3507_v39 = vsub.f32 %v12948_v24, %v3210_v58  ;;  %v12952_v24 = vld [vmem:[#allocation225_spill] sm:$0xff] }
 0x5aa   : > { %12946 = vst [vmem:[#allocation216_spill] sm:$0xff] %v10580_v35  ;;  %v4736_v53 = vmul.f32 %v10495_v57, %v12949_v29  ;;  %v10586_v1 = vpop.eup %7218  ;;  %7230 = vpow2.f32 %v4072_v63  ;;  %v3946_v27 = vmul.f32 1.442695, %v3512_v62  ;;  %4469 = vadd.xlane.f32.xlu1 %v4468_v59  ;;  %v4734_v5 = vmul.f32 %v10527_v38, %v12950_v33  ;;  %v12953_v62 = vld [vmem:[#allocation227_spill] sm:$0xff]  ;;  %v12954_v29 = vld [vmem:[#allocation97_spill] sm:$0xff] }
 0x5ab   : > { %v4733_v7 = vmul.f32 %v10553_v10, %v12951_v16  ;;  %v3934_v43 = vmul.f32 1.442695, %v3506_v49  ;;  %v3936_v11 = vmul.f32 1.442695, %v3507_v39  ;;  %v3948_v61 = vmul.f32 1.442695, %v3513_v60  ;;  %5019 = vmatpush2.bf16.xpose.msra.mxu0 %v4898_v21  ;;  %v3315_v45 = vpop.xlane.xlu0 %3314 }
 0x5ac   : > { %v4375_v58 = vadd.f32 %v10586_v1, %v10580_v35  ;;  %7232 = vpow2.f32 %v3946_v27  ;;  %v3306_v57 = vpop.xlane.xlu1 %3305  ;;  %v3576_v63 = vsub.f32 %v12952_v24, %v3315_v45  ;;  %v3577_v59 = vsub.f32 %v12953_v62, %v3315_v45  ;;  %5020 = vmatprep.subr.bf16.mxu0 %v4897_v44  ;;  %v12955_v49 = vld [vmem:[#allocation213_spill] sm:$0xff]  ;;  %v12956_v21 = vld [vmem:[#allocation24_spill] sm:$0xff] }
 0x5ad   : > { %v4668_v38 = vmul.f32 %v10512_v56, %v12954_v29  ;;  %v10598_v33 = vpop.eup %7220  ;;  %7234 = vpow2.f32 %v3934_v43  ;;  %v3570_v60 = vsub.f32 %v12955_v49, %v3306_v57  ;;  %v3571_v39 = vsub.f32 %v12956_v21, %v3306_v57  ;;  %v12957_v29 = vld [vmem:[#allocation23_spill] sm:$0xff] }
 0x5ae   : > { %4376 = vadd.xlane.f32.xlu0 %v4375_v58  ;;  %v4930_v16 = vpack.c.bf16 %v4736_v53, %v4734_v5  ;;  %v10602_v54 = vpop.eup %7222  ;;  %7236 = vpow2.f32 %v3936_v11  ;;  %v4074_v27 = vmul.f32 1.442695, %v3576_v63  ;;  %v4076_v24 = vmul.f32 1.442695, %v3577_v59  ;;  %v12958_v58 = vld [vmem:[#allocation22_spill] sm:$0xff]  ;;  %v12959_v11 = vld [vmem:[#allocation199_spill] sm:$0xff] }
 0x5af   : > { %v4929_v35 = vpack.c.bf16 %v4733_v7, %v4731_v31  ;;  %7238 = vpow2.f32 %v3948_v61  ;;  %v4062_v44 = vmul.f32 1.442695, %v3570_v60  ;;  %v4064_v45 = vmul.f32 1.442695, %v3571_v39  ;;  %v3213_v56 = vpop.xlane.xlu0 %3212  ;;  %v12960_v61 = vld [vmem:[#allocation201_spill] sm:$0xff]  ;;  %v12962_v39 = vld [vmem:[#allocation94_spill] sm:$0xff] }
 0x5b0   : > { %5062 = vmatpush2.bf16.xpose.msra.mxu1 %v4930_v16  ;;  %v4471_v43 = vadd.f32 %v10602_v54, %v10598_v33  ;;  %7240 = vpow2.f32 %v4074_v27  ;;  %v3204_v62 = vpop.xlane.xlu1 %3203  ;;  %v3508_v57 = vsub.f32 %v12957_v29, %v3213_v56  ;;  %v3509_v53 = vsub.f32 %v12958_v58, %v3213_v56  ;;  %v12961_v63 = vld [vmem:[#allocation253_spill] sm:$0xff]  ;;  %v12963_v56 = vld [vmem:[#allocation215_spill] sm:$0xff]  ;;  %v12966_v29 = vld [vmem:[#allocation208_spill] sm:$0xff] }
 0x5b1   : > { %5063 = vmatprep.subr.bf16.mxu1 %v4929_v35  ;;  %v4896_v5 = vpack.c.bf16 %v4668_v38, %v10521_v46  ;;  %7242 = vpow2.f32 %v4062_v44  ;;  %v3502_v31 = vsub.f32 %v12959_v11, %v3204_v62  ;;  %v3503_v7 = vsub.f32 %v12960_v61, %v3204_v62  ;;  %v12967_v11 = vld [vmem:[#allocation81_spill] sm:$0xff] }
 0x5b2   : > { %4472 = vadd.xlane.f32.xlu0 %v4471_v43  ;;  %v4732_v59 = vmul.f32 %v10553_v10, %v12961_v63  ;;  %v10613_v49 = vpop.eup %7224  ;;  %7244 = vpow2.f32 %v4064_v45  ;;  %v3938_v60 = vmul.f32 1.442695, %v3508_v57  ;;  %v4895_v21 = vpack.c.bf16 %v10525_v19, %v10485_v8  ;;  %v12964_v45 = vld [vmem:[#allocation217_spill] sm:$0xff]  ;;  %v12965_v8 = vld [vmem:[#allocation204_spill] sm:$0xff] }
 0x5b3   : > { %v4730_v35 = vmul.f32 %v10547_v20, %v12962_v39  ;;  %v10619_v46 = vpop.eup %7226  ;;  %7246 = vpow2.f32 %v4076_v24  ;;  %v3926_v38 = vmul.f32 1.442695, %v3502_v31  ;;  %v3928_v16 = vmul.f32 1.442695, %v3503_v7  ;;  %5021 = vmatpush2.bf16.xpose.msra.mxu0 %v4896_v5  ;;  %v3309_v44 = vpop.xlane.xlu0 %3308  ;;  %v12968_v39 = vld [vmem:[#allocation203_spill] sm:$0xff] }
 0x5b4   : > { %v3940_v27 = vmul.f32 1.442695, %v3509_v53  ;;  %7248 = vpow2.f32 %v3938_v60  ;;  %v3300_v10 = vpop.xlane.xlu1 %3299  ;;  %v3572_v43 = vsub.f32 %v12963_v56, %v3309_v44  ;;  %v3573_v62 = vsub.f32 %v12964_v45, %v3309_v44  ;;  %5022 = vmatprep.subr.bf16.mxu0 %v4895_v21  ;;  %v12970_v44 = vld [vmem:[#allocation92_spill] sm:$0xff] }
 0x5b5   : > { %v4366_v19 = vadd.f32 %v10619_v46, %v10613_v49  ;;  %7250 = vpow2.f32 %v3926_v38  ;;  %v3566_v20 = vsub.f32 %v12965_v8, %v3300_v10  ;;  %v3567_v24 = vsub.f32 %v12966_v29, %v3300_v10  ;;  %v12969_v38 = vld [vmem:[#allocation207_spill] sm:$0xff] }
 0x5b6   : > { %v4928_v57 = vpack.c.bf16 %v4732_v59, %v4730_v35  ;;  %v10627_v58 = vpop.eup %7228  ;;  %7252 = vpow2.f32 %v3928_v16  ;;  %v4066_v53 = vmul.f32 1.442695, %v3572_v43  ;;  %v4927_v5 = vpack.c.bf16 %v10567_v14, %v10510_v4 }
 0x5b7   : > { %4367 = vadd.xlane.f32.xlu1 %v4366_v19  ;;  %v4662_v31 = vmul.f32 %v10459_v32, %v12967_v11  ;;  %v10633_v61 = vpop.eup %7230  ;;  %7254 = vpow2.f32 %v3940_v27  ;;  %v4054_v7 = vmul.f32 1.442695, %v3566_v20  ;;  %v4056_v63 = vmul.f32 1.442695, %v3567_v24  ;;  %v3207_v21 = vpop.xlane.xlu0 %3206  ;;  %v12972_v20 = vld [vmem:[#allocation88_spill] sm:$0xff] }
 0x5b8   : > { %v4068_v60 = vmul.f32 1.442695, %v3573_v62  ;;  %5064 = vmatpush2.bf16.xpose.msra.mxu1 %v4928_v57  ;;  %7256 = vpow2.f32 %v4066_v53  ;;  %v10635_v59 = vpop.xlane.xlu1 %4325  ;;  %v3504_v35 = vsub.f32 %v12968_v39, %v3207_v21  ;;  %v3505_v16 = vsub.f32 %v12969_v38, %v3207_v21  ;;  %v12971_v62 = vld [vmem:[#allocation85_spill] sm:$0xff]  ;;  %v12974_v57 = vld [vmem:[#allocation212_spill] sm:$0xff] }
 0x5b9   : > { %v4462_v4 = vadd.f32 %v10633_v61, %v10627_v58  ;;  %5065 = vmatprep.subr.bf16.mxu1 %v4927_v5  ;;  %v10641_v32 = vpop.eup %7232  ;;  %7258 = vpow2.f32 %v4054_v7  ;;  %v4894_v14 = vpack.c.bf16 %v10559_v17, %v4662_v31  ;;  %v4893_v27 = vpack.c.bf16 %v10493_v12, %v10489_v51  ;;  %v12973_v12 = vld [vmem:[#allocation244_spill] sm:$0xff]  ;;  %v12975_v5 = vld [vmem:[#allocation18_spill] sm:$0xff] }
 0x5ba   : > { %v4728_v10 = vmul.f32 %v10471_v42, %v12970_v44  ;;  %v10648_v56 = vpop.eup %7234  ;;  %7260 = vpow2.f32 %v4056_v63  ;;  %v3930_v43 = vmul.f32 1.442695, %v3504_v35  ;;  %v3932_v45 = vmul.f32 1.442695, %v3505_v16 }
 0x5bb   : > { %4463 = vadd.xlane.f32.xlu1 %v4462_v4  ;;  %v4725_v19 = vmul.f32 %v10574_v25, %v12971_v62  ;;  %v10652_v8 = vpop.eup %7236  ;;  %7262 = vpow2.f32 %v4068_v60  ;;  %5023 = vmatpush2.bf16.xpose.msra.mxu0 %v4894_v14  ;;  %v3303_v17 = vpop.xlane.xlu0 %3302  ;;  %v4726_v51 = vmul.f32 %v10461_v23, %v12972_v20  ;;  %v4723_v42 = vmul.f32 %v10452_v22, %v12973_v12  ;;  %v12976_v60 = vld [vmem:[#allocation75_spill] sm:$0xff] }
 0x5bc   : > { %v10658_v29 = vpop.eup %7238  ;;  %7264 = vrcp.f32 %v10516_v18  ;;  %v10661_v24 = vpop.xlane.xlu1 %4421  ;;  %v3568_v53 = vsub.f32 %v12974_v57, %v3303_v17  ;;  %v3569_v11 = vsub.f32 %v12975_v5, %v3303_v17  ;;  %v4360_v31 = vadd.f32 %v10652_v8, %v10648_v56  ;;  %5024 = vmatprep.subr.bf16.mxu0 %v4893_v27  ;;  %v12977_v14 = vld [vmem:[#allocation67_spill] sm:$0xff] }
 0x5bd   : > { %v10667_v7 = vpop.eup %7240  ;;  %7266 = vpow2.f32 %v3930_v43  ;;  %v4369_v23 = vadd.f32 %v10658_v29, %v10641_v32  ;;  %v4926_v63 = vpack.c.bf16 %v4728_v10, %v4726_v51  ;;  %v4660_v18 = vmul.f32 %v10454_v55, %v12976_v60  ;;  %v12978_v62 = vld [vmem:[#allocation83_spill] sm:$0xff] }
 0x5be   : > { %v10673_v21 = vpop.eup %7242  ;;  %7268 = vpow2.f32 %v3932_v45  ;;  %v4058_v39 = vmul.f32 1.442695, %v3568_v53  ;;  %v4060_v35 = vmul.f32 1.442695, %v3569_v11  ;;  %v4925_v38 = vpack.c.bf16 %v4725_v19, %v4723_v42  ;;  %v12980_v42 = vld [vmem:[#allocation73_spill] sm:$0xff]  ;;  %v12982_v11 = vld [vmem:[#allocation242_spill] sm:$0xff] }
 0x5bf   : > { %4361 = vadd.xlane.f32.xlu1 %v4360_v31  ;;  %v10675_v16 = vpop.eup %7244  ;;  %7270 = vrcp.f32 %v10474_v6  ;;  %4370 = vadd.xlane.f32.xlu0 %v4369_v23  ;;  %v4329_v4 = vpop.xlane.xlu0 %4328  ;;  %v4658_v27 = vmul.f32 %v10447_v0, %v12977_v14  ;;  %v4724_v19 = vmul.f32 %v10574_v25, %v12978_v62  ;;  %v12979_v0 = vld [vmem:[#allocation41_spill] sm:$0xff]  ;;  %v4722_v57 = vmul.f32 %v10452_v22, %v12980_v42 }
 0x5c0   : > { %5066 = vmatpush2.bf16.xpose.msra.mxu1 %v4926_v63  ;;  %v10680_v44 = vpop.eup %7246  ;;  %7272 = vpow2.f32 %v4058_v39  ;;  %v4332_v55 = vpop.xlane.xlu1 %4331  ;;  %v4456_v10 = vadd.f32 %v10675_v16, %v10673_v21  ;;  %v4721_v20 = vmul.f32 %v10440_v30, %v12979_v0  ;;  %v12981_v5 = vpack.c.bf16 %v10227_v40, %v10224_v50  ;;  %v12986_v0 = vld [vmem:[#allocation37_spill] sm:$0xff] }
 0x5c1   : > { %5067 = vmatprep.subr.bf16.mxu1 %v4925_v38  ;;  %v10684_v43 = vpop.eup %7248  ;;  %7274 = vpow2.f32 %v4060_v35  ;;  %v4465_v6 = vadd.f32 %v10680_v44, %v10667_v7  ;;  %v4892_v45 = vpack.c.bf16 %v4660_v18, %v4658_v27  ;;  %v4719_v31 = vmul.f32 %v10435_v9, %v12982_v11  ;;  %v12984_v27 = vld [vmem:[#allocation66_spill] sm:$0xff] }
 0x5c2   : > { %v10690_v17 = vpop.eup %7250  ;;  %7276 = vrcp.f32 %v10541_v26  ;;  %v4924_v63 = vpack.c.bf16 %v4724_v19, %v4722_v57  ;;  %v12985_v62 = vpack.c.bf16 %v10233_v13, %v10230_v28  ;;  %v12989_v13 = vld [vmem:[#allocation247_spill] sm:$0xff] }
 0x5c3   : > { %4457 = vadd.xlane.f32.xlu1 %v4456_v10  ;;  %v10695_v51 = vpop.eup %7252  ;;  %4466 = vadd.xlane.f32.xlu0 %v4465_v6  ;;  %v10697_v12 = vpop.xlane.xlu0 %4424  ;;  %7278 = vrcp.f32 %v10497_v48  ;;  %v4923_v48 = vpack.c.bf16 %v4721_v20, %v4719_v31  ;;  %v4720_v10 = vmul.f32 %v10440_v30, %v12984_v27  ;;  %v4718_v20 = vmul.f32 %v10435_v9, %v12986_v0  ;;  %v12994_v27 = vld [vmem:[#allocation249_spill] sm:$0xff] }
 0x5c4   : > { %5025 = vmatpush2.bf16.xpose.msra.mxu0 %v4892_v45  ;;  %v10701_v53 = vpop.eup %7254  ;;  %v4428_v25 = vpop.xlane.xlu1 %4427  ;;  %v4354_v26 = vadd.f32 %v10695_v51, %v10690_v17  ;;  %7280 = vrcp.f32 %v4332_v55  ;;  %v12987_v30 = vpack.c.bf16 %v10152_v34, %v10144_v3  ;;  %v12990_v31 = vpack.c.bf16 %v10195_v37, %v10192_v52 }
 0x5c5   : > { %5026 = vmatprep.subr.bf16.mxu0 %v12981_v5  ;;  %v10711_v23 = vpop.eup %7256  ;;  %v4363_v22 = vadd.f32 %v10701_v53, %v10684_v43  ;;  %7282 = vrcp.f32 %v4329_v4  ;;  %v12995_v52 = vpack.c.bf16 %v10158_v47, %v10155_v15  ;;  %v13000_v47 = vpack.c.bf16 %v10198_v2, %v10207_v36  ;;  %v13005_v36 = vld [vmem:[#allocation84_spill] sm:$0xff] }
 0x5c6   : > { %v10715_v60 = vpop.eup %7258 }
 0x5c7   : > { %12983 = vst [vmem:[#allocation46_spill] sm:$0xff] %v10715_v60  ;;  %4355 = vadd.xlane.f32.xlu1 %v4354_v26  ;;  %v10717_v18 = vpop.eup %7260  ;;  %4364 = vadd.xlane.f32.xlu0 %v4363_v22  ;;  %v4335_v39 = vpop.xlane.xlu0 %4334  ;;  %v4922_v26 = vpack.c.bf16 %v4720_v10, %v4718_v20 }
 0x5c8   : > { %5068 = vmatpush2.bf16.xpose.msra.mxu1 %v4924_v63  ;;  %v10719_v50 = vpop.eup %7262  ;;  %v4338_v40 = vpop.xlane.xlu1 %4337  ;;  %v4450_v35 = vadd.f32 %v10717_v18, %v10715_v60  ;;  %7284 = vrcp.f32 %v4335_v39 }
 0x5c9   : > { %5069 = vmatprep.subr.bf16.mxu1 %v4923_v48  ;;  %v7265_v38 = vpop.eup %7264  ;;  %v4459_v14 = vadd.f32 %v10719_v50, %v10711_v23  ;;  %7286 = vrcp.f32 %v4428_v25  ;;  %v12991_v25 = vld [vmem:[#allocation74_spill] sm:$0xff] }
 0x5ca   : > { %v10727_v6 = vpop.eup %7266  ;;  %7288 = vrcp.f32 %v4338_v40  ;;  %v4649_v5 = vmul.f32 %v7265_v38, %v12989_v13  ;;  %v12992_v48 = vld [vmem:[#allocation186_spill] sm:$0xff]  ;;  %v12993_v40 = vld [vmem:[#allocation189_spill] sm:$0xff] }
 0x5cb   : > { %4451 = vadd.xlane.f32.xlu1 %v4450_v35  ;;  %v10729_v45 = vpop.eup %7268  ;;  %4460 = vadd.xlane.f32.xlu0 %v4459_v14  ;;  %v4431_v19 = vpop.xlane.xlu0 %4430 }
 0x5cc   : > { %5027 = vmatpush2.bf16.xpose.msra.mxu0 %v12985_v62  ;;  %v7271_v42 = vpop.eup %7270  ;;  %v4434_v57 = vpop.xlane.xlu1 %4433  ;;  %v4357_v55 = vadd.f32 %v10729_v45, %v10727_v6 }
 0x5cd   : > { %5028 = vmatprep.subr.bf16.mxu0 %v12987_v30  ;;  %v10741_v4 = vpop.eup %7272  ;;  %7290 = vrcp.f32 %v4434_v57  ;;  %v4647_v22 = vmul.f32 %v7271_v42, %v12991_v25  ;;  %v12996_v57 = vld [vmem:[#allocation245_spill] sm:$0xff]  ;;  %v13001_v25 = vld [vmem:[#allocation68_spill] sm:$0xff] }
 0x5ce   : > { %12988 = vst [vmem:[#allocation53_spill] sm:$0xff] %v10741_v4  ;;  %v10743_v28 = vpop.eup %7274 }
 0x5cf   : > { %v7277_v9 = vpop.eup %7276  ;;  %4358 = vadd.xlane.f32.xlu0 %v4357_v55  ;;  %v4341_v11 = vpop.xlane.xlu0 %4340  ;;  %v4453_v3 = vadd.f32 %v10743_v28, %v10741_v4  ;;  %v4887_v14 = vpack.c.bf16 %v4649_v5, %v4647_v22  ;;  %v12997_v55 = vld [vmem:[#allocation192_spill] sm:$0xff]  ;;  %v4646_v22 = vmul.f32 %v7271_v42, %v13001_v25  ;;  %v13012_v25 = vld [vmem:[#allocation131_spill] sm:$0xff]  ;;  %v13022_v4 = vld [vmem:[#allocation177_spill] sm:$0xff] }
 0x5d0   : > { %5070 = vmatpush2.bf16.xpose.msra.mxu1 %v4922_v26  ;;  %v3198_v34 = vpop.xlane.xlu1 %3197  ;;  %7292 = vrcp.f32 %v4341_v11  ;;  %v7279_v63 = vpop.eup %7278  ;;  %v4713_v10 = vmul.f32 %v7277_v9, %v12994_v27  ;;  %v12998_v26 = vld [vmem:[#allocation196_spill] sm:$0xff] }
 0x5d1   : > { %5071 = vmatprep.subr.bf16.mxu1 %v12990_v31  ;;  %v3498_v39 = vsub.f32 %v12992_v48, %v3198_v34  ;;  %v3499_v35 = vsub.f32 %v12993_v40, %v3198_v34  ;;  %7294 = vrcp.f32 %v10635_v59  ;;  %v4711_v30 = vmul.f32 %v7279_v63, %v12996_v57  ;;  %v12999_v5 = vld [vmem:[#allocation80_spill] sm:$0xff]  ;;  %v13002_v40 = vld [vmem:[#allocation191_spill] sm:$0xff] }
 0x5d2   : > { %7296 = vrcp.f32 %v4431_v19  ;;  %v4648_v19 = vmul.f32 %v7265_v38, %v12999_v5 }
 0x5d3   : > { %v3918_v62 = vmul.f32 1.442695, %v3498_v39  ;;  %v3920_v0 = vmul.f32 1.442695, %v3499_v35  ;;  %4454 = vadd.xlane.f32.xlu0 %v4453_v3  ;;  %v4437_v37 = vpop.xlane.xlu0 %4436  ;;  %v4919_v11 = vpack.c.bf16 %v4713_v10, %v4711_v30  ;;  %v10763_v3 = vpop.eup %7280  ;;  %v13003_v35 = vld [vmem:[#allocation195_spill] sm:$0xff]  ;;  %v13004_v10 = vld [vmem:[#allocation10_spill] sm:$0xff] }
 0x5d4   : > { %5029 = vmatpush2.bf16.xpose.msra.mxu0 %v12995_v52  ;;  %v3294_v20 = vpop.xlane.xlu1 %3293  ;;  %7298 = vrcp.f32 %v4437_v37  ;;  %v10769_v48 = vpop.eup %7282  ;;  %v4886_v2 = vpack.c.bf16 %v4648_v19, %v4646_v22  ;;  %v13006_v52 = vld [vmem:[#allocation11_spill] sm:$0xff]  ;;  %v13007_v30 = vld [vmem:[#allocation13_spill] sm:$0xff] }
 0x5d5   : > { %5030 = vmatprep.subr.bf16.mxu0 %v4887_v14  ;;  %7300 = vpow2.f32 %v3918_v62  ;;  %v3562_v59 = vsub.f32 %v12997_v55, %v3294_v20  ;;  %v3563_v13 = vsub.f32 %v12998_v26, %v3294_v20  ;;  %v10774_v27 = vpop.eup %7284  ;;  %v4998_v62 = vpack.c.bf16 %v13004_v10, %v13004_v10  ;;  %v13020_v26 = vld [vmem:[#allocation133_spill] sm:$0xff] }
 0x5d6   : > { %7302 = vpow2.f32 %v3920_v0  ;;  %v4712_v0 = vmul.f32 %v7277_v9, %v13005_v36  ;;  %v10779_v42 = vpop.eup %7286  ;;  %v5085_v55 = vpack.c.bf16 %v13007_v30, %v13007_v30  ;;  %v13009_v9 = vld [vmem:[#allocation76_spill] sm:$0xff]  ;;  %v4769_v22 = vmul.f32 %v10774_v27, %v13012_v25  ;;  %v13015_v36 = vld [vmem:[#allocation206_spill] sm:$0xff]  ;;  %v13016_v30 = vld [vmem:[#allocation137_spill] sm:$0xff] }
 0x5d7   : > { %v4046_v34 = vmul.f32 1.442695, %v3562_v59  ;;  %v4048_v15 = vmul.f32 1.442695, %v3563_v13  ;;  %v3201_v31 = vpop.xlane.xlu0 %3200  ;;  %7304 = vrcp.f32 %v10661_v24  ;;  %v7289_v57 = vpop.eup %7288  ;;  %v13008_v59 = vld [vmem:[#allocation15_spill] sm:$0xff]  ;;  %v4710_v5 = vmul.f32 %v7279_v63, %v13009_v9  ;;  %v13019_v25 = vld [vmem:[#allocation129_spill] sm:$0xff] }
 0x5d8   : > { %5072 = vmatpush2.bf16.xpose.msra.mxu1 %v13000_v47  ;;  %v4320_v39 = vpop.xlane.xlu1 %4319  ;;  %v3500_v38 = vsub.f32 %v13002_v40, %v3201_v31  ;;  %v3501_v14 = vsub.f32 %v13003_v35, %v3201_v31  ;;  %v13011_v47 = vld [vmem:[#allocation202_spill] sm:$0xff]  ;;  %v13013_v35 = vld [vmem:[#allocation193_spill] sm:$0xff] }
 0x5d9   : > { %5073 = vmatprep.subr.bf16.mxu1 %v4919_v11  ;;  %7306 = vpow2.f32 %v4046_v34  ;;  %v13010_v34 = vld [vmem:[#allocation200_spill] sm:$0xff] }
 0x5da   : > { %7308 = vpow2.f32 %v4048_v15  ;;  %v3922_v37 = vmul.f32 1.442695, %v3500_v38  ;;  %v3924_v20 = vmul.f32 1.442695, %v3501_v14  ;;  %v7291_v19 = vpop.eup %7290  ;;  %v4918_v38 = vpack.c.bf16 %v4712_v0, %v4710_v5  ;;  %v13014_v14 = vld [vmem:[#allocation165_spill] sm:$0xff]  ;;  %v13018_v5 = vld [vmem:[#allocation134_spill] sm:$0xff] }
 0x5db   : > { %7310 = vrcp.f32 %v10697_v12  ;;  %v3297_v13 = vpop.xlane.xlu0 %3296  ;;  %v4767_v12 = vmul.f32 %v10763_v3, %v13013_v35  ;;  %v10797_v10 = vmul.f32 %v10769_v48, %v13014_v14  ;;  %v4831_v35 = vmul.f32 %v10779_v42, %v13019_v25 }
 0x5dc   : > { %5031 = vmatpush2.bf16.xpose.msra.mxu0 %v4886_v2  ;;  %7312 = vpow2.f32 %v3922_v37  ;;  %v4416_v11 = vpop.xlane.xlu1 %4415  ;;  %v3564_v15 = vsub.f32 %v13010_v34, %v3297_v13  ;;  %v3565_v31 = vsub.f32 %v13011_v47, %v3297_v13  ;;  %v4771_v37 = vmul.f32 %v7289_v57, %v13015_v36 }
 0x5dd   : > { %v7293_v40 = vpop.eup %7292  ;;  %7314 = vpow2.f32 %v3924_v20  ;;  %v13017_v20 = vld [vmem:[#allocation198_spill] sm:$0xff]  ;;  %v4947_v36 = vpack.c.bf16 %v4769_v22, %v4767_v12 }
 0x5de   : > { %v4050_v63 = vmul.f32 1.442695, %v3564_v15  ;;  %v4052_v2 = vmul.f32 1.442695, %v3565_v31  ;;  %v4773_v9 = vmul.f32 %v7293_v40, %v13016_v30  ;;  %v10801_v13 = vpop.eup %7294  ;;  %7316 = vrcp.f32 %v4320_v39  ;;  %v13021_v39 = vld [vmem:[#allocation174_spill] sm:$0xff] }
 0x5df   : > { %v4323_v34 = vpop.xlane.xlu0 %4322  ;;  %v4770_v0 = vmul.f32 %v7289_v57, %v13017_v20  ;;  %v4772_v47 = vmul.f32 %v7293_v40, %v13018_v5  ;;  %v10807_v14 = vpop.eup %7296  ;;  %v4835_v30 = vmul.f32 %v7291_v19, %v13020_v26  ;;  %v13023_v40 = vld [vmem:[#allocation143_spill] sm:$0xff] }
 0x5e0   : > { %5074 = vmatpush2.bf16.xpose.msra.mxu1 %v4918_v38  ;;  %7318 = vpow2.f32 %v4050_v63  ;;  %v3192_v15 = vpop.xlane.xlu1 %3191  ;;  %v4949_v31 = vpack.c.bf16 %v4773_v9, %v4771_v37  ;;  %v13024_v63 = vld [vmem:[#allocation132_spill] sm:$0xff]  ;;  %v13025_v37 = vld [vmem:[#allocation139_spill] sm:$0xff]  ;;  %v13026_v9 = vld [vmem:[#allocation205_spill] sm:$0xff] }
 0x5e1   : > { %v7299_v24 = vpop.eup %7298  ;;  %7320 = vpow2.f32 %v4052_v2  ;;  %v3494_v38 = vsub.f32 %v13021_v39, %v3192_v15  ;;  %v3495_v60 = vsub.f32 %v13022_v4, %v3192_v15  ;;  %v4948_v57 = vpack.c.bf16 %v4772_v47, %v4770_v0 }
 0x5e2   : > { %v10812_v20 = vpop.eup %7300  ;;  %7322 = vrcp.f32 %v4323_v34  ;;  %5086 = vmatprep.subr.bf16.mxu0 %v4949_v31  ;;  %v4837_v5 = vmul.f32 %v7299_v24, %v13023_v40  ;;  %v4834_v25 = vmul.f32 %v7291_v19, %v13024_v63  ;;  %v4836_v22 = vmul.f32 %v7299_v24, %v13025_v37 }
 0x5e3   : > { %5033 = vmatmul.mubr.bf16.vlgmr.msra.gmra.mxu0 %v4998_v62  ;;  %v10817_v12 = vpop.eup %7302  ;;  %7324 = vrcp.f32 %v4416_v11  ;;  %v3910_v26 = vmul.f32 1.442695, %v3494_v38  ;;  %v3912_v2 = vmul.f32 1.442695, %v3495_v60  ;;  %v4419_v4 = vpop.xlane.xlu0 %4418  ;;  %v4833_v0 = vmul.f32 %v10807_v14, %v13026_v9  ;;  %v13027_v11 = vld [vmem:[#allocation180_spill] sm:$0xff] }
 0x5e4   : > { %5087 = vmatpush1.bf16.xpose.msra.mxu0 %v4948_v57  ;;  %5118 = vmatprep.mubr.bf16.mxu0 %v5085_v55  ;;  %v3288_v34 = vpop.xlane.xlu1 %3287  ;;  %7326 = vrcp.f32 %v4419_v4  ;;  %v4348_v62 = vadd.f32 %v10817_v12, %v10812_v20  ;;  %v4981_v19 = vpack.c.bf16 %v4837_v5, %v4835_v30  ;;  %v4980_v47 = vpack.c.bf16 %v4836_v22, %v4834_v25  ;;  %v10823_v24 = vpop.eup %7304  ;;  %v13028_v60 = vld [vmem:[#allocation184_spill] sm:$0xff]  ;;  %v13033_v22 = vld [vmem:[#allocation197_spill] sm:$0xff]  ;;  %v13034_v4 = vld [vmem:[#allocation179_spill] sm:$0xff] }
 0x5e5   : > { %5088 = vmatprep.subr.bf16.mxu0 %v4947_v36  ;;  %7328 = vpow2.f32 %v3910_v26  ;;  %v3558_v15 = vsub.f32 %v13027_v11, %v3288_v34  ;;  %v3559_v31 = vsub.f32 %v13028_v60, %v3288_v34  ;;  %v13029_v55 = vld [vmem:[#allocation176_spill] sm:$0xff]  ;;  %v13030_v57 = vpack.c.bf16 %v13006_v52, %v13006_v52  ;;  %v13031_v36 = vld [vmem:[#allocation162_spill] sm:$0xff] }
 0x5e6   : > { %v4768_v39 = vmul.f32 %v10774_v27, %v13029_v55  ;;  %v10829_v38 = vpop.eup %7306  ;;  %7330 = vpow2.f32 %v3912_v2  ;;  %4349 = vadd.xlane.f32.xlu1 %v4348_v62  ;;  %v4763_v30 = vmul.f32 %v10801_v13, %v13031_v36  ;;  %5129 = vmatprep.subr.bf16.mxu1 %v4981_v19  ;;  %v13032_v25 = vpack.c.bf16 %v13008_v59, %v13008_v59  ;;  %v13035_v34 = vld [vmem:[#allocation182_spill] sm:$0xff] }
 0x5e7   : > { %5076 = vmatmul.mubr.bf16.vlgmr.msra.gmra.mxu1 %v13030_v57  ;;  %v10836_v40 = vpop.eup %7308  ;;  %v4038_v5 = vmul.f32 1.442695, %v3558_v15  ;;  %v4040_v63 = vmul.f32 1.442695, %v3559_v31  ;;  %v4979_v37 = vpack.c.bf16 %v4833_v0, %v4831_v35  ;;  %v4766_v26 = vmul.f32 %v10763_v3, %v13033_v22  ;;  %v13037_v57 = vld [vmem:[#allocation126_spill] sm:$0xff] }
 0x5e8   : > { %5161 = vmatprep.mubr.bf16.mxu1 %v13032_v25  ;;  %v3195_v27 = vpop.xlane.xlu0 %3194  ;;  %v7311_v2 = vpop.eup %7310  ;;  %5130 = vmatpush1.bf16.xpose.msra.mxu1 %v4980_v47  ;;  %v4444_v11 = vadd.f32 %v10836_v40, %v10829_v38  ;;  %v4945_v35 = vpack.c.bf16 %v10797_v10, %v4763_v30  ;;  %v13036_v47 = vld [vmem:[#allocation194_spill] sm:$0xff]  ;;  %v13038_v10 = vld [vmem:[#allocation188_spill] sm:$0xff] }
 0x5e9   : > { %v4314_v52 = vpop.xlane.xlu1 %4313  ;;  %v3496_v9 = vsub.f32 %v13034_v4, %v3195_v27  ;;  %v3497_v62 = vsub.f32 %v13035_v34, %v3195_v27  ;;  %v10847_v19 = vpop.eup %7312  ;;  %7332 = vpow2.f32 %v4038_v5  ;;  %5131 = vmatprep.subr.bf16.mxu1 %v4979_v37  ;;  %v4946_v59 = vpack.c.bf16 %v4768_v39, %v4766_v26  ;;  %v13039_v25 = vld [vmem:[#allocation190_spill] sm:$0xff]  ;;  %v13042_v4 = vld [vmem:[#allocation171_spill] sm:$0xff] }
 0x5ea   : > { %v10850_v0 = vpop.eup %7314  ;;  %7334 = vpow2.f32 %v4040_v63  ;;  %4445 = vadd.xlane.f32.xlu1 %v4444_v11  ;;  %v4832_v60 = vmul.f32 %v10807_v14, %v13036_v47  ;;  %v4829_v36 = vmul.f32 %v7311_v2, %v13037_v57  ;;  %v13040_v27 = vld [vmem:[#allocation178_spill] sm:$0xff]  ;;  %v13041_v14 = vld [vmem:[#allocation172_spill] sm:$0xff] }
 0x5eb   : > { %v3914_v3 = vmul.f32 1.442695, %v3496_v9  ;;  %v3916_v15 = vmul.f32 1.442695, %v3497_v62  ;;  %v4351_v55 = vadd.f32 %v10850_v0, %v10847_v19  ;;  %v7317_v5 = vpop.eup %7316  ;;  %v4830_v37 = vmul.f32 %v10779_v42, %v13040_v27  ;;  %v13046_v27 = vld [vmem:[#allocation187_spill] sm:$0xff] }
 0x5ec   : > { %5089 = vmatpush1.bf16.xpose.msra.mxu0 %v4946_v59  ;;  %v3291_v31 = vpop.xlane.xlu0 %3290  ;;  %v4827_v26 = vmul.f32 %v10823_v24, %v13041_v14  ;;  %v4764_v9 = vmul.f32 %v10769_v48, %v13042_v4  ;;  %v13044_v48 = vld [vmem:[#allocation264_spill] sm:$0xff] }
 0x5ed   : > { %7336 = vpow2.f32 %v3914_v3  ;;  %v4410_v39 = vpop.xlane.xlu1 %4409  ;;  %v3560_v30 = vsub.f32 %v13038_v10, %v3291_v31  ;;  %v3561_v63 = vsub.f32 %v13039_v25, %v3291_v31  ;;  %5090 = vmatprep.subr.bf16.mxu0 %v4945_v35  ;;  %v10861_v22 = vpop.eup %7318  ;;  %4352 = vadd.xlane.f32.xlu0 %v4351_v55  ;;  %v4978_v59 = vpack.c.bf16 %v4832_v60, %v4830_v37  ;;  %v13045_v25 = vld [vmem:[#allocation267_spill] sm:$0xff] }
 0x5ee   : > { %7338 = vpow2.f32 %v3916_v15  ;;  %v10867_v34 = vpop.eup %7320  ;;  %v4977_v47 = vpack.c.bf16 %v4829_v36, %v4827_v26  ;;  %v13043_v15 = vld [vmem:[#allocation183_spill] sm:$0xff]  ;;  %v4759_v10 = vmul.f32 %v7317_v5, %v13044_v48  ;;  %v4828_v37 = vmul.f32 %v7311_v2, %v13046_v27  ;;  %v13047_v26 = vld [vmem:[#allocation270_spill] sm:$0xff]  ;;  %v13055_v27 = vld [vmem:[#allocation269_spill] sm:$0xff] }
 0x5ef   : > { %v4042_v62 = vmul.f32 1.442695, %v3560_v30  ;;  %v4044_v11 = vmul.f32 1.442695, %v3561_v63  ;;  %v7323_v3 = vpop.eup %7322  ;;  %7340 = vrcp.f32 %v4314_v52  ;;  %v4447_v42 = vadd.f32 %v10867_v34, %v10861_v22 }
 0x5f0   : > { %v4317_v35 = vpop.xlane.xlu0 %4316  ;;  %v4762_v31 = vmul.f32 %v10801_v13, %v13043_v15  ;;  %v7325_v55 = vpop.eup %7324  ;;  %5132 = vmatpush1.bf16.xpose.msra.mxu1 %v4978_v59  ;;  %v4761_v30 = vmul.f32 %v7323_v3, %v13045_v25  ;;  %v13053_v25 = vld [vmem:[#allocation263_spill] sm:$0xff] }
 0x5f1   : > { %7342 = vpow2.f32 %v4042_v62  ;;  %v4308_v57 = vpop.xlane.xlu1 %4307  ;;  %v7327_v63 = vpop.eup %7326  ;;  %5133 = vmatprep.subr.bf16.mxu1 %v4977_v47  ;;  %4448 = vadd.xlane.f32.xlu0 %v4447_v42  ;;  %v13050_v42 = vld [vmem:[#allocation266_spill] sm:$0xff] }
 0x5f2   : > { %7344 = vpow2.f32 %v4044_v11  ;;  %v4944_v52 = vpack.c.bf16 %v4764_v9, %v4762_v31  ;;  %v10875_v60 = vpop.eup %7328  ;;  %v4943_v36 = vpack.c.bf16 %v4761_v30, %v4759_v10  ;;  %v4825_v4 = vmul.f32 %v7327_v63, %v13047_v26  ;;  %v13048_v9 = vld [vmem:[#allocation164_spill] sm:$0xff] }
 0x5f3   : > { %7346 = vrcp.f32 %v4410_v39  ;;  %v10878_v13 = vpop.eup %7330  ;;  %v4826_v59 = vmul.f32 %v10823_v24, %v13048_v9  ;;  %v13049_v39 = vld [vmem:[#allocation118_spill] sm:$0xff]  ;;  %v4760_v2 = vmul.f32 %v7323_v3, %v13050_v42  ;;  %v4758_v30 = vmul.f32 %v7317_v5, %v13053_v25 }
 0x5f4   : > { %7348 = vrcp.f32 %v4317_v35  ;;  %5091 = vmatpush1.bf16.xpose.msra.mxu0 %v4944_v52  ;;  %v4413_v14 = vpop.xlane.xlu0 %4412  ;;  %v4342_v11 = vadd.f32 %v10878_v13, %v10875_v60  ;;  %v4823_v47 = vmul.f32 %v7325_v55, %v13049_v39 }
 0x5f5   : > { %v4404_v62 = vpop.xlane.xlu1 %4403  ;;  %7350 = vrcp.f32 %v4413_v14  ;;  %5092 = vmatprep.subr.bf16.mxu0 %v4943_v36  ;;  %v4976_v35 = vpack.c.bf16 %v4828_v37, %v4826_v59  ;;  %v4942_v3 = vpack.c.bf16 %v4760_v2, %v4758_v30  ;;  %v4824_v37 = vmul.f32 %v7327_v63, %v13055_v27 }
 0x5f6   : > { %v10887_v15 = vpop.eup %7332  ;;  %7352 = vrcp.f32 %v4308_v57  ;;  %4343 = vadd.xlane.f32.xlu1 %v4342_v11  ;;  %v4975_v10 = vpack.c.bf16 %v4825_v4, %v4823_v47  ;;  %v13056_v11 = vld [vmem:[#allocation268_spill] sm:$0xff] }
 0x5f7   : > { %13051 = vst [vmem:[#allocation218_spill] sm:$0xff] %v10887_v15  ;;  %v10889_v31 = vpop.eup %7334  ;;  %v4822_v9 = vmul.f32 %v7325_v55, %v13056_v11  ;;  %v13060_v55 = vld [vmem:[#allocation145_spill] sm:$0xff] }
 0x5f8   : > { %13052 = vst [vmem:[#allocation236_spill] sm:$0xff] %v10889_v31  ;;  %v4311_v48 = vpop.xlane.xlu0 %4310  ;;  %5134 = vmatpush1.bf16.xpose.msra.mxu1 %v4976_v35  ;;  %v4438_v24 = vadd.f32 %v10889_v31, %v10887_v15  ;;  %v13066_v15 = vld [vmem:[#allocation262_spill] sm:$0xff] }
 0x5f9   : > { %v4302_v52 = vpop.xlane.xlu1 %4301  ;;  %7354 = vrcp.f32 %v4311_v48  ;;  %5135 = vmatprep.subr.bf16.mxu1 %v4975_v10  ;;  %v4974_v39 = vpack.c.bf16 %v4824_v37, %v4822_v9  ;;  %v13059_v48 = vld [vmem:[#allocation154_spill] sm:$0xff]  ;;  %v13063_v37 = vld [vmem:[#allocation156_spill] sm:$0xff]  ;;  %v13065_v9 = vld [vmem:[#allocation155_spill] sm:$0xff] }
 0x5fa   : > { %v10894_v36 = vpop.eup %7336  ;;  %7356 = vrcp.f32 %v4404_v62  ;;  %4439 = vadd.xlane.f32.xlu1 %v4438_v24  ;;  %v13061_v24 = vld [vmem:[#allocation261_spill] sm:$0xff] }
 0x5fb   : > { %13054 = vst [vmem:[#allocation60_spill] sm:$0xff] %v10894_v36  ;;  %v10896_v57 = vpop.eup %7338 }
 0x5fc   : > { %5093 = vmatpush1.bf16.xpose.msra.mxu0 %v4942_v3  ;;  %v4407_v14 = vpop.xlane.xlu0 %4406  ;;  %v4345_v5 = vadd.f32 %v10896_v57, %v10894_v36  ;;  %v7341_v26 = vpop.eup %7340 }
 0x5fd   : > { %v4398_v4 = vpop.xlane.xlu1 %4397  ;;  %7358 = vrcp.f32 %v4407_v14  ;;  %v4755_v10 = vmul.f32 %v7341_v26, %v13059_v48  ;;  %v4754_v3 = vmul.f32 %v7341_v26, %v13061_v24 }
 0x5fe   : > { %v10902_v59 = vpop.eup %7342  ;;  %4346 = vadd.xlane.f32.xlu0 %v4345_v5  ;;  %7360 = vrcp.f32 %v4302_v52  ;;  %v13062_v52 = vld [vmem:[#allocation135_spill] sm:$0xff]  ;;  %v13064_v5 = vld [vmem:[#allocation265_spill] sm:$0xff] }
 0x5ff   : > { %13057 = vst [vmem:[#allocation61_spill] sm:$0xff] %v10902_v59  ;;  %v10904_v62 = vpop.eup %7344 }
 0x600   : > { %13058 = vst [vmem:[#allocation48_spill] sm:$0xff] %v10904_v62  ;;  %v7347_v47 = vpop.eup %7346  ;;  %v4305_v42 = vpop.xlane.xlu0 %4304  ;;  %v4441_v63 = vadd.f32 %v10904_v62, %v10902_v59  ;;  %5136 = vmatpush1.bf16.xpose.msra.mxu1 %v4974_v39 }
 0x601   : > { %v7349_v2 = vpop.eup %7348  ;;  %v4296_v35 = vpop.xlane.xlu1 %4295  ;;  %7362 = vrcp.f32 %v4305_v42  ;;  %v4819_v14 = vmul.f32 %v7347_v47, %v13063_v37  ;;  %v4818_v59 = vmul.f32 %v7347_v47, %v13065_v9  ;;  %v13069_v37 = vld [vmem:[#allocation260_spill] sm:$0xff] }
 0x602   : > { %v7351_v25 = vpop.eup %7350  ;;  %7364 = vrcp.f32 %v4398_v4  ;;  %4442 = vadd.xlane.f32.xlu0 %v4441_v63  ;;  %v4757_v30 = vmul.f32 %v7349_v2, %v13060_v55  ;;  %v4756_v27 = vmul.f32 %v7349_v2, %v13062_v52  ;;  %v13067_v2 = vld [vmem:[#allocation151_spill] sm:$0xff]  ;;  %v13068_v52 = vld [vmem:[#allocation86_spill] sm:$0xff] }
 0x603   : > { %v4821_v11 = vmul.f32 %v7351_v25, %v13064_v5  ;;  %v4820_v39 = vmul.f32 %v7351_v25, %v13066_v15  ;;  %v7353_v42 = vpop.eup %7352  ;;  %v13072_v5 = vld [vmem:[#allocation123_spill] sm:$0xff] }
 0x604   : > { %v4941_v62 = vpack.c.bf16 %v4757_v30, %v4755_v10  ;;  %v4940_v48 = vpack.c.bf16 %v4756_v27, %v4754_v3  ;;  %v4401_v31 = vpop.xlane.xlu0 %4400  ;;  %v4751_v24 = vmul.f32 %v7353_v42, %v13067_v2  ;;  %v13071_v3 = vld [vmem:[#allocation259_spill] sm:$0xff] }
 0x605   : > { %v4392_v4 = vpop.xlane.xlu1 %4391  ;;  %7366 = vrcp.f32 %v4401_v31  ;;  %v4973_v63 = vpack.c.bf16 %v4821_v11, %v4819_v14  ;;  %v4972_v55 = vpack.c.bf16 %v4820_v39, %v4818_v59  ;;  %v5178_v31 = vld [vmem:[%s11627_s8] sm:$0xff]  ;;  %v13074_v39 = vld [vmem:[#allocation121_spill] sm:$0xff] }
 0x606   : > { %v7355_v36 = vpop.eup %7354  ;;  %5094 = vmatprep.subr.bf16.mxu0 %v4941_v62  ;;  %7368 = vrcp.f32 %v4296_v35  ;;  %v13070_v62 = vld [vmem:[#allocation150_spill] sm:$0xff] }
 0x607   : > { %v7357_v26 = vpop.eup %7356  ;;  %5095 = vmatpush1.bf16.xpose.msra.mxu0 %v4940_v48  ;;  %5137 = vmatprep.subr.bf16.mxu1 %v4973_v63  ;;  %v4753_v47 = vmul.f32 %v7355_v36, %v13068_v52  ;;  %v4752_v15 = vmul.f32 %v7355_v36, %v13069_v37  ;;  %v4750_v30 = vmul.f32 %v7353_v42, %v13070_v62  ;;  %v13073_v36 = vld [vmem:[#allocation258_spill] sm:$0xff]  ;;  %v5180_v42 = vld [vmem:[%s11627_s8 + $0x10] sm:$0xff]  ;;  %v13075_v37 = vld [vmem:[#allocation125_spill] sm:$0xff] }
 0x608   : > { %v4299_v25 = vpop.xlane.xlu0 %4298  ;;  %5138 = vmatpush1.bf16.xpose.msra.mxu1 %v4972_v55  ;;  %v4815_v27 = vmul.f32 %v7357_v26, %v13071_v3  ;;  %v4814_v9 = vmul.f32 %v7357_v26, %v13073_v36 }
 0x609   : > { %v4386_v10 = vpop.xlane.xlu1 %4385  ;;  %7370 = vrcp.f32 %v4299_v25  ;;  %v4939_v59 = vpack.c.bf16 %v4753_v47, %v4751_v24  ;;  %v4938_v14 = vpack.c.bf16 %v4752_v15, %v4750_v30  ;;  %v13076_v15 = vld [vmem:[#allocation147_spill] sm:$0xff] }
 0x60a   : > { %v7359_v35 = vpop.eup %7358  ;;  %7372 = vrcp.f32 %v4392_v4 }
 0x60b   : > { %5096 = vmatprep.subr.bf16.mxu0 %v4939_v59  ;;  %v4817_v11 = vmul.f32 %v7359_v35, %v13072_v5  ;;  %v4816_v48 = vmul.f32 %v7359_v35, %v13074_v39  ;;  %v7361_v63 = vpop.eup %7360  ;;  %5184 = vperm.xlu1 %6463, %v5178_v31   ;;  %v13077_v59 = vld [vmem:[#allocation157_spill] sm:$0xff] }
 0x60c   : > { %v4395_v55 = vpop.xlane.xlu0 %4394  ;;  %v4747_v26 = vmul.f32 %v7361_v63, %v13075_v37  ;;  %v5181_v35 = vld [vmem:[%s11627_s8 + $0x18] sm:$0xff] }
 0x60d   : > { %v4482_v2 = vpop.xlane.xlu1 %4481  ;;  %7374 = vrcp.f32 %v4395_v55  ;;  %v4971_v4 = vpack.c.bf16 %v4817_v11, %v4815_v27  ;;  %v4970_v24 = vpack.c.bf16 %v4816_v48, %v4814_v9  ;;  %v13078_v27 = vld [vmem:[#allocation140_spill] sm:$0xff]  ;;  %v13079_v5 = vld [vmem:[#allocation153_spill] sm:$0xff] }
 0x60e   : > { %v7363_v52 = vpop.eup %7362  ;;  %7376 = vrcp.f32 %v4386_v10  ;;  %v4746_v10 = vmul.f32 %v7361_v63, %v13078_v27  ;;  %v13080_v9 = vld [vmem:[#allocation113_spill] sm:$0xff] }
 0x60f   : > { %v7365_v47 = vpop.eup %7364  ;;  %5097 = vmatpush1.bf16.xpose.msra.mxu0 %v4938_v14  ;;  %5139 = vmatprep.subr.bf16.mxu1 %v4971_v4  ;;  %v4749_v25 = vmul.f32 %v7363_v52, %v13076_v15  ;;  %v4748_v31 = vmul.f32 %v7363_v52, %v13077_v59  ;;  %v13081_v48 = vld [vmem:[#allocation141_spill] sm:$0xff]  ;;  %v13083_v59 = vld [vmem:[#allocation128_spill] sm:$0xff] }
 0x610   : > { %5194 = vperm.xlu1 %6463, %v5180_v42   ;;  %v4389_v62 = vpop.xlane.xlu0 %4388  ;;  %5140 = vmatpush1.bf16.xpose.msra.mxu1 %v4970_v24  ;;  %v4811_v11 = vmul.f32 %v7365_v47, %v13079_v5  ;;  %v4810_v55 = vmul.f32 %v7365_v47, %v13081_v48  ;;  %v13082_v42 = vld [vmem:[#allocation78_spill] sm:$0xff]  ;;  %v5366_v63 = vld [vmem:[%s11628_s9 + $0x18] sm:$0xff] }
 0x611   : > { %v4380_v30 = vpop.xlane.xlu1 %4379  ;;  %7378 = vrcp.f32 %v4389_v62  ;;  %v4937_v3 = vpack.c.bf16 %v4749_v25, %v4747_v26  ;;  %v4936_v36 = vpack.c.bf16 %v4748_v31, %v4746_v10  ;;  %v13084_v62 = vld [vmem:[#allocation148_spill] sm:$0xff] }
 0x612   : > { %v7367_v14 = vpop.eup %7366  ;;  %7380 = vrcp.f32 %v4482_v2  ;;  %v5179_v2 = vld [vmem:[%s11627_s8 + $0x8] sm:$0xff] }
 0x613   : > { %5098 = vmatprep.subr.bf16.mxu0 %v4937_v3  ;;  %v4813_v39 = vmul.f32 %v7367_v14, %v13080_v9  ;;  %v4812_v4 = vmul.f32 %v7367_v14, %v13082_v42  ;;  %v7369_v24 = vpop.eup %7368  ;;  %v13085_v3 = vld [vmem:[#allocation142_spill] sm:$0xff]  ;;  %v5398_v14 = vld [vmem:[%s11629_s10 + $0x18] sm:$0xff] }
 0x614   : > { %5199 = vperm.xlu1 %6463, %v5181_v35   ;;  %v4485_v52 = vpop.xlane.xlu0 %4484  ;;  %v4743_v31 = vmul.f32 %v7369_v24, %v13083_v59  ;;  %v13088_v42 = vld [vmem:[#allocation226_spill] sm:$0xff] }
 0x615   : > { %7382 = vrcp.f32 %v4485_v52  ;;  %v4969_v37 = vpack.c.bf16 %v4813_v39, %v4811_v11  ;;  %v4968_v26 = vpack.c.bf16 %v4812_v4, %v4810_v55  ;;  %v4476_v47 = vpop.xlane.xlu1 %4475  ;;  %v13086_v11 = vld [vmem:[#allocation108_spill] sm:$0xff]  ;;  %v13087_v39 = vld [vmem:[#allocation119_spill] sm:$0xff]  ;;  %v13089_v52 = vld [vmem:[#allocation117_spill] sm:$0xff] }
 0x616   : > { %v7371_v15 = vpop.eup %7370  ;;  %7384 = vrcp.f32 %v4380_v30  ;;  %v5365_v30 = vld [vmem:[%s11628_s9 + $0x10] sm:$0xff] }
 0x617   : > { %v7373_v25 = vpop.eup %7372  ;;  %5099 = vmatpush1.bf16.xpose.msra.mxu0 %v4936_v36  ;;  %5141 = vmatprep.subr.bf16.mxu1 %v4969_v37  ;;  %v4745_v35 = vmul.f32 %v7371_v15, %v13084_v62  ;;  %v4744_v27 = vmul.f32 %v7371_v15, %v13085_v3  ;;  %v4742_v36 = vmul.f32 %v7369_v24, %v13086_v11  ;;  %v5364_v24 = vld [vmem:[%s11628_s9 + $0x8] sm:$0xff]  ;;  %v5363_v11 = vld [vmem:[%s11628_s9] sm:$0xff] }
 0x618   : > { %5384 = vperm.xlu1 %6463, %v5366_v63   ;;  %5189 = vperm.xlu0 %6462, %v5179_v2   ;;  %v4383_v10 = vpop.xlane.xlu0 %4382  ;;  %v4807_v48 = vmul.f32 %v7373_v25, %v13087_v39  ;;  %v4806_v63 = vmul.f32 %v7373_v25, %v13089_v52  ;;  %v13090_v2 = vld [vmem:[#allocation127_spill] sm:$0xff]  ;;  %v13091_v25 = vld [vmem:[#allocation230_spill] sm:$0xff] }
 0x619   : > { %5142 = vmatpush1.bf16.xpose.msra.mxu1 %v4968_v26  ;;  %7386 = vrcp.f32 %v4383_v10  ;;  %v4935_v5 = vpack.c.bf16 %v4745_v35, %v4743_v31  ;;  %v4934_v55 = vpack.c.bf16 %v4744_v27, %v4742_v36  ;;  %v13092_v27 = vld [vmem:[#allocation228_spill] sm:$0xff]  ;;  %v13096_v52 = vld [vmem:[#allocation222_spill] sm:$0xff] }
 0x61a   : > { %v7375_v9 = vpop.eup %7374  ;;  %7388 = vrcp.f32 %v4476_v47  ;;  %v5397_v47 = vld [vmem:[%s11629_s10 + $0x10] sm:$0xff] }
 0x61b   : > { %5100 = vmatprep.subr.bf16.mxu0 %v4935_v5  ;;  %v4809_v4 = vmul.f32 %v7375_v9, %v13088_v42  ;;  %v4808_v37 = vmul.f32 %v7375_v9, %v13090_v2  ;;  %v7377_v26 = vpop.eup %7376  ;;  %v5396_v5 = vld [vmem:[%s11629_s10 + $0x8] sm:$0xff]  ;;  %v13094_v9 = vld [vmem:[#allocation49_spill] sm:$0xff] }
 0x61c   : > { %5416 = vperm.xlu1 %6463, %v5398_v14   ;;  %5379 = vperm.xlu0 %6462, %v5365_v30   ;;  %v4479_v15 = vpop.xlane.xlu0 %4478  ;;  %v4803_v3 = vmul.f32 %v7377_v26, %v13091_v25  ;;  %v13093_v14 = vld [vmem:[#allocation229_spill] sm:$0xff]  ;;  %v4802_v39 = vmul.f32 %v7377_v26, %v13094_v9  ;;  %v13097_v2 = vld [vmem:[#allocation115_spill] sm:$0xff]  ;;  %v5395_v26 = vld [vmem:[%s11629_s10] sm:$0xff] }
 0x61d   : > { %7390 = vrcp.f32 %v4479_v15  ;;  %v4967_v59 = vpack.c.bf16 %v4809_v4, %v4807_v48  ;;  %v4966_v31 = vpack.c.bf16 %v4808_v37, %v4806_v63  ;;  %v13098_v15 = vld [vmem:[#allocation56_spill] sm:$0xff] }
 0x61e   : > { %v7379_v62 = vpop.eup %7378 }
 0x61f   : > { %v7381_v35 = vpop.eup %7380  ;;  %5101 = vmatpush1.bf16.xpose.msra.mxu0 %v4934_v55  ;;  %5143 = vmatprep.subr.bf16.mxu1 %v4967_v59  ;;  %v4805_v10 = vmul.f32 %v7379_v62, %v13092_v27  ;;  %v4804_v30 = vmul.f32 %v7379_v62, %v13093_v14  ;;  %v13095_v55 = vld [vmem:[#allocation220_spill] sm:$0xff]  ;;  %v5462_v59 = vld [vmem:[%s11631_s12 + $0x78] sm:$0xff] }
 0x620   : > { %5374 = vperm.xlu1 %6463, %v5364_v24   ;;  %5411 = vperm.xlu0 %6462, %v5397_v47   ;;  %v4867_v42 = vmul.f32 %v7381_v35, %v13095_v55  ;;  %v4866_v37 = vmul.f32 %v7381_v35, %v13097_v2  ;;  %v13099_v35 = vld [vmem:[#allocation52_spill] sm:$0xff] }
 0x621   : > { %5144 = vmatpush1.bf16.xpose.msra.mxu1 %v4966_v31  ;;  %v4965_v36 = vpack.c.bf16 %v4805_v10, %v4803_v3  ;;  %v4964_v4 = vpack.c.bf16 %v4804_v30, %v4802_v39  ;;  %v13100_v10 = vld [vmem:[#allocation35_spill] sm:$0xff] }
 0x622   : > { %v7383_v48 = vpop.eup %7382  ;;  %v13101_v30 = vld [vmem:[#allocation223_spill] sm:$0xff] }
 0x623   : > { %5102 = vmatprep.subr.bf16.mxu0 %v4965_v36  ;;  %v4869_v63 = vmul.f32 %v7383_v48, %v13096_v52  ;;  %v4868_v24 = vmul.f32 %v7383_v48, %v13098_v15  ;;  %v7385_v47 = vpop.eup %7384  ;;  %v5461_v36 = vld [vmem:[%s11631_s12 + $0x70] sm:$0xff]  ;;  %v13102_v39 = vld [vmem:[#allocation51_spill] sm:$0xff] }
 0x624   : > { %5406 = vperm.xlu1 %6463, %v5396_v5   ;;  %5369 = vperm.xlu0 %6462, %v5363_v11   ;;  %v4799_v27 = vmul.f32 %v7385_v47, %v13099_v35  ;;  %v5460_v11 = vld [vmem:[%s11631_s12 + $0x68] sm:$0xff]  ;;  %v4798_v48 = vmul.f32 %v7385_v47, %v13102_v39  ;;  %v5459_v47 = vld [vmem:[%s11631_s12 + $0x60] sm:$0xff]  ;;  %v5457_v35 = vld [vmem:[%s11631_s12 + $0x50] sm:$0xff] }
 0x625   : > { %v4997_v31 = vpack.c.bf16 %v4869_v63, %v4867_v42  ;;  %v4996_v62 = vpack.c.bf16 %v4868_v24, %v4866_v37  ;;  %v13103_v42 = vld [vmem:[#allocation54_spill] sm:$0xff]  ;;  %v13105_v37 = vld [vmem:[#allocation57_spill] sm:$0xff] }
 0x626   : > { %v7387_v25 = vpop.eup %7386  ;;  %v13104_v63 = vld [vmem:[#allocation238_spill] sm:$0xff] }
 0x627   : > { %v7389_v3 = vpop.eup %7388  ;;  %5103 = vmatpush2.bf16.xpose.msra.mxu0 %v4964_v4  ;;  %5145 = vmatprep.subr.bf16.mxu1 %v4997_v31  ;;  %v4801_v14 = vmul.f32 %v7387_v25, %v13100_v10  ;;  %v4800_v5 = vmul.f32 %v7387_v25, %v13101_v30  ;;  %v13106_v24 = vld [vmem:[#allocation234_spill] sm:$0xff] }
 0x628   : > { %5540 = vperm.xlu1 %6463, %v5462_v59   ;;  %5401 = vperm.xlu0 %6462, %v5395_v26   ;;  %v4863_v4 = vmul.f32 %v7389_v3, %v13103_v42  ;;  %v4862_v15 = vmul.f32 %v7389_v3, %v13105_v37  ;;  %v5458_v26 = vld [vmem:[%s11631_s12 + $0x58] sm:$0xff]  ;;  %v5456_v3 = vld [vmem:[%s11631_s12 + $0x48] sm:$0xff]  ;;  %v5455_v10 = vld [vmem:[%s11631_s12 + $0x40] sm:$0xff] }
 0x629   : > { %5146 = vmatpush2.bf16.xpose.msra.mxu1 %v4996_v62  ;;  %v4963_v9 = vpack.c.bf16 %v4801_v14, %v4799_v27  ;;  %v4962_v52 = vpack.c.bf16 %v4800_v5, %v4798_v48  ;;  %v5454_v27 = vld [vmem:[%s11631_s12 + $0x38] sm:$0xff]  ;;  %v5452_v5 = vld [vmem:[%s11631_s12 + $0x28] sm:$0xff]  ;;  %v5451_v39 = vld [vmem:[%s11631_s12 + $0x20] sm:$0xff] }
 0x62a   : > { %v7391_v55 = vpop.eup %7390  ;;  %v5449_v42 = vld [vmem:[%s11631_s12 + $0x10] sm:$0xff]  ;;  %v5447_v37 = vld [vmem:[%s11631_s12] sm:$0xff] }
 0x62b   : > { %5104 = vmatprep.subr.bf16.mxu0 %v4963_v9  ;;  %v4865_v2 = vmul.f32 %v7391_v55, %v13104_v63  ;;  %v4864_v59 = vmul.f32 %v7391_v55, %v13106_v24  ;;  %v5450_v9 = vld [vmem:[%s11631_s12 + $0x18] sm:$0xff]  ;;  %v5448_v55 = vld [vmem:[%s11631_s12 + $0x8] sm:$0xff] }
 0x62c   : > { %5530 = vperm.xlu1 %6463, %v5460_v11   ;;  %5535 = vperm.xlu0 %6462, %v5461_v36   ;;  %v5453_v11 = vld [vmem:[%s11631_s12 + $0x30] sm:$0xff] }
 0x62d   : > { %v4995_v31 = vpack.c.bf16 %v4865_v2, %v4863_v4  ;;  %v4994_v62 = vpack.c.bf16 %v4864_v59, %v4862_v15  ;;  %v6029_v2 = vld [vmem:[%s11633_s14 + $0x8] sm:$0xff] }
 0x62f   : > { %5105 = vmatpush2.bf16.xpose.msra.mxu0 %v4962_v52  ;;  %5147 = vmatprep.subr.bf16.mxu1 %v4995_v31  ;;  %v4374_v25 = vpop.xlane.xlu1 %4373  ;;  %v13108_v31 = vld [vmem:[#allocation216_spill] sm:$0xff] }
 0x630   : > { %5520 = vperm.xlu1 %6463, %v5458_v26   ;;  %5525 = vperm.xlu0 %6462, %v5459_v47   ;;  %7392 = vrcp.f32 %v4374_v25  ;;  %v13107_v26 = vld [vmem:[#allocation231_spill] sm:$0xff] }
 0x631   : > { %5148 = vmatpush2.bf16.xpose.msra.mxu1 %v4994_v62 }
 0x633   : > { %v4470_v14 = vpop.xlane.xlu1 %4469 }
 0x634   : > { %5510 = vperm.xlu1 %6463, %v5456_v3   ;;  %5515 = vperm.xlu0 %6462, %v5457_v35  }
 0x637   : > { %v4377_v30 = vpop.xlane.xlu0 %4376 }
 0x638   : > { %5500 = vperm.xlu1 %6463, %v5454_v27   ;;  %7394 = vrcp.f32 %v4377_v30  ;;  %5505 = vperm.xlu0 %6462, %v5455_v10  }
 0x639   : > { %7396 = vrcp.f32 %v4470_v14  ;;  %v6031_v14 = vld [vmem:[%s11633_s14 + $0x18] sm:$0xff] }
 0x63b   : > { %v4473_v36 = vpop.xlane.xlu0 %4472 }
 0x63c   : > { %5490 = vperm.xlu1 %6463, %v5452_v5   ;;  %7398 = vrcp.f32 %v4473_v36  ;;  %5495 = vperm.xlu0 %6462, %v5453_v11   ;;  %v13110_v11 = vld [vmem:[#allocation237_spill] sm:$0xff] }
 0x63d   : > { %v7393_v4 = vpop.eup %7392 }
 0x63e   : > { %v4795_v24 = vmul.f32 %v7393_v4, %v10539_v41  ;;  %v4794_v47 = vmul.f32 %v7393_v4, %v13107_v26  ;;  %v13109_v41 = vld [vmem:[#allocation45_spill] sm:$0xff]  ;;  %v6030_v4 = vld [vmem:[%s11633_s14 + $0x10] sm:$0xff] }
 0x640   : > { %5480 = vperm.xlu1 %6463, %v5450_v9   ;;  %v4368_v48 = vpop.xlane.xlu1 %4367  ;;  %5485 = vperm.xlu0 %6462, %v5451_v39  }
 0x641   : > { %7400 = vrcp.f32 %v4368_v48 }
 0x644   : > { %5470 = vperm.xlu1 %6463, %v5448_v55   ;;  %v4464_v52 = vpop.xlane.xlu1 %4463  ;;  %5475 = vperm.xlu0 %6462, %v5449_v42  }
 0x645   : > { %v7395_v63 = vpop.eup %7394 }
 0x646   : > { %v7397_v15 = vpop.eup %7396  ;;  %v4797_v59 = vmul.f32 %v7395_v63, %v10586_v1  ;;  %v4796_v62 = vmul.f32 %v7395_v63, %v13108_v31  ;;  %v6028_v1 = vld [vmem:[%s11633_s14] sm:$0xff] }
 0x647   : > { %v4859_v30 = vmul.f32 %v7397_v15, %v13109_v41  ;;  %v4858_v36 = vmul.f32 %v7397_v15, %v13110_v11 }
 0x648   : > { %6039 = vperm.xlu1 %6463, %v6029_v2   ;;  %v4362_v25 = vpop.xlane.xlu1 %4361  ;;  %5465 = vperm.xlu0 %6462, %v5447_v37   ;;  %v4961_v3 = vpack.c.bf16 %v4797_v59, %v4795_v24  ;;  %v4960_v35 = vpack.c.bf16 %v4796_v62, %v4794_v47  ;;  %v4371_v10 = vpop.xlane.xlu0 %4370 }
 0x649   : > { %v7399_v27 = vpop.eup %7398  ;;  %7402 = vrcp.f32 %v4371_v10 }
 0x64a   : > { %5106 = vmatprep.subr.bf16.mxu0 %v4961_v3  ;;  %v4861_v5 = vmul.f32 %v7399_v27, %v10602_v54  ;;  %v4860_v9 = vmul.f32 %v7399_v27, %v10598_v33  ;;  %7404 = vrcp.f32 %v4464_v52 }
 0x64b   : > { %5107 = vmatpush2.bf16.xpose.msra.mxu0 %v4960_v35 }
 0x64c   : > { %6049 = vperm.xlu1 %6463, %v6031_v14   ;;  %6034 = vperm.xlu0 %6462, %v6028_v1   ;;  %v4993_v39 = vpack.c.bf16 %v4861_v5, %v4859_v30  ;;  %v4992_v48 = vpack.c.bf16 %v4860_v9, %v4858_v36  ;;  %v4458_v55 = vpop.xlane.xlu1 %4457  ;;  %v4467_v42 = vpop.xlane.xlu0 %4466 }
 0x64d   : > { %7406 = vrcp.f32 %v4467_v42 }
 0x64e   : > { %5149 = vmatprep.subr.bf16.mxu1 %v4993_v39  ;;  %7408 = vrcp.f32 %v4362_v25  ;;  %v7401_v52 = vpop.eup %7400 }
 0x64f   : > { %5150 = vmatpush2.bf16.xpose.msra.mxu1 %v4992_v48  ;;  %v4791_v37 = vmul.f32 %v7401_v52, %v10619_v46  ;;  %v4790_v59 = vmul.f32 %v7401_v52, %v10613_v49 }
 0x650   : > { %6044 = vperm.xlu0 %6462, %v6030_v4   ;;  %v4365_v54 = vpop.xlane.xlu0 %4364  ;;  %v4356_v33 = vpop.xlane.xlu1 %4355 }
 0x651   : > { %7410 = vrcp.f32 %v4365_v54 }
 0x652   : > { %7412 = vrcp.f32 %v4458_v55 }
 0x654   : > { %v4461_v63 = vpop.xlane.xlu0 %4460  ;;  %v4452_v47 = vpop.xlane.xlu1 %4451 }
 0x655   : > { %7414 = vrcp.f32 %v4461_v63  ;;  %v13111_v63 = vld [vmem:[#allocation46_spill] sm:$0xff] }
 0x656   : > { %v7403_v2 = vpop.eup %7402  ;;  %7416 = vrcp.f32 %v4356_v33 }
 0x657   : > { %v7405_v15 = vpop.eup %7404  ;;  %v4793_v24 = vmul.f32 %v7403_v2, %v10658_v29  ;;  %v4792_v26 = vmul.f32 %v7403_v2, %v10641_v32 }
 0x658   : > { %v4359_v31 = vpop.xlane.xlu0 %4358  ;;  %v4855_v35 = vmul.f32 %v7405_v15, %v10633_v61  ;;  %v4854_v27 = vmul.f32 %v7405_v15, %v10627_v58 }
 0x659   : > { %7418 = vrcp.f32 %v4359_v31  ;;  %v4959_v62 = vpack.c.bf16 %v4793_v24, %v4791_v37  ;;  %v4958_v25 = vpack.c.bf16 %v4792_v26, %v4790_v59  ;;  %v13112_v37 = vld [vmem:[#allocation53_spill] sm:$0xff] }
 0x65a   : > { %v7407_v3 = vpop.eup %7406  ;;  %7420 = vrcp.f32 %v4452_v47 }
 0x65b   : > { %5108 = vmatprep.subr.bf16.mxu0 %v4959_v62  ;;  %v4857_v46 = vmul.f32 %v7407_v3, %v10680_v44  ;;  %v4856_v29 = vmul.f32 %v7407_v3, %v10667_v7  ;;  %v7409_v10 = vpop.eup %7408 }
 0x65c   : > { %5109 = vmatpush2.bf16.xpose.msra.mxu0 %v4958_v25  ;;  %v4455_v49 = vpop.xlane.xlu0 %4454  ;;  %v4787_v41 = vmul.f32 %v7409_v10, %v10652_v8  ;;  %v4786_v30 = vmul.f32 %v7409_v10, %v10648_v56 }
 0x65d   : > { %7422 = vrcp.f32 %v4455_v49  ;;  %v4991_v32 = vpack.c.bf16 %v4857_v46, %v4855_v35  ;;  %v4990_v14 = vpack.c.bf16 %v4856_v29, %v4854_v27 }
 0x65e   : > { %v7411_v1 = vpop.eup %7410 }
 0x65f   : > { %5151 = vmatprep.subr.bf16.mxu1 %v4991_v32  ;;  %v4789_v61 = vmul.f32 %v7411_v1, %v10701_v53  ;;  %v4788_v44 = vmul.f32 %v7411_v1, %v10684_v43  ;;  %v7413_v5 = vpop.eup %7412 }
 0x660   : > { %5152 = vmatpush2.bf16.xpose.msra.mxu1 %v4990_v14  ;;  %v4851_v36 = vmul.f32 %v7413_v5, %v10675_v16  ;;  %v4850_v39 = vmul.f32 %v7413_v5, %v10673_v21 }
 0x661   : > { %v4957_v58 = vpack.c.bf16 %v4789_v61, %v4787_v41  ;;  %v4956_v7 = vpack.c.bf16 %v4788_v44, %v4786_v30 }
 0x662   : > { %v7415_v11 = vpop.eup %7414 }
 0x663   : > { %5110 = vmatprep.subr.bf16.mxu0 %v4957_v58  ;;  %v4853_v9 = vmul.f32 %v7415_v11, %v10719_v50  ;;  %v4852_v8 = vmul.f32 %v7415_v11, %v10711_v23  ;;  %v7417_v48 = vpop.eup %7416 }
 0x664   : > { %5111 = vmatpush2.bf16.xpose.msra.mxu0 %v4956_v7  ;;  %v4783_v43 = vmul.f32 %v7417_v48, %v10695_v51  ;;  %v4782_v4 = vmul.f32 %v7417_v48, %v10690_v17  ;;  %v13114_v7 = vld [vmem:[#allocation236_spill] sm:$0xff]  ;;  %v13117_v48 = vld [vmem:[#allocation61_spill] sm:$0xff] }
 0x665   : > { %v4989_v53 = vpack.c.bf16 %v4853_v9, %v4851_v36  ;;  %v4988_v56 = vpack.c.bf16 %v4852_v8, %v4850_v39  ;;  %v13115_v36 = vld [vmem:[#allocation48_spill] sm:$0xff]  ;;  %v13116_v39 = vld [vmem:[#allocation218_spill] sm:$0xff] }
 0x666   : > { %v7419_v55 = vpop.eup %7418 }
 0x667   : > { %5153 = vmatprep.subr.bf16.mxu1 %v4989_v53  ;;  %v4785_v42 = vmul.f32 %v7419_v55, %v10729_v45  ;;  %v4784_v16 = vmul.f32 %v7419_v55, %v10727_v6  ;;  %v7421_v54 = vpop.eup %7420 }
 0x668   : > { %5154 = vmatpush2.bf16.xpose.msra.mxu1 %v4988_v56  ;;  %v4847_v23 = vmul.f32 %v7421_v54, %v10717_v18  ;;  %v4846_v2 = vmul.f32 %v7421_v54, %v13111_v63 }
 0x669   : > { %v4955_v50 = vpack.c.bf16 %v4785_v42, %v4783_v43  ;;  %v4954_v21 = vpack.c.bf16 %v4784_v16, %v4782_v4  ;;  %v13119_v43 = vmov 0   ;;  %v13120_v42 = vld [vmem:[#allocation14_spill] sm:$0xff] }
 0x66a   : > { %v7423_v33 = vpop.eup %7422  ;;  %v5127_v4 = vpack.c.bf16 %v13120_v42, %v13120_v42 }
 0x66b   : > { %5112 = vmatprep.subr.bf16.mxu0 %v4955_v50  ;;  %v4849_v52 = vmul.f32 %v7423_v33, %v10743_v28  ;;  %v4848_v51 = vmul.f32 %v7423_v33, %v13112_v37 }
 0x66c   : > { %5113 = vmatpush2.bf16.xpose.msra.mxu0 %v4954_v21 }
 0x66d   : > { %v4987_v45 = vpack.c.bf16 %v4849_v52, %v4847_v23  ;;  %v4986_v15 = vpack.c.bf16 %v4848_v51, %v4846_v2 }
 0x66f   : > { %5155 = vmatprep.subr.bf16.mxu1 %v4987_v45  ;;  %v4350_v17 = vpop.xlane.xlu1 %4349 }
 0x670   : > { %5156 = vmatpush2.bf16.xpose.msra.mxu1 %v4986_v15  ;;  %7424 = vrcp.f32 %v4350_v17 }
 0x673   : > { %v4446_v6 = vpop.xlane.xlu1 %4445 }
 0x676   : > { %v4353_v24 = vpop.xlane.xlu0 %4352 }
 0x677   : > { %7426 = vrcp.f32 %v4353_v24 }
 0x678   : > { %7428 = vrcp.f32 %v4446_v6 }
 0x67a   : > { %v4449_v59 = vpop.xlane.xlu0 %4448 }
 0x67b   : > { %7430 = vrcp.f32 %v4449_v59 }
 0x67d   : > { %v7425_v26 = vpop.eup %7424 }
 0x67e   : > { %v4779_v47 = vmul.f32 %v7425_v26, %v10817_v12  ;;  %v4778_v25 = vmul.f32 %v7425_v26, %v10812_v20 }
 0x67f   : > { %v4344_v18 = vpop.xlane.xlu1 %4343 }
 0x680   : > { %7432 = vrcp.f32 %v4344_v18 }
 0x683   : > { %v4440_v35 = vpop.xlane.xlu1 %4439 }
 0x684   : > { %v7427_v28 = vpop.eup %7426 }
 0x685   : > { %v7429_v31 = vpop.eup %7428  ;;  %v4781_v62 = vmul.f32 %v7427_v28, %v10850_v0  ;;  %v4780_v3 = vmul.f32 %v7427_v28, %v10847_v19  ;;  %v6652_v28 = vld [vmem:[%s11626_s7] sm:$0xff]  }
 0x686   : > { %v4843_v49 = vmul.f32 %v7429_v31, %v10836_v40  ;;  %v4842_v32 = vmul.f32 %v7429_v31, %v10829_v38 }
 0x687   : > { %v4347_v46 = vpop.xlane.xlu0 %4346  ;;  %v4953_v27 = vpack.c.bf16 %v4781_v62, %v4779_v47  ;;  %v4952_v29 = vpack.c.bf16 %v4780_v3, %v4778_v25  ;;  %v6653_v47 = vld [vmem:[%s11626_s7 + $0x8] sm:$0xff]   ;;  %v5185_v31 = vpop.permute.xlu1 %5184 }
 0x688   : > { %7434 = vrcp.f32 %v4347_v46  ;;  %v7431_v10 = vpop.eup %7430 }
 0x689   : > { %7436 = vrcp.f32 %v4440_v35  ;;  %5114 = vmatprep.subr.bf16.mxu0 %v4953_v27  ;;  %v4845_v12 = vmul.f32 %v7431_v10, %v10867_v34  ;;  %v4844_v0 = vmul.f32 %v7431_v10, %v10861_v22  ;;  %v13113_v34 = vld [vmem:[#allocation60_spill] sm:$0xff] }
 0x68a   : > { %5115 = vmatpush2.bf16.xpose.msra.mxu0 %v4952_v29 }
 0x68b   : > { %v4443_v20 = vpop.xlane.xlu0 %4442  ;;  %v4985_v19 = vpack.c.bf16 %v4845_v12, %v4843_v49  ;;  %v4984_v14 = vpack.c.bf16 %v4844_v0, %v4842_v32  ;;  %v5195_v27 = vpop.permute.xlu1 %5194  ;;  %v13121_v0 = vld [vmem:[#allocation3_spill] sm:$0xff] }
 0x68c   : > { %7438 = vrcp.f32 %v4443_v20 }
 0x68d   : > { %5157 = vmatprep.subr.bf16.mxu1 %v4985_v19  ;;  %v7433_v1 = vpop.eup %7432 }
 0x68e   : > { %5158 = vmatpush2.bf16.xpose.msra.mxu1 %v4984_v14  ;;  %v4775_v61 = vmul.f32 %v7433_v1, %v10878_v13  ;;  %v4774_v30 = vmul.f32 %v7433_v1, %v10875_v60  ;;  %v13118_v60 = vld [vmem:[#allocation12_spill] sm:$0xff]  ;;  %v13123_v1 = vld [vmem:[#allocation2_spill] sm:$0xff] }
 0x68f   : > { %v5084_v56 = vpack.c.bf16 %v13118_v60, %v13118_v60 }
 0x693   : > { %v5190_v3 = vpop.permute.xlu0 %5189 }
 0x695   : > { %v7435_v41 = vpop.eup %7434 }
 0x696   : > { %v4777_v40 = vmul.f32 %v7435_v41, %v10896_v57  ;;  %v4776_v44 = vmul.f32 %v7435_v41, %v13113_v34  ;;  %v7437_v38 = vpop.eup %7436 }
 0x697   : > { %v4839_v11 = vmul.f32 %v7437_v38, %v13114_v7  ;;  %v4838_v8 = vmul.f32 %v7437_v38, %v13116_v39  ;;  %v5200_v38 = vpop.permute.xlu1 %5199 }
 0x698   : > { %v4951_v5 = vpack.c.bf16 %v4777_v40, %v4775_v61  ;;  %v4950_v22 = vpack.c.bf16 %v4776_v44, %v4774_v30  ;;  %v13125_v61 = vld [vmem:[#allocation6_spill] sm:$0xff]  ;;  %v13127_v30 = vld [vmem:[#allocation4_spill] sm:$0xff] }
 0x699   : > { %v7439_v58 = vpop.eup %7438 }
 0x69a   : > { %5116 = vmatprep.subr.bf16.mxu0 %v4951_v5  ;;  %v4841_v9 = vmul.f32 %v7439_v58, %v13115_v36  ;;  %v4840_v53 = vmul.f32 %v7439_v58, %v13117_v48 }
 0x69b   : > { %5117 = vmatpush2.bf16.xpose.msra.mxu0 %v4950_v22  ;;  %v13129_v22 = vld [vmem:[#allocation5_spill] sm:$0xff] }
 0x69c   : > { %v4983_v13 = vpack.c.bf16 %v4841_v9, %v4839_v11  ;;  %v4982_v57 = vpack.c.bf16 %v4840_v53, %v4838_v8  ;;  %v13131_v11 = vld [vmem:[#allocation7_spill] sm:$0xff]  ;;  %v13133_v53 = vld [vmem:[#allocation8_spill] sm:$0xff] }
 0x69e   : > { %5159 = vmatprep.subr.bf16.mxu1 %v4983_v13 }
 0x69f   : > { %5160 = vmatpush2.bf16.xpose.msra.mxu1 %v4982_v57 }
 0x6a2   : > { %5119 = vmatmul.mubr.bf16.vlgmr.msra.gmra.mxu0 %v5084_v56 }
 0x6a3   : > { %v5034_v55 = vpop.f32.mrf.mxu0  ;;  %5250 = vmatprep.mubr.bf16.mxu0 %v13119_v43 }
 0x6a5   : > { %v5036_v16 = vpop.f32.mrf.mxu0 }
 0x6a6   : > { %5162 = vmatmul.mubr.bf16.vlgmr.msra.gmra.mxu1 %v5127_v4 }
 0x6a7   : > { %v5038_v54 = vpop.f32.mrf.mxu0  ;;  %5639 = vmatprep.mubr.bf16.mxu1 %v13119_v43  ;;  %v5077_v50 = vpop.f32.mrf.mxu1 }
 0x6a8   : > { %v5170_v21 = vpack.c.bf16 %v5077_v50, %v5034_v55  ;;  %v13135_v55 = vld [vmem:[#allocation9_spill] sm:$0xff] }
 0x6a9   : > { %v5039_v33 = vpop.f32.mrf.mxu0  ;;  %v5079_v23 = vpop.f32.mrf.mxu1 }
 0x6aa   : > { %v5171_v52 = vpack.c.bf16 %v5079_v23, %v5036_v16 }
 0x6ab   : > { %v5081_v63 = vpop.f32.mrf.mxu1 }
 0x6ad   : > { %v5082_v2 = vpop.f32.mrf.mxu1 }
 0x762   : > { %v5120_v37 = vpop.f32.mrf.mxu0 }
 0x764   : > { %v5122_v51 = vpop.f32.mrf.mxu0 }
 0x766   : > { %v5124_v45 = vpop.f32.mrf.mxu0  ;;  %v5163_v15 = vpop.f32.mrf.mxu1 }
 0x767   : > { %v5172_v59 = vpack.c.bf16 %v5163_v15, %v5120_v37 }
 0x768   : > { %v5125_v17 = vpop.f32.mrf.mxu0  ;;  %v5165_v6 = vpop.f32.mrf.mxu1 }
 0x769   : > { %v5173_v24 = vpack.c.bf16 %v5165_v6, %v5122_v51 }
 0x76a   : > { %v5167_v18 = vpop.f32.mrf.mxu1 }
 0x76b   : > { %5230 = vmatprep.subr.bf16.mxu0 %v5173_v24 }
 0x76c   : > { %v5168_v26 = vpop.f32.mrf.mxu1  ;;  %5231 = vmatpush1.bf16.msra.mxu0 %v5172_v59 }
 0x76d   : > { %5232 = vmatprep.subr.bf16.mxu0 %v5171_v52 }
 0x770   : > { %5233 = vmatpush1.bf16.msra.mxu0 %v5170_v21 }
 0x773   : > { %6416 = vmatmul.mubr.msk.bf16.vlgmr.msra.gmra.mxu0 %vm1704_vm5, %v6652_v28 }
 0x774   : > { %5260 = vmatprep.mubr.bf16.mxu0 %v13119_v43 }
 0x77b   : > { %6417 = vmatmul.mubr.msk.bf16.gmra.mxu0 %vm1704_vm5, %v6653_v47 }
 0x77c   : > { %6096 = vmatprep.mubr.bf16.mxu0 %v13119_v43 }
 0x833   : > { %v5252_v62 = vpop.f32.mrf.mxu0 }
 0x834   : > { %v5253_v10 = vadd.f32 %v5252_v62, %v5185_v31 }
 0x835   : > { %v5254_v25 = vpop.f32.mrf.mxu0 }
 0x836   : > { %v5255_v32 = vadd.f32 %v5254_v25, %v5185_v31  ;;  %v11120_v41 = vadd.f32 %v5253_v10, %v13123_v1 }
 0x837   : > { %v5256_v35 = vpop.f32.mrf.mxu0 }
 0x838   : > { %v5257_v46 = vadd.f32 %v5256_v35, %v5190_v3  ;;  %13124 = vst [vmem:[#allocation33_spill] sm:$0xff] %v11120_v41  ;;  %v11129_v58 = vadd.f32 %v5255_v32, %v13129_v22 }
 0x839   : > { %v5258_v29 = vpop.f32.mrf.mxu0 }
 0x83a   : > { %v5259_v49 = vadd.f32 %v5258_v29, %v5190_v3  ;;  %v11117_v20 = vadd.f32 %v5257_v46, %v13121_v0  ;;  %13130 = vst [vmem:[#allocation72_spill] sm:$0xff] %v11129_v58 }
 0x83b   : > { %v5262_v12 = vpop.f32.mrf.mxu0 }
 0x83c   : > { %13122 = vst [vmem:[#allocation59_spill] sm:$0xff] %v11117_v20  ;;  %v5263_v19 = vadd.f32 %v5262_v12, %v5195_v27  ;;  %v11123_v40 = vadd.f32 %v5259_v49, %v13125_v61  ;;  %v5279_v7 = vadd.f32 %v11117_v20, %v11120_v41 }
 0x83d   : > { %v5264_v14 = vpop.f32.mrf.mxu0 }
 0x83e   : > { %13126 = vst [vmem:[#allocation27_spill] sm:$0xff] %v11123_v40  ;;  %v11126_v34 = vadd.f32 %v5263_v19, %v13127_v30  ;;  %v5265_v44 = vadd.f32 %v5264_v14, %v5195_v27  ;;  %v5288_v8 = vadd.f32 %v11123_v40, %v11129_v58 }
 0x83f   : > { %v5266_v5 = vpop.f32.mrf.mxu0 }
 0x840   : > { %13128 = vst [vmem:[#allocation69_spill] sm:$0xff] %v11126_v34  ;;  %v11134_v36 = vadd.f32 %v5265_v44, %v13131_v11  ;;  %v5267_v9 = vadd.f32 %v5266_v5, %v5200_v38  ;;  %v5280_v48 = vadd.f32 %v5279_v7, %v11126_v34 }
 0x841   : > { %v5268_v39 = vpop.f32.mrf.mxu0 }
 0x842   : > { %13132 = vst [vmem:[#allocation240_spill] sm:$0xff] %v11134_v36  ;;  %v11140_v13 = vadd.f32 %v5267_v9, %v13133_v53  ;;  %v5269_v57 = vadd.f32 %v5268_v39, %v5200_v38  ;;  %v5289_v60 = vadd.f32 %v5288_v8, %v11134_v36 }
 0x844   : > { %13134 = vst [vmem:[#allocation36_spill] sm:$0xff] %v11140_v13  ;;  %v5281_v56 = vadd.f32 %v5280_v48, %v11140_v13  ;;  %v11145_v42 = vadd.f32 %v5269_v57, %v13135_v55 }
 0x846   : > { %13136 = vst [vmem:[#allocation32_spill] sm:$0xff] %v11145_v42  ;;  %v5282_v4 = vrot.slane %v5281_v56, 4  ;;  %v5290_v16 = vadd.f32 %v5289_v60, %v11145_v42 }
 0x848   : > { %v5283_v54 = vadd.f32 %v5282_v4, %v5281_v56  ;;  %v5291_v50 = vrot.slane %v5290_v16, 4 }
 0x84a   : > { %v5284_v21 = vrot.slane %v5283_v54, 2  ;;  %v5292_v33 = vadd.f32 %v5291_v50, %v5290_v16 }
 0x84c   : > { %v5285_v23 = vadd.f32 %v5284_v21, %v5283_v54  ;;  %v5293_v52 = vrot.slane %v5292_v33, 2 }
 0x84e   : > { %v5286_v63 = vrot.slane %v5285_v23, 1  ;;  %v5294_v2 = vadd.f32 %v5293_v52, %v5292_v33 }
 0x850   : > { %v5287_v37 = vadd.f32 %v5286_v63, %v5285_v23  ;;  %v5295_v51 = vrot.slane %v5294_v2, 1  ;;  %v5385_v63 = vpop.permute.xlu1 %5384 }
 0x852   : > { %v5297_v45 = vmul.f32 0.03125, %v5287_v37  ;;  %v5296_v15 = vadd.f32 %v5295_v51, %v5294_v2  ;;  %v5380_v2 = vpop.permute.xlu0 %5379 }
 0x854   : > { %v11149_v17 = vsub.f32 %v11120_v41, %v5297_v45  ;;  %v11152_v6 = vsub.f32 %v11117_v20, %v5297_v45  ;;  %v11155_v24 = vsub.f32 %v11126_v34, %v5297_v45  ;;  %v5298_v59 = vmul.f32 0.03125, %v5296_v15  ;;  %v5417_v37 = vpop.permute.xlu1 %5416 }
 0x855   : > { %v5305_v18 = vsub.f32 %v11140_v13, %v5297_v45 }
 0x856   : > { %v5307_v26 = vmul.f32 %v11149_v17, %v11149_v17  ;;  %v5309_v28 = vmul.f32 %v11152_v6, %v11152_v6  ;;  %v11163_v47 = vsub.f32 %v11129_v58, %v5298_v59  ;;  %v11166_v31 = vsub.f32 %v11123_v40, %v5298_v59  ;;  %v5412_v51 = vpop.permute.xlu0 %5411 }
 0x857   : > { %v11169_v62 = vsub.f32 %v11134_v36, %v5298_v59  ;;  %v5311_v25 = vmul.f32 %v11155_v24, %v11155_v24  ;;  %v5306_v35 = vsub.f32 %v11145_v42, %v5298_v59  ;;  %v5313_v29 = vmul.f32 %v5305_v18, %v5305_v18 }
 0x858   : > { %v5315_v3 = vadd.f32 %v5309_v28, %v5307_v26  ;;  %v5308_v46 = vmul.f32 %v11163_v47, %v11163_v47  ;;  %v5310_v27 = vmul.f32 %v11166_v31, %v11166_v31  ;;  %v5375_v15 = vpop.permute.xlu1 %5374 }
 0x859   : > { %v5312_v49 = vmul.f32 %v11169_v62, %v11169_v62  ;;  %v5314_v0 = vmul.f32 %v5306_v35, %v5306_v35 }
 0x85a   : > { %v5316_v10 = vadd.f32 %v5315_v3, %v5311_v25  ;;  %v5324_v12 = vadd.f32 %v5310_v27, %v5308_v46  ;;  %v5370_v59 = vpop.permute.xlu0 %5369 }
 0x85c   : > { %v5317_v32 = vadd.f32 %v5316_v10, %v5313_v29  ;;  %v5325_v19 = vadd.f32 %v5324_v12, %v5312_v49 }
 0x85e   : > { %v5318_v14 = vrot.slane %v5317_v32, 4  ;;  %v5326_v1 = vadd.f32 %v5325_v19, %v5314_v0 }
 0x860   : > { %v5319_v61 = vadd.f32 %v5318_v14, %v5317_v32  ;;  %v5327_v30 = vrot.slane %v5326_v1, 4 }
 0x862   : > { %v5320_v44 = vrot.slane %v5319_v61, 2  ;;  %v5328_v38 = vadd.f32 %v5327_v30, %v5326_v1  ;;  %v5407_v1 = vpop.permute.xlu1 %5406 }
 0x864   : > { %v5321_v5 = vadd.f32 %v5320_v44, %v5319_v61  ;;  %v5329_v22 = vrot.slane %v5328_v38, 2 }
 0x866   : > { %v5322_v7 = vrot.slane %v5321_v5, 1  ;;  %v5330_v11 = vadd.f32 %v5329_v22, %v5328_v38 }
 0x868   : > { %v5323_v9 = vadd.f32 %v5322_v7, %v5321_v5  ;;  %v5331_v39 = vrot.slane %v5330_v11, 1 }
 0x86a   : > { %v5333_v8 = vmul.f32 0.03125, %v5323_v9  ;;  %v5332_v48 = vadd.f32 %v5331_v39, %v5330_v11  ;;  %v6654_v9 = vld [vmem:[%s11630_s11] sm:$0xff]   ;;  %v6655_v39 = vld [vmem:[%s11630_s11 + $0x8] sm:$0xff]  }
 0x86c   : > { %7440 = vrsqrt.f32 %v5333_v8  ;;  %v5334_v53 = vmul.f32 0.03125, %v5332_v48  ;;  %vm5337_vm8 = vcmp.eq.f32.partialorder %v5333_v8, inf  ;;  %v5340_v56 = vand.u32 2147483648, %v5333_v8  ;;  %v6657_v48 = vld [vmem:[%s11630_s11 + $0x18] sm:$0xff]  }
 0x86d   : > { %vm5339_vm9 = vcmp.eq.f32.partialorder %v5333_v8, 0.0 }
 0x86e   : > { %7442 = vrsqrt.f32 %v5334_v53  ;;  %vm5344_vm10 = vcmp.eq.f32.partialorder %v5334_v53, inf  ;;  %v5347_v21 = vand.u32 2147483648, %v5334_v53  ;;  %vm5346_vm11 = vcmp.eq.f32.partialorder %v5334_v53, 0.0 }
 0x879   : > { %v7441_v57 = vpop.eup %7440 }
 0x87a   : > { %v5336_v60 = vmul.f32 %v7441_v57, %v5333_v8  ;;  %v6659_v57 = vld [vmem:[%s11630_s11 + $0x28] sm:$0xff]  }
 0x87b   : > { %v7443_v55 = vpop.eup %7442 }
 0x87c   : > { %v5338_v4 = vsel %vm5337_vm8, %v5333_v8, %v5336_v60  ;;  %v5343_v54 = vmul.f32 %v7443_v55, %v5334_v53  ;;  %v6656_v8 = vld [vmem:[%s11630_s11 + $0x10] sm:$0xff]  }
 0x87d   : > { %v5341_v16 = vsel %vm5339_vm9, %v5340_v56, %v5338_v4  ;;  %v6660_v60 = vld [vmem:[%s11630_s11 + $0x30] sm:$0xff]   ;;  %v6661_v56 = vld [vmem:[%s11630_s11 + $0x38] sm:$0xff]  }
 0x87e   : > { %v5349_v50 = vadd.f32 1e-05, %v5341_v16  ;;  %v5345_v33 = vsel %vm5344_vm10, %v5334_v53, %v5343_v54  ;;  %v6658_v53 = vld [vmem:[%s11630_s11 + $0x20] sm:$0xff]   ;;  %v11229_v16 = vpop.permute.xlu1 %5540 }
 0x87f   : > { %v5348_v23 = vsel %vm5346_vm11, %v5347_v21, %v5345_v33 }
 0x880   : > { %7444 = vrcp.f32 %v5349_v50  ;;  %v5350_v52 = vadd.f32 1e-05, %v5348_v23 }
 0x882   : > { %7446 = vrcp.f32 %v5350_v52  ;;  %v11233_v50 = vpop.permute.xlu1 %5530 }
 0x886   : > { %v11237_v33 = vpop.permute.xlu1 %5520 }
 0x88a   : > { %v11241_v52 = vpop.permute.xlu1 %5510 }
 0x88d   : > { %v7445_v45 = vpop.eup %7444 }
 0x88e   : > { %v5361_v26 = vmul.f32 %v7445_v45, %v5305_v18  ;;  %v5359_v28 = vmul.f32 %v7445_v45, %v11155_v24  ;;  %v5355_v27 = vmul.f32 %v7445_v45, %v11149_v17  ;;  %v5357_v29 = vmul.f32 %v7445_v45, %v11152_v6  ;;  %v5402_v24 = vpop.permute.xlu0 %5401 }
 0x88f   : > { %v7447_v25 = vpop.eup %7446 }
 0x890   : > { %v5393_v3 = vmul.f32 %v5385_v63, %v5361_v26  ;;  %v5391_v46 = vmul.f32 %v5380_v2, %v5359_v28  ;;  %v5362_v10 = vmul.f32 %v7447_v25, %v5306_v35  ;;  %v5360_v49 = vmul.f32 %v7447_v25, %v11169_v62 }
 0x891   : > { %v5356_v12 = vmul.f32 %v7447_v25, %v11163_v47  ;;  %v5358_v32 = vmul.f32 %v7447_v25, %v11166_v31  ;;  %v5387_v44 = vmul.f32 %v5370_v59, %v5355_v27  ;;  %v5389_v38 = vmul.f32 %v5375_v15, %v5357_v29 }
 0x892   : > { %v5392_v0 = vmul.f32 %v5380_v2, %v5360_v49  ;;  %v5394_v19 = vmul.f32 %v5385_v63, %v5362_v10  ;;  %v5423_v61 = vadd.f32 %v5412_v51, %v5391_v46  ;;  %v5425_v30 = vadd.f32 %v5417_v37, %v5393_v3  ;;  %v11225_v55 = vpop.permute.xlu0 %5535 }
 0x893   : > { %v5388_v14 = vmul.f32 %v5370_v59, %v5356_v12  ;;  %v5390_v18 = vmul.f32 %v5375_v15, %v5358_v32  ;;  %v5419_v7 = vadd.f32 %v5402_v24, %v5387_v44  ;;  %v5421_v47 = vadd.f32 %v5407_v1, %v5389_v38 }
 0x894   : > { %v5424_v17 = vadd.f32 %v5412_v51, %v5392_v0  ;;  %v5426_v5 = vadd.f32 %v5417_v37, %v5394_v19  ;;  %v5429_v62 = vpack.c.bf16 %v5425_v30, %v5423_v61  ;;  %v11243_v37 = vpop.permute.xlu1 %5500 }
 0x895   : > { %v5420_v6 = vadd.f32 %v5402_v24, %v5388_v14  ;;  %v5422_v35 = vadd.f32 %v5407_v1, %v5390_v18  ;;  %v5427_v11 = vpack.c.bf16 %v5421_v47, %v5419_v7 }
 0x896   : > { %v5430_v22 = vpack.c.bf16 %v5426_v5, %v5424_v17  ;;  %v11227_v4 = vpop.permute.xlu0 %5525 }
 0x897   : > { %v5428_v31 = vpack.c.bf16 %v5422_v35, %v5420_v6 }
 0x898   : > { %5619 = vmatprep.subr.bf16.mxu1 %v5430_v22  ;;  %v11245_v26 = vpop.permute.xlu1 %5490 }
 0x899   : > { %5620 = vmatpush1.bf16.msra.mxu1 %v5429_v62 }
 0x89a   : > { %5621 = vmatprep.subr.bf16.mxu1 %v5428_v31  ;;  %v11231_v54 = vpop.permute.xlu0 %5515 }
 0x89c   : > { %v5481_v10 = vpop.permute.xlu1 %5480 }
 0x89d   : > { %5622 = vmatpush1.bf16.msra.mxu1 %v5427_v11 }
 0x89e   : > { %v11235_v21 = vpop.permute.xlu0 %5505 }
 0x8a0   : > { %6426 = vmatmul.mubr.msk.bf16.vlgmr.msra.gmra.mxu1 %vm1704_vm5, %v6654_v9  ;;  %v5471_v1 = vpop.permute.xlu1 %5470 }
 0x8a1   : > { %5649 = vmatprep.mubr.bf16.mxu1 %v13119_v43 }
 0x8a2   : > { %v11239_v23 = vpop.permute.xlu0 %5495 }
 0x8a6   : > { %v5486_v63 = vpop.permute.xlu0 %5485 }
 0x8a8   : > { %6427 = vmatmul.mubr.msk.bf16.gmra.mxu1 %vm1704_vm5, %v6655_v39 }
 0x8a9   : > { %5659 = vmatprep.mubr.bf16.mxu1 %v13119_v43 }
 0x8aa   : > { %v5476_v51 = vpop.permute.xlu0 %5475 }
 0x8ae   : > { %v5466_v28 = vpop.permute.xlu0 %5465 }
 0x8b0   : > { %6428 = vmatmul.mubr.msk.bf16.gmra.mxu1 %vm1704_vm5, %v6656_v8 }
 0x8b1   : > { %5669 = vmatprep.mubr.bf16.mxu1 %v13119_v43 }
 0x8b8   : > { %6429 = vmatmul.mubr.msk.bf16.gmra.mxu1 %vm1704_vm5, %v6657_v48 }
 0x8b9   : > { %5679 = vmatprep.mubr.bf16.mxu1 %v13119_v43 }
 0x8c0   : > { %6430 = vmatmul.mubr.msk.bf16.gmra.mxu1 %vm1704_vm5, %v6658_v53 }
 0x8c1   : > { %5689 = vmatprep.mubr.bf16.mxu1 %v13119_v43 }
 0x8c8   : > { %6431 = vmatmul.mubr.msk.bf16.gmra.mxu1 %vm1704_vm5, %v6659_v57 }
 0x8c9   : > { %5699 = vmatprep.mubr.bf16.mxu1 %v13119_v43 }
 0x8d0   : > { %6432 = vmatmul.mubr.msk.bf16.gmra.mxu1 %vm1704_vm5, %v6660_v60 }
 0x8d1   : > { %5709 = vmatprep.mubr.bf16.mxu1 %v13119_v43 }
 0x8d8   : > { %6433 = vmatmul.mubr.msk.bf16.gmra.mxu1 %vm1704_vm5, %v6661_v56 }
 0x960   : > { %v5641_v2 = vpop.f32.mrf.mxu1 }
 0x961   : > { %v11247_v3 = vadd.f32 %v5641_v2, %v5466_v28 }
 0x962   : > { %v5643_v45 = vpop.f32.mrf.mxu1 }
 0x963   : > { %v5720_v29 = vmul.f32 %v11247_v3, %v11247_v3  ;;  %v11258_v24 = vadd.f32 %v5643_v45, %v5466_v28 }
 0x964   : > { %v5645_v15 = vpop.f32.mrf.mxu1 }
 0x965   : > { %v5752_v0 = vmul.f32 %v5720_v29, %v11247_v3  ;;  %13137 = vst [vmem:[#allocation39_spill] sm:$0xff] %v11258_v24  ;;  %v11260_v44 = vadd.f32 %v5645_v15, %v5471_v1  ;;  %v5721_v22 = vmul.f32 %v11258_v24, %v11258_v24 }
 0x966   : > { %v5647_v59 = vpop.f32.mrf.mxu1 }
 0x967   : > { %v5784_v30 = vmul.f32 0.044715, %v5752_v0  ;;  %v11264_v17 = vadd.f32 %v5647_v59, %v5471_v1  ;;  %v5722_v47 = vmul.f32 %v11260_v44, %v11260_v44  ;;  %v5753_v57 = vmul.f32 %v5721_v22, %v11258_v24 }
 0x968   : > { %v5651_v25 = vpop.f32.mrf.mxu1 }
 0x969   : > { %v11251_v12 = vadd.f32 %v5651_v25, %v5476_v51  ;;  %13138 = vst [vmem:[#allocation29_spill] sm:$0xff] %v11264_v17  ;;  %v5816_v7 = vadd.f32 %v5784_v30, %v11247_v3  ;;  %v5723_v9 = vmul.f32 %v11264_v17, %v11264_v17  ;;  %v5754_v2 = vmul.f32 %v5722_v47, %v11260_v44 }
 0x96a   : > { %v5653_v46 = vpop.f32.mrf.mxu1 }
 0x96b   : > { %v5724_v18 = vmul.f32 %v11251_v12, %v11251_v12  ;;  %v11267_v35 = vadd.f32 %v5653_v46, %v5476_v51  ;;  %v5848_v56 = vmul.f32 0.7978846, %v5816_v7  ;;  %v5755_v15 = vmul.f32 %v5723_v9, %v11264_v17 }
 0x96c   : > { %v5655_v27 = vpop.f32.mrf.mxu1 }
 0x96d   : > { %v11254_v19 = vadd.f32 %v5655_v27, %v5481_v10  ;;  %v5756_v6 = vmul.f32 %v5724_v18, %v11251_v12  ;;  %v5725_v48 = vmul.f32 %v11267_v35, %v11267_v35  ;;  %v5785_v27 = vmul.f32 0.044715, %v5753_v57 }
 0x96e   : > { %v5657_v49 = vpop.f32.mrf.mxu1  ;;  %7448 = vtanh.f32 %v5848_v56  ;;  %v5787_v18 = vmul.f32 0.044715, %v5755_v15 }
 0x96f   : > { %v5726_v38 = vmul.f32 %v11254_v19, %v11254_v19  ;;  %v11275_v11 = vadd.f32 %v5657_v49, %v5481_v10  ;;  %v5788_v8 = vmul.f32 0.044715, %v5756_v6  ;;  %v5757_v25 = vmul.f32 %v5725_v48, %v11267_v35 }
 0x970   : > { %v5661_v32 = vpop.f32.mrf.mxu1  ;;  %v5786_v49 = vmul.f32 0.044715, %v5754_v2 }
 0x971   : > { %v5758_v31 = vmul.f32 %v5726_v38, %v11254_v19  ;;  %v5727_v45 = vmul.f32 %v11275_v11, %v11275_v11  ;;  %v5820_v28 = vadd.f32 %v5788_v8, %v11251_v12  ;;  %v11292_v29 = vadd.f32 %v5661_v32, %v5486_v63 }
 0x972   : > { %v5663_v14 = vpop.f32.mrf.mxu1  ;;  %v5789_v38 = vmul.f32 0.044715, %v5757_v25  ;;  %v5818_v47 = vadd.f32 %v5786_v49, %v11260_v44  ;;  %v5819_v8 = vadd.f32 %v5787_v18, %v11264_v17 }
 0x973   : > { %v11281_v53 = vadd.f32 %v5663_v14, %v5486_v63  ;;  %v5790_v51 = vmul.f32 0.044715, %v5758_v31  ;;  %13140 = vst [vmem:[#allocation44_spill] sm:$0xff] %v11292_v29  ;;  %v5759_v14 = vmul.f32 %v5727_v45, %v11275_v11  ;;  %v5852_v30 = vmul.f32 0.7978846, %v5820_v28 }
 0x974   : > { %v5665_v61 = vpop.f32.mrf.mxu1  ;;  %v5817_v63 = vadd.f32 %v5785_v27, %v11258_v24  ;;  %v5728_v32 = vmul.f32 %v11292_v29, %v11292_v29  ;;  %v5850_v28 = vmul.f32 0.7978846, %v5818_v47 }
 0x975   : > { %13139 = vst [vmem:[#allocation214_spill] sm:$0xff] %v11281_v53  ;;  %v5729_v46 = vmul.f32 %v11281_v53, %v11281_v53  ;;  %v5822_v0 = vadd.f32 %v5790_v51, %v11254_v19  ;;  %v5791_v9 = vmul.f32 0.044715, %v5759_v14  ;;  %v11308_v48 = vadd.f32 %v5665_v61, %v11245_v26 }
 0x976   : > { %v5667_v5 = vpop.f32.mrf.mxu1  ;;  %7450 = vtanh.f32 %v5852_v30  ;;  %v5849_v51 = vmul.f32 0.7978846, %v5817_v63  ;;  %v5760_v45 = vmul.f32 %v5728_v32, %v11292_v29 }
 0x977   : > { %v5761_v6 = vmul.f32 %v5729_v46, %v11281_v53  ;;  %v11300_v22 = vadd.f32 %v5667_v5, %v11245_v26  ;;  %v5854_v31 = vmul.f32 0.7978846, %v5822_v0  ;;  %v5821_v5 = vadd.f32 %v5789_v38, %v11267_v35 }
 0x978   : > { %v5671_v62 = vpop.f32.mrf.mxu1  ;;  %v5823_v25 = vadd.f32 %v5791_v9, %v11275_v11  ;;  %v5851_v26 = vmul.f32 0.7978846, %v5819_v8  ;;  %v5730_v61 = vmul.f32 %v11308_v48, %v11308_v48 }
 0x979   : > { %13141 = vst [vmem:[#allocation34_spill] sm:$0xff] %v11300_v22  ;;  %v5793_v56 = vmul.f32 0.044715, %v5761_v6  ;;  %v5731_v2 = vmul.f32 %v11300_v22, %v11300_v22  ;;  %7452 = vtanh.f32 %v5854_v31  ;;  %v11316_v46 = vadd.f32 %v5671_v62, %v11239_v23 }
 0x97a   : > { %v5673_v39 = vpop.f32.mrf.mxu1  ;;  %v5853_v14 = vmul.f32 0.7978846, %v5821_v5  ;;  %7454 = vtanh.f32 %v5849_v51  ;;  %v5792_v62 = vmul.f32 0.044715, %v5760_v45  ;;  %v5855_v63 = vmul.f32 0.7978846, %v5823_v25 }
 0x97b   : > { %v11321_v27 = vadd.f32 %v5673_v39, %v11239_v23  ;;  %v5825_v18 = vadd.f32 %v5793_v56, %v11281_v53  ;;  %v5763_v30 = vmul.f32 %v5731_v2, %v11300_v22  ;;  %7456 = vtanh.f32 %v5850_v28  ;;  %v7449_v31 = vpop.eup %7448 }
 0x97c   : > { %v5675_v60 = vpop.f32.mrf.mxu1  ;;  %v5732_v32 = vmul.f32 %v11316_v46, %v11316_v46  ;;  %7458 = vtanh.f32 %v5851_v26  ;;  %v5762_v9 = vmul.f32 %v5730_v61, %v11308_v48  ;;  %v11359_v28 = vadd.f32 1.0, %v7449_v31 }
 0x97d   : > { %v11340_v47 = vadd.f32 %v5675_v60, %v11243_v37  ;;  %7460 = vtanh.f32 %v5853_v14  ;;  %v5795_v5 = vmul.f32 0.044715, %v5763_v30 }
 0x97e   : > { %v5677_v59 = vpop.f32.mrf.mxu1  ;;  %7462 = vtanh.f32 %v5855_v63  ;;  %v5764_v25 = vmul.f32 %v5732_v32, %v11316_v46  ;;  %v11364_v61 = vmul.f32 0.044715, %v5762_v9 }
 0x97f   : > { %v11332_v6 = vadd.f32 %v5677_v59, %v11243_v37  ;;  %v5733_v59 = vmul.f32 %v11321_v27, %v11321_v27  ;;  %v11350_v37 = vadd.f32 %v5792_v62, %v11292_v29  ;;  %v5734_v26 = vmul.f32 %v11340_v47, %v11340_v47 }
 0x980   : > { %v5681_v10 = vpop.f32.mrf.mxu1 }
 0x981   : > { %v11335_v23 = vadd.f32 %v5681_v10, %v11235_v21  ;;  %v5735_v60 = vmul.f32 %v11332_v6, %v11332_v6 }
 0x982   : > { %v11296_v1 = vpop.f32.mrf.mxu1 }
 0x983   : > { %v5736_v2 = vmul.f32 %v11335_v23, %v11335_v23  ;;  %v11369_v14 = vadd.f32 %v11296_v1, %v11235_v21  ;;  %v7451_v63 = vpop.eup %7450  ;;  %v5767_v32 = vmul.f32 %v5735_v60, %v11332_v6 }
 0x984   : > { %v5685_v7 = vpop.f32.mrf.mxu1 }
 0x985   : > { %v11376_v30 = vadd.f32 %v5685_v7, %v11241_v52  ;;  %v5768_v31 = vmul.f32 %v5736_v2, %v11335_v23 }
 0x986   : > { %v5687_v57 = vpop.f32.mrf.mxu1 }
 0x987   : > { %v11324_v49 = vadd.f32 %v5687_v57, %v11241_v52  ;;  %v5857_v57 = vmul.f32 0.7978846, %v5825_v18  ;;  %v11373_v18 = vadd.f32 %v5795_v5, %v11300_v22 }
 0x988   : > { %v5691_v15 = vpop.f32.mrf.mxu1 }
 0x989   : > { %13142 = vst [vmem:[#allocation40_spill] sm:$0xff] %v11324_v49  ;;  %v5739_v10 = vmul.f32 %v11324_v49, %v11324_v49  ;;  %v11357_v51 = vadd.f32 %v5691_v15, %v11231_v54  ;;  %7464 = vtanh.f32 %v5857_v57  ;;  %v7453_v57 = vpop.eup %7452 }
 0x98a   : > { %v5693_v0 = vpop.f32.mrf.mxu1 }
 0x98b   : > { %v11329_v38 = vadd.f32 %v5693_v0, %v11231_v54  ;;  %v5765_v0 = vmul.f32 %v5733_v59, %v11321_v27  ;;  %v5771_v54 = vmul.f32 %v5739_v10, %v11324_v49  ;;  %v5740_v21 = vmul.f32 %v11357_v51, %v11357_v51 }
 0x98c   : > { %v5695_v39 = vpop.f32.mrf.mxu1  ;;  %v11386_v59 = vmul.f32 0.044715, %v5764_v25  ;;  %v11389_v10 = vmul.f32 %v5734_v26, %v11340_v47  ;;  %v11404_v25 = vadd.f32 1.0, %v7451_v63  ;;  %v11411_v26 = vmul.f32 0.044715, %v5767_v32 }
 0x98d   : > { %13143 = vst [vmem:[#allocation30_spill] sm:$0xff] %v11329_v38  ;;  %v5741_v56 = vmul.f32 %v11329_v38, %v11329_v38  ;;  %v11392_v52 = vadd.f32 %v5695_v39, %v11237_v33  ;;  %v11397_v5 = vmul.f32 0.044715, %v5765_v0  ;;  %v11413_v0 = vmul.f32 0.044715, %v5768_v31 }
 0x98e   : > { %v5697_v8 = vpop.f32.mrf.mxu1  ;;  %v5772_v42 = vmul.f32 %v5740_v21, %v11357_v51  ;;  %v11420_v63 = vadd.f32 1.0, %v7453_v57 }
 0x98f   : > { %v5773_v62 = vmul.f32 %v5741_v56, %v11329_v38  ;;  %v11384_v1 = vadd.f32 %v5697_v8, %v11237_v33  ;;  %v5737_v56 = vmul.f32 %v11369_v14, %v11369_v14  ;;  %v5803_v8 = vmul.f32 0.044715, %v5771_v54 }
 0x990   : > { %v5701_v45 = vpop.f32.mrf.mxu1  ;;  %v5738_v33 = vmul.f32 %v11376_v30, %v11376_v30 }
 0x991   : > { %v11395_v7 = vadd.f32 %v5701_v45, %v11227_v4  ;;  %v5805_v39 = vmul.f32 0.044715, %v5773_v62  ;;  %v5742_v62 = vmul.f32 %v11392_v52, %v11392_v52  ;;  %v5769_v21 = vmul.f32 %v5737_v56, %v11369_v14 }
 0x992   : > { %v5703_v15 = vpop.f32.mrf.mxu1  ;;  %v5835_v13 = vadd.f32 %v5803_v8, %v11324_v49  ;;  %v5770_v20 = vmul.f32 %v5738_v33, %v11376_v30  ;;  %v5804_v8 = vmul.f32 0.044715, %v5772_v42 }
 0x993   : > { %v11402_v60 = vadd.f32 %v5703_v15, %v11227_v4  ;;  %v5743_v4 = vmul.f32 %v11384_v1, %v11384_v1  ;;  %v11418_v15 = vpop.eup %7454  ;;  %v5837_v58 = vadd.f32 %v5805_v39, %v11329_v38  ;;  %v5774_v33 = vmul.f32 %v5742_v62, %v11392_v52 }
 0x994   : > { %v5705_v9 = vpop.f32.mrf.mxu1  ;;  %v11428_v31 = vpop.eup %7456  ;;  %v5867_v49 = vmul.f32 0.7978846, %v5835_v13 }
 0x995   : > { %13144 = vst [vmem:[#allocation26_spill] sm:$0xff] %v11402_v60  ;;  %v11409_v45 = vadd.f32 %v5705_v9, %v11233_v50  ;;  %v5744_v9 = vmul.f32 %v11395_v7, %v11395_v7  ;;  %v5745_v32 = vmul.f32 %v11402_v60, %v11402_v60  ;;  %v11437_v40 = vpop.eup %7458  ;;  %v5775_v29 = vmul.f32 %v5743_v4, %v11384_v1 }
 0x996   : > { %v5707_v2 = vpop.f32.mrf.mxu1  ;;  %13146 = vst [vmem:[#allocation79_spill] sm:$0xff] %v11437_v40  ;;  %v11445_v56 = vpop.eup %7460  ;;  %v5869_v38 = vmul.f32 0.7978846, %v5837_v58  ;;  %7466 = vtanh.f32 %v5867_v49 }
 0x997   : > { %13145 = vst [vmem:[#allocation25_spill] sm:$0xff] %v11409_v45  ;;  %v5746_v36 = vmul.f32 %v11409_v45, %v11409_v45  ;;  %v11435_v57 = vadd.f32 %v5707_v2, %v11233_v50  ;;  %v5777_v41 = vmul.f32 %v5745_v32, %v11402_v60  ;;  %v5776_v39 = vmul.f32 %v5744_v9, %v11395_v7  ;;  %v11455_v32 = vpop.eup %7462 }
 0x998   : > { %v5711_v54 = vpop.f32.mrf.mxu1  ;;  %v11466_v24 = vpop.eup %7464  ;;  %v5807_v40 = vmul.f32 0.044715, %v5775_v29  ;;  %7468 = vtanh.f32 %v5869_v38 }
 0x999   : > { %v11443_v43 = vadd.f32 %v5711_v54, %v11225_v55  ;;  %v5778_v50 = vmul.f32 %v5746_v36, %v11409_v45  ;;  %v5747_v2 = vmul.f32 %v11435_v57, %v11435_v57  ;;  %v5809_v22 = vmul.f32 0.044715, %v5777_v41  ;;  %13147 = vst [vmem:[#allocation82_spill] sm:$0xff] %v11466_v24 }
 0x99a   : > { %v5713_v34 = vpop.f32.mrf.mxu1 }
 0x99b   : > { %v5748_v54 = vmul.f32 %v11443_v43, %v11443_v43  ;;  %v5810_v42 = vmul.f32 0.044715, %v5778_v50  ;;  %v5779_v4 = vmul.f32 %v5747_v2, %v11435_v57  ;;  %v11459_v36 = vadd.f32 %v5713_v34, %v11225_v55 }
 0x99c   : > { %v5715_v53 = vpop.f32.mrf.mxu1  ;;  %v5841_v17 = vadd.f32 %v5809_v22, %v11402_v60  ;;  %v5806_v34 = vmul.f32 0.044715, %v5774_v33  ;;  %v5808_v55 = vmul.f32 0.044715, %v5776_v39  ;;  %v5839_v33 = vadd.f32 %v5807_v40, %v11384_v1 }
 0x99d   : > { %v5780_v62 = vmul.f32 %v5748_v54, %v11443_v43  ;;  %v11464_v9 = vadd.f32 %v5715_v53, %v11229_v16  ;;  %v5842_v13 = vadd.f32 %v5810_v42, %v11409_v45  ;;  %v5811_v50 = vmul.f32 0.044715, %v5779_v4 }
 0x99e   : > { %v5717_v41 = vpop.f32.mrf.mxu1  ;;  %v5749_v2 = vmul.f32 %v11459_v36, %v11459_v36  ;;  %v5873_v54 = vmul.f32 0.7978846, %v5841_v17 }
 0x99f   : > { %v5812_v58 = vmul.f32 0.044715, %v5780_v62  ;;  %v5750_v22 = vmul.f32 %v11464_v9, %v11464_v9  ;;  %v5843_v53 = vadd.f32 %v5811_v50, %v11435_v57  ;;  %v11476_v24 = vadd.f32 %v5717_v41, %v11229_v16 }
 0x9a0   : > { %v5781_v60 = vmul.f32 %v5749_v2, %v11459_v36  ;;  %v5874_v29 = vmul.f32 0.7978846, %v5842_v13  ;;  %v5840_v50 = vadd.f32 %v5808_v55, %v11395_v7  ;;  %v5801_v16 = vmul.f32 0.044715, %v5769_v21 }
 0x9a1   : > { %v5844_v42 = vadd.f32 %v5812_v58, %v11443_v43  ;;  %v5782_v4 = vmul.f32 %v5750_v22, %v11464_v9  ;;  %v5875_v39 = vmul.f32 0.7978846, %v5843_v53  ;;  %v5751_v17 = vmul.f32 %v11476_v24, %v11476_v24 }
 0x9a2   : > { %v5813_v62 = vmul.f32 0.044715, %v5781_v60  ;;  %7470 = vtanh.f32 %v5873_v54  ;;  %v5802_v13 = vmul.f32 0.044715, %v5770_v20  ;;  %v5838_v58 = vadd.f32 %v5806_v34, %v11392_v52 }
 0x9a3   : > { %v5876_v2 = vmul.f32 0.7978846, %v5844_v42  ;;  %v5814_v45 = vmul.f32 0.044715, %v5782_v4  ;;  %v5783_v41 = vmul.f32 %v5751_v17, %v11476_v24  ;;  %7472 = vtanh.f32 %v5874_v29 }
 0x9a4   : > { %v5845_v49 = vadd.f32 %v5813_v62, %v11459_v36  ;;  %v5871_v60 = vmul.f32 0.7978846, %v5839_v33  ;;  %7474 = vtanh.f32 %v5875_v39  ;;  %v5836_v55 = vadd.f32 %v5804_v8, %v11357_v51 }
 0x9a5   : > { %v5846_v40 = vadd.f32 %v5814_v45, %v11464_v9  ;;  %v5815_v38 = vmul.f32 0.044715, %v5783_v41  ;;  %v5872_v53 = vmul.f32 0.7978846, %v5840_v50  ;;  %7476 = vtanh.f32 %v5876_v2 }
 0x9a6   : > { %v5877_v22 = vmul.f32 0.7978846, %v5845_v49  ;;  %v5798_v54 = vmul.f32 0.044715, %v11389_v10  ;;  %v5833_v42 = vadd.f32 %v5801_v16, %v11369_v14  ;;  %v5950_v34 = vmul.f32 0.5, %v11420_v63 }
 0x9a7   : > { %v5878_v21 = vmul.f32 0.7978846, %v5846_v40  ;;  %v5847_v20 = vadd.f32 %v5815_v38, %v11476_v24  ;;  %v5834_v45 = vadd.f32 %v5802_v13, %v11376_v30  ;;  %v5870_v29 = vmul.f32 0.7978846, %v5838_v58 }
 0x9a8   : > { %7478 = vtanh.f32 %v5877_v22  ;;  %v5859_v4 = vmul.f32 0.7978846, %v11373_v18  ;;  %v5831_v8 = vadd.f32 %v11411_v26, %v11332_v6  ;;  %v5948_v10 = vmul.f32 0.5, %v11404_v25  ;;  %v11507_v25 = vpop.eup %7466 }
 0x9a9   : > { %7480 = vtanh.f32 %v5878_v21  ;;  %v5879_v33 = vmul.f32 0.7978846, %v5847_v20  ;;  %v5832_v39 = vadd.f32 %v11413_v0, %v11335_v23  ;;  %v5868_v62 = vmul.f32 0.7978846, %v5836_v55  ;;  %v7469_v41 = vpop.eup %7468 }
 0x9aa   : > { %7482 = vtanh.f32 %v5871_v60  ;;  %v5914_v63 = vadd.f32 1.0, %v11428_v31  ;;  %v5829_v17 = vadd.f32 %v11397_v5, %v11321_v27  ;;  %v5865_v50 = vmul.f32 0.7978846, %v5833_v42 }
 0x9ab   : > { %7484 = vtanh.f32 %v5872_v53  ;;  %v11504_v18 = vmul.f32 %v5950_v34, %v11254_v19  ;;  %v5830_v26 = vadd.f32 %v5798_v54, %v11340_v47  ;;  %v5866_v2 = vmul.f32 0.7978846, %v5834_v45 }
 0x9ac   : > { %7486 = vtanh.f32 %v5879_v33  ;;  %v5944_v0 = vmul.f32 0.5, %v11359_v28  ;;  %v5828_v31 = vadd.f32 %v11386_v59, %v11316_v46  ;;  %v5863_v16 = vmul.f32 0.7978846, %v5831_v8 }
 0x9ad   : > { %7488 = vtanh.f32 %v5870_v29  ;;  %v11513_v5 = vmul.f32 %v5948_v10, %v11251_v12  ;;  %v5826_v19 = vadd.f32 %v11364_v61, %v11308_v48  ;;  %v5864_v49 = vmul.f32 0.7978846, %v5832_v39 }
 0x9ae   : > { %7490 = vtanh.f32 %v5859_v4  ;;  %v5946_v13 = vmul.f32 0.5, %v5914_v63  ;;  %v5861_v58 = vmul.f32 0.7978846, %v5829_v17  ;;  %v5917_v40 = vadd.f32 1.0, %v11445_v56 }
 0x9af   : > { %7492 = vtanh.f32 %v5868_v62  ;;  %v7471_v28 = vpop.eup %7470  ;;  %v5862_v60 = vmul.f32 0.7978846, %v5830_v26  ;;  %v5919_v59 = vadd.f32 1.0, %v11455_v32  ;;  %v6010_v12 = vpack.c.bf16 %v11504_v18, %v11513_v5  ;;  %v6663_v18 = vld [vmem:[%s11632_s13 + $0x8] sm:$0xff]   ;;  %v6035_v5 = vpop.permute.xlu0 %6034 }
 0x9b0   : > { %7494 = vtanh.f32 %v5865_v50  ;;  %v7473_v22 = vpop.eup %7472  ;;  %v5856_v38 = vmul.f32 0.7978846, %v11350_v37  ;;  %v5860_v61 = vmul.f32 0.7978846, %v5828_v31  ;;  %v11523_v53 = vmul.f32 %v5944_v0, %v11247_v3  ;;  %v13148_v3 = vld [vmem:[#allocation79_spill] sm:$0xff] }
 0x9b1   : > { %7496 = vtanh.f32 %v5866_v2  ;;  %v7475_v55 = vpop.eup %7474  ;;  %v5949_v21 = vmul.f32 0.5, %v5917_v40  ;;  %v5951_v56 = vmul.f32 0.5, %v5919_v59  ;;  %v11526_v42 = vmul.f32 %v5946_v13, %v11260_v44  ;;  %v13149_v0 = vld [vmem:[#allocation39_spill] sm:$0xff] }
 0x9b2   : > { %7498 = vtanh.f32 %v5863_v16  ;;  %v7477_v54 = vpop.eup %7476  ;;  %v5858_v32 = vmul.f32 0.7978846, %v5826_v19  ;;  %v5913_v20 = vadd.f32 1.0, %v11418_v15  ;;  %v5915_v29 = vadd.f32 1.0, %v13148_v3  ;;  %v13150_v16 = vld [vmem:[#allocation29_spill] sm:$0xff] }
 0x9b3   : > { %7500 = vtanh.f32 %v5864_v49  ;;  %v11530_v37 = vmul.f32 %v5949_v21, %v11267_v35  ;;  %v11533_v45 = vmul.f32 %v5951_v56, %v11275_v11  ;;  %v5939_v33 = vadd.f32 1.0, %v7475_v55 }
 0x9b4   : > { %7502 = vtanh.f32 %v5861_v58  ;;  %v5945_v44 = vmul.f32 0.5, %v5913_v20  ;;  %v5940_v39 = vadd.f32 1.0, %v7477_v54  ;;  %v5947_v63 = vmul.f32 0.5, %v5915_v29 }
 0x9b5   : > { %v7479_v34 = vpop.eup %7478  ;;  %7504 = vtanh.f32 %v5862_v60  ;;  %v6011_v15 = vpack.c.bf16 %v11533_v45, %v11530_v37  ;;  %v5937_v35 = vadd.f32 1.0, %v7471_v28  ;;  %v6008_v11 = vpack.c.bf16 %v11526_v42, %v11523_v53  ;;  %v13160_v42 = vld [vmem:[#allocation33_spill] sm:$0xff] }
 0x9b6   : > { %v7481_v4 = vpop.eup %7480  ;;  %7506 = vtanh.f32 %v5860_v61  ;;  %v5941_v8 = vadd.f32 1.0, %v7479_v34  ;;  %v5938_v26 = vadd.f32 1.0, %v7473_v22  ;;  %v11541_v31 = vmul.f32 %v5945_v44, %v13149_v0 }
 0x9b7   : > { %v7483_v10 = vpop.eup %7482  ;;  %v5942_v62 = vadd.f32 1.0, %v7481_v4  ;;  %7508 = vtanh.f32 %v5858_v32  ;;  %v11544_v19 = vmul.f32 %v5947_v63, %v13150_v16  ;;  %v5971_v40 = vmul.f32 0.5, %v5939_v33 }
 0x9b8   : > { %v7485_v17 = vpop.eup %7484  ;;  %v5973_v58 = vmul.f32 0.5, %v5941_v8  ;;  %v5935_v60 = vadd.f32 1.0, %v7483_v10  ;;  %7510 = vtanh.f32 %v5856_v38  ;;  %v5972_v61 = vmul.f32 0.5, %v5940_v39 }
 0x9b9   : > { %v7487_v50 = vpop.eup %7486  ;;  %v5974_v2 = vmul.f32 0.5, %v5942_v62  ;;  %v5936_v28 = vadd.f32 1.0, %v7485_v17  ;;  %v6009_v55 = vpack.c.bf16 %v11544_v19, %v11541_v31  ;;  %v5969_v56 = vmul.f32 0.5, %v5937_v35  ;;  %v13151_v35 = vld [vmem:[#allocation26_spill] sm:$0xff]  ;;  %v13161_v19 = vld [vmem:[#allocation72_spill] sm:$0xff] }
 0x9ba   : > { %v7489_v49 = vpop.eup %7488  ;;  %v5943_v13 = vadd.f32 1.0, %v7487_v50  ;;  %v5933_v54 = vadd.f32 1.0, %v7469_v41  ;;  %v5970_v34 = vmul.f32 0.5, %v5938_v26  ;;  %v5931_v29 = vadd.f32 1.0, %v11507_v25 }
 0x9bb   : > { %v7491_v59 = vpop.eup %7490  ;;  %v5934_v20 = vadd.f32 1.0, %v7489_v49  ;;  %v6006_v3 = vmul.f32 %v5974_v2, %v11464_v9  ;;  %v6005_v8 = vmul.f32 %v5973_v58, %v11459_v36  ;;  %v6003_v33 = vmul.f32 %v5971_v40, %v11435_v57  ;;  %v13152_v36 = vld [vmem:[#allocation25_spill] sm:$0xff] }
 0x9bc   : > { %v7493_v22 = vpop.eup %7492  ;;  %v5975_v21 = vmul.f32 0.5, %v5943_v13  ;;  %v5967_v44 = vmul.f32 0.5, %v5935_v60  ;;  %v5968_v62 = vmul.f32 0.5, %v5936_v28  ;;  %v6004_v41 = vmul.f32 %v5972_v61, %v11443_v43 }
 0x9bd   : > { %v7495_v32 = vpop.eup %7494  ;;  %v5932_v39 = vadd.f32 1.0, %v7493_v22  ;;  %v6001_v50 = vmul.f32 %v5969_v56, %v13151_v35  ;;  %v5965_v9 = vmul.f32 0.5, %v5933_v54  ;;  %v5966_v0 = vmul.f32 0.5, %v5934_v20  ;;  %v13153_v22 = vld [vmem:[#allocation30_spill] sm:$0xff] }
 0x9be   : > { %v7497_v4 = vpop.eup %7496  ;;  %v6007_v38 = vmul.f32 %v5975_v21, %v11476_v24  ;;  %v5929_v26 = vadd.f32 1.0, %v7495_v32  ;;  %v6002_v16 = vmul.f32 %v5970_v34, %v13152_v36  ;;  %v6022_v24 = vpack.c.bf16 %v6006_v3, %v6004_v41 }
 0x9bf   : > { %v7499_v10 = vpop.eup %7498  ;;  %v5930_v2 = vadd.f32 1.0, %v7497_v4  ;;  %v6021_v57 = vpack.c.bf16 %v6003_v33, %v6001_v50  ;;  %v5999_v13 = vmul.f32 %v5967_v44, %v11384_v1  ;;  %v5963_v58 = vmul.f32 0.5, %v5931_v29  ;;  %v13154_v29 = vld [vmem:[#allocation40_spill] sm:$0xff] }
 0x9c0   : > { %v7501_v63 = vpop.eup %7500  ;;  %v6023_v17 = vpack.c.bf16 %v6007_v38, %v6005_v8  ;;  %v5927_v40 = vadd.f32 1.0, %v7499_v10  ;;  %v5964_v28 = vmul.f32 0.5, %v5932_v39  ;;  %v6000_v61 = vmul.f32 %v5968_v62, %v11395_v7 }
 0x9c1   : > { %v7503_v25 = vpop.eup %7502  ;;  %v5928_v60 = vadd.f32 1.0, %v7501_v63  ;;  %v5997_v21 = vmul.f32 %v5965_v9, %v13153_v22  ;;  %v5961_v56 = vmul.f32 0.5, %v5929_v26  ;;  %v5962_v34 = vmul.f32 0.5, %v5930_v2  ;;  %v13155_v63 = vld [vmem:[#allocation82_spill] sm:$0xff] }
 0x9c2   : > { %v7505_v49 = vpop.eup %7504  ;;  %6064 = vmatprep.subr.bf16.mxu0 %v6023_v17  ;;  %v5925_v54 = vadd.f32 1.0, %v7503_v25  ;;  %v5998_v3 = vmul.f32 %v5966_v0, %v11392_v52  ;;  %v6020_v4 = vpack.c.bf16 %v6002_v16, %v6000_v61  ;;  %v5995_v8 = vmul.f32 %v5963_v58, %v13154_v29 }
 0x9c3   : > { %v7507_v43 = vpop.eup %7506  ;;  %6065 = vmatpush1.bf16.msra.mxu0 %v6022_v24  ;;  %v5926_v20 = vadd.f32 1.0, %v7505_v49  ;;  %v6019_v1 = vpack.c.bf16 %v5999_v13, %v5997_v21  ;;  %v5959_v38 = vmul.f32 0.5, %v5927_v40  ;;  %v5923_v33 = vadd.f32 1.0, %v7491_v59  ;;  %v13157_v40 = vld [vmem:[#allocation214_spill] sm:$0xff] }
 0x9c4   : > { %6066 = vmatprep.subr.bf16.mxu0 %v6021_v57  ;;  %v7509_v32 = vpop.eup %7508  ;;  %v5924_v44 = vadd.f32 1.0, %v7507_v43  ;;  %v5960_v10 = vmul.f32 0.5, %v5928_v60  ;;  %v5996_v7 = vmul.f32 %v5964_v28, %v11357_v51  ;;  %v5993_v62 = vmul.f32 %v5961_v56, %v11369_v14  ;;  %v13162_v56 = vld [vmem:[#allocation59_spill] sm:$0xff] }
 0x9c5   : > { %v7511_v39 = vpop.eup %7510  ;;  %v5957_v41 = vmul.f32 0.5, %v5925_v54  ;;  %v5921_v17 = vadd.f32 1.0, %v13155_v63  ;;  %v5922_v35 = vadd.f32 1.0, %v7509_v32  ;;  %v5958_v52 = vmul.f32 0.5, %v5926_v20  ;;  %v6045_v20 = vpop.permute.xlu0 %6044  ;;  %v13166_v63 = vld [vmem:[#allocation36_spill] sm:$0xff] }
 0x9c6   : > { %v5994_v50 = vmul.f32 %v5962_v34, %v11376_v30  ;;  %v6018_v9 = vpack.c.bf16 %v5998_v3, %v5996_v7  ;;  %v6017_v26 = vpack.c.bf16 %v5995_v8, %v5993_v62  ;;  %v5991_v59 = vmul.f32 %v5959_v38, %v11332_v6  ;;  %v13156_v30 = vld [vmem:[#allocation34_spill] sm:$0xff]  ;;  %v13163_v3 = vld [vmem:[#allocation27_spill] sm:$0xff]  ;;  %v13164_v8 = vld [vmem:[#allocation69_spill] sm:$0xff] }
 0x9c7   : > { %6067 = vmatpush1.bf16.msra.mxu0 %v6020_v4  ;;  %v5955_v25 = vmul.f32 0.5, %v5923_v33  ;;  %v5920_v2 = vadd.f32 1.0, %v7511_v39  ;;  %v5956_v0 = vmul.f32 0.5, %v5924_v44  ;;  %v5992_v51 = vmul.f32 %v5960_v10, %v11335_v23  ;;  %v13165_v7 = vld [vmem:[#allocation240_spill] sm:$0xff] }
 0x9c8   : > { %6068 = vmatprep.subr.bf16.mxu0 %v6019_v1  ;;  %v5989_v14 = vmul.f32 %v5957_v41, %v11321_v27  ;;  %v5953_v36 = vmul.f32 0.5, %v5921_v17  ;;  %v5954_v16 = vmul.f32 0.5, %v5922_v35  ;;  %v5990_v24 = vmul.f32 %v5958_v52, %v11340_v47  ;;  %v13158_v27 = vld [vmem:[#allocation44_spill] sm:$0xff] }
 0x9c9   : > { %v6016_v49 = vpack.c.bf16 %v5994_v50, %v5992_v51  ;;  %v5987_v13 = vmul.f32 %v5955_v25, %v13156_v30  ;;  %v5952_v58 = vmul.f32 0.5, %v5920_v2  ;;  %v5988_v6 = vmul.f32 %v5956_v0, %v11316_v46  ;;  %v13167_v52 = vld [vmem:[#allocation32_spill] sm:$0xff] }
 0x9ca   : > { %v6015_v57 = vpack.c.bf16 %v5991_v59, %v5989_v14  ;;  %v5985_v43 = vmul.f32 %v5953_v36, %v13157_v40  ;;  %v5986_v23 = vmul.f32 %v5954_v16, %v11308_v48  ;;  %v6662_v48 = vld [vmem:[%s11632_s13] sm:$0xff]   ;;  %v13159_v46 = vmov 0  }
 0x9cb   : > { %6069 = vmatpush1.bf16.msra.mxu0 %v6018_v9  ;;  %v6014_v60 = vpack.c.bf16 %v5990_v24, %v5988_v6  ;;  %v5984_v61 = vmul.f32 %v5952_v58, %v13158_v27 }
 0x9cc   : > { %6070 = vmatprep.subr.bf16.mxu0 %v6017_v26  ;;  %v6013_v28 = vpack.c.bf16 %v5987_v13, %v5985_v43 }
 0x9cd   : > { %v6012_v47 = vpack.c.bf16 %v5986_v23, %v5984_v61 }
 0x9cf   : > { %6071 = vmatpush1.bf16.msra.mxu0 %v6016_v49 }
 0x9d0   : > { %6072 = vmatprep.subr.bf16.mxu0 %v6015_v57 }
 0x9d3   : > { %6073 = vmatpush1.bf16.msra.mxu0 %v6014_v60 }
 0x9d4   : > { %6074 = vmatprep.subr.bf16.mxu0 %v6013_v28 }
 0x9d7   : > { %6075 = vmatpush1.bf16.msra.mxu0 %v6012_v47 }
 0x9d8   : > { %6076 = vmatprep.subr.bf16.mxu0 %v6011_v15 }
 0x9db   : > { %6077 = vmatpush1.bf16.msra.mxu0 %v6010_v12 }
 0x9dc   : > { %6078 = vmatprep.subr.bf16.mxu0 %v6009_v55 }
 0x9df   : > { %6079 = vmatpush1.bf16.msra.mxu0 %v6008_v11  ;;  %v6040_v11 = vpop.permute.xlu1 %6039 }
 0x9e2   : > { %6097 = vmatmul.mubr.bf16.vlgmr.msra.gmra.mxu0 %v6662_v48 }
 0x9e3   : > { %6106 = vmatprep.mubr.bf16.mxu0 %v13159_v46  ;;  %v6050_v44 = vpop.permute.xlu1 %6049 }
 0x9ea   : > { %6107 = vmatmul.mubr.bf16.gmra.mxu0 %v6663_v18 }
 0xaa2   : > { %v6098_v12 = vpop.f32.mrf.mxu0 }
 0xaa3   : > { %v6099_v37 = vadd.f32 %v6098_v12, %v6035_v5 }
 0xaa4   : > { %v6100_v53 = vpop.f32.mrf.mxu0 }
 0xaa5   : > { %v6117_v45 = vadd.f32 %v6099_v37, %v13160_v42  ;;  %v6101_v15 = vadd.f32 %v6100_v53, %v6035_v5 }
 0xaa6   : > { %v6102_v31 = vpop.f32.mrf.mxu0 }
 0xaa7   : > { %6125 = vst [vmem:[%s11598_s27] sm:$0xff] %v6117_v45  ;;  %v6118_v55 = vadd.f32 %v6101_v15, %v13161_v19  ;;  %v6103_v22 = vadd.f32 %v6102_v31, %v6040_v11 }
 0xaa8   : > { %v6104_v21 = vpop.f32.mrf.mxu0 }
 0xaa9   : > { %6126 = vst [vmem:[%s11598_s27 + $0x8] sm:$0xff] %v6118_v55  ;;  %v6119_v54 = vadd.f32 %v6103_v22, %v13162_v56  ;;  %v6105_v32 = vadd.f32 %v6104_v21, %v6040_v11 }
 0xaaa   : > { %v6108_v34 = vpop.f32.mrf.mxu0 }
 0xaab   : > { %6127 = vst [vmem:[%s11598_s27 + $0x10] sm:$0xff] %v6119_v54  ;;  %v6120_v4 = vadd.f32 %v6105_v32, %v13163_v3  ;;  %v6109_v1 = vadd.f32 %v6108_v34, %v6045_v20 }
 0xaac   : > { %v6110_v29 = vpop.f32.mrf.mxu0 }
 0xaad   : > { %6128 = vst [vmem:[%s11598_s27 + $0x18] sm:$0xff] %v6120_v4  ;;  %v6121_v38 = vadd.f32 %v6109_v1, %v13164_v8  ;;  %v6111_v33 = vadd.f32 %v6110_v29, %v6045_v20 }
 0xaae   : > { %v6112_v10 = vpop.f32.mrf.mxu0 }
 0xaaf   : > { %6129 = vst [vmem:[%s11598_s27 + $0x20] sm:$0xff] %v6121_v38  ;;  %v6122_v39 = vadd.f32 %v6111_v33, %v13165_v7  ;;  %v6113_v62 = vadd.f32 %v6112_v10, %v6050_v44 }
 0xab0   : > { %v6114_v41 = vpop.f32.mrf.mxu0 }
 0xab1   : > { %6130 = vst [vmem:[%s11598_s27 + $0x28] sm:$0xff] %v6122_v39  ;;  %v6123_v17 = vadd.f32 %v6113_v62, %v13166_v63  ;;  %v6115_v35 = vadd.f32 %v6114_v41, %v6050_v44 }
 0xab3   : > { %6131 = vst [vmem:[%s11598_s27 + $0x30] sm:$0xff] %v6123_v17  ;;  %v6124_v50 = vadd.f32 %v6115_v35, %v13167_v52 }
 0xab5   : > { %6132 = vst [vmem:[%s11598_s27 + $0x38] sm:$0xff] %v6124_v50 }
 0xab6 PF: > { %s25_s18 = sadd.s32 1, %s7518_s18  }
 0xab7   : > { %p22_p4 = scmp.ge.s32.totalorder %s25_s18, 4  }
 0xab9   :  { %24 = sbr.rel (!%p22_p4) target bundleno = 1 (0x1), region = 113 }

</bundles_post_ra>
